<compile_context>
chip_gen: v7x
topology: tpu7x:2x2x1
jax: 0.10.0
libtpu: 0.0.40
codegen_flags: <defaults>
</compile_context>

<pallas_src>
import jax
import jax.numpy as jnp
import numpy as np
from jax import lax
from jax.experimental import pallas as pl
from jax.experimental.pallas import tpu as pltpu


def _round_up(x, m):
    return (x + m - 1) // m * m


# ----------------------------- Pallas kernel -------------------------------
def _up_double_conv_kernel(x2p_ref, x1p_ref, w1a_ref, w1b_ref, b1_ref,
                           w2_ref, b2_ref, o_ref, hpad_ref):
    # x2p_ref: (H+2, W+2, C2)  bf16  skip connection, spatially padded by 1
    # x1p_ref: (H+2, W+2, C1)  bf16  upsampled x1, diff-pad + 1-pixel halo
    # w1a_ref: (9, C2, M)      bf16  stage-1 weights for the x2 channel slab
    # w1b_ref: (9, C1, M)      bf16  stage-1 weights for the x1 channel slab
    # b1_ref : (1, M)          f32   BN1-folded bias
    # w2_ref : (9, M, Kout)    bf16  stage-2 weights (BN2 folded)
    # b2_ref : (1, Kout)       f32
    # o_ref  : (H, W, Kout)    f32   (batch dim squeezed by BlockSpec)
    # hpad_ref: VMEM (H+2, W+2, M) bf16 scratch for the padded mid activation
    H, W, Kout = o_ref.shape
    C2 = x2p_ref.shape[2]
    C1 = x1p_ref.shape[2]
    M = hpad_ref.shape[2]

    # ---- stage 1: conv3x3(concat(x2, up(x1))) -> folded-BN bias -> ReLU ----
    # The channel concat is fused into the matmul: conv over the concat equals
    # the sum of two convs over the separate slabs, so the concatenated tensor
    # is never built.  9 taps x 2 inputs = 18 shifted matmuls, f32 accumulate.
    acc1 = jnp.zeros((H * W, M), jnp.float32)
    for ky in range(3):
        for kx in range(3):
            t = 3 * ky + kx
            a2 = x2p_ref[ky:ky + H, kx:kx + W, :].reshape(H * W, C2)
            a1 = x1p_ref[ky:ky + H, kx:kx + W, :].reshape(H * W, C1)
            acc1 = acc1 + jnp.dot(a2, w1a_ref[t],
                                  preferred_element_type=jnp.float32)
            acc1 = acc1 + jnp.dot(a1, w1b_ref[t],
                                  preferred_element_type=jnp.float32)
    h1 = jnp.maximum(acc1 + b1_ref[...], 0.0)            # (H*W, M) f32

    # ---- stage 2: conv3x3 -> folded-BN bias -> ReLU ----
    # Mid activation stays in VMEM (bf16), never touches HBM.  Only the
    # 1-pixel halo ring of the scratch is zeroed; it is done every grid step
    # (not once) because scratch contents are undefined on a core's first
    # step and the "parallel" batch axis may be split across TensorCores.
    zrow = jnp.zeros((1, W + 2, M), jnp.bfloat16)
    zcol = jnp.zeros((H + 2, 1, M), jnp.bfloat16)
    hpad_ref[0:1, :, :] = zrow
    hpad_ref[H + 1:H + 2, :, :] = zrow
    hpad_ref[:, 0:1, :] = zcol
    hpad_ref[:, W + 1:W + 2, :] = zcol
    # TODO(synk): pltpu.roll-based shifts would avoid this offset-by-1 write.
    hpad_ref[1:H + 1, 1:W + 1, :] = h1.reshape(H, W, M).astype(jnp.bfloat16)

    acc2 = jnp.zeros((H * W, Kout), jnp.float32)
    for ky in range(3):
        for kx in range(3):
            t = 3 * ky + kx
            a = hpad_ref[ky:ky + H, kx:kx + W, :].reshape(H * W, M)
            acc2 = acc2 + jnp.dot(a, w2_ref[t],
                                  preferred_element_type=jnp.float32)
    h2 = jnp.maximum(acc2 + b2_ref[...], 0.0)             # (H*W, Kout) f32

    # Only the real out-channels are written back (no 128-padded f32 slab).
    o_ref[...] = h2.reshape(H, W, Kout).astype(o_ref.dtype)


def double_conv_pallas(x2p, x1p, w1a, w1b, b1, w2, b2, H, W):
    """Fused concat + DoubleConv.  x2p/x1p: (N, H+2, W+2, C) bf16, pre-padded."""
    N, Hp, Wp, C2 = x2p.shape
    C1 = x1p.shape[3]
    Mp, Kout = w2.shape[1], w2.shape[2]
    return pl.pallas_call(
        _up_double_conv_kernel,
        out_shape=jax.ShapeDtypeStruct((N, H, W, Kout), jnp.float32),
        grid_spec=pltpu.PrefetchScalarGridSpec(
            num_scalar_prefetch=0,
            grid=(N,),
            in_specs=[
                pl.BlockSpec((None, Hp, Wp, C2), lambda n: (n, 0, 0, 0)),
                pl.BlockSpec((None, Hp, Wp, C1), lambda n: (n, 0, 0, 0)),
                # Grid-invariant weights / biases (tiny at this config).
                pl.BlockSpec((9, C2, Mp), lambda n: (0, 0, 0)),
                pl.BlockSpec((9, C1, Mp), lambda n: (0, 0, 0)),
                pl.BlockSpec((1, Mp), lambda n: (0, 0)),
                pl.BlockSpec((9, Mp, Kout), lambda n: (0, 0, 0)),
                pl.BlockSpec((1, Kout), lambda n: (0, 0)),
            ],
            out_specs=pl.BlockSpec((None, H, W, Kout), lambda n: (n, 0, 0, 0)),
            scratch_shapes=[pltpu.VMEM((Hp, Wp, Mp), jnp.bfloat16)],
        ),
        compiler_params=pltpu.CompilerParams(
            dimension_semantics=("parallel",),
            vmem_limit_bytes=32 * 1024 * 1024),  # explicit; v5e default is 16 MiB
    )(x2p, x1p, w1a, w1b, b1, w2, b2)


# ------------------------------- JAX glue ----------------------------------
def _interp_matrix(n_in, n_out):
    """Static bilinear (align_corners=True) interpolation matrix (n_out, n_in)."""
    if n_in == 1:
        return jnp.ones((n_out, 1), jnp.float32)
    pos = np.arange(n_out, dtype=np.float64) * (n_in - 1) / (n_out - 1)
    i0 = np.floor(pos).astype(np.int64)
    i1 = np.minimum(i0 + 1, n_in - 1)
    frac = pos - i0
    A = np.zeros((n_out, n_in), np.float64)
    A[np.arange(n_out), i0] += 1.0 - frac
    A[np.arange(n_out), i1] += frac
    return jnp.asarray(A, dtype=jnp.float32)


def _fold_bn(conv_b, gamma, beta, mean, var, eps=1e-5):
    s = gamma / jnp.sqrt(var + eps)
    return s, beta + (conv_b - mean) * s


def _prep_stage1(w_hwio, conv_b, gamma, beta, mean, var, c_split, m_pad,
                 eps=1e-5):
    """Stage-1 conv, BN folded, split into the x2 / x1 channel slabs.

    Returns (w_a, w_b, bias): w_a (9, c_split, m_pad), w_b (9, cin-c_split,
    m_pad) bf16 in tap-major order; bias (1, m_pad) f32.  Padded mid channels
    get zero weight / bias so they stay exactly zero through ReLU.
    """
    s, b = _fold_bn(conv_b, gamma, beta, mean, var, eps)
    mid = w_hwio.shape[3]
    w = w_hwio * s[None, None, None, :]
    w = jnp.pad(w, ((0, 0), (0, 0), (0, 0), (0, m_pad - mid)))
    w = w.reshape(9, w.shape[2], m_pad).astype(jnp.bfloat16)
    bias = jnp.pad(b, (0, m_pad - mid)).reshape(1, m_pad).astype(jnp.float32)
    return w[:, :c_split, :], w[:, c_split:, :], bias


def _prep_stage2(w_hwio, conv_b, gamma, beta, mean, var, m_pad, eps=1e-5):
    """Stage-2 conv, BN folded.  Returns w (9, m_pad, out) bf16, b (1, out) f32."""
    s, b = _fold_bn(conv_b, gamma, beta, mean, var, eps)
    mid, out_ch = w_hwio.shape[2], w_hwio.shape[3]
    w = w_hwio * s[None, None, None, :]
    w = jnp.pad(w, ((0, 0), (0, 0), (0, m_pad - mid), (0, 0)))
    w = w.reshape(9, m_pad, out_ch).astype(jnp.bfloat16)
    return w, b.reshape(1, out_ch).astype(jnp.float32)


def up_forward(params, x1, x2):
    """Up.forward: upsample x1, pad, concat with x2 (channels), DoubleConv."""
    N, C1, h, w = x1.shape
    _, C2, H, W = x2.shape
    # NCHW -> NHWC once at the boundary (inputs follow the PyTorch convention).
    x1 = jnp.transpose(x1, (0, 2, 3, 1))
    x2 = jnp.transpose(x2, (0, 2, 3, 1))

    # Bilinear x2 upsample (align_corners=True) as two static interpolation
    # matmuls -- no gathers.
    Ah = _interp_matrix(h, 2 * h)
    Aw = _interp_matrix(w, 2 * w)
    x1u = jnp.einsum('Hh,nhwc->nHwc', Ah, x1)
    x1u = jnp.einsum('Ww,nhwc->nhWc', Aw, x1u)

    diffY = H - x1u.shape[1]
    diffX = W - x1u.shape[2]
    # Fuse the Up "diff" pad and the conv-1 1-pixel halo pad into one op, so
    # the kernel never does offset-by-1 interior writes for stage 1.  Real
    # channel counts are kept (no pad-to-128); the concat is fused in-kernel.
    x1p = jnp.pad(x1u, ((0, 0),
                        (1 + diffY // 2, 1 + diffY - diffY // 2),
                        (1 + diffX // 2, 1 + diffX - diffX // 2),
                        (0, 0))).astype(jnp.bfloat16)
    x2p = jnp.pad(x2, ((0, 0), (1, 1), (1, 1), (0, 0))).astype(jnp.bfloat16)

    mid = params['w1'].shape[3]
    # mid is the stage-2 contraction dim: pad only to the bf16 sublane multiple.
    Mp = _round_up(mid, 16)
    w1a, w1b, b1 = _prep_stage1(params['w1'], params['b1'], params['g1'],
                                params['beta1'], params['m1'], params['v1'],
                                C2, Mp)
    w2, b2 = _prep_stage2(params['w2'], params['b2'], params['g2'],
                          params['beta2'], params['m2'], params['v2'], Mp)

    y = double_conv_pallas(x2p, x1p, w1a, w1b, b1, w2, b2, H, W)  # (N,H,W,out)
    return jnp.transpose(y, (0, 3, 1, 2))                          # back to NCHW


# ----------------------- pure-JAX reference (check) -------------------------
def _bilinear_up2_ref(x):
    """Gather-based reference upsample, NCHW, align_corners=True."""
    N, C, H, W = x.shape
    Ho, Wo = 2 * H, 2 * W
    ys = jnp.arange(Ho, dtype=jnp.float32) * (H - 1) / (Ho - 1)
    xs = jnp.arange(Wo, dtype=jnp.float32) * (W - 1) / (Wo - 1)
    y0 = jnp.floor(ys).astype(jnp.int32)
    x0 = jnp.floor(xs).astype(jnp.int32)
    y1 = jnp.clip(y0 + 1, 0, H - 1)
    x1 = jnp.clip(x0 + 1, 0, W - 1)
    wy = (ys - y0.astype(jnp.float32))[None, None, :, None]
    wx = (xs - x0.astype(jnp.float32))[None, None, None, :]
    g = lambda yi, xi: x[:, :, yi, :][:, :, :, xi]
    return (g(y0, x0) * (1 - wy) * (1 - wx) + g(y0, x1) * (1 - wy) * wx +
            g(y1, x0) * wy * (1 - wx) + g(y1, x1) * wy * wx)


def _ref_conv_bn_relu(x_nchw, w_hwio, cb, g, beta, m, v, eps=1e-5):
    w_oihw = jnp.transpose(w_hwio, (3, 2, 0, 1))
    y = lax.conv_general_dilated(x_nchw, w_oihw, (1, 1), 'SAME',
                                 dimension_numbers=('NCHW', 'OIHW', 'NCHW'))
    y = y + cb[None, :, None, None]
    y = ((y - m[None, :, None, None]) / jnp.sqrt(v[None, :, None, None] + eps)
         * g[None, :, None, None] + beta[None, :, None, None])
    return jnp.maximum(y, 0.0)


def up_forward_ref(params, x1, x2):
    x1u = _bilinear_up2_ref(x1)
    diffY = x2.shape[2] - x1u.shape[2]
    diffX = x2.shape[3] - x1u.shape[3]
    x1u = jnp.pad(x1u, ((0, 0), (0, 0),
                        (diffY // 2, diffY - diffY // 2),
                        (diffX // 2, diffX - diffX // 2)))
    x = jnp.concatenate([x2, x1u], axis=1)
    h = _ref_conv_bn_relu(x, params['w1'], params['b1'], params['g1'],
                          params['beta1'], params['m1'], params['v1'])
    h = _ref_conv_bn_relu(h, params['w2'], params['b2'], params['g2'],
                          params['beta2'], params['m2'], params['v2'])
    return h


# ---------------------------------- main ------------------------------------
def init_params(key, in_channels, out_channels):
    mid = out_channels  # DoubleConv with default mid_channels
    ks = jax.random.split(key, 8)
    # conv weights in PyTorch OIHW, stored as HWIO for the kernel
    w1 = 0.1 * jax.random.normal(ks[0], (mid, in_channels, 3, 3), jnp.float32)
    w2 = 0.1 * jax.random.normal(ks[1], (out_channels, mid, 3, 3), jnp.float32)
    return dict(
        w1=jnp.transpose(w1, (2, 3, 1, 0)),
        b1=0.05 * jax.random.normal(ks[2], (mid,), jnp.float32),
        g1=1.0 + 0.1 * jax.random.normal(ks[3], (mid,), jnp.float32),
        beta1=0.05 * jax.random.normal(ks[4], (mid,), jnp.float32),
        m1=jnp.zeros((mid,), jnp.float32),
        v1=jnp.ones((mid,), jnp.float32),
        w2=jnp.transpose(w2, (2, 3, 1, 0)),
        b2=0.05 * jax.random.normal(ks[5], (out_channels,), jnp.float32),
        g2=1.0 + 0.1 * jax.random.normal(ks[6], (out_channels,), jnp.float32),
        beta2=0.05 * jax.random.normal(ks[7], (out_channels,), jnp.float32),
        m2=jnp.zeros((out_channels,), jnp.float32),
        v2=jnp.ones((out_channels,), jnp.float32),
    )


if __name__ == "__main__":
    key = jax.random.PRNGKey(0)
    k1, k2, kp = jax.random.split(key, 3)

    in_channels, out_channels = 8, 4          # Up(8, 4, bilinear=True)
    N, H, W = 2, 16, 16
    # x1 comes from the deeper level: in_channels//2 channels, half spatial res
    x1 = jax.random.normal(k1, (N, in_channels // 2, H // 2, W // 2), jnp.float32)
    # x2 is the skip connection: in_channels//2 channels, full spatial res
    x2 = jax.random.normal(k2, (N, in_channels // 2, H, W), jnp.float32)

    params = init_params(kp, in_channels, out_channels)

    out = jax.block_until_ready(jax.jit(up_forward)(params, x1, x2))
    ref = jax.block_until_ready(jax.jit(up_forward_ref)(params, x1, x2))

    assert out.shape == (N, out_channels, H, W), out.shape
    # bf16 MXU operands (f32 accumulation) vs the f32 XLA reference.
    np.testing.assert_allclose(np.asarray(out), np.asarray(ref),
                               rtol=2e-2, atol=2e-2)
    print("KERNEL_OK")
</pallas_src>

<mosaic_0001>
module attributes {stable_mosaic.version = 11 : i64} {
  func.func @_up_double_conv_kernel(%arg0: i32, %arg1: memref<1x18x18x4xbf16, #tpu.memory_space<vmem>>, %arg2: memref<1x18x18x4xbf16, #tpu.memory_space<vmem>>, %arg3: memref<9x4x16xbf16, #tpu.memory_space<vmem>>, %arg4: memref<9x4x16xbf16, #tpu.memory_space<vmem>>, %arg5: memref<1x16xf32, #tpu.memory_space<vmem>>, %arg6: memref<9x16x4xbf16, #tpu.memory_space<vmem>>, %arg7: memref<1x4xf32, #tpu.memory_space<vmem>>, %arg8: memref<1x16x16x4xf32, #tpu.memory_space<vmem>>, %arg9: memref<18x18x16xbf16, #tpu.memory_space<vmem>>) attributes {dimension_semantics = [#tpu.dimension_semantics<parallel>], iteration_bounds = array<i64: 2>, scalar_prefetch = 0 : i64, scratch_operands = 1 : i64, tpu.core_type = #tpu.core_type<tc>, window_params = [{transform_indices = @transform_0, window_bounds = array<i64: 1, 18, 18, 4>}, {transform_indices = @transform_1, window_bounds = array<i64: 1, 18, 18, 4>}, {pipeline_mode = #tpu.pipeline_mode<synchronous>, transform_indices = @transform_2, window_bounds = array<i64: 9, 4, 16>}, {pipeline_mode = #tpu.pipeline_mode<synchronous>, transform_indices = @transform_3, window_bounds = array<i64: 9, 4, 16>}, {pipeline_mode = #tpu.pipeline_mode<synchronous>, transform_indices = @transform_4, window_bounds = array<i64: 1, 16>}, {pipeline_mode = #tpu.pipeline_mode<synchronous>, transform_indices = @transform_5, window_bounds = array<i64: 9, 16, 4>}, {pipeline_mode = #tpu.pipeline_mode<synchronous>, transform_indices = @transform_6, window_bounds = array<i64: 1, 4>}, {transform_indices = @transform_7, window_bounds = array<i64: 1, 16, 16, 4>}]} {
    %cst = arith.constant 0.000000e+00 : f32
    %0 = vector.broadcast %cst : f32 to vector<256x16xf32>
    %c0 = arith.constant 0 : index
    %c0_0 = arith.constant 0 : index
    %c0_1 = arith.constant 0 : index
    %c0_2 = arith.constant 0 : index
    %1 = vector.load %arg1[%c0, %c0_0, %c0_1, %c0_2] : memref<1x18x18x4xbf16, #tpu.memory_space<vmem>>, vector<1x16x16x4xbf16>
    %2 = vector.shape_cast %1 : vector<1x16x16x4xbf16> to vector<16x16x4xbf16>
    %3 = vector.shape_cast %2 : vector<16x16x4xbf16> to vector<256x4xbf16>
    %c0_3 = arith.constant 0 : index
    %c0_4 = arith.constant 0 : index
    %c0_5 = arith.constant 0 : index
    %c0_6 = arith.constant 0 : index
    %4 = vector.load %arg2[%c0_3, %c0_4, %c0_5, %c0_6] : memref<1x18x18x4xbf16, #tpu.memory_space<vmem>>, vector<1x16x16x4xbf16>
    %5 = vector.shape_cast %4 : vector<1x16x16x4xbf16> to vector<16x16x4xbf16>
    %6 = vector.shape_cast %5 : vector<16x16x4xbf16> to vector<256x4xbf16>
    %c0_7 = arith.constant 0 : index
    %c0_8 = arith.constant 0 : index
    %c0_9 = arith.constant 0 : index
    %7 = vector.load %arg3[%c0_7, %c0_8, %c0_9] : memref<9x4x16xbf16, #tpu.memory_space<vmem>>, vector<1x4x16xbf16>
    %8 = vector.shape_cast %7 : vector<1x4x16xbf16> to vector<4x16xbf16>
    %cst_10 = arith.constant dense<0.000000e+00> : vector<256x16xf32>
    %9 = tpu.matmul %3, %8, %cst_10 {dimension_numbers = #tpu.dot_dimension_numbers<[1], [0], [0], [1], [0, 0, 1, 1], [], []>} : vector<256x4xbf16>, vector<4x16xbf16>, vector<256x16xf32> -> vector<256x16xf32>
    %10 = arith.addf %0, %9 : vector<256x16xf32>
    %c0_11 = arith.constant 0 : index
    %c0_12 = arith.constant 0 : index
    %c0_13 = arith.constant 0 : index
    %11 = vector.load %arg4[%c0_11, %c0_12, %c0_13] : memref<9x4x16xbf16, #tpu.memory_space<vmem>>, vector<1x4x16xbf16>
    %12 = vector.shape_cast %11 : vector<1x4x16xbf16> to vector<4x16xbf16>
    %cst_14 = arith.constant dense<0.000000e+00> : vector<256x16xf32>
    %13 = tpu.matmul %6, %12, %cst_14 {dimension_numbers = #tpu.dot_dimension_numbers<[1], [0], [0], [1], [0, 0, 1, 1], [], []>} : vector<256x4xbf16>, vector<4x16xbf16>, vector<256x16xf32> -> vector<256x16xf32>
    %14 = arith.addf %10, %13 : vector<256x16xf32>
    %c0_15 = arith.constant 0 : index
    %c0_16 = arith.constant 0 : index
    %c1 = arith.constant 1 : index
    %c0_17 = arith.constant 0 : index
    %15 = vector.load %arg1[%c0_15, %c0_16, %c1, %c0_17] : memref<1x18x18x4xbf16, #tpu.memory_space<vmem>>, vector<1x16x16x4xbf16>
    %16 = vector.shape_cast %15 : vector<1x16x16x4xbf16> to vector<16x16x4xbf16>
    %17 = vector.shape_cast %16 : vector<16x16x4xbf16> to vector<256x4xbf16>
    %c0_18 = arith.constant 0 : index
    %c0_19 = arith.constant 0 : index
    %c1_20 = arith.constant 1 : index
    %c0_21 = arith.constant 0 : index
    %18 = vector.load %arg2[%c0_18, %c0_19, %c1_20, %c0_21] : memref<1x18x18x4xbf16, #tpu.memory_space<vmem>>, vector<1x16x16x4xbf16>
    %19 = vector.shape_cast %18 : vector<1x16x16x4xbf16> to vector<16x16x4xbf16>
    %20 = vector.shape_cast %19 : vector<16x16x4xbf16> to vector<256x4xbf16>
    %c1_22 = arith.constant 1 : index
    %c0_23 = arith.constant 0 : index
    %c0_24 = arith.constant 0 : index
    %21 = vector.load %arg3[%c1_22, %c0_23, %c0_24] : memref<9x4x16xbf16, #tpu.memory_space<vmem>>, vector<1x4x16xbf16>
    %22 = vector.shape_cast %21 : vector<1x4x16xbf16> to vector<4x16xbf16>
    %cst_25 = arith.constant dense<0.000000e+00> : vector<256x16xf32>
    %23 = tpu.matmul %17, %22, %cst_25 {dimension_numbers = #tpu.dot_dimension_numbers<[1], [0], [0], [1], [0, 0, 1, 1], [], []>} : vector<256x4xbf16>, vector<4x16xbf16>, vector<256x16xf32> -> vector<256x16xf32>
    %24 = arith.addf %14, %23 : vector<256x16xf32>
    %c1_26 = arith.constant 1 : index
    %c0_27 = arith.constant 0 : index
    %c0_28 = arith.constant 0 : index
    %25 = vector.load %arg4[%c1_26, %c0_27, %c0_28] : memref<9x4x16xbf16, #tpu.memory_space<vmem>>, vector<1x4x16xbf16>
    %26 = vector.shape_cast %25 : vector<1x4x16xbf16> to vector<4x16xbf16>
    %cst_29 = arith.constant dense<0.000000e+00> : vector<256x16xf32>
    %27 = tpu.matmul %20, %26, %cst_29 {dimension_numbers = #tpu.dot_dimension_numbers<[1], [0], [0], [1], [0, 0, 1, 1], [], []>} : vector<256x4xbf16>, vector<4x16xbf16>, vector<256x16xf32> -> vector<256x16xf32>
    %28 = arith.addf %24, %27 : vector<256x16xf32>
    %c0_30 = arith.constant 0 : index
    %c0_31 = arith.constant 0 : index
    %c2 = arith.constant 2 : index
    %c0_32 = arith.constant 0 : index
    %29 = vector.load %arg1[%c0_30, %c0_31, %c2, %c0_32] : memref<1x18x18x4xbf16, #tpu.memory_space<vmem>>, vector<1x16x16x4xbf16>
    %30 = vector.shape_cast %29 : vector<1x16x16x4xbf16> to vector<16x16x4xbf16>
    %31 = vector.shape_cast %30 : vector<16x16x4xbf16> to vector<256x4xbf16>
    %c0_33 = arith.constant 0 : index
    %c0_34 = arith.constant 0 : index
    %c2_35 = arith.constant 2 : index
    %c0_36 = arith.constant 0 : index
    %32 = vector.load %arg2[%c0_33, %c0_34, %c2_35, %c0_36] : memref<1x18x18x4xbf16, #tpu.memory_space<vmem>>, vector<1x16x16x4xbf16>
    %33 = vector.shape_cast %32 : vector<1x16x16x4xbf16> to vector<16x16x4xbf16>
    %34 = vector.shape_cast %33 : vector<16x16x4xbf16> to vector<256x4xbf16>
    %c2_37 = arith.constant 2 : index
    %c0_38 = arith.constant 0 : index
    %c0_39 = arith.constant 0 : index
    %35 = vector.load %arg3[%c2_37, %c0_38, %c0_39] : memref<9x4x16xbf16, #tpu.memory_space<vmem>>, vector<1x4x16xbf16>
    %36 = vector.shape_cast %35 : vector<1x4x16xbf16> to vector<4x16xbf16>
    %cst_40 = arith.constant dense<0.000000e+00> : vector<256x16xf32>
    %37 = tpu.matmul %31, %36, %cst_40 {dimension_numbers = #tpu.dot_dimension_numbers<[1], [0], [0], [1], [0, 0, 1, 1], [], []>} : vector<256x4xbf16>, vector<4x16xbf16>, vector<256x16xf32> -> vector<256x16xf32>
    %38 = arith.addf %28, %37 : vector<256x16xf32>
    %c2_41 = arith.constant 2 : index
    %c0_42 = arith.constant 0 : index
    %c0_43 = arith.constant 0 : index
    %39 = vector.load %arg4[%c2_41, %c0_42, %c0_43] : memref<9x4x16xbf16, #tpu.memory_space<vmem>>, vector<1x4x16xbf16>
    %40 = vector.shape_cast %39 : vector<1x4x16xbf16> to vector<4x16xbf16>
    %cst_44 = arith.constant dense<0.000000e+00> : vector<256x16xf32>
    %41 = tpu.matmul %34, %40, %cst_44 {dimension_numbers = #tpu.dot_dimension_numbers<[1], [0], [0], [1], [0, 0, 1, 1], [], []>} : vector<256x4xbf16>, vector<4x16xbf16>, vector<256x16xf32> -> vector<256x16xf32>
    %42 = arith.addf %38, %41 : vector<256x16xf32>
    %c0_45 = arith.constant 0 : index
    %c1_46 = arith.constant 1 : index
    %c0_47 = arith.constant 0 : index
    %c0_48 = arith.constant 0 : index
    %43 = vector.load %arg1[%c0_45, %c1_46, %c0_47, %c0_48] : memref<1x18x18x4xbf16, #tpu.memory_space<vmem>>, vector<1x16x16x4xbf16>
    %44 = vector.shape_cast %43 : vector<1x16x16x4xbf16> to vector<16x16x4xbf16>
    %45 = vector.shape_cast %44 : vector<16x16x4xbf16> to vector<256x4xbf16>
    %c0_49 = arith.constant 0 : index
    %c1_50 = arith.constant 1 : index
    %c0_51 = arith.constant 0 : index
    %c0_52 = arith.constant 0 : index
    %46 = vector.load %arg2[%c0_49, %c1_50, %c0_51, %c0_52] : memref<1x18x18x4xbf16, #tpu.memory_space<vmem>>, vector<1x16x16x4xbf16>
    %47 = vector.shape_cast %46 : vector<1x16x16x4xbf16> to vector<16x16x4xbf16>
    %48 = vector.shape_cast %47 : vector<16x16x4xbf16> to vector<256x4xbf16>
    %c3 = arith.constant 3 : index
    %c0_53 = arith.constant 0 : index
    %c0_54 = arith.constant 0 : index
    %49 = vector.load %arg3[%c3, %c0_53, %c0_54] : memref<9x4x16xbf16, #tpu.memory_space<vmem>>, vector<1x4x16xbf16>
    %50 = vector.shape_cast %49 : vector<1x4x16xbf16> to vector<4x16xbf16>
    %cst_55 = arith.constant dense<0.000000e+00> : vector<256x16xf32>
    %51 = tpu.matmul %45, %50, %cst_55 {dimension_numbers = #tpu.dot_dimension_numbers<[1], [0], [0], [1], [0, 0, 1, 1], [], []>} : vector<256x4xbf16>, vector<4x16xbf16>, vector<256x16xf32> -> vector<256x16xf32>
    %52 = arith.addf %42, %51 : vector<256x16xf32>
    %c3_56 = arith.constant 3 : index
    %c0_57 = arith.constant 0 : index
    %c0_58 = arith.constant 0 : index
    %53 = vector.load %arg4[%c3_56, %c0_57, %c0_58] : memref<9x4x16xbf16, #tpu.memory_space<vmem>>, vector<1x4x16xbf16>
    %54 = vector.shape_cast %53 : vector<1x4x16xbf16> to vector<4x16xbf16>
    %cst_59 = arith.constant dense<0.000000e+00> : vector<256x16xf32>
    %55 = tpu.matmul %48, %54, %cst_59 {dimension_numbers = #tpu.dot_dimension_numbers<[1], [0], [0], [1], [0, 0, 1, 1], [], []>} : vector<256x4xbf16>, vector<4x16xbf16>, vector<256x16xf32> -> vector<256x16xf32>
    %56 = arith.addf %52, %55 : vector<256x16xf32>
    %c0_60 = arith.constant 0 : index
    %c1_61 = arith.constant 1 : index
    %c1_62 = arith.constant 1 : index
    %c0_63 = arith.constant 0 : index
    %57 = vector.load %arg1[%c0_60, %c1_61, %c1_62, %c0_63] : memref<1x18x18x4xbf16, #tpu.memory_space<vmem>>, vector<1x16x16x4xbf16>
    %58 = vector.shape_cast %57 : vector<1x16x16x4xbf16> to vector<16x16x4xbf16>
    %59 = vector.shape_cast %58 : vector<16x16x4xbf16> to vector<256x4xbf16>
    %c0_64 = arith.constant 0 : index
    %c1_65 = arith.constant 1 : index
    %c1_66 = arith.constant 1 : index
    %c0_67 = arith.constant 0 : index
    %60 = vector.load %arg2[%c0_64, %c1_65, %c1_66, %c0_67] : memref<1x18x18x4xbf16, #tpu.memory_space<vmem>>, vector<1x16x16x4xbf16>
    %61 = vector.shape_cast %60 : vector<1x16x16x4xbf16> to vector<16x16x4xbf16>
    %62 = vector.shape_cast %61 : vector<16x16x4xbf16> to vector<256x4xbf16>
    %c4 = arith.constant 4 : index
    %c0_68 = arith.constant 0 : index
    %c0_69 = arith.constant 0 : index
    %63 = vector.load %arg3[%c4, %c0_68, %c0_69] : memref<9x4x16xbf16, #tpu.memory_space<vmem>>, vector<1x4x16xbf16>
    %64 = vector.shape_cast %63 : vector<1x4x16xbf16> to vector<4x16xbf16>
    %cst_70 = arith.constant dense<0.000000e+00> : vector<256x16xf32>
    %65 = tpu.matmul %59, %64, %cst_70 {dimension_numbers = #tpu.dot_dimension_numbers<[1], [0], [0], [1], [0, 0, 1, 1], [], []>} : vector<256x4xbf16>, vector<4x16xbf16>, vector<256x16xf32> -> vector<256x16xf32>
    %66 = arith.addf %56, %65 : vector<256x16xf32>
    %c4_71 = arith.constant 4 : index
    %c0_72 = arith.constant 0 : index
    %c0_73 = arith.constant 0 : index
    %67 = vector.load %arg4[%c4_71, %c0_72, %c0_73] : memref<9x4x16xbf16, #tpu.memory_space<vmem>>, vector<1x4x16xbf16>
    %68 = vector.shape_cast %67 : vector<1x4x16xbf16> to vector<4x16xbf16>
    %cst_74 = arith.constant dense<0.000000e+00> : vector<256x16xf32>
    %69 = tpu.matmul %62, %68, %cst_74 {dimension_numbers = #tpu.dot_dimension_numbers<[1], [0], [0], [1], [0, 0, 1, 1], [], []>} : vector<256x4xbf16>, vector<4x16xbf16>, vector<256x16xf32> -> vector<256x16xf32>
    %70 = arith.addf %66, %69 : vector<256x16xf32>
    %c0_75 = arith.constant 0 : index
    %c1_76 = arith.constant 1 : index
    %c2_77 = arith.constant 2 : index
    %c0_78 = arith.constant 0 : index
    %71 = vector.load %arg1[%c0_75, %c1_76, %c2_77, %c0_78] : memref<1x18x18x4xbf16, #tpu.memory_space<vmem>>, vector<1x16x16x4xbf16>
    %72 = vector.shape_cast %71 : vector<1x16x16x4xbf16> to vector<16x16x4xbf16>
    %73 = vector.shape_cast %72 : vector<16x16x4xbf16> to vector<256x4xbf16>
    %c0_79 = arith.constant 0 : index
    %c1_80 = arith.constant 1 : index
    %c2_81 = arith.constant 2 : index
    %c0_82 = arith.constant 0 : index
    %74 = vector.load %arg2[%c0_79, %c1_80, %c2_81, %c0_82] : memref<1x18x18x4xbf16, #tpu.memory_space<vmem>>, vector<1x16x16x4xbf16>
    %75 = vector.shape_cast %74 : vector<1x16x16x4xbf16> to vector<16x16x4xbf16>
    %76 = vector.shape_cast %75 : vector<16x16x4xbf16> to vector<256x4xbf16>
    %c5 = arith.constant 5 : index
    %c0_83 = arith.constant 0 : index
    %c0_84 = arith.constant 0 : index
    %77 = vector.load %arg3[%c5, %c0_83, %c0_84] : memref<9x4x16xbf16, #tpu.memory_space<vmem>>, vector<1x4x16xbf16>
    %78 = vector.shape_cast %77 : vector<1x4x16xbf16> to vector<4x16xbf16>
    %cst_85 = arith.constant dense<0.000000e+00> : vector<256x16xf32>
    %79 = tpu.matmul %73, %78, %cst_85 {dimension_numbers = #tpu.dot_dimension_numbers<[1], [0], [0], [1], [0, 0, 1, 1], [], []>} : vector<256x4xbf16>, vector<4x16xbf16>, vector<256x16xf32> -> vector<256x16xf32>
    %80 = arith.addf %70, %79 : vector<256x16xf32>
    %c5_86 = arith.constant 5 : index
    %c0_87 = arith.constant 0 : index
    %c0_88 = arith.constant 0 : index
    %81 = vector.load %arg4[%c5_86, %c0_87, %c0_88] : memref<9x4x16xbf16, #tpu.memory_space<vmem>>, vector<1x4x16xbf16>
    %82 = vector.shape_cast %81 : vector<1x4x16xbf16> to vector<4x16xbf16>
    %cst_89 = arith.constant dense<0.000000e+00> : vector<256x16xf32>
    %83 = tpu.matmul %76, %82, %cst_89 {dimension_numbers = #tpu.dot_dimension_numbers<[1], [0], [0], [1], [0, 0, 1, 1], [], []>} : vector<256x4xbf16>, vector<4x16xbf16>, vector<256x16xf32> -> vector<256x16xf32>
    %84 = arith.addf %80, %83 : vector<256x16xf32>
    %c0_90 = arith.constant 0 : index
    %c2_91 = arith.constant 2 : index
    %c0_92 = arith.constant 0 : index
    %c0_93 = arith.constant 0 : index
    %85 = vector.load %arg1[%c0_90, %c2_91, %c0_92, %c0_93] : memref<1x18x18x4xbf16, #tpu.memory_space<vmem>>, vector<1x16x16x4xbf16>
    %86 = vector.shape_cast %85 : vector<1x16x16x4xbf16> to vector<16x16x4xbf16>
    %87 = vector.shape_cast %86 : vector<16x16x4xbf16> to vector<256x4xbf16>
    %c0_94 = arith.constant 0 : index
    %c2_95 = arith.constant 2 : index
    %c0_96 = arith.constant 0 : index
    %c0_97 = arith.constant 0 : index
    %88 = vector.load %arg2[%c0_94, %c2_95, %c0_96, %c0_97] : memref<1x18x18x4xbf16, #tpu.memory_space<vmem>>, vector<1x16x16x4xbf16>
    %89 = vector.shape_cast %88 : vector<1x16x16x4xbf16> to vector<16x16x4xbf16>
    %90 = vector.shape_cast %89 : vector<16x16x4xbf16> to vector<256x4xbf16>
    %c6 = arith.constant 6 : index
    %c0_98 = arith.constant 0 : index
    %c0_99 = arith.constant 0 : index
    %91 = vector.load %arg3[%c6, %c0_98, %c0_99] : memref<9x4x16xbf16, #tpu.memory_space<vmem>>, vector<1x4x16xbf16>
    %92 = vector.shape_cast %91 : vector<1x4x16xbf16> to vector<4x16xbf16>
    %cst_100 = arith.constant dense<0.000000e+00> : vector<256x16xf32>
    %93 = tpu.matmul %87, %92, %cst_100 {dimension_numbers = #tpu.dot_dimension_numbers<[1], [0], [0], [1], [0, 0, 1, 1], [], []>} : vector<256x4xbf16>, vector<4x16xbf16>, vector<256x16xf32> -> vector<256x16xf32>
    %94 = arith.addf %84, %93 : vector<256x16xf32>
    %c6_101 = arith.constant 6 : index
    %c0_102 = arith.constant 0 : index
    %c0_103 = arith.constant 0 : index
    %95 = vector.load %arg4[%c6_101, %c0_102, %c0_103] : memref<9x4x16xbf16, #tpu.memory_space<vmem>>, vector<1x4x16xbf16>
    %96 = vector.shape_cast %95 : vector<1x4x16xbf16> to vector<4x16xbf16>
    %cst_104 = arith.constant dense<0.000000e+00> : vector<256x16xf32>
    %97 = tpu.matmul %90, %96, %cst_104 {dimension_numbers = #tpu.dot_dimension_numbers<[1], [0], [0], [1], [0, 0, 1, 1], [], []>} : vector<256x4xbf16>, vector<4x16xbf16>, vector<256x16xf32> -> vector<256x16xf32>
    %98 = arith.addf %94, %97 : vector<256x16xf32>
    %c0_105 = arith.constant 0 : index
    %c2_106 = arith.constant 2 : index
    %c1_107 = arith.constant 1 : index
    %c0_108 = arith.constant 0 : index
    %99 = vector.load %arg1[%c0_105, %c2_106, %c1_107, %c0_108] : memref<1x18x18x4xbf16, #tpu.memory_space<vmem>>, vector<1x16x16x4xbf16>
    %100 = vector.shape_cast %99 : vector<1x16x16x4xbf16> to vector<16x16x4xbf16>
    %101 = vector.shape_cast %100 : vector<16x16x4xbf16> to vector<256x4xbf16>
    %c0_109 = arith.constant 0 : index
    %c2_110 = arith.constant 2 : index
    %c1_111 = arith.constant 1 : index
    %c0_112 = arith.constant 0 : index
    %102 = vector.load %arg2[%c0_109, %c2_110, %c1_111, %c0_112] : memref<1x18x18x4xbf16, #tpu.memory_space<vmem>>, vector<1x16x16x4xbf16>
    %103 = vector.shape_cast %102 : vector<1x16x16x4xbf16> to vector<16x16x4xbf16>
    %104 = vector.shape_cast %103 : vector<16x16x4xbf16> to vector<256x4xbf16>
    %c7 = arith.constant 7 : index
    %c0_113 = arith.constant 0 : index
    %c0_114 = arith.constant 0 : index
    %105 = vector.load %arg3[%c7, %c0_113, %c0_114] : memref<9x4x16xbf16, #tpu.memory_space<vmem>>, vector<1x4x16xbf16>
    %106 = vector.shape_cast %105 : vector<1x4x16xbf16> to vector<4x16xbf16>
    %cst_115 = arith.constant dense<0.000000e+00> : vector<256x16xf32>
    %107 = tpu.matmul %101, %106, %cst_115 {dimension_numbers = #tpu.dot_dimension_numbers<[1], [0], [0], [1], [0, 0, 1, 1], [], []>} : vector<256x4xbf16>, vector<4x16xbf16>, vector<256x16xf32> -> vector<256x16xf32>
    %108 = arith.addf %98, %107 : vector<256x16xf32>
    %c7_116 = arith.constant 7 : index
    %c0_117 = arith.constant 0 : index
    %c0_118 = arith.constant 0 : index
    %109 = vector.load %arg4[%c7_116, %c0_117, %c0_118] : memref<9x4x16xbf16, #tpu.memory_space<vmem>>, vector<1x4x16xbf16>
    %110 = vector.shape_cast %109 : vector<1x4x16xbf16> to vector<4x16xbf16>
    %cst_119 = arith.constant dense<0.000000e+00> : vector<256x16xf32>
    %111 = tpu.matmul %104, %110, %cst_119 {dimension_numbers = #tpu.dot_dimension_numbers<[1], [0], [0], [1], [0, 0, 1, 1], [], []>} : vector<256x4xbf16>, vector<4x16xbf16>, vector<256x16xf32> -> vector<256x16xf32>
    %112 = arith.addf %108, %111 : vector<256x16xf32>
    %c0_120 = arith.constant 0 : index
    %c2_121 = arith.constant 2 : index
    %c2_122 = arith.constant 2 : index
    %c0_123 = arith.constant 0 : index
    %113 = vector.load %arg1[%c0_120, %c2_121, %c2_122, %c0_123] : memref<1x18x18x4xbf16, #tpu.memory_space<vmem>>, vector<1x16x16x4xbf16>
    %114 = vector.shape_cast %113 : vector<1x16x16x4xbf16> to vector<16x16x4xbf16>
    %115 = vector.shape_cast %114 : vector<16x16x4xbf16> to vector<256x4xbf16>
    %c0_124 = arith.constant 0 : index
    %c2_125 = arith.constant 2 : index
    %c2_126 = arith.constant 2 : index
    %c0_127 = arith.constant 0 : index
    %116 = vector.load %arg2[%c0_124, %c2_125, %c2_126, %c0_127] : memref<1x18x18x4xbf16, #tpu.memory_space<vmem>>, vector<1x16x16x4xbf16>
    %117 = vector.shape_cast %116 : vector<1x16x16x4xbf16> to vector<16x16x4xbf16>
    %118 = vector.shape_cast %117 : vector<16x16x4xbf16> to vector<256x4xbf16>
    %c8 = arith.constant 8 : index
    %c0_128 = arith.constant 0 : index
    %c0_129 = arith.constant 0 : index
    %119 = vector.load %arg3[%c8, %c0_128, %c0_129] : memref<9x4x16xbf16, #tpu.memory_space<vmem>>, vector<1x4x16xbf16>
    %120 = vector.shape_cast %119 : vector<1x4x16xbf16> to vector<4x16xbf16>
    %cst_130 = arith.constant dense<0.000000e+00> : vector<256x16xf32>
    %121 = tpu.matmul %115, %120, %cst_130 {dimension_numbers = #tpu.dot_dimension_numbers<[1], [0], [0], [1], [0, 0, 1, 1], [], []>} : vector<256x4xbf16>, vector<4x16xbf16>, vector<256x16xf32> -> vector<256x16xf32>
    %122 = arith.addf %112, %121 : vector<256x16xf32>
    %c8_131 = arith.constant 8 : index
    %c0_132 = arith.constant 0 : index
    %c0_133 = arith.constant 0 : index
    %123 = vector.load %arg4[%c8_131, %c0_132, %c0_133] : memref<9x4x16xbf16, #tpu.memory_space<vmem>>, vector<1x4x16xbf16>
    %124 = vector.shape_cast %123 : vector<1x4x16xbf16> to vector<4x16xbf16>
    %cst_134 = arith.constant dense<0.000000e+00> : vector<256x16xf32>
    %125 = tpu.matmul %118, %124, %cst_134 {dimension_numbers = #tpu.dot_dimension_numbers<[1], [0], [0], [1], [0, 0, 1, 1], [], []>} : vector<256x4xbf16>, vector<4x16xbf16>, vector<256x16xf32> -> vector<256x16xf32>
    %126 = arith.addf %122, %125 : vector<256x16xf32>
    %c0_135 = arith.constant 0 : index
    %c0_136 = arith.constant 0 : index
    %127 = vector.load %arg5[%c0_135, %c0_136] : memref<1x16xf32, #tpu.memory_space<vmem>>, vector<1x16xf32>
    %128 = vector.broadcast %127 : vector<1x16xf32> to vector<256x16xf32>
    %129 = arith.addf %126, %128 : vector<256x16xf32>
    %cst_137 = arith.constant 0.000000e+00 : f32
    %130 = vector.broadcast %cst_137 : f32 to vector<256x16xf32>
    %131 = arith.maximumf %129, %130 : vector<256x16xf32>
    %cst_138 = arith.constant 0.000000e+00 : bf16
    %132 = vector.broadcast %cst_138 : bf16 to vector<1x18x16xbf16>
    %cst_139 = arith.constant 0.000000e+00 : bf16
    %133 = vector.broadcast %cst_139 : bf16 to vector<18x1x16xbf16>
    %c0_140 = arith.constant 0 : index
    %c0_141 = arith.constant 0 : index
    %c0_142 = arith.constant 0 : index
    %134 = vector.load %arg9[%c0_140, %c0_141, %c0_142] : memref<18x18x16xbf16, #tpu.memory_space<vmem>>, vector<1x18x16xbf16>
    tpu.vector_store %arg9[%c0_140, %c0_141, %c0_142], %132 {strides = array<i32>} : memref<18x18x16xbf16, #tpu.memory_space<vmem>>, vector<1x18x16xbf16>,
    %c17 = arith.constant 17 : index
    %c0_143 = arith.constant 0 : index
    %c0_144 = arith.constant 0 : index
    %135 = vector.load %arg9[%c17, %c0_143, %c0_144] : memref<18x18x16xbf16, #tpu.memory_space<vmem>>, vector<1x18x16xbf16>
    tpu.vector_store %arg9[%c17, %c0_143, %c0_144], %132 {strides = array<i32>} : memref<18x18x16xbf16, #tpu.memory_space<vmem>>, vector<1x18x16xbf16>,
    %c0_145 = arith.constant 0 : index
    %c0_146 = arith.constant 0 : index
    %c0_147 = arith.constant 0 : index
    %136 = vector.load %arg9[%c0_145, %c0_146, %c0_147] : memref<18x18x16xbf16, #tpu.memory_space<vmem>>, vector<18x1x16xbf16>
    tpu.vector_store %arg9[%c0_145, %c0_146, %c0_147], %133 {strides = array<i32>} : memref<18x18x16xbf16, #tpu.memory_space<vmem>>, vector<18x1x16xbf16>,
    %c0_148 = arith.constant 0 : index
    %c17_149 = arith.constant 17 : index
    %c0_150 = arith.constant 0 : index
    %137 = vector.load %arg9[%c0_148, %c17_149, %c0_150] : memref<18x18x16xbf16, #tpu.memory_space<vmem>>, vector<18x1x16xbf16>
    tpu.vector_store %arg9[%c0_148, %c17_149, %c0_150], %133 {strides = array<i32>} : memref<18x18x16xbf16, #tpu.memory_space<vmem>>, vector<18x1x16xbf16>,
    %138 = vector.shape_cast %131 : vector<256x16xf32> to vector<16x16x16xf32>
    %139 = arith.truncf %138 : vector<16x16x16xf32> to vector<16x16x16xbf16>
    %c1_151 = arith.constant 1 : index
    %c1_152 = arith.constant 1 : index
    %c0_153 = arith.constant 0 : index
    %140 = vector.load %arg9[%c1_151, %c1_152, %c0_153] : memref<18x18x16xbf16, #tpu.memory_space<vmem>>, vector<16x16x16xbf16>
    tpu.vector_store %arg9[%c1_151, %c1_152, %c0_153], %139 {strides = array<i32>} : memref<18x18x16xbf16, #tpu.memory_space<vmem>>, vector<16x16x16xbf16>,
    %cst_154 = arith.constant 0.000000e+00 : f32
    %141 = vector.broadcast %cst_154 : f32 to vector<256x4xf32>
    %c0_155 = arith.constant 0 : index
    %c0_156 = arith.constant 0 : index
    %c0_157 = arith.constant 0 : index
    %142 = vector.load %arg9[%c0_155, %c0_156, %c0_157] : memref<18x18x16xbf16, #tpu.memory_space<vmem>>, vector<16x16x16xbf16>
    %143 = vector.shape_cast %142 : vector<16x16x16xbf16> to vector<256x16xbf16>
    %c0_158 = arith.constant 0 : index
    %c0_159 = arith.constant 0 : index
    %c0_160 = arith.constant 0 : index
    %144 = vector.load %arg6[%c0_158, %c0_159, %c0_160] : memref<9x16x4xbf16, #tpu.memory_space<vmem>>, vector<1x16x4xbf16>
    %145 = vector.shape_cast %144 : vector<1x16x4xbf16> to vector<16x4xbf16>
    %cst_161 = arith.constant dense<0.000000e+00> : vector<256x4xf32>
    %146 = tpu.matmul %143, %145, %cst_161 {dimension_numbers = #tpu.dot_dimension_numbers<[1], [0], [0], [1], [0, 0, 1, 1], [], []>} : vector<256x16xbf16>, vector<16x4xbf16>, vector<256x4xf32> -> vector<256x4xf32>
    %147 = arith.addf %141, %146 : vector<256x4xf32>
    %c0_162 = arith.constant 0 : index
    %c1_163 = arith.constant 1 : index
    %c0_164 = arith.constant 0 : index
    %148 = vector.load %arg9[%c0_162, %c1_163, %c0_164] : memref<18x18x16xbf16, #tpu.memory_space<vmem>>, vector<16x16x16xbf16>
    %149 = vector.shape_cast %148 : vector<16x16x16xbf16> to vector<256x16xbf16>
    %c1_165 = arith.constant 1 : index
    %c0_166 = arith.constant 0 : index
    %c0_167 = arith.constant 0 : index
    %150 = vector.load %arg6[%c1_165, %c0_166, %c0_167] : memref<9x16x4xbf16, #tpu.memory_space<vmem>>, vector<1x16x4xbf16>
    %151 = vector.shape_cast %150 : vector<1x16x4xbf16> to vector<16x4xbf16>
    %cst_168 = arith.constant dense<0.000000e+00> : vector<256x4xf32>
    %152 = tpu.matmul %149, %151, %cst_168 {dimension_numbers = #tpu.dot_dimension_numbers<[1], [0], [0], [1], [0, 0, 1, 1], [], []>} : vector<256x16xbf16>, vector<16x4xbf16>, vector<256x4xf32> -> vector<256x4xf32>
    %153 = arith.addf %147, %152 : vector<256x4xf32>
    %c0_169 = arith.constant 0 : index
    %c2_170 = arith.constant 2 : index
    %c0_171 = arith.constant 0 : index
    %154 = vector.load %arg9[%c0_169, %c2_170, %c0_171] : memref<18x18x16xbf16, #tpu.memory_space<vmem>>, vector<16x16x16xbf16>
    %155 = vector.shape_cast %154 : vector<16x16x16xbf16> to vector<256x16xbf16>
    %c2_172 = arith.constant 2 : index
    %c0_173 = arith.constant 0 : index
    %c0_174 = arith.constant 0 : index
    %156 = vector.load %arg6[%c2_172, %c0_173, %c0_174] : memref<9x16x4xbf16, #tpu.memory_space<vmem>>, vector<1x16x4xbf16>
    %157 = vector.shape_cast %156 : vector<1x16x4xbf16> to vector<16x4xbf16>
    %cst_175 = arith.constant dense<0.000000e+00> : vector<256x4xf32>
    %158 = tpu.matmul %155, %157, %cst_175 {dimension_numbers = #tpu.dot_dimension_numbers<[1], [0], [0], [1], [0, 0, 1, 1], [], []>} : vector<256x16xbf16>, vector<16x4xbf16>, vector<256x4xf32> -> vector<256x4xf32>
    %159 = arith.addf %153, %158 : vector<256x4xf32>
    %c1_176 = arith.constant 1 : index
    %c0_177 = arith.constant 0 : index
    %c0_178 = arith.constant 0 : index
    %160 = vector.load %arg9[%c1_176, %c0_177, %c0_178] : memref<18x18x16xbf16, #tpu.memory_space<vmem>>, vector<16x16x16xbf16>
    %161 = vector.shape_cast %160 : vector<16x16x16xbf16> to vector<256x16xbf16>
    %c3_179 = arith.constant 3 : index
    %c0_180 = arith.constant 0 : index
    %c0_181 = arith.constant 0 : index
    %162 = vector.load %arg6[%c3_179, %c0_180, %c0_181] : memref<9x16x4xbf16, #tpu.memory_space<vmem>>, vector<1x16x4xbf16>
    %163 = vector.shape_cast %162 : vector<1x16x4xbf16> to vector<16x4xbf16>
    %cst_182 = arith.constant dense<0.000000e+00> : vector<256x4xf32>
    %164 = tpu.matmul %161, %163, %cst_182 {dimension_numbers = #tpu.dot_dimension_numbers<[1], [0], [0], [1], [0, 0, 1, 1], [], []>} : vector<256x16xbf16>, vector<16x4xbf16>, vector<256x4xf32> -> vector<256x4xf32>
    %165 = arith.addf %159, %164 : vector<256x4xf32>
    %c1_183 = arith.constant 1 : index
    %c1_184 = arith.constant 1 : index
    %c0_185 = arith.constant 0 : index
    %166 = vector.load %arg9[%c1_183, %c1_184, %c0_185] : memref<18x18x16xbf16, #tpu.memory_space<vmem>>, vector<16x16x16xbf16>
    %167 = vector.shape_cast %166 : vector<16x16x16xbf16> to vector<256x16xbf16>
    %c4_186 = arith.constant 4 : index
    %c0_187 = arith.constant 0 : index
    %c0_188 = arith.constant 0 : index
    %168 = vector.load %arg6[%c4_186, %c0_187, %c0_188] : memref<9x16x4xbf16, #tpu.memory_space<vmem>>, vector<1x16x4xbf16>
    %169 = vector.shape_cast %168 : vector<1x16x4xbf16> to vector<16x4xbf16>
    %cst_189 = arith.constant dense<0.000000e+00> : vector<256x4xf32>
    %170 = tpu.matmul %167, %169, %cst_189 {dimension_numbers = #tpu.dot_dimension_numbers<[1], [0], [0], [1], [0, 0, 1, 1], [], []>} : vector<256x16xbf16>, vector<16x4xbf16>, vector<256x4xf32> -> vector<256x4xf32>
    %171 = arith.addf %165, %170 : vector<256x4xf32>
    %c1_190 = arith.constant 1 : index
    %c2_191 = arith.constant 2 : index
    %c0_192 = arith.constant 0 : index
    %172 = vector.load %arg9[%c1_190, %c2_191, %c0_192] : memref<18x18x16xbf16, #tpu.memory_space<vmem>>, vector<16x16x16xbf16>
    %173 = vector.shape_cast %172 : vector<16x16x16xbf16> to vector<256x16xbf16>
    %c5_193 = arith.constant 5 : index
    %c0_194 = arith.constant 0 : index
    %c0_195 = arith.constant 0 : index
    %174 = vector.load %arg6[%c5_193, %c0_194, %c0_195] : memref<9x16x4xbf16, #tpu.memory_space<vmem>>, vector<1x16x4xbf16>
    %175 = vector.shape_cast %174 : vector<1x16x4xbf16> to vector<16x4xbf16>
    %cst_196 = arith.constant dense<0.000000e+00> : vector<256x4xf32>
    %176 = tpu.matmul %173, %175, %cst_196 {dimension_numbers = #tpu.dot_dimension_numbers<[1], [0], [0], [1], [0, 0, 1, 1], [], []>} : vector<256x16xbf16>, vector<16x4xbf16>, vector<256x4xf32> -> vector<256x4xf32>
    %177 = arith.addf %171, %176 : vector<256x4xf32>
    %c2_197 = arith.constant 2 : index
    %c0_198 = arith.constant 0 : index
    %c0_199 = arith.constant 0 : index
    %178 = vector.load %arg9[%c2_197, %c0_198, %c0_199] : memref<18x18x16xbf16, #tpu.memory_space<vmem>>, vector<16x16x16xbf16>
    %179 = vector.shape_cast %178 : vector<16x16x16xbf16> to vector<256x16xbf16>
    %c6_200 = arith.constant 6 : index
    %c0_201 = arith.constant 0 : index
    %c0_202 = arith.constant 0 : index
    %180 = vector.load %arg6[%c6_200, %c0_201, %c0_202] : memref<9x16x4xbf16, #tpu.memory_space<vmem>>, vector<1x16x4xbf16>
    %181 = vector.shape_cast %180 : vector<1x16x4xbf16> to vector<16x4xbf16>
    %cst_203 = arith.constant dense<0.000000e+00> : vector<256x4xf32>
    %182 = tpu.matmul %179, %181, %cst_203 {dimension_numbers = #tpu.dot_dimension_numbers<[1], [0], [0], [1], [0, 0, 1, 1], [], []>} : vector<256x16xbf16>, vector<16x4xbf16>, vector<256x4xf32> -> vector<256x4xf32>
    %183 = arith.addf %177, %182 : vector<256x4xf32>
    %c2_204 = arith.constant 2 : index
    %c1_205 = arith.constant 1 : index
    %c0_206 = arith.constant 0 : index
    %184 = vector.load %arg9[%c2_204, %c1_205, %c0_206] : memref<18x18x16xbf16, #tpu.memory_space<vmem>>, vector<16x16x16xbf16>
    %185 = vector.shape_cast %184 : vector<16x16x16xbf16> to vector<256x16xbf16>
    %c7_207 = arith.constant 7 : index
    %c0_208 = arith.constant 0 : index
    %c0_209 = arith.constant 0 : index
    %186 = vector.load %arg6[%c7_207, %c0_208, %c0_209] : memref<9x16x4xbf16, #tpu.memory_space<vmem>>, vector<1x16x4xbf16>
    %187 = vector.shape_cast %186 : vector<1x16x4xbf16> to vector<16x4xbf16>
    %cst_210 = arith.constant dense<0.000000e+00> : vector<256x4xf32>
    %188 = tpu.matmul %185, %187, %cst_210 {dimension_numbers = #tpu.dot_dimension_numbers<[1], [0], [0], [1], [0, 0, 1, 1], [], []>} : vector<256x16xbf16>, vector<16x4xbf16>, vector<256x4xf32> -> vector<256x4xf32>
    %189 = arith.addf %183, %188 : vector<256x4xf32>
    %c2_211 = arith.constant 2 : index
    %c2_212 = arith.constant 2 : index
    %c0_213 = arith.constant 0 : index
    %190 = vector.load %arg9[%c2_211, %c2_212, %c0_213] : memref<18x18x16xbf16, #tpu.memory_space<vmem>>, vector<16x16x16xbf16>
    %191 = vector.shape_cast %190 : vector<16x16x16xbf16> to vector<256x16xbf16>
    %c8_214 = arith.constant 8 : index
    %c0_215 = arith.constant 0 : index
    %c0_216 = arith.constant 0 : index
    %192 = vector.load %arg6[%c8_214, %c0_215, %c0_216] : memref<9x16x4xbf16, #tpu.memory_space<vmem>>, vector<1x16x4xbf16>
    %193 = vector.shape_cast %192 : vector<1x16x4xbf16> to vector<16x4xbf16>
    %cst_217 = arith.constant dense<0.000000e+00> : vector<256x4xf32>
    %194 = tpu.matmul %191, %193, %cst_217 {dimension_numbers = #tpu.dot_dimension_numbers<[1], [0], [0], [1], [0, 0, 1, 1], [], []>} : vector<256x16xbf16>, vector<16x4xbf16>, vector<256x4xf32> -> vector<256x4xf32>
    %195 = arith.addf %189, %194 : vector<256x4xf32>
    %c0_218 = arith.constant 0 : index
    %c0_219 = arith.constant 0 : index
    %196 = vector.load %arg7[%c0_218, %c0_219] : memref<1x4xf32, #tpu.memory_space<vmem>>, vector<1x4xf32>
    %197 = vector.broadcast %196 : vector<1x4xf32> to vector<256x4xf32>
    %198 = arith.addf %195, %197 : vector<256x4xf32>
    %cst_220 = arith.constant 0.000000e+00 : f32
    %199 = vector.broadcast %cst_220 : f32 to vector<256x4xf32>
    %200 = arith.maximumf %198, %199 : vector<256x4xf32>
    %201 = vector.shape_cast %200 : vector<256x4xf32> to vector<16x16x4xf32>
    %c0_221 = arith.constant 0 : index
    %c0_222 = arith.constant 0 : index
    %c0_223 = arith.constant 0 : index
    %c0_224 = arith.constant 0 : index
    %202 = vector.load %arg8[%c0_221, %c0_222, %c0_223, %c0_224] : memref<1x16x16x4xf32, #tpu.memory_space<vmem>>, vector<1x16x16x4xf32>
    %203 = vector.shape_cast %202 : vector<1x16x16x4xf32> to vector<16x16x4xf32>
    %204 = vector.shape_cast %201 : vector<16x16x4xf32> to vector<1x16x16x4xf32>
    tpu.vector_store %arg8[%c0_221, %c0_222, %c0_223, %c0_224], %204 {strides = array<i32>} : memref<1x16x16x4xf32, #tpu.memory_space<vmem>>, vector<1x16x16x4xf32>,
    return
  }
  func.func @transform_0(%arg0: i32) -> (i32, i32, i32, i32) {
    %c0_i32 = arith.constant 0 : i32
    %c0_i32_0 = arith.constant 0 : i32
    %c0_i32_1 = arith.constant 0 : i32
    %c0_i32_2 = arith.constant 0 : i32
    return %arg0, %c0_i32, %c0_i32_0, %c0_i32_1 : i32, i32, i32, i32
  }
  func.func @transform_1(%arg0: i32) -> (i32, i32, i32, i32) {
    %c0_i32 = arith.constant 0 : i32
    %c0_i32_0 = arith.constant 0 : i32
    %c0_i32_1 = arith.constant 0 : i32
    %c0_i32_2 = arith.constant 0 : i32
    return %arg0, %c0_i32, %c0_i32_0, %c0_i32_1 : i32, i32, i32, i32
  }
  func.func @transform_2(%arg0: i32) -> (i32, i32, i32) {
    %c0_i32 = arith.constant 0 : i32
    %c0_i32_0 = arith.constant 0 : i32
    %c0_i32_1 = arith.constant 0 : i32
    %c0_i32_2 = arith.constant 0 : i32
    return %c0_i32, %c0_i32_0, %c0_i32_1 : i32, i32, i32
  }
  func.func @transform_3(%arg0: i32) -> (i32, i32, i32) {
    %c0_i32 = arith.constant 0 : i32
    %c0_i32_0 = arith.constant 0 : i32
    %c0_i32_1 = arith.constant 0 : i32
    %c0_i32_2 = arith.constant 0 : i32
    return %c0_i32, %c0_i32_0, %c0_i32_1 : i32, i32, i32
  }
  func.func @transform_4(%arg0: i32) -> (i32, i32) {
    %c0_i32 = arith.constant 0 : i32
    %c0_i32_0 = arith.constant 0 : i32
    %c0_i32_1 = arith.constant 0 : i32
    return %c0_i32, %c0_i32_0 : i32, i32
  }
  func.func @transform_5(%arg0: i32) -> (i32, i32, i32) {
    %c0_i32 = arith.constant 0 : i32
    %c0_i32_0 = arith.constant 0 : i32
    %c0_i32_1 = arith.constant 0 : i32
    %c0_i32_2 = arith.constant 0 : i32
    return %c0_i32, %c0_i32_0, %c0_i32_1 : i32, i32, i32
  }
  func.func @transform_6(%arg0: i32) -> (i32, i32) {
    %c0_i32 = arith.constant 0 : i32
    %c0_i32_0 = arith.constant 0 : i32
    %c0_i32_1 = arith.constant 0 : i32
    return %c0_i32, %c0_i32_0 : i32, i32
  }
  func.func @transform_7(%arg0: i32) -> (i32, i32, i32, i32) {
    %c0_i32 = arith.constant 0 : i32
    %c0_i32_0 = arith.constant 0 : i32
    %c0_i32_1 = arith.constant 0 : i32
    %c0_i32_2 = arith.constant 0 : i32
    return %arg0, %c0_i32, %c0_i32_0, %c0_i32_1 : i32, i32, i32, i32
  }
}

</mosaic_0001>

<bundles_post_ra>
// kernel: up_forward.1
= control target key start
LH: loop header
LB: loop body
LE: loop exit
PB: predicated region body
PF: predicated region fallthrough
CT: control target
= control target key end

     0   :  { %s19105_s24 = smov 0   ;;  %s24324_s0 = inlined_call_operand.vmem [shape: bf16[2,18,18,4], index: 0, kind: input, shape index: {}]   ;;  %s24325_s1 = inlined_call_operand.vmem [shape: bf16[2,18,18,4], index: 1, kind: input, shape index: {}]   ;;  %s24326_s2 = inlined_call_operand.vmem [shape: bf16[9,4,16], index: 2, kind: input, shape index: {}]   ;;  %s24327_s3 = inlined_call_operand.vmem [shape: bf16[9,4,16], index: 3, kind: input, shape index: {}]   ;;  %s24328_s4 = inlined_call_operand.vmem [shape: f32[1,16], index: 4, kind: input, shape index: {}]   ;;  %s24329_s5 = inlined_call_operand.vmem [shape: bf16[9,16,4], index: 5, kind: input, shape index: {}]   ;;  %s24330_s6 = inlined_call_operand.vmem [shape: f32[1,4], index: 6, kind: input, shape index: {}]   ;;  %s24331_s7 = inlined_call_operand.vmem [shape: f32[2,16,16,4], index: 7, kind: output, shape index: {}]  }
   0x1 LB: > { %s15053_s25 = sadd.s32 4294967295, %s19062_s24   ;;  %p15057_p0 = scmp.ge.s32.totalorder %s19062_s24, 1  ;;  %s19062_s24 = sphi %s19105_s24, %s17_s24  }
   0x2   : > { %p247_p1 = scmp.lt.s32.totalorder %s19062_s24, 3 }
   0x4   : > { %p248_p2 = pnand %p15057_p0, %p247_p1 }
   0x6   : > { %251 = sbr.rel (%p248_p2) target bundleno = 1937 (0x791), region = 48 }
   0xd   : > { %vm495_vm0 = vcmask 1041408   ;;  %v15224_v0 = vld [vmem:[%s24326_s2 + $0x4] sm:$0x3]  ;;  %p284_p3 = scmp.lt.s32.totalorder %s15053_s25, 1  ;;  %vm2471_vm1 = vcmask 1042432   ;;  %vm2472_vm2 = vcmask 1046532  }
   0xe   : > { %18747 = vmatprep.subr.msk.bf16.mxu0 %vm495_vm0, %v15224_v0  ;;  %v19118_v1 = vsel %vm495_vm0, %v15224_v0, 0  ;;  %v15257_v2 = vld [vmem:[%s24327_s3 + $0x4] sm:$0x3]  ;;  %vm19142_vm3 = vmor %vm2471_vm1, %vm2472_vm2  ;;  %vm446_vm4 = vcmask 31744   ;;  %v15354_v50 = vld [vmem:[%s24326_s2 + $0x6] sm:$0x3] }
   0xf   : > { %24464 = vst [vmem:[#allocation3_spill] sm:$0xff] %v19118_v1  ;;  %17160 = vmatpush3.bf16.msra.mxu0 %v19118_v1  ;;  %s24862_s25 = smov (!%p284_p3, %s15053_s25), 1  ;;  %v3155_v42 = vsel %vm495_vm0, %v15257_v2, 0  ;;  %vm1000_vm5 = vsmask.f32 3328  ;;  %vm9644_vm8 = vcmask 122880  }
  0x10   : > { %18749 = vmatprep.subr.msk.bf16.mxu0 %vm495_vm0, %v15257_v2  ;;  %s18762_s30 = smul.u32 216, %s24862_s25  ;;  %vm1001_vm6 = vsmask.f32 7440  ;;  %vm9651_vm9 = vsmask.f32 256  ;;  %vm9641_vm13 = vcmask 125952  }
  0x11   : > { %vm19559_vm7 = vmor %vm1000_vm5, %vm1001_vm6  ;;  %vm9707_vm11 = vsmask.f32 7938  ;;  %vm10787_vm14 = vcmask 130048   ;;  %vm9859_vm15 = vsmask.f32 4368  ;;  %s16531_s9 = sshll.u32 %s24862_s25, 8 }
  0x12   : > { %s19133_s10 = scalar_lea.vmem %s24324_s0, %s18762_s30  ;;  %s19205_s15 = scalar_lea.vmem %s24325_s1, %s18762_s30  ;;  %vm22272_vm10 = vmand %vm9644_vm8, %vm9651_vm9 }
  0x13   : > { %v19136_v3 = vld [vmem:[%s19133_s10 + $0x4] sm:$0xf]  ;;  %v19139_v4 = vld [vmem:[%s19133_s10 + $0x8] sm:$0x1]  ;;  %v2407_v5 = vld [vmem:[%s19133_s10] sm:$0xe]  ;;  %s24224_s13 = scalar_lea.vmem %s24331_s7, %s16531_s9 }
  0x14   : > { %v15192_v7 = vrot.slane %v2407_v5, 9  ;;  %v2476_v8 = vrot.slane %v19136_v3, 5  ;;  %v2479_v9 = vrot.slane %v19139_v4, 5  ;;  %v19149_v10 = vld [vmem:[%s19133_s10 + $0x10] sm:$0xf]  ;;  %vm22282_vm12 = vmand %vm9644_vm8, %vm9707_vm11 }
  0x15   : > { %v19152_v11 = vld [vmem:[%s19133_s10 + $0x14] sm:$0x1]  ;;  %v2408_v12 = vld [vmem:[%s19133_s10 + $0xc] sm:$0xe]  ;;  %v959_v15 = vld [vmem:[%s19133_s10 + $0x1c] sm:$0xf] }
  0x16   : > { %v2477_v13 = vsel %vm19142_vm3, %v15192_v7, %v2476_v8  ;;  %v2478_v14 = vrot.slane %v2476_v8, 4  ;;  %v15193_v16 = vrot.slane %v2408_v12, 9  ;;  %v2483_v17 = vrot.slane %v19149_v10, 5  ;;  %v960_v19 = vld [vmem:[%s19133_s10 + $0x20] sm:$0x1]  ;;  %vm22395_vm1 = vmor %vm9651_vm9, %vm9859_vm15 }
  0x17   : > { %v2486_v18 = vrot.slane %v19152_v11, 5  ;;  %v2409_v21 = vld [vmem:[%s19133_s10 + $0x18] sm:$0xe]  ;;  %v2490_v22 = vrot.slane %v959_v15, 5  ;;  %v2493_v23 = vrot.slane %v960_v19, 5 }
  0x18   : > { %v2480_v20 = vsel %vm19142_vm3, %v2478_v14, %v2479_v9  ;;  %v962_v24 = vld [vmem:[%s19133_s10 + $0x28] sm:$0xf]  ;;  %v2484_v26 = vsel %vm19142_vm3, %v15193_v16, %v2483_v17  ;;  %v2485_v27 = vrot.slane %v2483_v17, 4  ;;  %v15194_v28 = vrot.slane %v2409_v21, 9  ;;  %v963_v29 = vld [vmem:[%s19133_s10 + $0x2c] sm:$0x1] }
  0x19   : > { %v15225_v25 = vcombine.low %v2477_v13, %v2480_v20  ;;  %v2410_v30 = vld [vmem:[%s19133_s10 + $0x24] sm:$0xe]  ;;  %v2492_v31 = vrot.slane %v2490_v22, 4  ;;  %v2497_v33 = vrot.slane %v962_v24, 5  ;;  %v965_v34 = vld [vmem:[%s19133_s10 + $0x34] sm:$0xf] }
  0x1a   : > { %v15195_v32 = vrot.slane %v2410_v30, 9  ;;  %v2487_v35 = vsel %vm19142_vm3, %v2485_v27, %v2486_v18  ;;  %v2491_v36 = vsel %vm19142_vm3, %v15194_v28, %v2490_v22  ;;  %v2500_v37 = vrot.slane %v963_v29, 5  ;;  %v966_v38 = vld [vmem:[%s19133_s10 + $0x38] sm:$0x1]  ;;  %v2411_v39 = vld [vmem:[%s19133_s10 + $0x30] sm:$0xe] }
  0x1b   : > { %17161 = vmatprep.mubr.msk.bf16.mxu0 %vm446_vm4, %v15225_v25  ;;  %v2504_v40 = vrot.slane %v965_v34, 5  ;;  %v15226_v41 = vcombine.low %v2484_v26, %v2487_v35  ;;  %v2494_v43 = vsel %vm19142_vm3, %v2492_v31, %v2493_v23  ;;  %v2499_v44 = vrot.slane %v2497_v33, 4  ;;  %v968_v45 = vld [vmem:[%s19133_s10 + $0x40] sm:$0xf]  ;;  %v971_v51 = vld [vmem:[%s19133_s10 + $0x4c] sm:$0xf] }
  0x1c   : > { %v15227_v46 = vcombine.low %v2491_v36, %v2494_v43  ;;  %v15196_v47 = vrot.slane %v2411_v39, 9  ;;  %v2507_v49 = vrot.slane %v966_v38, 5  ;;  %v2498_v52 = vsel %vm19142_vm3, %v15195_v32, %v2497_v33  ;;  %v969_v57 = vld [vmem:[%s19133_s10 + $0x44] sm:$0x1]  ;;  %v2412_v58 = vld [vmem:[%s19133_s10 + $0x3c] sm:$0xe] }
  0x1d   : > { %v2506_v48 = vrot.slane %v2504_v40, 4  ;;  %17162 = vmatmul.mubr.msk.bf16.vlgmr.msra.gmra.mrb[0].mxu0 %vm446_vm4, %v15226_v41  ;;  %v2501_v53 = vsel %vm19142_vm3, %v2499_v44, %v2500_v37  ;;  %v2511_v54 = vrot.slane %v968_v45, 5  ;;  %v2518_v59 = vrot.slane %v971_v51, 5  ;;  %v972_v60 = vld [vmem:[%s19133_s10 + $0x50] sm:$0x1] }
  0x1e   : > { %17194 = vmatpush3.bf16.msra.mxu0 %v3155_v42  ;;  %17165 = vmatprep.mubr.msk.bf16.mxu0 %vm446_vm4, %v15227_v46  ;;  %v2505_v55 = vsel %vm19142_vm3, %v15196_v47, %v2504_v40  ;;  %v2413_v61 = vld [vmem:[%s19133_s10 + $0x48] sm:$0xe]  ;;  %v15228_v62 = vcombine.low %v2498_v52, %v2501_v53  ;;  %v15197_v0 = vrot.slane %v2412_v58, 9  ;;  %v2514_v5 = vrot.slane %v969_v57, 5  ;;  %v974_v12 = vld [vmem:[%s19133_s10 + $0x58] sm:$0xf] }
  0x1f   : > { %v2508_v56 = vsel %vm19142_vm3, %v2506_v48, %v2507_v49  ;;  %18750 = vmatprep.subr.msk.bf16.mxu0 %vm495_vm0, %v15354_v50  ;;  %v2513_v2 = vrot.slane %v2511_v54, 4  ;;  %v15198_v7 = vrot.slane %v2413_v61, 9  ;;  %v2520_v8 = vrot.slane %v2518_v59, 4  ;;  %v1388_v13 = vld [vmem:[%s19205_s15 + $0x4] sm:$0xf] }
  0x20   : > { %v15229_v63 = vcombine.low %v2505_v55, %v2508_v56  ;;  %v2521_v9 = vrot.slane %v972_v60, 5  ;;  %v2512_v14 = vsel %vm19142_vm3, %v15197_v0, %v2511_v54  ;;  %v2525_v16 = vrot.slane %v974_v12, 5  ;;  %v975_v19 = vld [vmem:[%s19133_s10 + $0x5c] sm:$0x1]  ;;  %v2414_v20 = vld [vmem:[%s19133_s10 + $0x54] sm:$0xe] }
  0x21   : > { %v2515_v15 = vsel %vm19142_vm3, %v2513_v2, %v2514_v5  ;;  %v2519_v17 = vsel %vm19142_vm3, %v15198_v7, %v2518_v59  ;;  %v2652_v21 = vrot.slane %v1388_v13, 5  ;;  %v1389_v22 = vld [vmem:[%s19205_s15 + $0x8] sm:$0x1]  ;;  %v2586_v23 = vld [vmem:[%s19205_s15] sm:$0xe]  ;;  %v15199_v27 = vrot.slane %v2414_v20, 9 }
  0x22   : > { %v2522_v18 = vsel %vm19142_vm3, %v2520_v8, %v2521_v9  ;;  %v15230_v24 = vcombine.low %v2512_v14, %v2515_v15  ;;  %v1391_v25 = vld [vmem:[%s19205_s15 + $0x10] sm:$0xf]  ;;  %v2527_v28 = vrot.slane %v2525_v16, 4  ;;  %v2528_v29 = vrot.slane %v975_v19, 5  ;;  %v1394_v33 = vld [vmem:[%s19205_s15 + $0x1c] sm:$0xf] }
  0x23   : > { %v15231_v26 = vcombine.low %v2519_v17, %v2522_v18  ;;  %v15208_v30 = vrot.slane %v2586_v23, 9  ;;  %v2654_v31 = vrot.slane %v2652_v21, 4  ;;  %v2655_v32 = vrot.slane %v1389_v22, 5  ;;  %v1392_v34 = vld [vmem:[%s19205_s15 + $0x14] sm:$0x1] }
  0x24   : > { %v2587_v35 = vld [vmem:[%s19205_s15 + $0xc] sm:$0xe]  ;;  %v2659_v36 = vrot.slane %v1391_v25, 5  ;;  %v19229_v37 = vld [vmem:[%s19205_s15 + $0x28] sm:$0xf]  ;;  %v2526_v38 = vsel %vm19142_vm3, %v15199_v27, %v2525_v16  ;;  %v2529_v39 = vsel %vm19142_vm3, %v2527_v28, %v2528_v29  ;;  %v19237_v40 = vsel %vm495_vm0, %v15354_v50, 0 }
  0x25   : > { %17166 = vmatmul.mubr.msk.bf16.gmra.mrb[4].mxu0 %vm446_vm4, %v15228_v62  ;;  %v2666_v41 = vrot.slane %v1394_v33, 5  ;;  %v2653_v42 = vsel %vm19142_vm3, %v15208_v30, %v2652_v21  ;;  %v2656_v43 = vsel %vm19142_vm3, %v2654_v31, %v2655_v32  ;;  %v15209_v44 = vrot.slane %v2587_v35, 9  ;;  %v1395_v46 = vld [vmem:[%s19205_s15 + $0x20] sm:$0x1]  ;;  %v2588_v47 = vld [vmem:[%s19205_s15 + $0x18] sm:$0xe] }
  0x26   : > { %17169 = vmatprep.mubr.msk.bf16.mxu0 %vm446_vm4, %v15229_v63  ;;  %v2662_v45 = vrot.slane %v1392_v34, 5  ;;  %v2661_v48 = vrot.slane %v2659_v36, 4  ;;  %v19246_v49 = vld [vmem:[%s19205_s15 + $0x24] sm:$0xe]  ;;  %v2673_v51 = vrot.slane %v19229_v37, 5  ;;  %v15232_v52 = vcombine.low %v2526_v38, %v2529_v39 }
  0x27   : > { %v19250_v50 = vld [vmem:[%s19205_s15 + $0x34] sm:$0xf]  ;;  %v19253_v53 = vld [vmem:[%s19205_s15 + $0x2c] sm:$0x1]  ;;  %v19256_v54 = vld [vmem:[%s19205_s15 + $0x38] sm:$0x1]  ;;  %v15258_v56 = vcombine.low %v2653_v42, %v2656_v43  ;;  %v2660_v9 = vsel %vm19142_vm3, %v15209_v44, %v2659_v36 }
  0x28   : > { %v19259_v55 = vld [vmem:[%s19205_s15 + $0x30] sm:$0xe]  ;;  %v15210_v57 = vrot.slane %v2588_v47, 9  ;;  %v2668_v58 = vrot.slane %v2666_v41, 4  ;;  %v2669_v59 = vrot.slane %v1395_v46, 5  ;;  %v15211_v60 = vrot.slane %v19246_v49, 9 }
  0x29   : > { %v2680_v61 = vrot.slane %v19250_v50, 5  ;;  %v19264_v62 = vld [vmem:[%s19205_s15 + $0x40] sm:$0xf]  ;;  %v19267_v63 = vld [vmem:[%s19205_s15 + $0x4c] sm:$0xf]  ;;  %v2675_v0 = vrot.slane %v2673_v51, 4  ;;  %v2663_v12 = vsel %vm19142_vm3, %v2661_v48, %v2662_v45 }
  0x2a   : > { %v2676_v2 = vrot.slane %v19253_v53, 5  ;;  %v15212_v5 = vrot.slane %v19259_v55, 9  ;;  %v2683_v7 = vrot.slane %v19256_v54, 5  ;;  %v19275_v8 = vld [vmem:[%s19205_s15 + $0x58] sm:$0xf]  ;;  %v2667_v16 = vsel %vm19142_vm3, %v15210_v57, %v2666_v41 }
  0x2b   : > { %v1404_v13 = vld [vmem:[%s19205_s15 + $0x44] sm:$0x1]  ;;  %v2591_v14 = vld [vmem:[%s19205_s15 + $0x3c] sm:$0xe]  ;;  %v2670_v17 = vsel %vm19142_vm3, %v2668_v58, %v2669_v59  ;;  %v2687_v18 = vrot.slane %v19264_v62, 5  ;;  %v2694_v21 = vrot.slane %v19267_v63, 5  ;;  %v15259_v31 = vcombine.low %v2660_v9, %v2663_v12 }
  0x2c   : > { %v19285_v15 = vld [vmem:[%s19205_s15 + $0x64] sm:$0xf]  ;;  %v1407_v19 = vld [vmem:[%s19205_s15 + $0x50] sm:$0x1]  ;;  %v2592_v20 = vld [vmem:[%s19205_s15 + $0x48] sm:$0xe]  ;;  %v15260_v32 = vcombine.low %v2667_v16, %v2670_v17  ;;  %v2674_v57 = vsel %vm19142_vm3, %v15211_v60, %v2673_v51  ;;  %v2677_v58 = vsel %vm19142_vm3, %v2675_v0, %v2676_v2  ;;  %v2681_v63 = vsel %vm19142_vm3, %v15212_v5, %v2680_v61 }
  0x2d   : > { %17170 = vmatmul.mubr.msk.bf16.gmra.mrb[8].mxu0 %vm446_vm4, %v15230_v24  ;;  %v19297_v22 = vld [vmem:[%s19205_s15 + $0x70] sm:$0xf]  ;;  %v2682_v23 = vrot.slane %v2680_v61, 4  ;;  %v19300_v24 = vld [vmem:[%s19205_s15 + $0x5c] sm:$0x1]  ;;  %v2701_v25 = vrot.slane %v19275_v8, 5  ;;  %v15261_v37 = vcombine.low %v2674_v57, %v2677_v58 }
  0x2e   : > { %17173 = vmatprep.mubr.msk.bf16.mxu0 %vm446_vm4, %v15231_v26  ;;  %v19304_v26 = vld [vmem:[%s19205_s15 + $0x7c] sm:$0xf]  ;;  %v15213_v27 = vrot.slane %v2591_v14, 9  ;;  %v2593_v28 = vld [vmem:[%s19205_s15 + $0x54] sm:$0xe]  ;;  %v2708_v30 = vrot.slane %v19285_v15, 5 }
  0x2f   : > { %v19308_v29 = vld [vmem:[%s19205_s15 + $0x68] sm:$0x1]  ;;  %v2690_v33 = vrot.slane %v1404_v13, 5  ;;  %v2594_v34 = vld [vmem:[%s19205_s15 + $0x60] sm:$0xe]  ;;  %v2715_v36 = vrot.slane %v19297_v22, 5 }
  0x30   : > { %v19313_v35 = vld [vmem:[%s19205_s15 + $0x6c] sm:$0xe]  ;;  %v2689_v38 = vrot.slane %v2687_v18, 4  ;;  %v15214_v39 = vrot.slane %v2592_v20, 9  ;;  %v2696_v41 = vrot.slane %v2694_v21, 4  ;;  %v2722_v43 = vrot.slane %v19304_v26, 5 }
  0x31   : > { %v19317_v42 = vld [vmem:[%s19205_s15 + $0x74] sm:$0x1]  ;;  %v2697_v44 = vrot.slane %v1407_v19, 5  ;;  %v15215_v45 = vrot.slane %v2593_v28, 9  ;;  %v2703_v46 = vrot.slane %v2701_v25, 4  ;;  %v2704_v47 = vrot.slane %v19300_v24, 5 }
  0x32   : > { %v19324_v48 = vld [vmem:[%s19205_s15 + $0x78] sm:$0xe]  ;;  %v15216_v49 = vrot.slane %v2594_v34, 9  ;;  %v2710_v50 = vrot.slane %v2708_v30, 4  ;;  %v15217_v53 = vrot.slane %v19313_v35, 9  ;;  %v2717_v55 = vrot.slane %v2715_v36, 4 }
  0x33   : > { %v19333_v54 = vld [vmem:[%s24327_s3 + $0x6] sm:$0x3]  ;;  %v15218_v59 = vrot.slane %v19324_v48, 9  ;;  %v2724_v62 = vrot.slane %v2722_v43, 4  ;;  %v1419_v60 = vld [vmem:[%s19205_s15 + $0x80] sm:$0x1]  ;;  %v2688_v61 = vsel %vm19142_vm3, %v15213_v27, %v2687_v18  ;;  %v2691_v2 = vsel %vm19142_vm3, %v2689_v38, %v2690_v33 }
  0x34   : > { %v1421_v0 = vld [vmem:[%s19205_s15 + $0x88] sm:$0xf]  ;;  %v2695_v5 = vsel %vm19142_vm3, %v15214_v39, %v2694_v21  ;;  %v2597_v9 = vld [vmem:[%s19205_s15 + $0x84] sm:$0xe]  ;;  %v15263_v12 = vcombine.low %v2688_v61, %v2691_v2  ;;  %v2725_v13 = vrot.slane %v1419_v60, 5  ;;  %v2702_v27 = vsel %vm19142_vm3, %v15215_v45, %v2701_v25 }
  0x35   : > { %17174 = vmatmul.mubr.msk.bf16.gmra.mrb[12].mxu0 %vm446_vm4, %v15232_v52  ;;  %v2711_v52 = vrot.slane %v19308_v29, 5  ;;  %v1422_v14 = vld [vmem:[%s19205_s15 + $0x8c] sm:$0x1]  ;;  %v2729_v16 = vrot.slane %v1421_v0, 5  ;;  %v1424_v17 = vld [vmem:[%s19205_s15 + $0x94] sm:$0xf]  ;;  %v2705_v28 = vsel %vm19142_vm3, %v2703_v46, %v2704_v47 }
  0x36   : > { %17195 = vmatprep.mubr.msk.bf16.mxu0 %vm446_vm4, %v15258_v56  ;;  %v2718_v56 = vrot.slane %v19317_v42, 5  ;;  %v1425_v20 = vld [vmem:[%s19205_s15 + $0x98] sm:$0x1]  ;;  %v2598_v18 = vld [vmem:[%s19205_s15 + $0x90] sm:$0xe]  ;;  %v2736_v24 = vrot.slane %v1424_v17, 5 }
  0x37   : > { %v1427_v21 = vld [vmem:[%s19205_s15 + $0xa0] sm:$0xf]  ;;  %v2731_v29 = vrot.slane %v2729_v16, 4  ;;  %v2712_v33 = vsel %vm19142_vm3, %v2710_v50, %v2711_v52  ;;  %v15220_v34 = vrot.slane %v2598_v18, 9  ;;  %v2739_v35 = vrot.slane %v1425_v20, 5  ;;  %v18772_v20 = vld [vmem:[%s19133_s10 + $0xc] sm:$0xff]  }
  0x38   : > { %v2738_v38 = vrot.slane %v2736_v24, 4  ;;  %v1428_v8 = vld [vmem:[%s19205_s15 + $0xa4] sm:$0x1]  ;;  %v2599_v39 = vld [vmem:[%s19205_s15 + $0x9c] sm:$0xe]  ;;  %v2743_v25 = vrot.slane %v1427_v21, 5  ;;  %v2719_v46 = vsel %vm19142_vm3, %v2717_v55, %v2718_v56  ;;  %v2726_v50 = vsel %vm19142_vm3, %v2724_v62, %v2725_v13 }
  0x39   : > { %v1430_v42 = vld [vmem:[%s19205_s15 + $0xac] sm:$0xf]  ;;  %v15221_v15 = vrot.slane %v2599_v39, 9  ;;  %v2746_v45 = vrot.slane %v1428_v8, 5  ;;  %v2600_v52 = vld [vmem:[%s19205_s15 + $0xa8] sm:$0xe]  ;;  %v2737_v62 = vsel %vm19142_vm3, %v15220_v34, %v2736_v24 }
  0x3a   : > { %v2745_v47 = vrot.slane %v2743_v25, 4  ;;  %v2750_v48 = vrot.slane %v1430_v42, 5  ;;  %v1431_v22 = vld [vmem:[%s19205_s15 + $0xb0] sm:$0x1]  ;;  %v1433_v58 = vld [vmem:[%s19205_s15 + $0xb8] sm:$0xf] }
  0x3b   : > { %v2753_v56 = vrot.slane %v1431_v22, 5  ;;  %v2744_v61 = vsel %vm19142_vm3, %v15221_v15, %v2743_v25  ;;  %v18773_v18 = vld [vmem:[%s19133_s10 + $0x18] sm:$0xff]   ;;  %v3873_v24 = vsel %vm495_vm0, %v19333_v54, 0  ;;  %v15516_v21 = vld [vmem:[%s24326_s2 + $0x8] sm:$0x3]  ;;  %v1037_v8 = vshll.u32 %v19149_v10, 16 }
  0x3c   : > { %v2752_v55 = vrot.slane %v2750_v48, 4  ;;  %v2747_v2 = vsel %vm19142_vm3, %v2745_v47, %v2746_v45  ;;  %v18782_v34 = vld [vmem:[%s19133_s10 + $0x84] sm:$0xff]   ;;  %v1041_v39 = vshrl.u32 %v19149_v10, 16  ;;  %v1013_v25 = vshll.u32 %v19136_v3, 16 }
  0x3d   : > { %17196 = vmatmul.mubr.msk.bf16.vlgmr.msra.gmra.mrb[0].mxu0 %vm446_vm4, %v15259_v31  ;;  %v2732_v31 = vrot.slane %v1422_v14, 5  ;;  %v15271_v13 = vcombine.low %v2744_v61, %v2747_v2  ;;  %v1017_v42 = vshrl.u32 %v19136_v3, 16  ;;  %v18785_v45 = vld [vmem:[%s19133_s10 + $0xa8] sm:$0xff]   ;;  %v1023_v10 = vshll.u32 %v19139_v4, 16 }
  0x3e   : > { %17228 = vmatpush3.bf16.msra.mxu0 %v19237_v40  ;;  %17199 = vmatprep.mubr.msk.bf16.mxu0 %vm446_vm4, %v15260_v32  ;;  %v2684_v40 = vsel %vm19142_vm3, %v2682_v23, %v2683_v7  ;;  %v2698_v7 = vsel %vm19142_vm3, %v2696_v41, %v2697_v44  ;;  %v15219_v23 = vrot.slane %v2597_v9, 9  ;;  %v2709_v32 = vsel %vm19142_vm3, %v15216_v49, %v2708_v30 }
  0x3f   : > { %18751 = vmatprep.subr.msk.bf16.mxu0 %vm495_vm0, %v19333_v54  ;;  %v15262_v51 = vcombine.low %v2681_v63, %v2684_v40  ;;  %v15264_v19 = vcombine.low %v2695_v5, %v2698_v7  ;;  %v15265_v41 = vcombine.low %v2702_v27, %v2705_v28  ;;  %v15266_v44 = vcombine.low %v2709_v32, %v2712_v33  ;;  %v2601_v40 = vld [vmem:[%s19205_s15 + $0xb4] sm:$0xe]  ;;  %v18776_v28 = vld [vmem:[%s19133_s10 + $0x3c] sm:$0xff]   ;;  %v18777_v54 = vld [vmem:[%s19133_s10 + $0x48] sm:$0xff]  }
  0x40   : > { %v2716_v30 = vsel %vm19142_vm3, %v15217_v53, %v2715_v36  ;;  %v2723_v49 = vsel %vm19142_vm3, %v15218_v59, %v2722_v43  ;;  %v15222_v53 = vrot.slane %v2600_v52, 9  ;;  %v2730_v26 = vsel %vm19142_vm3, %v15219_v23, %v2729_v16  ;;  %v18774_v23 = vld [vmem:[%s19133_s10 + $0x24] sm:$0xff]   ;;  %v18775_v27 = vld [vmem:[%s19133_s10 + $0x30] sm:$0xff]   ;;  %v18781_v33 = vld [vmem:[%s19133_s10 + $0x78] sm:$0xff]  }
  0x41   : > { %v15267_v57 = vcombine.low %v2716_v30, %v2719_v46  ;;  %v15268_v36 = vcombine.low %v2723_v49, %v2726_v50  ;;  %v2733_v43 = vsel %vm19142_vm3, %v2731_v29, %v2732_v31  ;;  %v2757_v59 = vrot.slane %v1433_v58, 5  ;;  %v18778_v29 = vld [vmem:[%s19133_s10 + $0x54] sm:$0xff]   ;;  %v18779_v31 = vld [vmem:[%s19133_s10 + $0x60] sm:$0xff]   ;;  %v18780_v32 = vld [vmem:[%s19133_s10 + $0x6c] sm:$0xff]  }
  0x42   : > { %v2740_v63 = vsel %vm19142_vm3, %v2738_v38, %v2739_v35  ;;  %v15223_v0 = vrot.slane %v2601_v40, 9  ;;  %v2751_v9 = vsel %vm19142_vm3, %v15222_v53, %v2750_v48  ;;  %v18783_v35 = vld [vmem:[%s19133_s10 + $0x90] sm:$0xff]   ;;  %v18784_v38 = vld [vmem:[%s19133_s10 + $0x9c] sm:$0xff]   ;;  %v1043_v15 = vrot.slane %v1041_v39, 4  ;;  %v15423_v49 = vld [vmem:[%s19133_s10 + $0x18] sm:$0xf] }
  0x43   : > { %v15270_v60 = vcombine.low %v2737_v62, %v2740_v63  ;;  %v2759_v5 = vrot.slane %v2757_v59, 4  ;;  %v15421_v30 = vld [vmem:[%s19133_s10 + $0x10] sm:$0xf]  ;;  %v18786_v46 = vld [vmem:[%s19133_s10 + $0xb4] sm:$0xff]   ;;  %v1047_v50 = vshll.u32 %v19152_v11, 16  ;;  %v19482_v22 = vrot.slane %v1013_v25, 5 }
  0x44   : > { %v2758_v16 = vsel %vm19142_vm3, %v15223_v0, %v2757_v59  ;;  %v4126_v52 = vshll.u32 %v15421_v30, 16  ;;  %v19484_v3 = vrot.slane %v1017_v42, 4  ;;  %v4141_v53 = vshrl.u32 %v15423_v49, 16  ;;  %v18787_v63 = vld [vmem:[%s19133_s10 + $0xc0] sm:$0xff]   ;;  %v15432_v25 = vld [vmem:[%s19133_s10 + $0x3c] sm:$0xf] }
  0x45   : > { %17200 = vmatmul.mubr.msk.bf16.gmra.mrb[4].mxu0 %vm446_vm4, %v15261_v37  ;;  %v15269_v37 = vcombine.low %v2730_v26, %v2733_v43  ;;  %24468 = vst [vmem:[#allocation5_spill] sm:$0xff] %v19482_v22  ;;  %v4144_v4 = vshll.u32 %v15423_v49, 16  ;;  %v19490_v26 = vrot.slane %v1023_v10, 5  ;;  %v19492_v43 = vrot.slane %v1047_v50, 5  ;;  %v15428_v42 = vld [vmem:[%s19133_s10 + $0x2c] sm:$0x1] }
  0x46   : > { %17203 = vmatprep.mubr.msk.bf16.mxu0 %vm446_vm4, %v15262_v51  ;;  %v1434_v51 = vld [vmem:[%s19205_s15 + $0xbc] sm:$0x1]  ;;  %24469 = vst [vmem:[#allocation6_spill] sm:$0xff] %v19484_v3  ;;  %v5031_v0 = vsel %vm495_vm0, %v15516_v21, 0  ;;  %v4143_v61 = vrot.slane %v4141_v53, 4  ;;  %v4213_v50 = vshrl.u32 %v15432_v25, 16 }
  0x47   : > { %v2760_v7 = vrot.slane %v1434_v51, 5  ;;  %24470 = vst [vmem:[#allocation7_spill] sm:$0xff] %v19490_v26  ;;  %24471 = vst [vmem:[#allocation8_spill] sm:$0xff] %v19492_v43  ;;  %v15426_v51 = vld [vmem:[%s19133_s10 + $0x24] sm:$0xf]  ;;  %v4146_v2 = vrot.slane %v4144_v4, 5 }
  0x48   : > { %v15431_v10 = vld [vmem:[%s19133_s10 + $0x38] sm:$0x1] }
  0x49   : > { %v2761_v17 = vsel %vm19142_vm3, %v2759_v5, %v2760_v7  ;;  %v15427_v5 = vld [vmem:[%s19133_s10 + $0x28] sm:$0xf] }
  0x4d   : > { %17204 = vmatmul.mubr.msk.bf16.gmra.mrb[8].mxu0 %vm446_vm4, %v15263_v12  ;;  %v2754_v12 = vsel %vm19142_vm3, %v2752_v55, %v2753_v56  ;;  %v19494_v56 = vrot.slane %v4126_v52, 5  ;;  %v4216_v52 = vshll.u32 %v15432_v25, 16 }
  0x4e   : > { %17207 = vmatprep.mubr.msk.bf16.mxu0 %vm446_vm4, %v15264_v19  ;;  %v15272_v14 = vcombine.low %v2751_v9, %v2754_v12  ;;  %v15273_v19 = vcombine.low %v2758_v16, %v2761_v17  ;;  %v15429_v9 = vld [vmem:[%s19133_s10 + $0x30] sm:$0xf]  ;;  %v15430_v12 = vld [vmem:[%s19133_s10 + $0x34] sm:$0xf]  ;;  %v15425_v16 = vld [vmem:[%s19133_s10 + $0x20] sm:$0x1] }
  0x4f   : > { %v4165_v17 = vshrl.u32 %v15426_v51, 16 }
  0x55   : > { %17208 = vmatmul.mubr.msk.bf16.gmra.mrb[12].mxu0 %vm446_vm4, %v15265_v41  ;;  %v15420_v41 = vld [vmem:[%s19133_s10 + $0xc] sm:$0xf] }
  0x56   : > { %17211 = vmatprep.mubr.msk.bf16.mxu0 %vm446_vm4, %v15266_v44  ;;  %v19474_v44 = vrot.slane %v1037_v8, 5  ;;  %v4117_v47 = vshrl.u32 %v15420_v41, 16  ;;  %v4120_v48 = vshll.u32 %v15420_v41, 16  ;;  %v4167_v8 = vrot.slane %v4165_v17, 4  ;;  %v18792_v17 = vld [vmem:[%s19205_s15 + $0x3c] sm:$0xff]  }
  0x58   : > { %24467 = vst [vmem:[#allocation4_spill] sm:$0xff] %v19474_v44  ;;  %v1044_v58 = vor.u32 %v1043_v15, %v19474_v44  ;;  %v4119_v11 = vrot.slane %v4117_v47, 4  ;;  %v4122_v55 = vrot.slane %v4120_v48, 5 }
  0x5a   : > { %v19496_v62 = vrot.slane %v1044_v58, 4  ;;  %v4123_v7 = vor.u32 %v4122_v55, %v4119_v11  ;;  %v15549_v58 = vld [vmem:[%s24327_s3 + $0x8] sm:$0x3] }
  0x5c   : > { %24472 = vst [vmem:[#allocation9_spill] sm:$0xff] %v19496_v62 }
  0x5d   : > { %17212 = vmatmul.mubr.msk.bf16.gmra.mrb[16].mxu0 %vm446_vm4, %v15267_v57  ;;  %v4130_v57 = vshrl.u32 %v15421_v30, 16  ;;  %v15433_v30 = vld [vmem:[%s19133_s10 + $0x40] sm:$0xf] }
  0x5e   : > { %17215 = vmatprep.mubr.msk.bf16.mxu0 %vm446_vm4, %v15268_v36  ;;  %v15424_v36 = vld [vmem:[%s19133_s10 + $0x1c] sm:$0xf]  ;;  %v4222_v53 = vshll.u32 %v15433_v30, 16  ;;  %v4226_v4 = vshrl.u32 %v15433_v30, 16 }
  0x5f   : > { %v4132_v59 = vrot.slane %v4130_v57, 4  ;;  %v4150_v40 = vshll.u32 %v15424_v36, 16 }
  0x65   : > { %17216 = vmatmul.mubr.msk.bf16.gmra.mrb[20].mxu0 %vm446_vm4, %v15269_v37  ;;  %v4154_v37 = vshrl.u32 %v15424_v36, 16 }
  0x66   : > { %17219 = vmatprep.mubr.msk.bf16.mxu0 %vm446_vm4, %v15270_v60  ;;  %v18788_v60 = vld [vmem:[%s19205_s15 + $0xc] sm:$0xff]  }
  0x6d   : > { %17220 = vmatmul.mubr.msk.bf16.gmra.mrb[24].mxu0 %vm446_vm4, %v15271_v13  ;;  %v15422_v13 = vld [vmem:[%s19133_s10 + $0x14] sm:$0x1] }
  0x6e   : > { %17223 = vmatprep.mubr.msk.bf16.mxu0 %vm446_vm4, %v15272_v14  ;;  %v4133_v14 = vor.u32 %v4132_v59, %v19494_v56 }
  0x75   : > { %17224 = vmatmul.mubr.msk.bf16.gmra.mrb[28].mxu0 %vm446_vm4, %v15273_v19  ;;  %v4168_v19 = vshll.u32 %v15426_v51, 16 }
  0x76   : > { %17229 = vmatprep.mubr.msk.bf16.mxu0 %vm446_vm4, %v18772_v20  ;;  %v19509_v20 = vrot.slane %v4150_v40, 5  ;;  %v15434_v40 = vld [vmem:[%s19133_s10 + $0x44] sm:$0x1] }
  0x77   : > { %v4170_v39 = vrot.slane %v4168_v19, 5  ;;  %v19549_v19 = vsel %vm495_vm0, %v15549_v58, 0 }
  0x79   : > { %v4171_v55 = vor.u32 %v4170_v39, %v4167_v8  ;;  %v15439_v8 = vld [vmem:[%s19133_s10 + $0x58] sm:$0xf] }
  0x7d   : > { %17230 = vmatmul.mubr.msk.bf16.vlgmr.msra.gmra.mrb[0].mxu0 %vm446_vm4, %v18773_v18  ;;  %v4156_v18 = vrot.slane %v4154_v37, 4  ;;  %v15435_v37 = vld [vmem:[%s19133_s10 + $0x48] sm:$0xf] }
  0x7e   : > { %17262 = vmatpush3.bf16.msra.mxu0 %v3873_v24  ;;  %17233 = vmatprep.mubr.msk.bf16.mxu0 %vm446_vm4, %v18774_v23  ;;  %v4174_v23 = vshll.u32 %v15427_v5, 16  ;;  %v4178_v24 = vshrl.u32 %v15427_v5, 16  ;;  %v4215_v5 = vrot.slane %v4213_v50, 4  ;;  %v4274_v50 = vshrl.u32 %v15439_v8, 16 }
  0x7f   : > { %18752 = vmatprep.subr.msk.bf16.mxu0 %vm495_vm0, %v15516_v21  ;;  %v4189_v21 = vshrl.u32 %v15429_v9, 16  ;;  %v4157_v41 = vor.u32 %v4156_v18, %v19509_v20  ;;  %v19551_v18 = vrot.slane %v4171_v55, 4  ;;  %v18794_v55 = vld [vmem:[%s19205_s15 + $0x54] sm:$0xff]  }
  0x80   : > { %v19521_v15 = vrot.slane %v4174_v23, 5 }
  0x81   : > { %v4158_v51 = vrot.slane %v4157_v41, 4  ;;  %v19575_v41 = vld [vmem:[%s19133_s10 + $0x50] sm:$0x1] }
  0x85   : > { %17234 = vmatmul.mubr.msk.bf16.gmra.mrb[4].mxu0 %vm446_vm4, %v18775_v27  ;;  %v4192_v27 = vshll.u32 %v15429_v9, 16  ;;  %v19543_v9 = vrot.slane %v4222_v53, 5 }
  0x86   : > { %17237 = vmatprep.mubr.msk.bf16.mxu0 %vm446_vm4, %v18776_v28  ;;  %v4198_v28 = vshll.u32 %v15430_v12, 16 }
  0x87   : > { %v4194_v47 = vrot.slane %v4192_v27, 5 }
  0x88   : > { %v19524_v48 = vrot.slane %v4198_v28, 5 }
  0x8d   : > { %17238 = vmatmul.mubr.msk.bf16.gmra.mrb[8].mxu0 %vm446_vm4, %v18777_v54  ;;  %v4202_v54 = vshrl.u32 %v15430_v12, 16  ;;  %v4228_v12 = vrot.slane %v4226_v4, 4  ;;  %v18793_v4 = vld [vmem:[%s19205_s15 + $0x48] sm:$0xff]  }
  0x8e   : > { %17241 = vmatprep.mubr.msk.bf16.mxu0 %vm446_vm4, %v18778_v29  ;;  %v18789_v29 = vld [vmem:[%s19205_s15 + $0x18] sm:$0xff]  }
  0x8f   : > { %v4204_v49 = vrot.slane %v4202_v54, 4  ;;  %v4229_v39 = vor.u32 %v4228_v12, %v19543_v9 }
  0x95   : > { %17242 = vmatmul.mubr.msk.bf16.gmra.mrb[12].mxu0 %vm446_vm4, %v18779_v31  ;;  %v19513_v31 = vrot.slane %v4123_v7, 4  ;;  %v4218_v7 = vrot.slane %v4216_v52, 5  ;;  %v15442_v52 = vld [vmem:[%s19133_s10 + $0x64] sm:$0xf] }
  0x96   : > { %17245 = vmatprep.mubr.msk.bf16.mxu0 %vm446_vm4, %v18780_v32  ;;  %v4136_v32 = vshll.u32 %v15422_v13, 16  ;;  %v4232_v13 = vshll.u32 %v15434_v40, 16 }
  0x98   : > { %v19527_v57 = vrot.slane %v4136_v32, 5  ;;  %v15438_v32 = vld [vmem:[%s19133_s10 + $0x54] sm:$0xf]  ;;  %v19572_v25 = vrot.slane %v4232_v13, 5  ;;  %v4276_v13 = vrot.slane %v4274_v50, 4 }
  0x9d   : > { %17246 = vmatmul.mubr.msk.bf16.gmra.mrb[16].mxu0 %vm446_vm4, %v18781_v33  ;;  %v4147_v33 = vor.u32 %v4146_v2, %v4143_v61  ;;  %v4205_v61 = vor.u32 %v4204_v49, %v19524_v48  ;;  %v4208_v2 = vshll.u32 %v15431_v10, 16  ;;  %v15441_v49 = vld [vmem:[%s19133_s10 + $0x60] sm:$0xf] }
  0x9e   : > { %17249 = vmatprep.mubr.msk.bf16.mxu0 %vm446_vm4, %v18782_v34  ;;  %v18790_v34 = vld [vmem:[%s19205_s15 + $0x24] sm:$0xff]  }
  0x9f   : > { %v19532_v36 = vrot.slane %v4147_v33, 4  ;;  %v19565_v28 = vrot.slane %v4205_v61, 4  ;;  %v19567_v54 = vrot.slane %v4208_v2, 5  ;;  %v4219_v33 = vor.u32 %v4218_v7, %v4215_v5  ;;  %v15445_v61 = vld [vmem:[%s19133_s10 + $0x70] sm:$0xf] }
  0xa0   : > { %v15440_v2 = vld [vmem:[%s19133_s10 + $0x5c] sm:$0x1] }
  0xa1   : > { %v4153_v10 = vsel %vm19559_vm7, %v19532_v36, %v19509_v20  ;;  %v4256_v20 = vshll.u32 %v19575_v41, 16  ;;  %v4285_v36 = vshrl.u32 %v15441_v49, 16  ;;  %v4280_v41 = vshll.u32 %v15440_v2, 16 }
  0xa5   : > { %17250 = vmatmul.mubr.msk.bf16.gmra.mrb[20].mxu0 %vm446_vm4, %v18783_v35  ;;  %v19516_v35 = vrot.slane %v4133_v14, 4  ;;  %v15436_v14 = vld [vmem:[%s19133_s10 + $0x4c] sm:$0xf] }
  0xa6   : > { %17253 = vmatprep.mubr.msk.bf16.mxu0 %vm446_vm4, %v18784_v38  ;;  %v4160_v38 = vshll.u32 %v15425_v16, 16  ;;  %v4237_v16 = vshrl.u32 %v15435_v37, 16 }
  0xa7   : > { %v4139_v30 = vsel %vm19559_vm7, %v19516_v35, %v19527_v57  ;;  %v19598_v35 = vrot.slane %v4219_v33, 4 }
  0xa8   : > { %v19535_v11 = vrot.slane %v4160_v38, 5  ;;  %v4250_v38 = vshrl.u32 %v15436_v14, 16 }
  0xaa   : > { %v4252_v53 = vrot.slane %v4250_v38, 4  ;;  %v4322_v38 = vshrl.u32 %v15445_v61, 16 }
  0xad   : > { %17254 = vmatmul.mubr.msk.bf16.gmra.mrb[24].mxu0 %vm446_vm4, %v18785_v45  ;;  %v4180_v45 = vrot.slane %v4178_v24, 4 }
  0xae   : > { %17257 = vmatprep.mubr.msk.bf16.mxu0 %vm446_vm4, %v18786_v46  ;;  %v4191_v46 = vrot.slane %v4189_v21, 4 }
  0xaf   : > { %v4181_v59 = vor.u32 %v4180_v45, %v19521_v15  ;;  %v4129_v45 = vsel %vm19559_vm7, %v19513_v31, %v19494_v56  ;;  %v4163_v56 = vsel %vm19559_vm7, %v4158_v51, %v19535_v11  ;;  %v4270_v31 = vshll.u32 %v15439_v8, 16 }
  0xb0   : > { %v4288_v11 = vshll.u32 %v15441_v49, 16  ;;  %v19609_v40 = vcombine.low %v4153_v10, %v4163_v56  ;;  %v4298_v51 = vshrl.u32 %v15442_v52, 16  ;;  %v4287_v8 = vrot.slane %v4285_v36, 4  ;;  %v15447_v49 = vld [vmem:[%s19133_s10 + $0x78] sm:$0xf] }
  0xb1   : > { %v19553_v23 = vrot.slane %v4181_v59, 4  ;;  %v19604_v59 = vrot.slane %v4229_v39, 4  ;;  %v19614_v12 = vrot.slane %v4270_v31, 5  ;;  %v15446_v10 = vld [vmem:[%s19133_s10 + $0x74] sm:$0x1] }
  0xb2   : > { %v4300_v39 = vrot.slane %v4298_v51, 4 }
  0xb5   : > { %17258 = vmatmul.mubr.msk.bf16.gmra.mrb[28].mxu0 %vm446_vm4, %v18787_v63  ;;  %v4184_v63 = vshll.u32 %v15428_v42, 16  ;;  %v19577_v42 = vrot.slane %v4237_v16, 4 }
  0xb6   : > { %17263 = vmatprep.mubr.msk.bf16.mxu0 %vm446_vm4, %v18788_v60  ;;  %v4195_v60 = vor.u32 %v4194_v47, %v4191_v46  ;;  %v4261_v46 = vshrl.u32 %v15438_v32, 16  ;;  %v4264_v47 = vshll.u32 %v15438_v32, 16 }
  0xb7   : > { %v19555_v24 = vrot.slane %v4184_v63, 5  ;;  %v19607_v63 = vcombine.low %v4129_v45, %v4139_v30 }
  0xb8   : > { %v19563_v27 = vrot.slane %v4195_v60, 4  ;;  %v15444_v60 = vld [vmem:[%s19133_s10 + $0x6c] sm:$0xf]  ;;  %v4263_v5 = vrot.slane %v4261_v46, 4  ;;  %v4266_v7 = vrot.slane %v4264_v47, 5  ;;  %v4211_v46 = vsel %vm19559_vm7, %v19565_v28, %v19567_v54 }
  0xb9   : > { %v4187_v16 = vsel %vm19559_vm7, %v19553_v23, %v19555_v24  ;;  %v4309_v32 = vshrl.u32 %v15444_v60, 16  ;;  %v4312_v33 = vshll.u32 %v15444_v60, 16  ;;  %v4277_v24 = vor.u32 %v4276_v13, %v19614_v12  ;;  %v15448_v54 = vld [vmem:[%s19133_s10 + $0x7c] sm:$0xf]  ;;  %v15450_v13 = vld [vmem:[%s19133_s10 + $0x84] sm:$0xf] }
  0xba   : > { %v4267_v23 = vor.u32 %v4266_v7, %v4263_v5  ;;  %v4201_v30 = vsel %vm19559_vm7, %v19563_v27, %v19524_v48  ;;  %v4225_v47 = vsel %vm19559_vm7, %v19598_v35, %v19543_v9  ;;  %v18796_v48 = vld [vmem:[%s19205_s15 + $0x6c] sm:$0xff]   ;;  %v4282_v35 = vrot.slane %v4280_v41, 5 }
  0xbb   : > { %v4311_v56 = vrot.slane %v4309_v32, 4  ;;  %v4314_v31 = vrot.slane %v4312_v33, 5  ;;  %v4278_v9 = vrot.slane %v4277_v24, 4  ;;  %v4328_v60 = vshll.u32 %v15446_v10, 16  ;;  %v15451_v33 = vld [vmem:[%s19133_s10 + $0x88] sm:$0xf] }
  0xbc   : > { %v4268_v36 = vrot.slane %v4267_v23, 4  ;;  %v4336_v5 = vshll.u32 %v15447_v49, 16  ;;  %v4342_v7 = vshll.u32 %v15448_v54, 16 }
  0xbd   : > { %17264 = vmatmul.mubr.msk.bf16.vlgmr.msra.gmra.mrb[0].mxu0 %vm446_vm4, %v18789_v29  ;;  %v4240_v29 = vshll.u32 %v15435_v37, 16  ;;  %v4294_v37 = vshll.u32 %v15442_v52, 16  ;;  %v4324_v52 = vrot.slane %v4322_v38, 4  ;;  %v4283_v32 = vsel %vm19559_vm7, %v4278_v9, %v4282_v35 }
  0xbe   : > { %17296 = vmatpush3.bf16.msra.mxu0 %v5031_v0  ;;  %17267 = vmatprep.mubr.msk.bf16.mxu0 %vm446_vm4, %v18790_v34  ;;  %v18791_v0 = vld [vmem:[%s19205_s15 + $0x30] sm:$0xff]   ;;  %v4246_v34 = vshll.u32 %v15436_v14, 16  ;;  %v4177_v14 = vsel %vm19559_vm7, %v19551_v18, %v19521_v15  ;;  %v4290_v15 = vrot.slane %v4288_v11, 5  ;;  %v15449_v11 = vld [vmem:[%s19133_s10 + $0x80] sm:$0x1]  ;;  %v19681_v38 = vrot.slane %v4328_v60, 5 }
  0xbf   : > { %18753 = vmatprep.subr.msk.bf16.mxu0 %vm495_vm0, %v15549_v58  ;;  %v4242_v57 = vrot.slane %v4240_v29, 5  ;;  %v15443_v29 = vld [vmem:[%s19133_s10 + $0x68] sm:$0x1]  ;;  %v19628_v18 = vrot.slane %v4294_v37, 5  ;;  %v19632_v45 = vcombine.low %v4177_v14, %v4187_v16  ;;  %v4235_v37 = vsel %vm19559_vm7, %v19604_v59, %v19572_v25  ;;  %v15452_v60 = vld [vmem:[%s19133_s10 + $0x8c] sm:$0x1] }
  0xc0   : > { %v19600_v58 = vrot.slane %v4246_v34, 5  ;;  %v4318_v34 = vshll.u32 %v15445_v61, 16  ;;  %v4333_v61 = vshrl.u32 %v15447_v49, 16  ;;  %v4346_v25 = vshrl.u32 %v15448_v54, 16 }
  0xc1   : > { %v4301_v28 = vor.u32 %v4300_v39, %v19628_v18  ;;  %v4352_v59 = vshll.u32 %v15449_v11, 16  ;;  %v4360_v39 = vshll.u32 %v15450_v13, 16  ;;  %v19692_v41 = vrot.slane %v4342_v7, 5  ;;  %v15459_v11 = vld [vmem:[%s19133_s10 + $0xa8] sm:$0xf] }
  0xc2   : > { %v19648_v50 = vrot.slane %v4318_v34, 5  ;;  %v18797_v34 = vld [vmem:[%s19205_s15 + $0x78] sm:$0xff]   ;;  %v19695_v49 = vrot.slane %v4346_v25, 4  ;;  %v4376_v7 = vshll.u32 %v15452_v60, 16 }
  0xc3   : > { %v19666_v16 = vrot.slane %v4301_v28, 4  ;;  %v19697_v10 = vrot.slane %v4352_v59, 5  ;;  %v15457_v28 = vld [vmem:[%s19133_s10 + $0xa0] sm:$0xf] }
  0xc4   : > { %v4325_v2 = vor.u32 %v4324_v52, %v19648_v50  ;;  %v15454_v52 = vld [vmem:[%s19133_s10 + $0x94] sm:$0xf] }
  0xc5   : > { %17268 = vmatmul.mubr.msk.bf16.gmra.mrb[4].mxu0 %vm446_vm4, %v18791_v0  ;;  %v4243_v0 = vor.u32 %v4242_v57, %v19577_v42  ;;  %v4304_v42 = vshll.u32 %v15443_v29, 16  ;;  %v18795_v57 = vld [vmem:[%s19205_s15 + $0x60] sm:$0xff]   ;;  %v4273_v29 = vsel %vm19559_vm7, %v4268_v36, %v19614_v12  ;;  %v19690_v12 = vrot.slane %v4336_v5, 5 }
  0xc6   : > { %17271 = vmatprep.mubr.msk.bf16.mxu0 %vm446_vm4, %v18792_v17  ;;  %v4253_v17 = vor.u32 %v4252_v53, %v19600_v58  ;;  %v4258_v53 = vrot.slane %v4256_v20, 5  ;;  %v4315_v20 = vor.u32 %v4314_v31, %v4311_v56  ;;  %v19688_v24 = vrot.slane %v4325_v2, 4 }
  0xc7   : > { %v4244_v27 = vrot.slane %v4243_v0, 4  ;;  %v19659_v51 = vrot.slane %v4304_v42, 5  ;;  %v15453_v42 = vld [vmem:[%s19133_s10 + $0x90] sm:$0xf]  ;;  %v4366_v56 = vshll.u32 %v15451_v33, 16  ;;  %v4370_v31 = vshrl.u32 %v15451_v33, 16 }
  0xc8   : > { %v19686_v23 = vrot.slane %v4315_v20, 4  ;;  %v4381_v36 = vshrl.u32 %v15453_v42, 16  ;;  %v4384_v9 = vshll.u32 %v15453_v42, 16  ;;  %v4414_v2 = vshll.u32 %v15457_v28, 16 }
  0xc9   : > { %v4249_v0 = vsel %vm19559_vm7, %v4244_v27, %v19600_v58  ;;  %v18798_v58 = vld [vmem:[%s19205_s15 + $0x84] sm:$0xff]   ;;  %v4418_v5 = vshrl.u32 %v15457_v28, 16  ;;  %v19729_v25 = vrot.slane %v4366_v56, 5  ;;  %v4372_v59 = vrot.slane %v4370_v31, 4  ;;  %v18800_v56 = vld [vmem:[%s19205_s15 + $0x9c] sm:$0xff]  }
  0xca   : > { %v4349_v31 = vor.u32 %v19695_v49, %v19692_v41 }
  0xcd   : > { %17272 = vmatmul.mubr.msk.bf16.gmra.mrb[8].mxu0 %vm446_vm4, %v18793_v4  ;;  %v4291_v4 = vor.u32 %v4290_v15, %v4287_v8  ;;  %v19683_v8 = vrot.slane %v4333_v61, 4  ;;  %v4357_v15 = vshrl.u32 %v15450_v13, 16 }
  0xce   : > { %17275 = vmatprep.mubr.msk.bf16.mxu0 %vm446_vm4, %v18794_v55  ;;  %v4254_v55 = vrot.slane %v4253_v17, 4 }
  0xcf   : > { %v19664_v14 = vrot.slane %v4291_v4, 4  ;;  %v15456_v4 = vld [vmem:[%s19133_s10 + $0x9c] sm:$0xf]  ;;  %v4359_v54 = vrot.slane %v4357_v15, 4  ;;  %v4339_v13 = vor.u32 %v19690_v12, %v19683_v8  ;;  %v4383_v15 = vrot.slane %v4381_v36, 4 }
  0xd0   : > { %v4259_v17 = vsel %vm19559_vm7, %v4254_v55, %v4258_v53  ;;  %v19706_v53 = vcombine.low %v4273_v29, %v4283_v32  ;;  %v4362_v55 = vrot.slane %v4360_v39, 5  ;;  %v4405_v61 = vshrl.u32 %v15456_v4, 16  ;;  %v15462_v36 = vld [vmem:[%s19133_s10 + $0xb4] sm:$0xf] }
  0xd1   : > { %v19704_v27 = vcombine.low %v4249_v0, %v4259_v17  ;;  %v4408_v20 = vshll.u32 %v15456_v4, 16  ;;  %v18799_v0 = vld [vmem:[%s19205_s15 + $0x90] sm:$0xff]   ;;  %v4429_v17 = vshrl.u32 %v15459_v11, 16  ;;  %v4432_v29 = vshll.u32 %v15459_v11, 16 }
  0xd2   : > { %v4386_v39 = vrot.slane %v4384_v9, 5  ;;  %v4407_v4 = vrot.slane %v4405_v61, 4  ;;  %v19736_v8 = vrot.slane %v4414_v2, 5  ;;  %v4420_v12 = vrot.slane %v4418_v5, 4  ;;  %v15461_v5 = vld [vmem:[%s19133_s10 + $0xb0] sm:$0x1] }
  0xd3   : > { %v4410_v28 = vrot.slane %v4408_v20, 5  ;;  %v4363_v11 = vor.u32 %v4362_v55, %v4359_v54  ;;  %v4431_v9 = vrot.slane %v4429_v17, 4  ;;  %v4453_v55 = vshrl.u32 %v15462_v36, 16 }
  0xd4   : > { %v4387_v61 = vor.u32 %v4386_v39, %v4383_v15  ;;  %v4421_v54 = vor.u32 %v4420_v12, %v19736_v8  ;;  %v4456_v60 = vshll.u32 %v15462_v36, 16  ;;  %v4350_v17 = vrot.slane %v4349_v31, 4  ;;  %v18801_v12 = vld [vmem:[%s19205_s15 + $0xa8] sm:$0xff]  }
  0xd5   : > { %17276 = vmatmul.mubr.msk.bf16.gmra.mrb[12].mxu0 %vm446_vm4, %v18795_v57  ;;  %v19700_v57 = vcombine.low %v4201_v30, %v4211_v46  ;;  %v4390_v46 = vshll.u32 %v15454_v52, 16  ;;  %v4411_v49 = vor.u32 %v4410_v28, %v4407_v4  ;;  %v4448_v39 = vshll.u32 %v15461_v5, 16  ;;  %v15465_v5 = vld [vmem:[%s19133_s10 + $0xc0] sm:$0xf] }
  0xd6   : > { %17279 = vmatprep.mubr.msk.bf16.mxu0 %vm446_vm4, %v18796_v48  ;;  %v19702_v48 = vcombine.low %v4225_v47, %v4235_v37  ;;  %v4394_v47 = vshrl.u32 %v15454_v52, 16  ;;  %v15460_v37 = vld [vmem:[%s19133_s10 + $0xac] sm:$0xf]  ;;  %v15458_v52 = vld [vmem:[%s19133_s10 + $0xa4] sm:$0x1]  ;;  %v4458_v31 = vrot.slane %v4456_v60, 5 }
  0xd7   : > { %v4438_v32 = vshll.u32 %v15460_v37, 16  ;;  %v4442_v33 = vshrl.u32 %v15460_v37, 16  ;;  %v4373_v37 = vor.u32 %v4372_v59, %v19729_v25  ;;  %v4424_v30 = vshll.u32 %v15458_v52, 16 }
  0xd8   : > { %v4396_v42 = vrot.slane %v4394_v47, 4  ;;  %v4340_v59 = vrot.slane %v4339_v13, 4  ;;  %v4412_v36 = vrot.slane %v4411_v49, 4  ;;  %v4455_v13 = vrot.slane %v4453_v55, 4 }
  0xd9   : > { %v19743_v35 = vrot.slane %v4438_v32, 5  ;;  %v4444_v47 = vrot.slane %v4442_v33, 4  ;;  %v4378_v32 = vrot.slane %v4376_v7, 5  ;;  %v4374_v33 = vrot.slane %v4373_v37, 4 }
  0xda   : > { %v4426_v28 = vrot.slane %v4424_v30, 5  ;;  %v4331_v7 = vsel %vm19559_vm7, %v19688_v24, %v19681_v38  ;;  %v4345_v37 = vsel %vm19559_vm7, %v4340_v59, %v19692_v41  ;;  %v4459_v55 = vor.u32 %v4458_v31, %v4455_v13 }
  0xdb   : > { %v4445_v15 = vor.u32 %v4444_v47, %v19743_v35  ;;  %v4355_v47 = vsel %vm19559_vm7, %v4350_v17, %v19697_v10  ;;  %v4379_v38 = vsel %vm19559_vm7, %v4374_v33, %v4378_v32  ;;  %v15466_v10 = vld [vmem:[%s19133_s10 + $0xc4] sm:$0xf]  ;;  %v4477_v17 = vshrl.u32 %v15465_v5, 16 }
  0xdc   : > { %v4486_v33 = vshll.u32 %v15466_v10, 16 }
  0xdd   : > { %17280 = vmatmul.mubr.msk.bf16.gmra.mrb[16].mxu0 %vm446_vm4, %v18797_v34  ;;  %v15455_v34 = vld [vmem:[%s19133_s10 + $0x98] sm:$0x1]  ;;  %v19830_v31 = vrot.slane %v4477_v17, 4 }
  0xde   : > { %17283 = vmatprep.mubr.msk.bf16.mxu0 %vm446_vm4, %v18798_v58  ;;  %v19733_v58 = vrot.slane %v4390_v46, 5  ;;  %v4434_v46 = vrot.slane %v4432_v29, 5  ;;  %v4400_v2 = vshll.u32 %v15455_v34, 16  ;;  %v4364_v29 = vrot.slane %v4363_v11, 4  ;;  %v18802_v11 = vld [vmem:[%s19205_s15 + $0xb4] sm:$0xff]  }
  0xe0   : > { %v4397_v20 = vor.u32 %v4396_v42, %v19733_v58  ;;  %v4435_v34 = vor.u32 %v4434_v46, %v4431_v9  ;;  %v4388_v42 = vrot.slane %v4387_v61, 4  ;;  %v4402_v4 = vrot.slane %v4400_v2, 5  ;;  %v15464_v9 = vld [vmem:[%s19133_s10 + $0xbc] sm:$0x1] }
  0xe1   : > { %v4450_v2 = vrot.slane %v4448_v39, 5  ;;  %v4369_v49 = vsel %vm19559_vm7, %v4364_v29, %v19729_v25  ;;  %v4472_v60 = vshll.u32 %v15464_v9, 16  ;;  %v4480_v29 = vshll.u32 %v15465_v5, 16 }
  0xe2   : > { %v4398_v52 = vrot.slane %v4397_v20, 4  ;;  %v4436_v61 = vrot.slane %v4435_v34, 4  ;;  %v4446_v20 = vrot.slane %v4445_v15, 4  ;;  %v4393_v24 = vsel %vm19559_vm7, %v4388_v42, %v19733_v58  ;;  %v18803_v15 = vld [vmem:[%s19205_s15 + $0xc0] sm:$0xff]  }
  0xe3   : > { %v4490_v34 = vshrl.u32 %v15466_v10, 16  ;;  %v24475_v39 = vsel %vm19559_vm7, %v19666_v16, %v19659_v51  ;;  %v15467_v51 = vld [vmem:[%s19133_s10 + $0xc8] sm:$0x1]  ;;  %v15468_v16 = vld [vmem:[%s19205_s15 + $0xc] sm:$0xf] }
  0xe4   : > { %v4403_v41 = vsel %vm19559_vm7, %v4398_v52, %v4402_v4  ;;  %v4441_v32 = vsel %vm19559_vm7, %v4436_v61, %v19743_v35  ;;  %v24477_v35 = vsel %vm19559_vm7, %v19686_v23, %v19648_v50  ;;  %v19811_v4 = vcombine.low %v4345_v37, %v4355_v47  ;;  %v15471_v50 = vld [vmem:[%s19205_s15 + $0x18] sm:$0xf]  ;;  %v15474_v47 = vld [vmem:[%s19205_s15 + $0x24] sm:$0xf] }
  0xe5   : > { %17284 = vmatmul.mubr.msk.bf16.gmra.mrb[20].mxu0 %vm446_vm4, %v18799_v0  ;;  %v15463_v0 = vld [vmem:[%s19133_s10 + $0xb8] sm:$0xf]  ;;  %v19809_v52 = vcombine.low %v24477_v35, %v4331_v7  ;;  %v15472_v7 = vld [vmem:[%s19205_s15 + $0x1c] sm:$0xf]  ;;  %v19835_v37 = vrot.slane %v4486_v33, 5  ;;  %v19837_v9 = vrot.slane %v4490_v34, 4 }
  0xe6   : > { %17287 = vmatprep.mubr.msk.bf16.mxu0 %vm446_vm4, %v18800_v56  ;;  %v4422_v56 = vrot.slane %v4421_v54, 4  ;;  %v4462_v46 = vshll.u32 %v15463_v0, 16  ;;  %v4466_v30 = vshrl.u32 %v15463_v0, 16  ;;  %v4417_v54 = vsel %vm19559_vm7, %v4412_v36, %v19736_v8  ;;  %v15477_v34 = vld [vmem:[%s19205_s15 + $0x30] sm:$0xf] }
  0xe7   : > { %v4451_v8 = vsel %vm19559_vm7, %v4446_v20, %v4450_v2  ;;  %v24476_v0 = vsel %vm19559_vm7, %v19664_v14, %v19628_v18  ;;  %v19821_v14 = vrot.slane %v4459_v55, 4  ;;  %v19823_v36 = vrot.slane %v4472_v60, 5 }
  0xe8   : > { %v4427_v25 = vsel %vm19559_vm7, %v4422_v56, %v4426_v28  ;;  %v19784_v58 = vrot.slane %v4462_v46, 5  ;;  %v4468_v59 = vrot.slane %v4466_v30, 4  ;;  %v19802_v42 = vcombine.low %v24476_v0, %v24475_v39  ;;  %v15469_v56 = vld [vmem:[%s19205_s15 + $0x10] sm:$0xf] }
  0xe9   : > { %v19813_v28 = vcombine.low %v4369_v49, %v4379_v38  ;;  %v19819_v18 = vcombine.low %v4417_v54, %v4427_v25  ;;  %v19827_v23 = vcombine.low %v4441_v32, %v4451_v8  ;;  %v4549_v46 = vshrl.u32 %v15468_v16, 16  ;;  %v15475_v49 = vld [vmem:[%s19205_s15 + $0x28] sm:$0xf]  ;;  %v365_v54 = vld [vmem:[%s24327_s3] sm:$0x3] }
  0xea   : > { %v4469_v13 = vor.u32 %v4468_v59, %v19784_v58  ;;  %v4552_v30 = vshll.u32 %v15468_v16, 16  ;;  %v4496_v61 = vshll.u32 %v15467_v51, 16  ;;  %v4558_v20 = vshll.u32 %v15469_v56, 16  ;;  %v18804_v25 = vld [vmem:[%s19205_s15] sm:$0xff]   ;;  %18743 = vmatprep.subr.msk.bf16.mxu1 %vm495_vm0, %v365_v54  ;;  %v18805_v51 = vld [vmem:[%s19205_s15 + $0xc] sm:$0xff]  }
  0xeb   : > { %v4562_v2 = vshrl.u32 %v15469_v56, 16  ;;  %v4573_v5 = vshrl.u32 %v15471_v50, 16  ;;  %v4465_v38 = vsel %vm19559_vm7, %v19821_v14, %v19784_v58  ;;  %v4586_v10 = vshrl.u32 %v15472_v7, 16  ;;  %17025 = vmatprep.mubr.msk.bf16.mxu1 %vm446_vm4, %v18804_v25 }
  0xec   : > { %v4470_v55 = vrot.slane %v4469_v13, 4  ;;  %v4597_v59 = vshrl.u32 %v15474_v47, 16  ;;  %v4600_v17 = vshll.u32 %v15474_v47, 16  ;;  %v4554_v32 = vrot.slane %v4552_v30, 5 }
  0xed   : > { %17288 = vmatmul.mubr.msk.bf16.gmra.mrb[24].mxu0 %vm446_vm4, %v18801_v12  ;;  %v19817_v12 = vcombine.low %v4393_v24, %v4403_v41  ;;  %v4576_v24 = vshll.u32 %v15471_v50, 16  ;;  %v4582_v41 = vshll.u32 %v15472_v7, 16  ;;  %v4606_v8 = vshll.u32 %v15475_v49, 16 }
  0xee   : > { %17291 = vmatprep.mubr.msk.bf16.mxu0 %vm446_vm4, %v18802_v11  ;;  %v19832_v11 = vrot.slane %v4480_v29, 5  ;;  %v4551_v29 = vrot.slane %v4549_v46, 4  ;;  %v4610_v33 = vshrl.u32 %v15475_v49, 16  ;;  %v19860_v39 = vrot.slane %v4558_v20, 5 }
  0xef   : > { %v4564_v0 = vrot.slane %v4562_v2, 4  ;;  %v497_v35 = vsel %vm495_vm0, %v365_v54, 0  ;;  %v4575_v16 = vrot.slane %v4573_v5, 4  ;;  %v4578_v56 = vrot.slane %v4576_v24, 5  ;;  %v19873_v2 = vld [vmem:[%s19205_s15 + $0x2c] sm:$0x1] }
  0xf0   : > { %v4483_v60 = vor.u32 %v19832_v11, %v19830_v31  ;;  %v19864_v50 = vrot.slane %v4582_v41, 5  ;;  %v4588_v13 = vrot.slane %v4586_v10, 4  ;;  %v19867_v31 = vld [vmem:[%s19205_s15 + $0x34] sm:$0xf]  ;;  %17024 = vmatpush3.bf16.msra.mxu1 %v497_v35  ;;  %v15473_v11 = vld [vmem:[%s19205_s15 + $0x20] sm:$0x1]  ;;  %v4555_v20 = vor.u32 %v4554_v32, %v4551_v29 }
  0xf1   : > { %v4599_v7 = vrot.slane %v4597_v59, 4  ;;  %v4602_v46 = vrot.slane %v4600_v17, 5  ;;  %v4624_v30 = vshll.u32 %v15477_v34, 16  ;;  %v19870_v47 = vrot.slane %v4496_v61, 5  ;;  %v15646_v10 = vld [vmem:[%s24326_s2 + $0xa] sm:$0x3] }
  0xf2   : > { %v19875_v49 = vrot.slane %v4606_v8, 5  ;;  %v4612_v5 = vrot.slane %v4610_v33, 4  ;;  %v4475_v24 = vsel %vm19559_vm7, %v4470_v55, %v19823_v36  ;;  %v4630_v54 = vshll.u32 %v19867_v31, 16 }
  0xf3   : > { %v4634_v61 = vshrl.u32 %v19867_v31, 16  ;;  %17026 = vmatmul.mubr.msk.bf16.vlgmr.msra.gmra.mrb[0].mxu1 %vm446_vm4, %v18805_v51  ;;  %v4565_v25 = vor.u32 %v4564_v0, %v19860_v39  ;;  %v4579_v59 = vor.u32 %v4578_v56, %v4575_v16  ;;  %v4589_v36 = vor.u32 %v4588_v13, %v19864_v50 }
  0xf4   : > { %v4592_v55 = vshll.u32 %v15473_v11, 16  ;;  %v4603_v17 = vor.u32 %v4602_v46, %v4599_v7  ;;  %v4616_v29 = vshll.u32 %v19873_v2, 16  ;;  %v4626_v8 = vrot.slane %v4624_v30, 5  ;;  %v19913_v46 = vld [vmem:[%s19205_s15 + $0x38] sm:$0x1] }
  0xf5   : > { %17292 = vmatmul.mubr.msk.bf16.gmra.mrb[28].mxu0 %vm446_vm4, %v18803_v15  ;;  %v15470_v15 = vld [vmem:[%s19205_s15 + $0x14] sm:$0x1]  ;;  %v4484_v33 = vrot.slane %v4483_v60, 4  ;;  %v4613_v0 = vor.u32 %v4612_v5, %v19875_v49  ;;  %v19905_v51 = vrot.slane %v4630_v54, 5  ;;  %v4636_v16 = vrot.slane %v4634_v61, 4 }
  0xf6   : > { %17297 = vmatprep.mubr.msk.bf16.mxu0 %vm446_vm4, %v19607_v63  ;;  %v4493_v63 = vor.u32 %v19837_v9, %v19835_v37  ;;  %v4621_v9 = vshrl.u32 %v15477_v34, 16  ;;  %v4568_v41 = vshll.u32 %v15470_v15, 16  ;;  %v4556_v15 = vrot.slane %v4555_v20, 4  ;;  %v19908_v60 = vld [vmem:[%s19205_s15 + $0x40] sm:$0xf] }
  0xf7   : > { %v4566_v56 = vrot.slane %v4565_v25, 4  ;;  %v4580_v13 = vrot.slane %v4579_v59, 4  ;;  %v4590_v11 = vrot.slane %v4589_v36, 4  ;;  %v4594_v7 = vrot.slane %v4592_v55, 5  ;;  %v19940_v55 = vld [vmem:[%s19205_s15 + $0x44] sm:$0x1] }
  0xf8   : > { %v4623_v32 = vrot.slane %v4621_v9, 4  ;;  %v4494_v34 = vrot.slane %v4493_v63, 4  ;;  %v4570_v35 = vrot.slane %v4568_v41, 5  ;;  %v18807_v63 = vld [vmem:[%s19205_s15 + $0x24] sm:$0xff]   ;;  %v4604_v9 = vrot.slane %v4603_v17, 4  ;;  %v18808_v17 = vld [vmem:[%s19205_s15 + $0x30] sm:$0xff]  }
  0xf9   : > { %v4618_v30 = vrot.slane %v4616_v29, 5  ;;  %v4654_v5 = vshll.u32 %v19908_v60, 16  ;;  %v4489_v41 = vsel %vm19559_vm7, %v4484_v33, %v19835_v37  ;;  %v4637_v61 = vor.u32 %v4636_v16, %v19905_v51  ;;  %v19960_v33 = vld [vmem:[%s19205_s15 + $0x4c] sm:$0xf] }
  0xfa   : > { %v4627_v58 = vor.u32 %v4626_v8, %v4623_v32  ;;  %v4499_v54 = vsel %vm19559_vm7, %v4494_v34, %v19870_v47  ;;  %v4640_v25 = vshll.u32 %v19913_v46, 16  ;;  %v4561_v59 = vsel %vm19559_vm7, %v4556_v15, %v19860_v39 }
  0xfb   : > { %v4571_v37 = vsel %vm19559_vm7, %v4566_v56, %v4570_v35  ;;  %v4585_v47 = vsel %vm19559_vm7, %v4580_v13, %v19864_v50  ;;  %v19937_v36 = vsel %vm495_vm0, %v15646_v10, 0  ;;  %v4609_v39 = vsel %vm19559_vm7, %v4604_v9, %v19875_v49  ;;  %v18809_v35 = vld [vmem:[%s19205_s15 + $0x3c] sm:$0xff]  }
  0xfc   : > { %v19950_v29 = vrot.slane %v4627_v58, 4  ;;  %v19963_v34 = vcombine.low %v4489_v41, %v4499_v54  ;;  %v19965_v49 = vrot.slane %v4637_v61, 4  ;;  %v19967_v15 = vrot.slane %v4640_v25, 5 }
  0xfd   : > { %17298 = vmatmul.mubr.msk.bf16.vlgmr.msra.gmra.mrb[0].mxu0 %vm446_vm4, %v19609_v40  ;;  %v18806_v40 = vld [vmem:[%s19205_s15 + $0x18] sm:$0xff]   ;;  %v19972_v16 = vcombine.low %v4561_v59, %v4571_v37  ;;  %v4678_v58 = vshll.u32 %v19960_v33, 16 }
  0xfe   : > { %17330 = vmatpush3.bf16.msra.mxu0 %v19549_v19  ;;  %17301 = vmatprep.mubr.msk.bf16.mxu0 %vm446_vm4, %v19632_v45  ;;  %v15480_v19 = vld [vmem:[%s19205_s15 + $0x3c] sm:$0xf]  ;;  %v19903_v45 = vcombine.low %v4465_v38, %v4475_v24  ;;  %v4614_v38 = vrot.slane %v4613_v0, 4  ;;  %v4658_v24 = vshrl.u32 %v19908_v60, 16  ;;  %v4664_v0 = vshll.u32 %v19940_v55, 16 }
  0xff   : > { %18754 = vmatprep.subr.msk.bf16.mxu0 %vm495_vm0, %v15646_v10  ;;  %17029 = vmatprep.mubr.msk.bf16.mxu1 %vm446_vm4, %v18806_v40  ;;  %v4645_v14 = vshrl.u32 %v15480_v19, 16  ;;  %v4648_v20 = vshll.u32 %v15480_v19, 16  ;;  %v15483_v10 = vld [vmem:[%s19205_s15 + $0x48] sm:$0xf]  ;;  %v15486_v19 = vld [vmem:[%s19205_s15 + $0x54] sm:$0xf] }
 0x100   : > { %17030 = vmatmul.mubr.msk.bf16.gmra.mrb[4].mxu1 %vm446_vm4, %v18807_v63  ;;  %v4619_v32 = vsel %vm19559_vm7, %v4614_v38, %v4618_v30  ;;  %v4660_v40 = vrot.slane %v4658_v24, 4  ;;  %v4669_v56 = vshrl.u32 %v15483_v10, 16  ;;  %v4672_v13 = vshll.u32 %v15483_v10, 16  ;;  %v19989_v38 = vld [vmem:[%s19205_s15 + $0x64] sm:$0xf]  ;;  %v18810_v10 = vld [vmem:[%s19205_s15 + $0x48] sm:$0xff]  }
 0x101   : > { %v19952_v50 = vrot.slane %v4645_v14, 4  ;;  %v4650_v8 = vrot.slane %v4648_v20, 5  ;;  %17033 = vmatprep.mubr.msk.bf16.mxu1 %vm446_vm4, %v18808_v17  ;;  %v19980_v9 = vcombine.low %v4609_v39, %v4619_v32  ;;  %v4682_v14 = vshrl.u32 %v19960_v33, 16  ;;  %v15492_v20 = vld [vmem:[%s19205_s15 + $0x6c] sm:$0xf] }
 0x102   : > { %v4693_v41 = vshrl.u32 %v15486_v19, 16  ;;  %v4696_v54 = vshll.u32 %v15486_v19, 16  ;;  %v4726_v17 = vshll.u32 %v19989_v38, 16  ;;  %v4741_v39 = vshrl.u32 %v15492_v20, 16 }
 0x103   : > { %v4671_v32 = vrot.slane %v4669_v56, 4  ;;  %v4684_v19 = vrot.slane %v4682_v14, 4 }
 0x104   : > { %v20021_v14 = vrot.slane %v4726_v17, 5 }
 0x105   : > { %17302 = vmatmul.mubr.msk.bf16.gmra.mrb[4].mxu0 %vm446_vm4, %v19700_v57  ;;  %v4595_v57 = vsel %vm19559_vm7, %v4590_v11, %v4594_v7  ;;  %v19977_v11 = vld [vmem:[%s19205_s15 + $0x58] sm:$0xf]  ;;  %v15489_v7 = vld [vmem:[%s19205_s15 + $0x60] sm:$0xf] }
 0x106   : > { %17305 = vmatprep.mubr.msk.bf16.mxu0 %vm446_vm4, %v19702_v48  ;;  %v19957_v48 = vrot.slane %v4654_v5, 5  ;;  %v19974_v63 = vcombine.low %v4585_v47, %v4595_v57  ;;  %v4651_v5 = vor.u32 %v4650_v8, %v19952_v50  ;;  %v4702_v61 = vshll.u32 %v19977_v11, 16  ;;  %v19997_v47 = vld [vmem:[%s19205_s15 + $0x70] sm:$0xf] }
 0x107   : > { %v4706_v25 = vshrl.u32 %v19977_v11, 16  ;;  %v4717_v59 = vshrl.u32 %v15489_v7, 16  ;;  %v4720_v37 = vshll.u32 %v15489_v7, 16  ;;  %v4730_v57 = vshrl.u32 %v19989_v38, 16 }
 0x108   : > { %v4661_v24 = vor.u32 %v4660_v40, %v19957_v48  ;;  %17034 = vmatmul.mubr.msk.bf16.gmra.mrb[8].mxu1 %vm446_vm4, %v18809_v35  ;;  %v4744_v50 = vshll.u32 %v15492_v20, 16  ;;  %v4674_v8 = vrot.slane %v4672_v13, 5  ;;  %v20007_v40 = vrot.slane %v4678_v58, 5  ;;  %v20010_v35 = vld [vmem:[%s19205_s15 + $0x50] sm:$0x1]  ;;  %v18811_v13 = vld [vmem:[%s19205_s15 + $0x54] sm:$0xff]  }
 0x109   : > { %v4698_v7 = vrot.slane %v4696_v54, 5  ;;  %v4750_v30 = vshll.u32 %v19997_v47, 16  ;;  %v4754_v1 = vshrl.u32 %v19997_v47, 16  ;;  %17037 = vmatprep.mubr.msk.bf16.mxu1 %vm446_vm4, %v18810_v10  ;;  %v20015_v20 = vrot.slane %v4702_v61, 5  ;;  %v20019_v58 = vld [vmem:[%s19205_s15 + $0x5c] sm:$0x1] }
 0x10a   : > { %v4719_v44 = vrot.slane %v4717_v59, 4  ;;  %v4722_v56 = vrot.slane %v4720_v37, 5  ;;  %v4743_v54 = vrot.slane %v4741_v39, 4  ;;  %v4746_v26 = vrot.slane %v4744_v50, 5  ;;  %v20028_v59 = vld [vmem:[%s19205_s15 + $0x68] sm:$0x1] }
 0x10b   : > { %v4643_v10 = vsel %vm19559_vm7, %v19965_v49, %v19967_v15  ;;  %v4652_v61 = vrot.slane %v4651_v5, 4  ;;  %v4662_v62 = vrot.slane %v4661_v24, 4  ;;  %v4675_v37 = vor.u32 %v4674_v8, %v4671_v32  ;;  %v15495_v39 = vld [vmem:[%s19205_s15 + $0x78] sm:$0xf]  ;;  %v20038_v15 = vld [vmem:[%s19205_s15 + $0x74] sm:$0x1] }
 0x10c   : > { %v4688_v43 = vshll.u32 %v20010_v35, 16  ;;  %v20031_v17 = vrot.slane %v4750_v30, 5  ;;  %v4685_v50 = vor.u32 %v4684_v19, %v20007_v40  ;;  %v4712_v49 = vshll.u32 %v20019_v58, 16  ;;  %24478 = vst [vmem:[#allocation10_spill] sm:$0xff] %v20038_v15  ;;  %v18812_v24 = vld [vmem:[%s19205_s15 + $0x60] sm:$0xff]  }
 0x10d   : > { %17306 = vmatmul.mubr.msk.bf16.gmra.mrb[8].mxu0 %vm446_vm4, %v19704_v27  ;;  %v4695_v27 = vrot.slane %v4693_v41, 4  ;;  %v4732_v41 = vrot.slane %v4730_v57, 4  ;;  %v4756_v57 = vrot.slane %v4754_v1, 4  ;;  %v4736_v1 = vshll.u32 %v20028_v59, 16 }
 0x10e   : > { %17309 = vmatprep.mubr.msk.bf16.mxu0 %vm446_vm4, %v19706_v53  ;;  %v4708_v53 = vrot.slane %v4706_v25, 4  ;;  %v4666_v25 = vrot.slane %v4664_v0, 5  ;;  %v4723_v0 = vor.u32 %v4722_v56, %v4719_v44  ;;  %v4747_v5 = vor.u32 %v4746_v26, %v4743_v54 }
 0x10f   : > { %v4699_v3 = vor.u32 %v4698_v7, %v4695_v27  ;;  %v4733_v30 = vor.u32 %v4732_v41, %v20021_v14  ;;  %v4657_v32 = vsel %vm19559_vm7, %v4652_v61, %v19957_v48  ;;  %v4765_v19 = vshrl.u32 %v15495_v39, 16  ;;  %v18813_v41 = vld [vmem:[%s19205_s15 + $0x6c] sm:$0xff]  }
 0x110   : > { %v4709_v22 = vor.u32 %v4708_v53, %v20015_v20  ;;  %17038 = vmatmul.mubr.msk.bf16.gmra.mrb[12].mxu1 %vm446_vm4, %v18811_v13  ;;  %v4667_v8 = vsel %vm19559_vm7, %v4662_v62, %v4666_v25  ;;  %v4676_v44 = vrot.slane %v4675_v37, 4  ;;  %v4690_v27 = vrot.slane %v4688_v43, 5  ;;  %v20056_v53 = vld [vmem:[%s19205_s15 + $0x7c] sm:$0xf]  ;;  %v20061_v43 = vld [vmem:[%s19205_s15 + $0x80] sm:$0x1] }
 0x111   : > { %v4757_v7 = vor.u32 %v4756_v57, %v20031_v17  ;;  %v4760_v26 = vshll.u32 %v20038_v15, 16  ;;  %17041 = vmatprep.mubr.msk.bf16.mxu1 %vm446_vm4, %v18812_v24  ;;  %v4700_v56 = vrot.slane %v4699_v3, 4  ;;  %v4714_v48 = vrot.slane %v4712_v49, 5  ;;  %24479 = vst [vmem:[#allocation11_spill] sm:$0xff] %v20061_v43 }
 0x112   : > { %v4710_v13 = vrot.slane %v4709_v22, 4  ;;  %v4724_v62 = vrot.slane %v4723_v0, 4  ;;  %v4734_v54 = vrot.slane %v4733_v30, 4  ;;  %v4738_v61 = vrot.slane %v4736_v1, 5  ;;  %v15498_v30 = vld [vmem:[%s19205_s15 + $0x84] sm:$0xf] }
 0x113   : > { %v4748_v25 = vrot.slane %v4747_v5, 4  ;;  %v4767_v37 = vrot.slane %v4765_v19, 4  ;;  %v4778_v15 = vshrl.u32 %v20056_v53, 16  ;;  %v24480_v22 = vsel %vm19559_vm7, %v19950_v29, %v19905_v51  ;;  %v20102_v19 = vld [vmem:[%s19205_s15 + $0x94] sm:$0xf] }
 0x114   : > { %v20070_v3 = vcombine.low %v24480_v22, %v4643_v10  ;;  %v4758_v49 = vrot.slane %v4757_v7, 4  ;;  %v4762_v0 = vrot.slane %v4760_v26, 5  ;;  %v4681_v1 = vsel %vm19559_vm7, %v4676_v44, %v20007_v40  ;;  %v20086_v10 = vld [vmem:[%s19205_s15 + $0x88] sm:$0xf]  ;;  %24481 = vst [vmem:[#allocation12_spill] sm:$0xff] %v20102_v19 }
 0x115   : > { %17310 = vmatmul.mubr.msk.bf16.gmra.mrb[12].mxu0 %vm446_vm4, %v19802_v42  ;;  %v4768_v42 = vshll.u32 %v15495_v39, 16  ;;  %v4774_v39 = vshll.u32 %v20056_v53, 16  ;;  %v4705_v51 = vsel %vm19559_vm7, %v4700_v56, %v20015_v20  ;;  %v4715_v29 = vsel %vm19559_vm7, %v4710_v13, %v4714_v48 }
 0x116   : > { %17313 = vmatprep.mubr.msk.bf16.mxu0 %vm446_vm4, %v19809_v52  ;;  %v4686_v52 = vrot.slane %v4685_v50, 4  ;;  %v20072_v50 = vcombine.low %v4657_v32, %v4667_v8  ;;  %v4729_v40 = vsel %vm19559_vm7, %v4724_v62, %v20021_v14  ;;  %v4739_v24 = vsel %vm19559_vm7, %v4734_v54, %v4738_v61  ;;  %v15501_v8 = vld [vmem:[%s19205_s15 + $0x90] sm:$0xf] }
 0x117   : > { %v4770_v57 = vrot.slane %v4768_v42, 5  ;;  %v4753_v20 = vsel %vm19559_vm7, %v4748_v25, %v20031_v17  ;;  %v4784_v32 = vshll.u32 %v20061_v43, 16  ;;  %v18814_v42 = vld [vmem:[%s19205_s15 + $0x78] sm:$0xff]   ;;  %v20107_v44 = vrot.slane %v4774_v39, 5  ;;  %v20112_v17 = vld [vmem:[%s19205_s15 + $0x8c] sm:$0x1] }
 0x118   : > { %v4691_v5 = vsel %vm19559_vm7, %v4686_v52, %v4690_v27  ;;  %17042 = vmatmul.mubr.msk.bf16.gmra.mrb[16].mxu1 %vm446_vm4, %v18813_v41  ;;  %v4780_v14 = vrot.slane %v4778_v15, 4  ;;  %v4789_v27 = vshrl.u32 %v15498_v30, 16  ;;  %v4763_v7 = vsel %vm19559_vm7, %v4758_v49, %v4762_v0  ;;  %24482 = vst [vmem:[#allocation13_spill] sm:$0xff] %v20112_v17  ;;  %v18815_v41 = vld [vmem:[%s19205_s15 + $0x84] sm:$0xff]   ;;  %v20135_v0 = vld [vmem:[%s19205_s15 + $0xa0] sm:$0xf] }
 0x119   : > { %v4792_v26 = vshll.u32 %v15498_v30, 16  ;;  %v4798_v52 = vshll.u32 %v20086_v10, 16  ;;  %v4802_v56 = vshrl.u32 %v20086_v10, 16  ;;  %17045 = vmatprep.mubr.msk.bf16.mxu1 %vm446_vm4, %v18814_v42  ;;  %v4816_v13 = vshll.u32 %v15501_v8, 16  ;;  %24483 = vst [vmem:[#allocation14_spill] sm:$0xff] %v20135_v0  ;;  %v18817_v43 = vld [vmem:[%s19205_s15 + $0x9c] sm:$0xff]  }
 0x11a   : > { %v4822_v15 = vshll.u32 %v20102_v19, 16  ;;  %v4826_v48 = vshrl.u32 %v20102_v19, 16  ;;  %v20120_v62 = vcombine.low %v4681_v1, %v4691_v5  ;;  %v20122_v54 = vcombine.low %v4705_v51, %v4715_v29  ;;  %v15507_v30 = vld [vmem:[%s19205_s15 + $0xa8] sm:$0xf] }
 0x11b   : > { %v20124_v61 = vcombine.low %v4729_v40, %v4739_v24  ;;  %v20126_v25 = vrot.slane %v4784_v32, 5  ;;  %v4781_v22 = vor.u32 %v4780_v14, %v20107_v44  ;;  %v4791_v49 = vrot.slane %v4789_v27, 4  ;;  %v20142_v40 = vld [vmem:[%s19205_s15 + $0xac] sm:$0xf]  ;;  %v20145_v24 = vld [vmem:[%s19205_s15 + $0x98] sm:$0x1] }
 0x11c   : > { %v4794_v1 = vrot.slane %v4792_v26, 5  ;;  %v20138_v5 = vrot.slane %v4798_v52, 5  ;;  %v4804_v51 = vrot.slane %v4802_v56, 4  ;;  %v4808_v29 = vshll.u32 %v20112_v17, 16  ;;  %24484 = vst [vmem:[#allocation15_spill] sm:$0xff] %v20142_v40  ;;  %24485 = vst [vmem:[#allocation16_spill] sm:$0xff] %v20145_v24 }
 0x11d   : > { %17314 = vmatmul.mubr.msk.bf16.gmra.mrb[16].mxu0 %vm446_vm4, %v19811_v4  ;;  %v4771_v4 = vor.u32 %v4770_v57, %v4767_v37  ;;  %v15504_v37 = vld [vmem:[%s19205_s15 + $0x9c] sm:$0xf]  ;;  %v20129_v57 = vcombine.low %v4753_v20, %v4763_v7  ;;  %v4818_v32 = vrot.slane %v4816_v13, 5  ;;  %v4828_v42 = vrot.slane %v4826_v48, 4  ;;  %v18816_v26 = vld [vmem:[%s19205_s15 + $0x90] sm:$0xff]  }
 0x11e   : > { %17317 = vmatprep.mubr.msk.bf16.mxu0 %vm446_vm4, %v19813_v28  ;;  %v4813_v28 = vshrl.u32 %v15501_v8, 16  ;;  %v20147_v8 = vrot.slane %v4822_v15, 5  ;;  %v4840_v14 = vshll.u32 %v15504_v37, 16  ;;  %v4846_v27 = vshll.u32 %v20135_v0, 16  ;;  %v20170_v17 = vld [vmem:[%s19205_s15 + $0xa4] sm:$0x1] }
 0x11f   : > { %v20131_v39 = vrot.slane %v4771_v4, 4  ;;  %v4837_v4 = vshrl.u32 %v15504_v37, 16  ;;  %v4850_v7 = vshrl.u32 %v20135_v0, 16  ;;  %v4861_v52 = vshrl.u32 %v15507_v30, 16  ;;  %24486 = vst [vmem:[#allocation17_spill] sm:$0xff] %v20170_v17 }
 0x120   : > { %v4815_v20 = vrot.slane %v4813_v28, 4  ;;  %17046 = vmatmul.mubr.msk.bf16.gmra.mrb[20].mxu1 %vm446_vm4, %v18815_v41  ;;  %v4864_v56 = vshll.u32 %v15507_v30, 16  ;;  %v4870_v28 = vshll.u32 %v20142_v40, 16  ;;  %v4874_v13 = vshrl.u32 %v20142_v40, 16  ;;  %v15510_v0 = vld [vmem:[%s19205_s15 + $0xb4] sm:$0xf] }
 0x121   : > { %v4782_v15 = vrot.slane %v4781_v22, 4  ;;  %v4795_v48 = vor.u32 %v4794_v1, %v4791_v49  ;;  %v20163_v41 = vrot.slane %v4808_v29, 5  ;;  %17049 = vmatprep.mubr.msk.bf16.mxu1 %vm446_vm4, %v18816_v26  ;;  %v4829_v30 = vor.u32 %v4828_v42, %v20147_v8  ;;  %v20177_v1 = vld [vmem:[%s19205_s15 + $0xb8] sm:$0xf] }
 0x122   : > { %v4819_v37 = vor.u32 %v4818_v32, %v4815_v20  ;;  %v4832_v40 = vshll.u32 %v20145_v24, 16  ;;  %v20174_v22 = vrot.slane %v4846_v27, 5  ;;  %v4852_v49 = vrot.slane %v4850_v7, 4  ;;  %24487 = vst [vmem:[#allocation18_spill] sm:$0xff] %v20177_v1 }
 0x123   : > { %v4863_v29 = vrot.slane %v4861_v52, 4  ;;  %v20179_v20 = vrot.slane %v4870_v28, 5  ;;  %v4876_v32 = vrot.slane %v4874_v13, 4  ;;  %v4787_v42 = vsel %vm19559_vm7, %v4782_v15, %v20126_v25  ;;  %v15513_v28 = vld [vmem:[%s19205_s15 + $0xc0] sm:$0xf] }
 0x124   : > { %v20184_v26 = vrot.slane %v4795_v48, 4  ;;  %v4888_v27 = vshll.u32 %v15510_v0, 16  ;;  %v4856_v7 = vshll.u32 %v20170_v17, 16  ;;  %v4894_v52 = vshll.u32 %v20177_v1, 16  ;;  %v18818_v48 = vld [vmem:[%s19205_s15 + $0xa8] sm:$0xff]  }
 0x125   : > { %17318 = vmatmul.mubr.msk.bf16.gmra.mrb[20].mxu0 %vm446_vm4, %v19817_v12  ;;  %v4777_v12 = vsel %vm19559_vm7, %v20131_v39, %v20107_v44  ;;  %v4839_v44 = vrot.slane %v4837_v4, 4  ;;  %v4842_v39 = vrot.slane %v4840_v14, 5  ;;  %v20187_v4 = vld [vmem:[%s19205_s15 + $0xb0] sm:$0x1]  ;;  %v4885_v14 = vshrl.u32 %v15510_v0, 16 }
 0x126   : > { %17321 = vmatprep.mubr.msk.bf16.mxu0 %vm446_vm4, %v19819_v18  ;;  %v4805_v18 = vor.u32 %v4804_v51, %v20138_v5  ;;  %v4866_v51 = vrot.slane %v4864_v56, 5  ;;  %24488 = vst [vmem:[#allocation19_spill] sm:$0xff] %v20187_v4  ;;  %v4898_v56 = vshrl.u32 %v20177_v1, 16  ;;  %v20198_v25 = vrot.slane %v4819_v37, 4  ;;  %v20211_v37 = vld [vmem:[%s19205_s15 + $0xc4] sm:$0xf] }
 0x127   : > { %v20200_v13 = vrot.slane %v4832_v40, 5  ;;  %v4843_v0 = vor.u32 %v4842_v39, %v4839_v44  ;;  %v4853_v15 = vor.u32 %v4852_v49, %v20174_v22  ;;  %24489 = vst [vmem:[#allocation20_spill] sm:$0xff] %v20211_v37  ;;  %v4887_v40 = vrot.slane %v4885_v14, 4 }
 0x128   : > { %v20189_v24 = vrot.slane %v4805_v18, 4  ;;  %17050 = vmatmul.mubr.msk.bf16.gmra.mrb[24].mxu1 %vm446_vm4, %v18817_v43  ;;  %v20206_v18 = vrot.slane %v4829_v30, 4  ;;  %v4867_v1 = vor.u32 %v4866_v51, %v4863_v29  ;;  %v4877_v43 = vor.u32 %v4876_v32, %v20179_v20  ;;  %v18819_v51 = vld [vmem:[%s19205_s15 + $0xb4] sm:$0xff]  }
 0x129   : > { %v4890_v17 = vrot.slane %v4888_v27, 5  ;;  %v4909_v44 = vshrl.u32 %v15513_v28, 16  ;;  %v4912_v39 = vshll.u32 %v15513_v28, 16  ;;  %17053 = vmatprep.mubr.msk.bf16.mxu1 %vm446_vm4, %v18818_v48  ;;  %v20214_v49 = vcombine.low %v4777_v12, %v4787_v42 }
 0x12a   : > { %v4858_v19 = vrot.slane %v4856_v7, 5  ;;  %v20219_v30 = vrot.slane %v4894_v52, 5  ;;  %v4900_v29 = vrot.slane %v4898_v56, 4  ;;  %v4844_v32 = vrot.slane %v4843_v0, 4 }
 0x12b   : > { %v4918_v14 = vshll.u32 %v20211_v37, 16  ;;  %v4922_v27 = vshrl.u32 %v20211_v37, 16  ;;  %v4801_v12 = vsel %vm19559_vm7, %v20184_v26, %v20138_v5  ;;  %v4868_v42 = vrot.slane %v4867_v1, 4  ;;  %v20243_v1 = vld [vmem:[%s19205_s15 + $0xc8] sm:$0x1] }
 0x12c   : > { %v4878_v7 = vrot.slane %v4877_v43, 4  ;;  %v4891_v52 = vor.u32 %v4890_v17, %v4887_v40  ;;  %v4911_v0 = vrot.slane %v4909_v44, 4  ;;  %v4914_v48 = vrot.slane %v4912_v39, 5  ;;  %v15582_v26 = vld [vmem:[%s19133_s10 + $0xc] sm:$0xe] }
 0x12d   : > { %17322 = vmatmul.mubr.msk.bf16.gmra.mrb[24].mxu0 %vm446_vm4, %v19827_v23  ;;  %v4880_v23 = vshll.u32 %v20187_v4, 16  ;;  %v4854_v4 = vrot.slane %v4853_v15, 4  ;;  %v4811_v15 = vsel %vm19559_vm7, %v20189_v24, %v20163_v41  ;;  %v4825_v37 = vsel %vm19559_vm7, %v20198_v25, %v20147_v8 }
 0x12e   : > { %17325 = vmatprep.mubr.msk.bf16.mxu0 %vm446_vm4, %v19903_v45  ;;  %v20217_v45 = vld [vmem:[%s19205_s15 + $0xbc] sm:$0x1]  ;;  %v4835_v17 = vsel %vm19559_vm7, %v20206_v18, %v20200_v13  ;;  %v4901_v5 = vor.u32 %v4900_v29, %v20219_v30  ;;  %v4849_v24 = vsel %vm19559_vm7, %v4844_v32, %v20174_v22  ;;  %v20254_v41 = vrot.slane %v4918_v14, 5  ;;  %v364_v13 = vld [vmem:[%s24326_s2] sm:$0x3] }
 0x12f   : > { %v4882_v28 = vrot.slane %v4880_v23, 5  ;;  %v4904_v56 = vshll.u32 %v20217_v45, 16  ;;  %v4859_v8 = vsel %vm19559_vm7, %v4854_v4, %v4858_v19  ;;  %v4924_v25 = vrot.slane %v4922_v27, 4  ;;  %v18820_v18 = vld [vmem:[%s19133_s10] sm:$0xff]   ;;  %v18918_v22 = vld [vmem:[%s19133_s10 + $0x10] sm:$0xf]  ;;  %18744 = vmatprep.subr.msk.bf16.mxu1 %vm495_vm0, %v364_v13 }
 0x130   : > { %17054 = vmatmul.mubr.msk.bf16.gmra.mrb[28].mxu1 %vm446_vm4, %v18819_v51  ;;  %v5586_v4 = vrot.slane %v18918_v22, 5  ;;  %v789_v43 = vsel %vm495_vm0, %v364_v13, 0  ;;  %v4892_v23 = vrot.slane %v4891_v52, 4  ;;  %v4928_v44 = vshll.u32 %v20243_v1, 16  ;;  %v15583_v51 = vld [vmem:[%s19133_s10 + $0x18] sm:$0xe] }
 0x131   : > { %v4883_v19 = vsel %vm19559_vm7, %v4878_v7, %v4882_v28  ;;  %v4906_v40 = vrot.slane %v4904_v56, 5  ;;  %17058 = vmatpush3.bf16.msra.mxu1 %v789_v43  ;;  %17059 = vmatprep.mubr.msk.bf16.mxu1 %vm446_vm4, %v18820_v18  ;;  %v4902_v39 = vrot.slane %v4901_v5, 4  ;;  %v15598_v29 = vrot.slane %v15582_v26, 9  ;;  %v18919_v32 = vld [vmem:[%s19133_s10 + $0x1c] sm:$0xf]  ;;  %v18821_v27 = vld [vmem:[%s19133_s10 + $0xc] sm:$0xff]  }
 0x132   : > { %v5593_v14 = vrot.slane %v18919_v32, 5  ;;  %v20279_v7 = vcombine.low %v4849_v24, %v4859_v8  ;;  %v4925_v28 = vor.u32 %v4924_v25, %v20254_v41  ;;  %v18920_v52 = vld [vmem:[%s19133_s10 + $0x28] sm:$0xf]  ;;  %v15584_v5 = vld [vmem:[%s19133_s10 + $0x24] sm:$0xe]  ;;  %v20293_v24 = vrot.slane %v4928_v44, 5 }
 0x133   : > { %v5600_v56 = vrot.slane %v18920_v52, 5  ;;  %v18922_v26 = vld [vmem:[%s19133_s10 + $0x34] sm:$0xf]  ;;  %v15599_v8 = vrot.slane %v15583_v51, 9  ;;  %v15585_v25 = vld [vmem:[%s19133_s10 + $0x30] sm:$0xe]  ;;  %v4907_v18 = vsel %vm19559_vm7, %v4902_v39, %v4906_v40 }
 0x134   : > { %v5607_v13 = vrot.slane %v18922_v26, 5  ;;  %v18923_v22 = vld [vmem:[%s19133_s10 + $0x20] sm:$0x1]  ;;  %v15600_v40 = vrot.slane %v15584_v5, 9  ;;  %v18925_v51 = vld [vmem:[%s19133_s10 + $0x38] sm:$0x1] }
 0x135   : > { %17326 = vmatmul.mubr.msk.bf16.gmra.mrb[28].mxu0 %vm446_vm4, %v19963_v34  ;;  %v4873_v34 = vsel %vm19559_vm7, %v4868_v42, %v20179_v20  ;;  %v20272_v20 = vcombine.low %v4801_v12, %v4811_v15  ;;  %v20277_v42 = vcombine.low %v4825_v37, %v4835_v17  ;;  %v5588_v12 = vrot.slane %v5586_v4, 4  ;;  %v15586_v52 = vld [vmem:[%s19133_s10 + $0x3c] sm:$0xe]  ;;  %v15587_v26 = vld [vmem:[%s19133_s10 + $0x48] sm:$0xe] }
 0x136   : > { %17331 = vmatprep.mubr.msk.bf16.mxu0 %vm446_vm4, %v19972_v16  ;;  %v4915_v16 = vor.u32 %v4914_v48, %v4911_v0  ;;  %v20283_v0 = vcombine.low %v4873_v34, %v4883_v19  ;;  %v18921_v48 = vld [vmem:[%s19133_s10 + $0x14] sm:$0x1]  ;;  %v4897_v37 = vsel %vm19559_vm7, %v4892_v23, %v20219_v30  ;;  %v20300_v34 = vsel %vm19142_vm3, %v15598_v29, %v5586_v4  ;;  %v15679_v19 = vld [vmem:[%s24327_s3 + $0xa] sm:$0x3]  ;;  %v18924_v4 = vld [vmem:[%s19133_s10 + $0x2c] sm:$0x1] }
 0x137   : > { %v5589_v15 = vrot.slane %v18921_v48, 5  ;;  %v5595_v30 = vrot.slane %v5593_v14, 4  ;;  %v5596_v43 = vrot.slane %v18923_v22, 5  ;;  %v4926_v23 = vrot.slane %v4925_v28, 4  ;;  %v15588_v22 = vld [vmem:[%s19133_s10 + $0x54] sm:$0xe] }
 0x138   : > { %v20291_v17 = vrot.slane %v4915_v16, 4  ;;  %17060 = vmatmul.mubr.msk.bf16.vlgmr.msra.gmra.mrb[0].mxu1 %vm446_vm4, %v18821_v27  ;;  %v5602_v16 = vrot.slane %v5600_v56, 4  ;;  %v5603_v44 = vrot.slane %v18924_v4, 5  ;;  %v15601_v29 = vrot.slane %v15585_v25, 9  ;;  %v18822_v27 = vld [vmem:[%s19133_s10 + $0x18] sm:$0xff]  }
 0x139   : > { %v20315_v39 = vsel %vm19142_vm3, %v5588_v12, %v5589_v15  ;;  %v5610_v32 = vrot.slane %v18925_v51, 5  ;;  %v20319_v28 = vcombine.low %v4897_v37, %v4907_v18  ;;  %v18926_v12 = vld [vmem:[%s19133_s10 + $0x40] sm:$0xf]  ;;  %v20334_v15 = vsel %vm19142_vm3, %v5595_v30, %v5596_v43  ;;  %17063 = vmatprep.mubr.msk.bf16.mxu1 %vm446_vm4, %v18822_v27  ;;  %v18930_v27 = vld [vmem:[%s19133_s10 + $0x64] sm:$0xf] }
 0x13a   : > { %v5614_v48 = vrot.slane %v18926_v12, 5  ;;  %v20337_v5 = vsel %vm495_vm0, %v15679_v19, 0  ;;  %v4931_v25 = vsel %vm19559_vm7, %v4926_v23, %v20293_v24  ;;  %v20355_v30 = vsel %vm19142_vm3, %v5602_v16, %v5603_v44  ;;  %v18929_v23 = vld [vmem:[%s19133_s10 + $0x44] sm:$0x1]  ;;  %v15589_v51 = vld [vmem:[%s19133_s10 + $0x60] sm:$0xe] }
 0x13b   : > { %24491 = vst [vmem:[#allocation22_spill] sm:$0xff] %v20355_v30  ;;  %v20360_v43 = vsel %vm19142_vm3, %v15601_v29, %v5607_v13  ;;  %v5617_v4 = vrot.slane %v18929_v23, 5  ;;  %v15603_v16 = vrot.slane %v15587_v26, 9  ;;  %v18931_v44 = vld [vmem:[%s19133_s10 + $0x50] sm:$0x1]  ;;  %v15605_v26 = vrot.slane %v15589_v51, 9 }
 0x13c   : > { %24492 = vst [vmem:[#allocation23_spill] sm:$0xff] %v20360_v43  ;;  %v5616_v12 = vrot.slane %v5614_v48, 4  ;;  %v18932_v18 = vld [vmem:[%s19133_s10 + $0x5c] sm:$0x1]  ;;  %v18933_v23 = vld [vmem:[%s19133_s10 + $0x70] sm:$0xf] }
 0x13d   : > { %17332 = vmatmul.mubr.msk.bf16.vlgmr.msra.gmra.mrb[0].mxu0 %vm446_vm4, %v19974_v63  ;;  %v5609_v63 = vrot.slane %v5607_v13, 4  ;;  %v15604_v13 = vrot.slane %v15588_v22, 9  ;;  %v5642_v22 = vrot.slane %v18933_v23, 5  ;;  %v18936_v30 = vld [vmem:[%s19133_s10 + $0x88] sm:$0xf] }
 0x13e   : > { %17364 = vmatpush3.bf16.msra.mxu0 %v19937_v36  ;;  %17335 = vmatprep.mubr.msk.bf16.mxu0 %vm446_vm4, %v19980_v9  ;;  %v4921_v36 = vsel %vm19559_vm7, %v20291_v17, %v20254_v41  ;;  %v20328_v9 = vsel %vm19142_vm3, %v15599_v8, %v5593_v14  ;;  %v18927_v41 = vld [vmem:[%s19133_s10 + $0x4c] sm:$0xf]  ;;  %v18928_v17 = vld [vmem:[%s19133_s10 + $0x58] sm:$0xf]  ;;  %v18823_v8 = vld [vmem:[%s19133_s10 + $0x24] sm:$0xff]  }
 0x13f   : > { %18755 = vmatprep.subr.msk.bf16.mxu0 %vm495_vm0, %v15679_v19  ;;  %v5621_v37 = vrot.slane %v18927_v41, 5  ;;  %v5628_v14 = vrot.slane %v18928_v17, 5  ;;  %v20351_v19 = vsel %vm19142_vm3, %v15600_v40, %v5600_v56  ;;  %v20364_v24 = vsel %vm19142_vm3, %v5609_v63, %v5610_v32  ;;  %v18939_v43 = vld [vmem:[%s19133_s10 + $0x8c] sm:$0x1] }
 0x140   : > { %24490 = vst [vmem:[#allocation21_spill] sm:$0xff] %v20351_v19  ;;  %24493 = vst [vmem:[#allocation24_spill] sm:$0xff] %v20364_v24  ;;  %v5635_v56 = vrot.slane %v18930_v27, 5  ;;  %v15602_v40 = vrot.slane %v15586_v52, 9  ;;  %v5624_v41 = vrot.slane %v18931_v44, 5  ;;  %v5631_v63 = vrot.slane %v18932_v18, 5  ;;  %17064 = vmatmul.mubr.msk.bf16.gmra.mrb[4].mxu1 %vm446_vm4, %v18823_v8 }
 0x141   : > { %v5623_v17 = vrot.slane %v5621_v37, 4  ;;  %v5630_v29 = vrot.slane %v5628_v14, 4  ;;  %v20374_v32 = vcombine.low %v4921_v36, %v4931_v25  ;;  %v18824_v27 = vld [vmem:[%s19133_s10 + $0x30] sm:$0xff]   ;;  %v18934_v44 = vld [vmem:[%s19133_s10 + $0x68] sm:$0x1]  ;;  %v5656_v19 = vrot.slane %v18936_v30, 5 }
 0x142   : > { %v5637_v18 = vrot.slane %v5635_v56, 4  ;;  %v15590_v36 = vld [vmem:[%s19133_s10 + $0x6c] sm:$0xe]  ;;  %v18935_v25 = vld [vmem:[%s19133_s10 + $0x7c] sm:$0xf]  ;;  %v20391_v23 = vsel %vm19142_vm3, %v15602_v40, %v5614_v48  ;;  %17067 = vmatprep.mubr.msk.bf16.mxu1 %vm446_vm4, %v18824_v27  ;;  %v20410_v48 = vsel %vm19142_vm3, %v15604_v13, %v5628_v14 }
 0x143   : > { %v5649_v52 = vrot.slane %v18935_v25, 5  ;;  %24494 = vst [vmem:[#allocation25_spill] sm:$0xff] %v20391_v23  ;;  %v15591_v8 = vld [vmem:[%s19133_s10 + $0x78] sm:$0xe]  ;;  %v20406_v25 = vsel %vm19142_vm3, %v5623_v17, %v5624_v41  ;;  %24498 = vst [vmem:[#allocation29_spill] sm:$0xff] %v20410_v48  ;;  %v18825_v40 = vld [vmem:[%s19133_s10 + $0x3c] sm:$0xff]  }
 0x144   : > { %24497 = vst [vmem:[#allocation28_spill] sm:$0xff] %v20406_v25  ;;  %v15592_v30 = vld [vmem:[%s19133_s10 + $0x84] sm:$0xe]  ;;  %v18937_v41 = vld [vmem:[%s19133_s10 + $0x74] sm:$0x1]  ;;  %v15607_v13 = vrot.slane %v15591_v8, 9 }
 0x145   : > { %17336 = vmatmul.mubr.msk.bf16.gmra.mrb[4].mxu0 %vm446_vm4, %v20070_v3  ;;  %v5638_v3 = vrot.slane %v18934_v44, 5  ;;  %v20402_v44 = vsel %vm19142_vm3, %v15603_v16, %v5621_v37  ;;  %v20420_v37 = vsel %vm19142_vm3, %v15605_v26, %v5635_v56  ;;  %v5644_v16 = vrot.slane %v5642_v22, 4  ;;  %v18940_v26 = vld [vmem:[%s19133_s10 + $0x94] sm:$0xf]  ;;  %v18947_v25 = vld [vmem:[%s19133_s10 + $0xbc] sm:$0x1] }
 0x146   : > { %17339 = vmatprep.mubr.msk.bf16.mxu0 %vm446_vm4, %v20072_v50  ;;  %v20395_v50 = vsel %vm19142_vm3, %v5616_v12, %v5617_v4  ;;  %24496 = vst [vmem:[#allocation27_spill] sm:$0xff] %v20402_v44  ;;  %v20414_v4 = vsel %vm19142_vm3, %v5630_v29, %v5631_v63  ;;  %24500 = vst [vmem:[#allocation31_spill] sm:$0xff] %v20420_v37  ;;  %v15606_v12 = vrot.slane %v15590_v36, 9  ;;  %v5645_v17 = vrot.slane %v18937_v41, 5  ;;  %v18938_v63 = vld [vmem:[%s19133_s10 + $0x80] sm:$0x1] }
 0x147   : > { %24495 = vst [vmem:[#allocation26_spill] sm:$0xff] %v20395_v50  ;;  %24499 = vst [vmem:[#allocation30_spill] sm:$0xff] %v20414_v4  ;;  %v20425_v14 = vsel %vm19142_vm3, %v5637_v18, %v5638_v3  ;;  %v5651_v29 = vrot.slane %v5649_v52, 4  ;;  %v5652_v27 = vrot.slane %v18938_v63, 5  ;;  %v15608_v51 = vrot.slane %v15592_v30, 9  ;;  %v18827_v48 = vld [vmem:[%s19133_s10 + $0x54] sm:$0xff]  }
 0x148   : > { %24501 = vst [vmem:[#allocation32_spill] sm:$0xff] %v20425_v14  ;;  %v5658_v24 = vrot.slane %v5656_v19, 4  ;;  %v5659_v56 = vrot.slane %v18939_v43, 5  ;;  %v5663_v36 = vrot.slane %v18940_v26, 5  ;;  %v15593_v3 = vld [vmem:[%s19133_s10 + $0x90] sm:$0xe]  ;;  %17068 = vmatmul.mubr.msk.bf16.gmra.mrb[8].mxu1 %vm446_vm4, %v18825_v40  ;;  %v20445_v26 = vsel %vm19142_vm3, %v15606_v12, %v5642_v22 }
 0x149   : > { %v18941_v30 = vld [vmem:[%s19133_s10 + $0xa0] sm:$0xf]  ;;  %24502 = vst [vmem:[#allocation33_spill] sm:$0xff] %v20445_v26  ;;  %v20449_v8 = vsel %vm19142_vm3, %v5644_v16, %v5645_v17  ;;  %v15594_v18 = vld [vmem:[%s19133_s10 + $0x9c] sm:$0xe]  ;;  %v18826_v40 = vld [vmem:[%s19133_s10 + $0x48] sm:$0xff]   ;;  %v20463_v22 = vsel %vm19142_vm3, %v5651_v29, %v5652_v27 }
 0x14a   : > { %v5670_v63 = vrot.slane %v18941_v30, 5  ;;  %24503 = vst [vmem:[#allocation34_spill] sm:$0xff] %v20449_v8  ;;  %v15595_v30 = vld [vmem:[%s19133_s10 + $0xa8] sm:$0xe]  ;;  %v18942_v41 = vld [vmem:[%s19133_s10 + $0xac] sm:$0xf]  ;;  %17071 = vmatprep.mubr.msk.bf16.mxu1 %vm446_vm4, %v18826_v40 }
 0x14b   : > { %v5677_v4 = vrot.slane %v18942_v41, 5  ;;  %24505 = vst [vmem:[#allocation36_spill] sm:$0xff] %v20463_v22  ;;  %v18943_v12 = vld [vmem:[%s19133_s10 + $0x98] sm:$0x1]  ;;  %v20469_v41 = vsel %vm19142_vm3, %v15608_v51, %v5656_v19  ;;  %v15596_v14 = vld [vmem:[%s19133_s10 + $0xb4] sm:$0xe] }
 0x14c   : > { %v5666_v16 = vrot.slane %v18943_v12, 5  ;;  %v18944_v17 = vld [vmem:[%s19133_s10 + $0xb8] sm:$0xf]  ;;  %24506 = vst [vmem:[#allocation37_spill] sm:$0xff] %v20469_v41  ;;  %v15610_v29 = vrot.slane %v15594_v18, 9  ;;  %v5672_v27 = vrot.slane %v5670_v63, 4 }
 0x14d   : > { %17340 = vmatmul.mubr.msk.bf16.gmra.mrb[8].mxu0 %vm446_vm4, %v20120_v62  ;;  %v20459_v62 = vsel %vm19142_vm3, %v15607_v13, %v5649_v52  ;;  %v5684_v43 = vrot.slane %v18944_v17, 5  ;;  %v15609_v52 = vrot.slane %v15593_v3, 9  ;;  %v5665_v13 = vrot.slane %v5663_v36, 4  ;;  %v18945_v12 = vld [vmem:[%s19133_s10 + $0xa4] sm:$0x1] }
 0x14e   : > { %17343 = vmatprep.mubr.msk.bf16.mxu0 %vm446_vm4, %v20122_v54  ;;  %24504 = vst [vmem:[#allocation35_spill] sm:$0xff] %v20459_v62  ;;  %v20473_v54 = vsel %vm19142_vm3, %v5658_v24, %v5659_v56  ;;  %v5673_v17 = vrot.slane %v18945_v12, 5  ;;  %v15611_v37 = vrot.slane %v15595_v30, 9  ;;  %v5679_v51 = vrot.slane %v5677_v4, 4  ;;  %v18946_v56 = vld [vmem:[%s19133_s10 + $0xb0] sm:$0x1] }
 0x14f   : > { %24507 = vst [vmem:[#allocation38_spill] sm:$0xff] %v20473_v54  ;;  %v5680_v3 = vrot.slane %v18946_v56, 5  ;;  %v15612_v40 = vrot.slane %v15596_v14, 9  ;;  %v5686_v18 = vrot.slane %v5684_v43, 4  ;;  %v5687_v12 = vrot.slane %v18947_v25, 5 }
 0x150   : > { %v18948_v30 = vld [vmem:[%s19133_s10 + $0xc4] sm:$0xf]  ;;  %v20490_v19 = vsel %vm19142_vm3, %v15609_v52, %v5663_v36  ;;  %v20494_v56 = vsel %vm19142_vm3, %v5665_v13, %v5666_v16  ;;  %v15597_v14 = vld [vmem:[%s19133_s10 + $0xc0] sm:$0xe]  ;;  %v18949_v24 = vld [vmem:[%s19205_s15 + $0x10] sm:$0xf]  ;;  %v20500_v25 = vsel %vm19142_vm3, %v15610_v29, %v5670_v63  ;;  %v20508_v36 = vsel %vm19142_vm3, %v15611_v37, %v5677_v4  ;;  %17072 = vmatmul.mubr.msk.bf16.gmra.mrb[12].mxu1 %vm446_vm4, %v18827_v48 }
 0x151   : > { %v5691_v44 = vrot.slane %v18948_v30, 5  ;;  %v5762_v22 = vrot.slane %v18949_v24, 5  ;;  %v20504_v30 = vsel %vm19142_vm3, %v5672_v27, %v5673_v17  ;;  %v15614_v16 = vld [vmem:[%s19205_s15 + $0xc] sm:$0xe]  ;;  %v15615_v52 = vld [vmem:[%s19205_s15 + $0x18] sm:$0xe]  ;;  %v20518_v63 = vsel %vm19142_vm3, %v5679_v51, %v5680_v3 }
 0x152   : > { %v18950_v13 = vld [vmem:[%s19205_s15 + $0x1c] sm:$0xf]  ;;  %v18951_v29 = vld [vmem:[%s19133_s10 + $0xc8] sm:$0x1]  ;;  %v15616_v4 = vld [vmem:[%s19205_s15 + $0x24] sm:$0xe]  ;;  %v20533_v48 = vsel %vm19142_vm3, %v5686_v18, %v5687_v12 }
 0x153   : > { %v5769_v50 = vrot.slane %v18950_v13, 5  ;;  %v5694_v27 = vrot.slane %v18951_v29, 5  ;;  %v18952_v37 = vld [vmem:[%s19205_s15 + $0x28] sm:$0xf]  ;;  %v5783_v24 = vrot.slane %v19867_v31, 5  ;;  %v18828_v13 = vld [vmem:[%s19133_s10 + $0x60] sm:$0xff]  }
 0x154   : > { %v5776_v17 = vrot.slane %v18952_v37, 5  ;;  %v15613_v51 = vrot.slane %v15597_v14, 9  ;;  %v5693_v3 = vrot.slane %v5691_v44, 4  ;;  %v15617_v29 = vld [vmem:[%s19205_s15 + $0x30] sm:$0xe]  ;;  %v15630_v54 = vrot.slane %v15614_v16, 9  ;;  %17075 = vmatprep.mubr.msk.bf16.mxu1 %vm446_vm4, %v18828_v13 }
 0x155   : > { %17344 = vmatmul.mubr.msk.bf16.gmra.mrb[12].mxu0 %vm446_vm4, %v20124_v61  ;;  %v20529_v61 = vsel %vm19142_vm3, %v15612_v40, %v5684_v43  ;;  %v5764_v37 = vrot.slane %v5762_v22, 4  ;;  %v18953_v41 = vld [vmem:[%s19205_s15 + $0x14] sm:$0x1]  ;;  %v18954_v62 = vld [vmem:[%s19205_s15 + $0x20] sm:$0x1]  ;;  %v5771_v43 = vrot.slane %v5769_v50, 4 }
 0x156   : > { %17347 = vmatprep.mubr.msk.bf16.mxu0 %vm446_vm4, %v20129_v57  ;;  %v5765_v31 = vrot.slane %v18953_v41, 5  ;;  %v5772_v8 = vrot.slane %v18954_v62, 5  ;;  %v15631_v57 = vrot.slane %v15615_v52, 9  ;;  %v15632_v40 = vrot.slane %v15616_v4, 9  ;;  %v18829_v18 = vld [vmem:[%s19133_s10 + $0x6c] sm:$0xff]  }
 0x157   : > { %v5779_v26 = vrot.slane %v19873_v2, 5  ;;  %v5778_v12 = vrot.slane %v5776_v17, 4  ;;  %v15633_v14 = vrot.slane %v15617_v29, 9  ;;  %v5785_v23 = vrot.slane %v5783_v24, 4  ;;  %v15618_v29 = vld [vmem:[%s19205_s15 + $0x3c] sm:$0xe] }
 0x158   : > { %v5786_v16 = vrot.slane %v19913_v46, 5  ;;  %v5790_v13 = vrot.slane %v19908_v60, 5  ;;  %v20553_v4 = vsel %vm19142_vm3, %v15613_v51, %v5691_v44  ;;  %v20557_v46 = vsel %vm19142_vm3, %v5693_v3, %v5694_v27  ;;  %v15619_v41 = vld [vmem:[%s19205_s15 + $0x48] sm:$0xe]  ;;  %17076 = vmatmul.mubr.msk.bf16.gmra.mrb[16].mxu1 %vm446_vm4, %v18829_v18  ;;  %v24519_v2 = vld [vmem:[#allocation14_spill] sm:$0xff] }
 0x159   : > { %v5797_v62 = vrot.slane %v19960_v33, 5  ;;  %v20564_v52 = vsel %vm19142_vm3, %v15630_v54, %v5762_v22  ;;  %v20568_v60 = vsel %vm19142_vm3, %v5764_v37, %v5765_v31  ;;  %v20572_v44 = vsel %vm19142_vm3, %v15631_v57, %v5769_v50  ;;  %v20584_v33 = vld [vmem:[%s24326_s2 + $0xc] sm:$0x3]  ;;  %v18830_v54 = vld [vmem:[%s19133_s10 + $0x78] sm:$0xff]   ;;  %v15620_v37 = vld [vmem:[%s19205_s15 + $0x54] sm:$0xe] }
 0x15a   : > { %24508 = vst [vmem:[#allocation39_spill] sm:$0xff] %v20568_v60  ;;  %24509 = vst [vmem:[#allocation40_spill] sm:$0xff] %v20572_v44  ;;  %v20576_v27 = vsel %vm19142_vm3, %v5771_v43, %v5772_v8  ;;  %v20588_v22 = vsel %vm19142_vm3, %v15632_v40, %v5776_v17  ;;  %v20592_v50 = vsel %vm19142_vm3, %v5778_v12, %v5779_v26  ;;  %v15634_v51 = vrot.slane %v15618_v29, 9  ;;  %v18831_v18 = vld [vmem:[%s19133_s10 + $0x84] sm:$0xff]   ;;  %v15625_v31 = vld [vmem:[%s19205_s15 + $0x90] sm:$0xe] }
 0x15b   : > { %24510 = vst [vmem:[#allocation41_spill] sm:$0xff] %v20576_v27  ;;  %24511 = vst [vmem:[#allocation42_spill] sm:$0xff] %v20588_v22  ;;  %v20596_v8 = vsel %vm19142_vm3, %v15633_v14, %v5783_v24  ;;  %v5792_v17 = vrot.slane %v5790_v13, 4  ;;  %v5793_v3 = vrot.slane %v19940_v55, 5  ;;  %v15635_v26 = vrot.slane %v15619_v41, 9  ;;  %17079 = vmatprep.mubr.msk.bf16.mxu1 %vm446_vm4, %v18830_v54  ;;  %v24518_v24 = vld [vmem:[#allocation11_spill] sm:$0xff] }
 0x15c   : > { %24512 = vst [vmem:[#allocation43_spill] sm:$0xff] %v20592_v50  ;;  %24513 = vst [vmem:[#allocation44_spill] sm:$0xff] %v20596_v8  ;;  %v5800_v57 = vrot.slane %v20010_v35, 5  ;;  %v20617_v55 = vsel %vm495_vm0, %v20584_v33, 0  ;;  %v5804_v43 = vrot.slane %v19977_v11, 5  ;;  %v5811_v40 = vrot.slane %v19989_v38, 5 }
 0x15d   : > { %17348 = vmatmul.mubr.msk.bf16.gmra.mrb[16].mxu0 %vm446_vm4, %v20214_v49  ;;  %v20600_v49 = vsel %vm19142_vm3, %v5785_v23, %v5786_v16  ;;  %v5799_v23 = vrot.slane %v5797_v62, 4  ;;  %24515 = vst [vmem:[#allocation46_spill] sm:$0xff] %v20617_v55  ;;  %v15636_v14 = vrot.slane %v15620_v37, 9  ;;  %v15621_v16 = vld [vmem:[%s19205_s15 + $0x60] sm:$0xe]  ;;  %v5818_v41 = vrot.slane %v19997_v47, 5 }
 0x15e   : > { %24514 = vst [vmem:[#allocation45_spill] sm:$0xff] %v20600_v49  ;;  %17351 = vmatprep.mubr.msk.bf16.mxu0 %vm446_vm4, %v20272_v20  ;;  %v20630_v29 = vsel %vm19142_vm3, %v15634_v51, %v5790_v13  ;;  %v20634_v11 = vsel %vm19142_vm3, %v5792_v17, %v5793_v3  ;;  %v20638_v38 = vsel %vm19142_vm3, %v15635_v26, %v5797_v62  ;;  %v15622_v54 = vld [vmem:[%s19205_s15 + $0x6c] sm:$0xe]  ;;  %v5825_v35 = vrot.slane %v20056_v53, 5  ;;  %v15623_v51 = vld [vmem:[%s19205_s15 + $0x78] sm:$0xe] }
 0x15f   : > { %v20644_v37 = vsel %vm19142_vm3, %v5799_v23, %v5800_v57  ;;  %v5807_v47 = vrot.slane %v20019_v58, 5  ;;  %v5814_v13 = vrot.slane %v20028_v59, 5  ;;  %v5832_v17 = vrot.slane %v20086_v10, 5  ;;  %v15624_v26 = vld [vmem:[%s19205_s15 + $0x84] sm:$0xe]  ;;  %v24517_v57 = vld [vmem:[#allocation10_spill] sm:$0xff] }
 0x160   : > { %v5806_v3 = vrot.slane %v5804_v43, 4  ;;  %v15637_v12 = vrot.slane %v15621_v16, 9  ;;  %v5813_v62 = vrot.slane %v5811_v40, 4  ;;  %17080 = vmatmul.mubr.msk.bf16.gmra.mrb[20].mxu1 %vm446_vm4, %v18831_v18  ;;  %v24516_v53 = vld [vmem:[#allocation12_spill] sm:$0xff]  ;;  %v20657_v58 = vsel %vm19142_vm3, %v15636_v14, %v5804_v43  ;;  %v18832_v16 = vld [vmem:[%s19133_s10 + $0x90] sm:$0xff]   ;;  %v24520_v8 = vld [vmem:[#allocation13_spill] sm:$0xff] }
 0x161   : > { %v5839_v20 = vrot.slane %v24516_v53, 5  ;;  %v15638_v59 = vrot.slane %v15622_v54, 9  ;;  %v5820_v23 = vrot.slane %v5818_v41, 4  ;;  %v5821_v10 = vrot.slane %v24517_v57, 5  ;;  %v24521_v50 = vld [vmem:[#allocation16_spill] sm:$0xff]  ;;  %17083 = vmatprep.mubr.msk.bf16.mxu1 %vm446_vm4, %v18832_v16  ;;  %v24524_v16 = vld [vmem:[#allocation19_spill] sm:$0xff] }
 0x162   : > { %v15639_v18 = vrot.slane %v15623_v51, 9  ;;  %v5827_v53 = vrot.slane %v5825_v35, 4  ;;  %v5846_v49 = vrot.slane %v24519_v2, 5  ;;  %v15640_v43 = vrot.slane %v15624_v26, 9  ;;  %v15626_v57 = vld [vmem:[%s19205_s15 + $0x9c] sm:$0xe] }
 0x163   : > { %v5834_v14 = vrot.slane %v5832_v17, 4  ;;  %v5835_v54 = vrot.slane %v24520_v8, 5  ;;  %v5842_v22 = vrot.slane %v24521_v50, 5  ;;  %v20672_v55 = vsel %vm19142_vm3, %v5806_v3, %v5807_v47  ;;  %v18833_v27 = vld [vmem:[%s19133_s10 + $0x9c] sm:$0xff]   ;;  %v15627_v44 = vld [vmem:[%s19205_s15 + $0xa8] sm:$0xe] }
 0x164   : > { %v5841_v51 = vrot.slane %v5839_v20, 4  ;;  %v20679_v2 = vsel %vm19142_vm3, %v15637_v12, %v5811_v40  ;;  %v20683_v50 = vsel %vm19142_vm3, %v5813_v62, %v5814_v13  ;;  %v20687_v8 = vsel %vm19142_vm3, %v15638_v59, %v5818_v41  ;;  %v24523_v40 = vld [vmem:[#allocation17_spill] sm:$0xff] }
 0x165   : > { %17352 = vmatmul.mubr.msk.bf16.gmra.mrb[20].mxu0 %vm446_vm4, %v20277_v42  ;;  %v5828_v42 = vrot.slane %v24518_v24, 5  ;;  %v24522_v24 = vld [vmem:[#allocation15_spill] sm:$0xff]  ;;  %v20695_v47 = vsel %vm19142_vm3, %v15639_v18, %v5825_v35  ;;  %v15642_v3 = vrot.slane %v15626_v57, 9  ;;  %v5848_v26 = vrot.slane %v5846_v49, 4 }
 0x166   : > { %17355 = vmatprep.mubr.msk.bf16.mxu0 %vm446_vm4, %v20279_v7  ;;  %v15641_v7 = vrot.slane %v15625_v31, 9  ;;  %v5853_v60 = vrot.slane %v24522_v24, 5  ;;  %v20691_v31 = vsel %vm19142_vm3, %v5820_v23, %v5821_v10  ;;  %v5849_v12 = vrot.slane %v24523_v40, 5  ;;  %v955_v24 = vld [vmem:[%s19133_s10 + $0xc] sm:$0xf] }
 0x167   : > { %v20700_v13 = vsel %vm19142_vm3, %v5827_v53, %v5828_v42  ;;  %v20704_v41 = vsel %vm19142_vm3, %v15640_v43, %v5832_v17  ;;  %v20708_v62 = vsel %vm19142_vm3, %v5834_v14, %v5835_v54  ;;  %v15643_v35 = vrot.slane %v15627_v44, 9  ;;  %v15628_v53 = vld [vmem:[%s19205_s15 + $0xb4] sm:$0xe] }
 0x168   : > { %v20712_v59 = vsel %vm19142_vm3, %v15641_v7, %v5839_v20  ;;  %v20716_v23 = vsel %vm19142_vm3, %v5841_v51, %v5842_v22  ;;  %17084 = vmatmul.mubr.msk.bf16.gmra.mrb[24].mxu1 %vm446_vm4, %v18833_v27  ;;  %v5855_v10 = vrot.slane %v5853_v60, 4  ;;  %v5856_v18 = vrot.slane %v24524_v16, 5  ;;  %v18834_v20 = vld [vmem:[%s19133_s10 + $0xa8] sm:$0xff]   ;;  %v24526_v14 = vld [vmem:[#allocation18_spill] sm:$0xff]  ;;  %v952_v51 = vld [vmem:[%s19133_s10] sm:$0xf] }
 0x169   : > { %v20738_v42 = vsel %vm19142_vm3, %v15642_v3, %v5846_v49  ;;  %v20742_v43 = vsel %vm19142_vm3, %v5848_v26, %v5849_v12  ;;  %v5860_v54 = vrot.slane %v24526_v14, 5  ;;  %v20753_v49 = vsel %vm19142_vm3, %v15643_v35, %v5853_v60  ;;  %17087 = vmatprep.mubr.msk.bf16.mxu1 %vm446_vm4, %v18834_v20  ;;  %v18835_v26 = vld [vmem:[%s19133_s10 + $0xb4] sm:$0xff]   ;;  %v15629_v7 = vld [vmem:[%s19205_s15 + $0xc0] sm:$0xe] }
 0x16a   : > { %24525 = vst [vmem:[#allocation12_spill] sm:$0xff] %v20742_v43  ;;  %24527 = vst [vmem:[#allocation10_spill] sm:$0xff] %v20753_v49  ;;  %v20760_v3 = vsel %vm19142_vm3, %v5855_v10, %v5856_v18  ;;  %v15644_v40 = vrot.slane %v15628_v53, 9  ;;  %v1004_v12 = vshrl.u32 %v952_v51, 16  ;;  %v1007_v16 = vshll.u32 %v952_v51, 16  ;;  %v24530_v18 = vld [vmem:[#allocation5_spill] sm:$0xff] }
 0x16b   : > { %24528 = vst [vmem:[#allocation11_spill] sm:$0xff] %v20760_v3  ;;  %v1028_v60 = vshrl.u32 %v955_v24, 16  ;;  %v1031_v35 = vshll.u32 %v955_v24, 16  ;;  %v5863_v20 = vrot.slane %v20217_v45, 5  ;;  %v24531_v53 = vld [vmem:[#allocation6_spill] sm:$0xff]  ;;  %v15645_v24 = vrot.slane %v15629_v7, 9 }
 0x16c   : > { %v1006_v27 = vrot.slane %v1004_v12, 4  ;;  %v1009_v22 = vrot.slane %v1007_v16, 5  ;;  %v1020_v51 = vor.u32 %v24531_v53, %v24530_v18  ;;  %v24532_v53 = vld [vmem:[#allocation8_spill] sm:$0xff] }
 0x16d   : > { %17356 = vmatmul.mubr.msk.bf16.gmra.mrb[24].mxu0 %vm446_vm4, %v20283_v0  ;;  %v5862_v0 = vrot.slane %v5860_v54, 4  ;;  %v1030_v44 = vrot.slane %v1028_v60, 4  ;;  %v1033_v17 = vrot.slane %v1031_v35, 5  ;;  %v15126_v60 = vld [vmem:[%s24326_s2 + $0x2] sm:$0x3] }
 0x16e   : > { %17359 = vmatprep.mubr.msk.bf16.mxu0 %vm446_vm4, %v20319_v28  ;;  %v24529_v28 = vld [vmem:[#allocation20_spill] sm:$0xff]  ;;  %v1010_v12 = vor.u32 %v1009_v22, %v1006_v27  ;;  %v1021_v35 = vrot.slane %v1020_v51, 4  ;;  %v24534_v22 = vcombine.low %v20300_v34, %v20315_v39  ;;  %18745 = vmatprep.subr.msk.bf16.mxu1 %vm495_vm0, %v15126_v60  ;;  %v1918_v27 = vsel %vm495_vm0, %v15126_v60, 0  ;;  %v24535_v51 = vld [vmem:[#allocation7_spill] sm:$0xff] }
 0x16f   : > { %v5867_v57 = vrot.slane %v24529_v28, 5  ;;  %v20775_v28 = vsel %vm19142_vm3, %v15644_v40, %v5860_v54  ;;  %v24533_v54 = vld [vmem:[#allocation9_spill] sm:$0xff]  ;;  %v958_v40 = vld [vmem:[%s19133_s10 + $0x18] sm:$0xf]  ;;  %17092 = vmatpush3.bf16.msra.mxu1 %v1918_v27  ;;  %v18955_v39 = vld [vmem:[%s19133_s10 + $0x1c] sm:$0xf] }
 0x170   : > { %17088 = vmatmul.mubr.msk.bf16.gmra.mrb[28].mxu1 %vm446_vm4, %v18835_v26  ;;  %v1034_v26 = vor.u32 %v1033_v17, %v1030_v44  ;;  %v1050_v7 = vsel %vm19559_vm7, %v24533_v54, %v24532_v53  ;;  %v1011_v17 = vrot.slane %v1010_v12, 4  ;;  %v1052_v44 = vshrl.u32 %v958_v40, 16  ;;  %v961_v10 = vld [vmem:[%s19133_s10 + $0x24] sm:$0xf]  ;;  %v18956_v3 = vld [vmem:[%s19133_s10 + $0x20] sm:$0x1] }
 0x171   : > { %v20780_v16 = vrot.slane %v5867_v57, 4  ;;  %v1026_v53 = vsel %vm19559_vm7, %v1021_v35, %v24535_v51  ;;  %v1055_v34 = vshll.u32 %v958_v40, 16  ;;  %v1065_v60 = vshrl.u32 %v18955_v39, 16  ;;  %v24536_v27 = vld [vmem:[#allocation4_spill] sm:$0xff] }
 0x172   : > { %v1035_v54 = vrot.slane %v1034_v26, 4  ;;  %v1076_v12 = vshrl.u32 %v961_v10, 16  ;;  %v1071_v49 = vshll.u32 %v18956_v3, 16  ;;  %v24537_v3 = vcombine.low %v20328_v9, %v20334_v15 }
 0x173   : > { %v1057_v35 = vrot.slane %v1055_v34, 5  ;;  %v1067_v40 = vrot.slane %v1065_v60, 4 }
 0x174   : > { %v1040_v45 = vsel %vm19559_vm7, %v1035_v54, %v24536_v27  ;;  %v1078_v43 = vrot.slane %v1076_v12, 4 }
 0x175   : > { %17360 = vmatmul.mubr.msk.bf16.gmra.mrb[28].mxu0 %vm446_vm4, %v20374_v32  ;;  %v20796_v32 = vsel %vm19142_vm3, %v5862_v0, %v5863_v20  ;;  %v1016_v0 = vsel %vm19559_vm7, %v1011_v17, %v24530_v18  ;;  %v1054_v20 = vrot.slane %v1052_v44, 4  ;;  %v15128_v26 = vcombine.low %v1040_v45, %v1050_v7  ;;  %v18957_v44 = vld [vmem:[%s19133_s10 + $0x28] sm:$0xf]  ;;  %v18958_v7 = vld [vmem:[%s19133_s10 + $0x2c] sm:$0x1] }
 0x176   : > { %17365 = vmatprep.mubr.msk.bf16.mxu0 %vm446_vm4, %v24534_v22  ;;  %v1061_v22 = vshll.u32 %v18955_v39, 16  ;;  %v15127_v14 = vcombine.low %v1016_v0, %v1026_v53  ;;  %v1079_v17 = vshll.u32 %v961_v10, 16  ;;  %v1085_v39 = vshll.u32 %v18957_v44, 16 }
 0x177   : > { %v1058_v18 = vor.u32 %v1057_v35, %v1054_v20  ;;  %v1089_v53 = vshrl.u32 %v18957_v44, 16  ;;  %v20816_v0 = vsel %vm19142_vm3, %v15645_v24, %v5867_v57  ;;  %v1073_v45 = vrot.slane %v1071_v49, 5  ;;  %v964_v24 = vld [vmem:[%s19133_s10 + $0x30] sm:$0xf]  ;;  %v24538_v20 = vld [vmem:[#allocation21_spill] sm:$0xff] }
 0x178   : > { %v1063_v51 = vrot.slane %v1061_v22, 5  ;;  %17093 = vmatprep.mubr.msk.bf16.mxu1 %vm446_vm4, %v15127_v14  ;;  %v1095_v34 = vshll.u32 %v18958_v7, 16  ;;  %v1081_v22 = vrot.slane %v1079_v17, 5  ;;  %v1087_v57 = vrot.slane %v1085_v39, 5  ;;  %v24539_v49 = vld [vmem:[#allocation22_spill] sm:$0xff] }
 0x179   : > { %17094 = vmatmul.mubr.msk.bf16.vlgmr.msra.gmra.mrb[0].mxu1 %vm446_vm4, %v15128_v26  ;;  %v1059_v10 = vrot.slane %v1058_v18, 4  ;;  %v24540_v60 = vcombine.low %v24538_v20, %v24539_v49  ;;  %v1091_v9 = vrot.slane %v1089_v53, 4  ;;  %v1100_v27 = vshrl.u32 %v964_v24, 16  ;;  %v18959_v18 = vld [vmem:[%s19133_s10 + $0x34] sm:$0xf] }
 0x17a   : > { %v1068_v54 = vor.u32 %v1067_v40, %v1063_v51  ;;  %v1097_v15 = vrot.slane %v1095_v34, 5  ;;  %v1082_v26 = vor.u32 %v1081_v22, %v1078_v43  ;;  %v1103_v40 = vshll.u32 %v964_v24, 16  ;;  %v967_v17 = vld [vmem:[%s19133_s10 + $0x3c] sm:$0xf] }
 0x17b   : > { %v1064_v35 = vsel %vm19559_vm7, %v1059_v10, %v1063_v51  ;;  %v1092_v39 = vor.u32 %v1091_v9, %v1087_v57  ;;  %v1102_v53 = vrot.slane %v1100_v27, 4  ;;  %v18960_v51 = vld [vmem:[%s19133_s10 + $0x38] sm:$0x1]  ;;  %v1124_v43 = vshrl.u32 %v967_v17, 16 }
 0x17c   : > { %v1069_v12 = vrot.slane %v1068_v54, 4  ;;  %v1113_v54 = vshrl.u32 %v18959_v18, 16  ;;  %v1083_v34 = vrot.slane %v1082_v26, 4  ;;  %v1119_v10 = vshll.u32 %v18960_v51, 16 }
 0x17d   : > { %17366 = vmatmul.mubr.msk.bf16.vlgmr.msra.gmra.mrb[0].mxu0 %vm446_vm4, %v24537_v3  ;;  %v1105_v3 = vrot.slane %v1103_v40, 5  ;;  %v1093_v20 = vrot.slane %v1092_v39, 4  ;;  %v1127_v24 = vshll.u32 %v967_v17, 16  ;;  %v1126_v26 = vrot.slane %v1124_v43, 4  ;;  %v24541_v40 = vld [vmem:[#allocation23_spill] sm:$0xff] }
 0x17e   : > { %17398 = vmatpush3.bf16.msra.mxu0 %v20337_v5  ;;  %17369 = vmatprep.mubr.msk.bf16.mxu0 %vm446_vm4, %v24540_v60  ;;  %v1109_v5 = vshll.u32 %v18959_v18, 16  ;;  %v1074_v44 = vsel %vm19559_vm7, %v1069_v12, %v1073_v45  ;;  %v1115_v49 = vrot.slane %v1113_v54, 4  ;;  %v1088_v22 = vsel %vm19559_vm7, %v1083_v34, %v1087_v57  ;;  %v18961_v60 = vld [vmem:[%s19133_s10 + $0x40] sm:$0xf]  ;;  %v24544_v54 = vld [vmem:[#allocation25_spill] sm:$0xff] }
 0x17f   : > { %18756 = vmatprep.subr.msk.bf16.mxu0 %vm495_vm0, %v20584_v33  ;;  %v15129_v7 = vcombine.low %v1064_v35, %v1074_v44  ;;  %v1106_v45 = vor.u32 %v1105_v3, %v1102_v53  ;;  %v1133_v12 = vshll.u32 %v18961_v60, 16  ;;  %v1098_v9 = vsel %vm19559_vm7, %v1093_v20, %v1097_v15  ;;  %v24542_v18 = vld [vmem:[#allocation24_spill] sm:$0xff]  ;;  %v970_v53 = vld [vmem:[%s19133_s10 + $0x48] sm:$0xf] }
 0x180   : > { %v1111_v33 = vrot.slane %v1109_v5, 5  ;;  %v1121_v35 = vrot.slane %v1119_v10, 5  ;;  %v24543_v5 = vcombine.low %v24541_v40, %v24542_v18  ;;  %v15130_v44 = vcombine.low %v1088_v22, %v1098_v9  ;;  %v18962_v20 = vld [vmem:[%s19133_s10 + $0x44] sm:$0x1] }
 0x181   : > { %17097 = vmatprep.mubr.msk.bf16.mxu1 %vm446_vm4, %v15129_v7  ;;  %v1107_v39 = vrot.slane %v1106_v45, 4  ;;  %v1129_v57 = vrot.slane %v1127_v24, 5  ;;  %v1135_v17 = vrot.slane %v1133_v12, 5  ;;  %v24545_v7 = vld [vmem:[#allocation26_spill] sm:$0xff]  ;;  %v1137_v3 = vshrl.u32 %v18961_v60, 16 }
 0x182   : > { %v1116_v27 = vor.u32 %v1115_v49, %v1111_v33  ;;  %v24546_v34 = vcombine.low %v24544_v54, %v24545_v7  ;;  %v1143_v49 = vshll.u32 %v18962_v20, 16  ;;  %v1148_v51 = vshrl.u32 %v970_v53, 16  ;;  %17098 = vmatmul.mubr.msk.bf16.gmra.mrb[4].mxu1 %vm446_vm4, %v15130_v44  ;;  %v18963_v45 = vld [vmem:[%s19133_s10 + $0x4c] sm:$0xf]  ;;  %v973_v12 = vld [vmem:[%s19133_s10 + $0x54] sm:$0xf] }
 0x183   : > { %v1112_v10 = vsel %vm19559_vm7, %v1107_v39, %v1111_v33  ;;  %v1130_v43 = vor.u32 %v1129_v57, %v1126_v26  ;;  %v1151_v22 = vshll.u32 %v970_v53, 16  ;;  %v1157_v24 = vshll.u32 %v18963_v45, 16  ;;  %v18964_v33 = vld [vmem:[%s19133_s10 + $0x50] sm:$0x1] }
 0x184   : > { %v1117_v15 = vrot.slane %v1116_v27, 4  ;;  %v1139_v40 = vrot.slane %v1137_v3, 4  ;;  %v1145_v60 = vrot.slane %v1143_v49, 5  ;;  %v1150_v27 = vrot.slane %v1148_v51, 4  ;;  %v18965_v3 = vld [vmem:[%s19133_s10 + $0x58] sm:$0xf] }
 0x185   : > { %17370 = vmatmul.mubr.msk.bf16.gmra.mrb[4].mxu0 %vm446_vm4, %v24543_v5  ;;  %v1131_v5 = vrot.slane %v1130_v43, 4  ;;  %v1153_v54 = vrot.slane %v1151_v22, 5  ;;  %v1159_v44 = vrot.slane %v1157_v24, 5  ;;  %v1167_v39 = vshll.u32 %v18964_v33, 16  ;;  %v24548_v43 = vld [vmem:[#allocation27_spill] sm:$0xff]  ;;  %v24549_v22 = vld [vmem:[#allocation28_spill] sm:$0xff] }
 0x186   : > { %17373 = vmatprep.mubr.msk.bf16.mxu0 %vm446_vm4, %v24546_v34  ;;  %v1122_v9 = vsel %vm19559_vm7, %v1117_v15, %v1121_v35  ;;  %v1140_v7 = vor.u32 %v1139_v40, %v1135_v17  ;;  %v1161_v34 = vshrl.u32 %v18963_v45, 16  ;;  %v1172_v26 = vshrl.u32 %v973_v12, 16  ;;  %v24551_v40 = vld [vmem:[#allocation29_spill] sm:$0xff]  ;;  %v976_v33 = vld [vmem:[%s19133_s10 + $0x60] sm:$0xf] }
 0x187   : > { %v15131_v18 = vcombine.low %v1112_v10, %v1122_v9  ;;  %v24547_v57 = vrot.slane %v20243_v1, 5  ;;  %v1154_v35 = vor.u32 %v1153_v54, %v1150_v27  ;;  %v1175_v15 = vshll.u32 %v973_v12, 16  ;;  %v24552_v27 = vld [vmem:[#allocation30_spill] sm:$0xff] }
 0x188   : > { %v1181_v20 = vshll.u32 %v18965_v3, 16  ;;  %v1136_v49 = vsel %vm19559_vm7, %v1131_v5, %v1135_v17  ;;  %v1141_v51 = vrot.slane %v1140_v7, 4  ;;  %v1163_v10 = vrot.slane %v1161_v34, 4  ;;  %v18966_v7 = vld [vmem:[%s19133_s10 + $0x5c] sm:$0x1] }
 0x189   : > { %v20870_v53 = vsel %vm19142_vm3, %v20780_v16, %v24547_v57  ;;  %17101 = vmatprep.mubr.msk.bf16.mxu1 %vm446_vm4, %v15131_v18  ;;  %v1174_v1 = vrot.slane %v1172_v26, 4  ;;  %v24550_v45 = vcombine.low %v24548_v43, %v24549_v22  ;;  %v1155_v16 = vrot.slane %v1154_v35, 4  ;;  %v977_v26 = vld [vmem:[%s19133_s10 + $0x64] sm:$0xf] }
 0x18a   : > { %v1177_v24 = vrot.slane %v1175_v15, 5  ;;  %v1183_v9 = vrot.slane %v1181_v20, 5  ;;  %v1185_v12 = vshrl.u32 %v18965_v3, 16  ;;  %v24553_v18 = vcombine.low %v24551_v40, %v24552_v27  ;;  %v979_v40 = vld [vmem:[%s19133_s10 + $0x6c] sm:$0xf] }
 0x18b   : > { %v1146_v17 = vsel %vm19559_vm7, %v1141_v51, %v1145_v60  ;;  %v1164_v5 = vor.u32 %v1163_v10, %v1159_v44  ;;  %v1169_v54 = vrot.slane %v1167_v39, 5  ;;  %v1191_v34 = vshll.u32 %v18966_v7, 16  ;;  %v20894_v51 = vld [vmem:[%s19133_s10 + $0x68] sm:$0x1] }
 0x18c   : > { %v15132_v57 = vcombine.low %v1136_v49, %v1146_v17  ;;  %v1160_v35 = vsel %vm19559_vm7, %v1155_v16, %v1159_v44  ;;  %v1178_v15 = vor.u32 %v1177_v24, %v1174_v1  ;;  %v1187_v3 = vrot.slane %v1185_v12, 4  ;;  %v20900_v12 = vld [vmem:[%s19133_s10 + $0x70] sm:$0xf] }
 0x18d   : > { %17374 = vmatmul.mubr.msk.bf16.gmra.mrb[8].mxu0 %vm446_vm4, %v24550_v45  ;;  %v1165_v20 = vrot.slane %v1164_v5, 4  ;;  %v1193_v43 = vrot.slane %v1191_v34, 5  ;;  %v1196_v22 = vshrl.u32 %v976_v33, 16  ;;  %v1199_v45 = vshll.u32 %v976_v33, 16 }
 0x18e   : > { %17377 = vmatprep.mubr.msk.bf16.mxu0 %vm446_vm4, %v24553_v18  ;;  %17102 = vmatmul.mubr.msk.bf16.gmra.mrb[8].mxu1 %vm446_vm4, %v15132_v57  ;;  %v1179_v60 = vrot.slane %v1178_v15, 4  ;;  %v1188_v39 = vor.u32 %v1187_v3, %v1183_v9  ;;  %v1205_v10 = vshll.u32 %v977_v26, 16  ;;  %v1209_v49 = vshrl.u32 %v977_v26, 16  ;;  %v20905_v26 = vld [vmem:[%s19133_s10 + $0x74] sm:$0x1]  ;;  %v24555_v15 = vld [vmem:[#allocation32_spill] sm:$0xff] }
 0x18f   : > { %v1170_v44 = vsel %vm19559_vm7, %v1165_v20, %v1169_v54  ;;  %v1198_v1 = vrot.slane %v1196_v22, 4  ;;  %v1201_v16 = vrot.slane %v1199_v45, 5  ;;  %v1215_v24 = vshll.u32 %v20894_v51, 16  ;;  %v24554_v54 = vld [vmem:[#allocation31_spill] sm:$0xff]  ;;  %v24557_v45 = vld [vmem:[#allocation33_spill] sm:$0xff] }
 0x190   : > { %v15133_v27 = vcombine.low %v1160_v35, %v1170_v44  ;;  %v1184_v18 = vsel %vm19559_vm7, %v1179_v60, %v1183_v9  ;;  %v1189_v17 = vrot.slane %v1188_v39, 4  ;;  %v1207_v5 = vrot.slane %v1205_v10, 5  ;;  %v24558_v60 = vld [vmem:[#allocation34_spill] sm:$0xff] }
 0x191   : > { %v1202_v7 = vor.u32 %v1201_v16, %v1198_v1  ;;  %v1211_v34 = vrot.slane %v1209_v49, 4  ;;  %v1217_v33 = vrot.slane %v1215_v24, 5  ;;  %v1220_v57 = vshrl.u32 %v979_v40, 16  ;;  %v982_v16 = vld [vmem:[%s19133_s10 + $0x78] sm:$0xf] }
 0x192   : > { %v24556_v3 = vcombine.low %v24554_v54, %v24555_v15  ;;  %17105 = vmatprep.mubr.msk.bf16.mxu1 %vm446_vm4, %v15133_v27  ;;  %v1194_v9 = vsel %vm19559_vm7, %v1189_v17, %v1193_v43  ;;  %v1223_v35 = vshll.u32 %v979_v40, 16  ;;  %v1229_v20 = vshll.u32 %v20900_v12, 16  ;;  %v20923_v40 = vld [vmem:[%s19133_s10 + $0x7c] sm:$0xf]  ;;  %v20942_v17 = vld [vmem:[%s19133_s10 + $0x88] sm:$0xf] }
 0x193   : > { %v1233_v22 = vshrl.u32 %v20900_v12, 16  ;;  %v24559_v39 = vcombine.low %v24557_v45, %v24558_v60  ;;  %v15134_v10 = vcombine.low %v1184_v18, %v1194_v9  ;;  %v1203_v49 = vrot.slane %v1202_v7, 4  ;;  %24560 = vst [vmem:[#allocation14_spill] sm:$0xff] %v20923_v40  ;;  %v20932_v9 = vld [vmem:[%s19133_s10 + $0x80] sm:$0x1]  ;;  %24562 = vst [vmem:[#allocation16_spill] sm:$0xff] %v20942_v17 }
 0x194   : > { %v1212_v44 = vor.u32 %v1211_v34, %v1207_v5  ;;  %v1222_v1 = vrot.slane %v1220_v57, 4  ;;  %v1225_v24 = vrot.slane %v1223_v35, 5  ;;  %v1231_v27 = vrot.slane %v1229_v20, 5  ;;  %24561 = vst [vmem:[#allocation13_spill] sm:$0xff] %v20932_v9  ;;  %v985_v60 = vld [vmem:[%s19133_s10 + $0x84] sm:$0xf] }
 0x195   : > { %17378 = vmatmul.mubr.msk.bf16.gmra.mrb[12].mxu0 %vm446_vm4, %v24556_v3  ;;  %v1235_v54 = vrot.slane %v1233_v22, 4  ;;  %v1239_v43 = vshll.u32 %v20905_v26, 16  ;;  %v1208_v15 = vsel %vm19559_vm7, %v1203_v49, %v1207_v5  ;;  %v1244_v35 = vshrl.u32 %v982_v16, 16  ;;  %v24568_v22 = vld [vmem:[#allocation38_spill] sm:$0xff] }
 0x196   : > { %17381 = vmatprep.mubr.msk.bf16.mxu0 %vm446_vm4, %v24559_v39  ;;  %v1213_v18 = vrot.slane %v1212_v44, 4  ;;  %17106 = vmatmul.mubr.msk.bf16.gmra.mrb[12].mxu1 %vm446_vm4, %v15134_v10  ;;  %v1226_v34 = vor.u32 %v1225_v24, %v1222_v1  ;;  %v1247_v45 = vshll.u32 %v982_v16, 16  ;;  %v1253_v5 = vshll.u32 %v20923_v40, 16  ;;  %v20964_v7 = vld [vmem:[%s19133_s10 + $0x94] sm:$0xf] }
 0x197   : > { %v1236_v57 = vor.u32 %v1235_v54, %v1231_v27  ;;  %v1241_v3 = vrot.slane %v1239_v43, 5  ;;  %v1246_v44 = vrot.slane %v1244_v35, 4  ;;  %v1257_v54 = vshrl.u32 %v20923_v40, 16 }
 0x198   : > { %v1218_v20 = vsel %vm19559_vm7, %v1213_v18, %v1217_v33  ;;  %v1227_v10 = vrot.slane %v1226_v34, 4  ;;  %v1249_v1 = vrot.slane %v1247_v45, 5  ;;  %v1255_v24 = vrot.slane %v1253_v5, 5  ;;  %v24563_v33 = vld [vmem:[#allocation35_spill] sm:$0xff]  ;;  %v24564_v18 = vld [vmem:[#allocation36_spill] sm:$0xff]  ;;  %v24567_v5 = vld [vmem:[#allocation37_spill] sm:$0xff] }
 0x199   : > { %v15135_v39 = vcombine.low %v1208_v15, %v1218_v20  ;;  %v1237_v49 = vrot.slane %v1236_v57, 4  ;;  %v1263_v43 = vshll.u32 %v20932_v9, 16  ;;  %v24565_v16 = vcombine.low %v24563_v33, %v24564_v18  ;;  %v20954_v57 = vld [vmem:[%s19133_s10 + $0x8c] sm:$0x1]  ;;  %v988_v45 = vld [vmem:[%s19133_s10 + $0x90] sm:$0xf] }
 0x19a   : > { %v1232_v15 = vsel %vm19559_vm7, %v1227_v10, %v1231_v27  ;;  %24566 = vst [vmem:[#allocation15_spill] sm:$0xff] %v20954_v57  ;;  %v1268_v35 = vshrl.u32 %v985_v60, 16  ;;  %v1271_v20 = vshll.u32 %v985_v60, 16  ;;  %v24569_v33 = vcombine.low %v24567_v5, %v24568_v22  ;;  %v991_v5 = vld [vmem:[%s19133_s10 + $0x9c] sm:$0xf] }
 0x19b   : > { %17109 = vmatprep.mubr.msk.bf16.mxu1 %vm446_vm4, %v15135_v39  ;;  %v1242_v34 = vsel %vm19559_vm7, %v1237_v49, %v1241_v3  ;;  %v1250_v39 = vor.u32 %v1249_v1, %v1246_v44  ;;  %v1265_v14 = vrot.slane %v1263_v43, 5  ;;  %v1277_v3 = vshll.u32 %v20942_v17, 16  ;;  %v20970_v43 = vld [vmem:[%s19133_s10 + $0x98] sm:$0x1] }
 0x19c   : > { %v15136_v18 = vcombine.low %v1232_v15, %v1242_v34  ;;  %v1270_v27 = vrot.slane %v1268_v35, 4  ;;  %v1273_v10 = vrot.slane %v1271_v20, 5  ;;  %v1281_v49 = vshrl.u32 %v20942_v17, 16 }
 0x19d   : > { %17382 = vmatmul.mubr.msk.bf16.gmra.mrb[16].mxu0 %vm446_vm4, %v24565_v16  ;;  %v1259_v16 = vrot.slane %v1257_v54, 4  ;;  %v1251_v60 = vrot.slane %v1250_v39, 4  ;;  %v1287_v40 = vshll.u32 %v20954_v57, 16  ;;  %v1292_v22 = vshrl.u32 %v988_v45, 16 }
 0x19e   : > { %17385 = vmatprep.mubr.msk.bf16.mxu0 %vm446_vm4, %v24569_v33  ;;  %17110 = vmatmul.mubr.msk.bf16.gmra.mrb[16].mxu1 %vm446_vm4, %v15136_v18  ;;  %v1274_v44 = vor.u32 %v1273_v10, %v1270_v27  ;;  %v1279_v1 = vrot.slane %v1277_v3, 5  ;;  %v1283_v54 = vrot.slane %v1281_v49, 4  ;;  %v1295_v15 = vshll.u32 %v988_v45, 16  ;;  %v20980_v10 = vld [vmem:[%s19133_s10 + $0xa0] sm:$0xf] }
 0x19f   : > { %v1260_v9 = vor.u32 %v1259_v16, %v1255_v24  ;;  %v1256_v34 = vsel %vm19559_vm7, %v1251_v60, %v1255_v24  ;;  %v1289_v20 = vrot.slane %v1287_v40, 5  ;;  %v1294_v33 = vrot.slane %v1292_v22, 4 }
 0x1a0   : > { %v1275_v39 = vrot.slane %v1274_v44, 4  ;;  %v1284_v16 = vor.u32 %v1283_v54, %v1279_v1  ;;  %v1297_v57 = vrot.slane %v1295_v15, 5  ;;  %v1301_v17 = vshll.u32 %v20964_v7, 16 }
 0x1a1   : > { %v1261_v35 = vrot.slane %v1260_v9, 4  ;;  %v1305_v27 = vshrl.u32 %v20964_v7, 16  ;;  %v1311_v45 = vshll.u32 %v20970_v43, 16  ;;  %v1316_v24 = vshrl.u32 %v991_v5, 16 }
 0x1a2   : > { %v24570_v40 = vcombine.low %v20490_v19, %v20494_v56  ;;  %v1280_v3 = vsel %vm19559_vm7, %v1275_v39, %v1279_v1  ;;  %v1285_v49 = vrot.slane %v1284_v16, 4  ;;  %v1298_v60 = vor.u32 %v1297_v57, %v1294_v33  ;;  %v994_v56 = vld [vmem:[%s19133_s10 + $0xa8] sm:$0xf]  ;;  %v21003_v39 = vld [vmem:[%s19133_s10 + $0xac] sm:$0xf] }
 0x1a3   : > { %v1266_v18 = vsel %vm19559_vm7, %v1261_v35, %v1265_v14  ;;  %v20989_v14 = vld [vmem:[%s19133_s10 + $0xa4] sm:$0x1]  ;;  %v24571_v22 = vcombine.low %v20500_v25, %v20504_v30  ;;  %v1303_v44 = vrot.slane %v1301_v17, 5  ;;  %v1307_v54 = vrot.slane %v1305_v27, 4 }
 0x1a4   : > { %v15137_v9 = vcombine.low %v1256_v34, %v1266_v18  ;;  %v1313_v15 = vrot.slane %v1311_v45, 5  ;;  %v1318_v19 = vrot.slane %v1316_v24, 4  ;;  %v1290_v1 = vsel %vm19559_vm7, %v1285_v49, %v1289_v20  ;;  %v21008_v45 = vld [vmem:[%s19133_s10 + $0xb0] sm:$0x1] }
 0x1a5   : > { %17386 = vmatmul.mubr.msk.bf16.gmra.mrb[20].mxu0 %vm446_vm4, %v24570_v40  ;;  %v1299_v57 = vrot.slane %v1298_v60, 4  ;;  %v1319_v34 = vshll.u32 %v991_v5, 16  ;;  %v1325_v35 = vshll.u32 %v20980_v10, 16  ;;  %v15138_v33 = vcombine.low %v1280_v3, %v1290_v1 }
 0x1a6   : > { %17389 = vmatprep.mubr.msk.bf16.mxu0 %vm446_vm4, %v24571_v22  ;;  %17113 = vmatprep.mubr.msk.bf16.mxu1 %vm446_vm4, %v15137_v9  ;;  %v1308_v25 = vor.u32 %v1307_v54, %v1303_v44  ;;  %v1329_v30 = vshrl.u32 %v20980_v10, 16  ;;  %v1335_v17 = vshll.u32 %v20989_v14, 16  ;;  %v1340_v5 = vshrl.u32 %v994_v56, 16  ;;  %v997_v54 = vld [vmem:[%s19133_s10 + $0xb4] sm:$0xf] }
 0x1a7   : > { %v1304_v16 = vsel %vm19559_vm7, %v1299_v57, %v1303_v44  ;;  %v1321_v18 = vrot.slane %v1319_v34, 5  ;;  %v1327_v27 = vrot.slane %v1325_v35, 5  ;;  %17114 = vmatmul.mubr.msk.bf16.gmra.mrb[20].mxu1 %vm446_vm4, %v15138_v33  ;;  %v1343_v9 = vshll.u32 %v994_v56, 16  ;;  %v21018_v35 = vld [vmem:[%s19133_s10 + $0xb8] sm:$0xf] }
 0x1a8   : > { %v1309_v20 = vrot.slane %v1308_v25, 4  ;;  %v1331_v24 = vrot.slane %v1329_v30, 4  ;;  %v1337_v40 = vrot.slane %v1335_v17, 5  ;;  %v1342_v49 = vrot.slane %v1340_v5, 4 }
 0x1a9   : > { %v1322_v3 = vor.u32 %v1321_v18, %v1318_v19  ;;  %v1349_v60 = vshll.u32 %v21003_v39, 16  ;;  %v1353_v22 = vshrl.u32 %v21003_v39, 16  ;;  %v1345_v57 = vrot.slane %v1343_v9, 5 }
 0x1aa   : > { %v1314_v44 = vsel %vm19559_vm7, %v1309_v20, %v1313_v15  ;;  %v1332_v1 = vor.u32 %v1331_v24, %v1327_v27  ;;  %v1359_v34 = vshll.u32 %v21008_v45, 16  ;;  %v24572_v56 = vcombine.low %v20508_v36, %v20518_v63  ;;  %v21032_v24 = vld [vmem:[%s19133_s10 + $0xbc] sm:$0x1] }
 0x1ab   : > { %v15139_v19 = vcombine.low %v1304_v16, %v1314_v44  ;;  %v1323_v33 = vrot.slane %v1322_v3, 4  ;;  %v1351_v25 = vrot.slane %v1349_v60, 5  ;;  %v1355_v30 = vrot.slane %v1353_v22, 4  ;;  %v1387_v3 = vld [vmem:[%s19205_s15] sm:$0xf] }
 0x1ac   : > { %v24573_v15 = vcombine.low %v20529_v61, %v20533_v48  ;;  %v1333_v17 = vrot.slane %v1332_v1, 4  ;;  %v1346_v18 = vor.u32 %v1345_v57, %v1342_v49  ;;  %v1361_v5 = vrot.slane %v1359_v34, 5 }
 0x1ad   : > { %17390 = vmatmul.mubr.msk.bf16.gmra.mrb[24].mxu0 %vm446_vm4, %v24572_v56  ;;  %v1364_v20 = vshrl.u32 %v997_v54, 16  ;;  %17117 = vmatprep.mubr.msk.bf16.mxu1 %vm446_vm4, %v15139_v19  ;;  %v1328_v36 = vsel %vm19559_vm7, %v1323_v33, %v1327_v27  ;;  %v1356_v63 = vor.u32 %v1355_v30, %v1351_v25  ;;  %v1367_v16 = vshll.u32 %v997_v54, 16  ;;  %v18967_v30 = vld [vmem:[%s19205_s15 + $0x4] sm:$0xf] }
 0x1ae   : > { %17393 = vmatprep.mubr.msk.bf16.mxu0 %vm446_vm4, %v24573_v15  ;;  %v1373_v9 = vshll.u32 %v21018_v35, 16  ;;  %v1338_v61 = vsel %vm19559_vm7, %v1333_v17, %v1337_v40  ;;  %v1347_v48 = vrot.slane %v1346_v18, 4  ;;  %v1377_v60 = vshrl.u32 %v21018_v35, 16  ;;  %v1390_v17 = vld [vmem:[%s19205_s15 + $0xc] sm:$0xf] }
 0x1af   : > { %v1366_v49 = vrot.slane %v1364_v20, 4  ;;  %v15140_v22 = vcombine.low %v1328_v36, %v1338_v61  ;;  %v1357_v44 = vrot.slane %v1356_v63, 4  ;;  %v1369_v1 = vrot.slane %v1367_v16, 5 }
 0x1b0   : > { %v1375_v27 = vrot.slane %v1373_v9, 5  ;;  %v1352_v57 = vsel %vm19559_vm7, %v1347_v48, %v1351_v25  ;;  %v1379_v54 = vrot.slane %v1377_v60, 4  ;;  %v1383_v34 = vshll.u32 %v21032_v24, 16  ;;  %v24575_v48 = vld [vmem:[#allocation39_spill] sm:$0xff]  ;;  %v18968_v60 = vld [vmem:[%s19205_s15 + $0x8] sm:$0x1] }
 0x1b1   : > { %v1436_v56 = vshrl.u32 %v1387_v3, 16  ;;  %17118 = vmatmul.mubr.msk.bf16.gmra.mrb[24].mxu1 %vm446_vm4, %v15140_v22  ;;  %v1362_v40 = vsel %vm19559_vm7, %v1357_v44, %v1361_v5  ;;  %v1370_v19 = vor.u32 %v1369_v1, %v1366_v49  ;;  %v1439_v33 = vshll.u32 %v1387_v3, 16  ;;  %v15159_v5 = vld [vmem:[%s24327_s3 + $0x2] sm:$0x3] }
 0x1b2   : > { %v1445_v15 = vshll.u32 %v18967_v30, 16  ;;  %v15141_v18 = vcombine.low %v1352_v57, %v1362_v40  ;;  %v1380_v20 = vor.u32 %v1379_v54, %v1375_v27  ;;  %v1385_v36 = vrot.slane %v1383_v34, 5  ;;  %18746 = vmatprep.subr.msk.bf16.mxu1 %vm495_vm0, %v15159_v5 }
 0x1b3   : > { %v1438_v63 = vrot.slane %v1436_v56, 4  ;;  %v24574_v25 = vcombine.low %v20553_v4, %v20557_v46  ;;  %v1371_v16 = vrot.slane %v1370_v19, 4  ;;  %v1441_v9 = vrot.slane %v1439_v33, 5  ;;  %v18969_v33 = vld [vmem:[%s19205_s15 + $0x10] sm:$0xf] }
 0x1b4   : > { %v1447_v3 = vrot.slane %v1445_v15, 5  ;;  %v1449_v61 = vshrl.u32 %v18967_v30, 16  ;;  %v24576_v49 = vcombine.low %v20564_v52, %v24575_v48  ;;  %17121 = vmatprep.mubr.msk.bf16.mxu1 %vm446_vm4, %v15141_v18  ;;  %v1381_v4 = vrot.slane %v1380_v20, 4  ;;  %v1393_v52 = vld [vmem:[%s19205_s15 + $0x18] sm:$0xf] }
 0x1b5   : > { %17394 = vmatmul.mubr.msk.bf16.gmra.mrb[28].mxu0 %vm446_vm4, %v24574_v25  ;;  %v2212_v46 = vsel %vm495_vm0, %v15159_v5, 0  ;;  %v1455_v22 = vshll.u32 %v18968_v60, 16  ;;  %v1460_v44 = vshrl.u32 %v1390_v17, 16  ;;  %v1376_v1 = vsel %vm19559_vm7, %v1371_v16, %v1375_v27  ;;  %v18970_v27 = vld [vmem:[%s24326_s2 + $0x4] sm:$0x3] }
 0x1b6   : > { %17399 = vmatprep.mubr.msk.bf16.mxu0 %vm446_vm4, %v24576_v49  ;;  %v1442_v57 = vor.u32 %v1441_v9, %v1438_v63  ;;  %v1451_v54 = vrot.slane %v1449_v61, 4  ;;  %v1463_v34 = vshll.u32 %v1390_v17, 16  ;;  %v1386_v56 = vsel %vm19559_vm7, %v1381_v4, %v1385_v36  ;;  %17126 = vmatpush3.bf16.msra.mxu1 %v2212_v46  ;;  %v18971_v36 = vld [vmem:[%s19205_s15 + $0x14] sm:$0x1]  ;;  %v21076_v9 = vld [vmem:[%s24327_s3 + $0xc] sm:$0x3] }
 0x1b7   : > { %v1457_v40 = vrot.slane %v1455_v22, 5  ;;  %v1462_v19 = vrot.slane %v1460_v44, 4  ;;  %v1469_v30 = vshll.u32 %v18969_v33, 16  ;;  %v15142_v15 = vcombine.low %v1376_v1, %v1386_v56  ;;  %18748 = vmatprep.subr.msk.bf16.mxu1 %vm495_vm0, %v18970_v27  ;;  %v18972_v1 = vld [vmem:[%s19205_s15 + $0x1c] sm:$0xf]  ;;  %v24579_v56 = vld [vmem:[#allocation41_spill] sm:$0xff] }
 0x1b8   : > { %v1443_v18 = vrot.slane %v1442_v57, 4  ;;  %v1452_v20 = vor.u32 %v1451_v54, %v1447_v3  ;;  %v1465_v25 = vrot.slane %v1463_v34, 5  ;;  %v1473_v63 = vshrl.u32 %v18969_v33, 16  ;;  %v1396_v54 = vld [vmem:[%s19205_s15 + $0x24] sm:$0xf] }
 0x1b9   : > { %v1471_v17 = vrot.slane %v1469_v30, 5  ;;  %v1479_v16 = vshll.u32 %v18971_v36, 16  ;;  %v1484_v5 = vshrl.u32 %v1393_v52, 16  ;;  %17122 = vmatmul.mubr.msk.bf16.gmra.mrb[28].mxu1 %vm446_vm4, %v15142_v15  ;;  %v1487_v4 = vshll.u32 %v1393_v52, 16  ;;  %v24578_v34 = vld [vmem:[#allocation40_spill] sm:$0xff]  ;;  %v24581_v15 = vld [vmem:[#allocation46_spill] sm:$0xff] }
 0x1ba   : > { %v1448_v61 = vsel %vm19559_vm7, %v1443_v18, %v1447_v3  ;;  %v1453_v48 = vrot.slane %v1452_v20, 4  ;;  %v1466_v49 = vor.u32 %v1465_v25, %v1462_v19  ;;  %v24577_v46 = vrot.slane %v20900_v12, 5  ;;  %v24582_v18 = vld [vmem:[#allocation42_spill] sm:$0xff]  ;;  %v24583_v20 = vld [vmem:[#allocation43_spill] sm:$0xff] }
 0x1bb   : > { %v1475_v22 = vrot.slane %v1473_v63, 4  ;;  %v1486_v44 = vrot.slane %v1484_v5, 4  ;;  %v1493_v57 = vshll.u32 %v18972_v1, 16  ;;  %v24580_v33 = vcombine.low %v24578_v34, %v24579_v56 }
 0x1bc   : > { %v21083_v60 = vrot.slane %v24577_v46, 4  ;;  %v1458_v3 = vsel %vm19559_vm7, %v1453_v48, %v1457_v40  ;;  %v1467_v19 = vrot.slane %v1466_v49, 4  ;;  %v1481_v52 = vrot.slane %v1479_v16, 5  ;;  %v18973_v48 = vld [vmem:[%s19205_s15 + $0x20] sm:$0x1] }
 0x1bd   : > { %17400 = vmatmul.mubr.msk.bf16.vlgmr.msra.gmra.mrb[0].mxu0 %vm446_vm4, %v24580_v33  ;;  %v1489_v30 = vrot.slane %v1487_v4, 5  ;;  %v24584_v25 = vcombine.low %v24582_v18, %v24583_v20  ;;  %v15160_v27 = vcombine.low %v1448_v61, %v1458_v3  ;;  %v1476_v63 = vor.u32 %v1475_v22, %v1471_v17  ;;  %v18974_v22 = vld [vmem:[%s19205_s15 + $0x28] sm:$0xf] }
 0x1be   : > { %17432 = vmatpush3.bf16.msra.mxu0 %v24581_v15  ;;  %v1495_v36 = vrot.slane %v1493_v57, 5  ;;  %v1497_v5 = vshrl.u32 %v18972_v1, 16  ;;  %v1472_v40 = vsel %vm19559_vm7, %v1467_v19, %v1471_v17  ;;  %v1503_v49 = vshll.u32 %v18973_v48, 16  ;;  %v1399_v15 = vld [vmem:[%s19205_s15 + $0x30] sm:$0xf] }
 0x1bf   : > { %17403 = vmatprep.mubr.msk.bf16.mxu0 %vm446_vm4, %v24584_v25  ;;  %18757 = vmatprep.subr.msk.bf16.mxu0 %vm495_vm0, %v21076_v9  ;;  %v1490_v16 = vor.u32 %v1489_v30, %v1486_v44  ;;  %v1508_v4 = vshrl.u32 %v1396_v54, 16  ;;  %v1477_v46 = vrot.slane %v1476_v63, 4  ;;  %v1511_v61 = vshll.u32 %v1396_v54, 16  ;;  %v18975_v25 = vld [vmem:[%s19205_s15 + $0x2c] sm:$0x1] }
 0x1c0   : > { %17127 = vmatprep.mubr.msk.bf16.mxu1 %vm446_vm4, %v15160_v27  ;;  %v1499_v34 = vrot.slane %v1497_v5, 4  ;;  %v1517_v57 = vshll.u32 %v18974_v22, 16  ;;  %v1505_v56 = vrot.slane %v1503_v49, 5  ;;  %v1521_v3 = vshrl.u32 %v18974_v22, 16  ;;  %v24585_v49 = vld [vmem:[#allocation44_spill] sm:$0xff] }
 0x1c1   : > { %v1491_v1 = vrot.slane %v1490_v16, 4  ;;  %v1510_v33 = vrot.slane %v1508_v4, 4  ;;  %v1482_v17 = vsel %vm19559_vm7, %v1477_v46, %v1481_v52  ;;  %v1513_v19 = vrot.slane %v1511_v61, 5  ;;  %v24586_v4 = vld [vmem:[#allocation45_spill] sm:$0xff]  ;;  %v18976_v46 = vld [vmem:[%s19205_s15 + $0x34] sm:$0xf] }
 0x1c2   : > { %v1500_v44 = vor.u32 %v1499_v34, %v1495_v36  ;;  %v1519_v30 = vrot.slane %v1517_v57, 5  ;;  %v15161_v18 = vcombine.low %v1472_v40, %v1482_v17  ;;  %v1523_v54 = vrot.slane %v1521_v3, 4  ;;  %v1402_v61 = vld [vmem:[%s19205_s15 + $0x3c] sm:$0xf] }
 0x1c3   : > { %v1496_v20 = vsel %vm19559_vm7, %v1491_v1, %v1495_v36  ;;  %v1527_v27 = vshll.u32 %v18975_v25, 16  ;;  %v1514_v5 = vor.u32 %v1513_v19, %v1510_v33  ;;  %v1532_v16 = vshrl.u32 %v1399_v15, 16  ;;  %v24589_v17 = vld [vmem:[#allocation3_spill] sm:$0xff] }
 0x1c4   : > { %v1501_v63 = vrot.slane %v1500_v44, 4  ;;  %v1535_v48 = vshll.u32 %v1399_v15, 16  ;;  %v24587_v22 = vcombine.low %v24585_v49, %v24586_v4  ;;  %17128 = vmatmul.mubr.msk.bf16.vlgmr.msra.gmra.mrb[0].mxu1 %vm446_vm4, %v15161_v18  ;;  %v1524_v52 = vor.u32 %v1523_v54, %v1519_v30 }
 0x1c5   : > { %v1529_v40 = vrot.slane %v1527_v27, 5  ;;  %v1541_v34 = vshll.u32 %v18976_v46, 16  ;;  %v1545_v36 = vshrl.u32 %v18976_v46, 16  ;;  %v24588_v57 = vcombine.low %v20630_v29, %v20634_v11  ;;  %17942 = vmatpush3.bf16.msra.mxu1 %v24589_v17  ;;  %v18977_v11 = vld [vmem:[%s19205_s15 + $0x38] sm:$0x1] }
 0x1c6   : > { %17404 = vmatmul.mubr.msk.bf16.gmra.mrb[4].mxu0 %vm446_vm4, %v24587_v22  ;;  %v1506_v1 = vsel %vm19559_vm7, %v1501_v63, %v1505_v56  ;;  %v1515_v33 = vrot.slane %v1514_v5, 4  ;;  %v1534_v3 = vrot.slane %v1532_v16, 4  ;;  %v1537_v15 = vrot.slane %v1535_v48, 5  ;;  %v18978_v16 = vld [vmem:[%s19205_s15 + $0x40] sm:$0xf] }
 0x1c7   : > { %17407 = vmatprep.mubr.msk.bf16.mxu0 %vm446_vm4, %v24588_v57  ;;  %v15162_v44 = vcombine.low %v1496_v20, %v1506_v1  ;;  %v1525_v19 = vrot.slane %v1524_v52, 4  ;;  %v1543_v18 = vrot.slane %v1541_v34, 5  ;;  %v1547_v54 = vrot.slane %v1545_v36, 4  ;;  %v1405_v48 = vld [vmem:[%s19205_s15 + $0x48] sm:$0xf] }
 0x1c8   : > { %v1520_v25 = vsel %vm19559_vm7, %v1515_v33, %v1519_v30  ;;  %v1538_v29 = vor.u32 %v1537_v15, %v1534_v3  ;;  %v1551_v27 = vshll.u32 %v18977_v11, 16  ;;  %v1556_v49 = vshrl.u32 %v1402_v61, 16  ;;  %v18979_v33 = vld [vmem:[%s19205_s15 + $0x44] sm:$0x1] }
 0x1c9   : > { %17131 = vmatprep.mubr.msk.bf16.mxu1 %vm446_vm4, %v15162_v44  ;;  %v1530_v56 = vsel %vm19559_vm7, %v1525_v19, %v1529_v40  ;;  %v1548_v63 = vor.u32 %v1547_v54, %v1543_v18  ;;  %v1559_v5 = vshll.u32 %v1402_v61, 16  ;;  %v1565_v20 = vshll.u32 %v18978_v16, 16  ;;  %v18980_v54 = vld [vmem:[%s19205_s15 + $0x4c] sm:$0xf] }
 0x1ca   : > { %v15163_v4 = vcombine.low %v1520_v25, %v1530_v56  ;;  %v1539_v22 = vrot.slane %v1538_v29, 4  ;;  %v1553_v52 = vrot.slane %v1551_v27, 5  ;;  %v1558_v30 = vrot.slane %v1556_v49, 4 }
 0x1cb   : > { %v1549_v46 = vrot.slane %v1548_v63, 4  ;;  %v1561_v34 = vrot.slane %v1559_v5, 5  ;;  %v1567_v36 = vrot.slane %v1565_v20, 5  ;;  %v1569_v57 = vshrl.u32 %v18978_v16, 16  ;;  %v18981_v20 = vld [vmem:[%s19205_s15 + $0x50] sm:$0x1] }
 0x1cc   : > { %v1544_v1 = vsel %vm19559_vm7, %v1539_v22, %v1543_v18  ;;  %v1575_v40 = vshll.u32 %v18979_v33, 16  ;;  %v1580_v3 = vshrl.u32 %v1405_v48, 16  ;;  %v1583_v61 = vshll.u32 %v1405_v48, 16  ;;  %17132 = vmatmul.mubr.msk.bf16.gmra.mrb[4].mxu1 %vm446_vm4, %v15163_v4  ;;  %v1408_v18 = vld [vmem:[%s19205_s15 + $0x54] sm:$0xf] }
 0x1cd   : > { %v24590_v15 = vcombine.low %v20638_v38, %v20644_v37  ;;  %v1554_v17 = vsel %vm19559_vm7, %v1549_v46, %v1553_v52  ;;  %v1562_v44 = vor.u32 %v1561_v34, %v1558_v30  ;;  %v1571_v19 = vrot.slane %v1569_v57, 4  ;;  %v18982_v30 = vld [vmem:[%s19205_s15 + $0x58] sm:$0xf] }
 0x1ce   : > { %v1589_v25 = vshll.u32 %v18980_v54, 16  ;;  %v24591_v29 = vcombine.low %v20657_v58, %v20672_v55  ;;  %v15164_v11 = vcombine.low %v1544_v1, %v1554_v17  ;;  %v1577_v38 = vrot.slane %v1575_v40, 5  ;;  %v1411_v40 = vld [vmem:[%s19205_s15 + $0x60] sm:$0xf] }
 0x1cf   : > { %17408 = vmatmul.mubr.msk.bf16.gmra.mrb[8].mxu0 %vm446_vm4, %v24590_v15  ;;  %v1582_v37 = vrot.slane %v1580_v3, 4  ;;  %v1585_v27 = vrot.slane %v1583_v61, 5  ;;  %v1563_v49 = vrot.slane %v1562_v44, 4  ;;  %v1572_v56 = vor.u32 %v1571_v19, %v1567_v36 }
 0x1d0   : > { %17411 = vmatprep.mubr.msk.bf16.mxu0 %vm446_vm4, %v24591_v29  ;;  %v1591_v63 = vrot.slane %v1589_v25, 5  ;;  %v1593_v5 = vshrl.u32 %v18980_v54, 16  ;;  %17135 = vmatprep.mubr.msk.bf16.mxu1 %vm446_vm4, %v15164_v11  ;;  %v1599_v48 = vshll.u32 %v18981_v20, 16  ;;  %v1604_v4 = vshrl.u32 %v1408_v18, 16  ;;  %v18983_v54 = vld [vmem:[%s19205_s15 + $0x5c] sm:$0x1] }
 0x1d1   : > { %v1586_v16 = vor.u32 %v1585_v27, %v1582_v37  ;;  %v1607_v22 = vshll.u32 %v1408_v18, 16  ;;  %v1568_v55 = vsel %vm19559_vm7, %v1563_v49, %v1567_v36  ;;  %v1573_v58 = vrot.slane %v1572_v56, 4 }
 0x1d2   : > { %v1595_v52 = vrot.slane %v1593_v5, 4  ;;  %v1613_v46 = vshll.u32 %v18982_v30, 16  ;;  %v1601_v57 = vrot.slane %v1599_v48, 5  ;;  %v1606_v1 = vrot.slane %v1604_v4, 4 }
 0x1d3   : > { %v1587_v34 = vrot.slane %v1586_v16, 4  ;;  %v1609_v33 = vrot.slane %v1607_v22, 5  ;;  %v1578_v3 = vsel %vm19559_vm7, %v1573_v58, %v1577_v38  ;;  %v1617_v17 = vshrl.u32 %v18982_v30, 16  ;;  %v18985_v30 = vld [vmem:[%s19205_s15 + $0x68] sm:$0x1] }
 0x1d4   : > { %v1596_v61 = vor.u32 %v1595_v52, %v1591_v63  ;;  %v1615_v15 = vrot.slane %v1613_v46, 5  ;;  %v15165_v44 = vcombine.low %v1568_v55, %v1578_v3  ;;  %v1623_v25 = vshll.u32 %v18983_v54, 16 }
 0x1d5   : > { %v1592_v36 = vsel %vm19559_vm7, %v1587_v34, %v1591_v63  ;;  %v1610_v19 = vor.u32 %v1609_v33, %v1606_v1  ;;  %v24592_v18 = vcombine.low %v20679_v2, %v20683_v50  ;;  %v1619_v11 = vrot.slane %v1617_v17, 4  ;;  %v18984_v63 = vld [vmem:[%s19205_s15 + $0x64] sm:$0xf]  ;;  %v1414_v2 = vld [vmem:[%s19205_s15 + $0x6c] sm:$0xf] }
 0x1d6   : > { %v1597_v29 = vrot.slane %v1596_v61, 4  ;;  %v1628_v38 = vshrl.u32 %v1411_v40, 16  ;;  %v1631_v37 = vshll.u32 %v1411_v40, 16  ;;  %v24593_v27 = vcombine.low %v20687_v8, %v20691_v31  ;;  %17136 = vmatmul.mubr.msk.bf16.gmra.mrb[8].mxu1 %vm446_vm4, %v15165_v44  ;;  %v18986_v33 = vld [vmem:[%s19205_s15 + $0x70] sm:$0xf] }
 0x1d7   : > { %17412 = vmatmul.mubr.msk.bf16.gmra.mrb[12].mxu0 %vm446_vm4, %v24592_v18  ;;  %v1611_v49 = vrot.slane %v1610_v19, 4  ;;  %v1625_v56 = vrot.slane %v1623_v25, 5  ;;  %v1637_v5 = vshll.u32 %v18984_v63, 16  ;;  %v1641_v16 = vshrl.u32 %v18984_v63, 16  ;;  %v1417_v61 = vld [vmem:[%s19205_s15 + $0x78] sm:$0xf] }
 0x1d8   : > { %17415 = vmatprep.mubr.msk.bf16.mxu0 %vm446_vm4, %v24593_v27  ;;  %v1602_v50 = vsel %vm19559_vm7, %v1597_v29, %v1601_v57  ;;  %v1620_v20 = vor.u32 %v1619_v11, %v1615_v15  ;;  %v1630_v48 = vrot.slane %v1628_v38, 4  ;;  %v1633_v4 = vrot.slane %v1631_v37, 5  ;;  %v18987_v37 = vld [vmem:[%s19205_s15 + $0x74] sm:$0x1] }
 0x1d9   : > { %v15166_v8 = vcombine.low %v1592_v36, %v1602_v50  ;;  %v1616_v31 = vsel %vm19559_vm7, %v1611_v49, %v1615_v15  ;;  %v1639_v22 = vrot.slane %v1637_v5, 5  ;;  %v1643_v55 = vrot.slane %v1641_v16, 4  ;;  %v18988_v5 = vld [vmem:[%s19205_s15 + $0x7c] sm:$0xf] }
 0x1da   : > { %v1621_v58 = vrot.slane %v1620_v20, 4  ;;  %v1634_v52 = vor.u32 %v1633_v4, %v1630_v48  ;;  %v1647_v46 = vshll.u32 %v18985_v30, 16  ;;  %v1652_v34 = vshrl.u32 %v1414_v2, 16 }
 0x1db   : > { %17139 = vmatprep.mubr.msk.bf16.mxu1 %vm446_vm4, %v15166_v8  ;;  %v1644_v1 = vor.u32 %v1643_v55, %v1639_v22  ;;  %v1655_v57 = vshll.u32 %v1414_v2, 16  ;;  %v1661_v40 = vshll.u32 %v18986_v33, 16  ;;  %v1665_v3 = vshrl.u32 %v18986_v33, 16  ;;  %v1420_v2 = vld [vmem:[%s19205_s15 + $0x84] sm:$0xf] }
 0x1dc   : > { %v1626_v17 = vsel %vm19559_vm7, %v1621_v58, %v1625_v56  ;;  %v1635_v15 = vrot.slane %v1634_v52, 4  ;;  %v1649_v44 = vrot.slane %v1647_v46, 5  ;;  %v1654_v36 = vrot.slane %v1652_v34, 4  ;;  %v18989_v55 = vld [vmem:[%s19205_s15 + $0x80] sm:$0x1] }
 0x1dd   : > { %v15167_v19 = vcombine.low %v1616_v31, %v1626_v17  ;;  %v1645_v54 = vrot.slane %v1644_v1, 4  ;;  %v1657_v25 = vrot.slane %v1655_v57, 5  ;;  %v1663_v18 = vrot.slane %v1661_v40, 5  ;;  %v18990_v57 = vld [vmem:[%s19205_s15 + $0x88] sm:$0xf] }
 0x1de   : > { %v24594_v29 = vcombine.low %v20695_v47, %v20700_v13  ;;  %v1640_v11 = vsel %vm19559_vm7, %v1635_v15, %v1639_v22  ;;  %v1667_v38 = vrot.slane %v1665_v3, 4  ;;  %v1671_v27 = vshll.u32 %v18987_v37, 16  ;;  %v1423_v40 = vld [vmem:[%s19205_s15 + $0x90] sm:$0xf] }
 0x1df   : > { %v1676_v49 = vshrl.u32 %v1417_v61, 16  ;;  %v24595_v56 = vcombine.low %v20704_v41, %v20708_v62  ;;  %17140 = vmatmul.mubr.msk.bf16.gmra.mrb[12].mxu1 %vm446_vm4, %v15167_v19  ;;  %v1650_v63 = vsel %vm19559_vm7, %v1645_v54, %v1649_v44  ;;  %v1658_v47 = vor.u32 %v1657_v25, %v1654_v36 }
 0x1e0   : > { %17416 = vmatmul.mubr.msk.bf16.gmra.mrb[16].mxu0 %vm446_vm4, %v24594_v29  ;;  %v1679_v13 = vshll.u32 %v1417_v61, 16  ;;  %v1685_v16 = vshll.u32 %v18988_v5, 16  ;;  %v15168_v50 = vcombine.low %v1640_v11, %v1650_v63  ;;  %v1668_v20 = vor.u32 %v1667_v38, %v1663_v18  ;;  %v18991_v11 = vld [vmem:[%s19205_s15 + $0x8c] sm:$0x1] }
 0x1e1   : > { %17419 = vmatprep.mubr.msk.bf16.mxu0 %vm446_vm4, %v24595_v56  ;;  %v1673_v48 = vrot.slane %v1671_v27, 5  ;;  %v1678_v4 = vrot.slane %v1676_v49, 4  ;;  %v1659_v41 = vrot.slane %v1658_v47, 4  ;;  %v1689_v31 = vshrl.u32 %v18988_v5, 16  ;;  %v24597_v27 = vld [vmem:[#allocation12_spill] sm:$0xff] }
 0x1e2   : > { %v1681_v62 = vrot.slane %v1679_v13, 5  ;;  %v1687_v8 = vrot.slane %v1685_v16, 5  ;;  %17143 = vmatprep.mubr.msk.bf16.mxu1 %vm446_vm4, %v15168_v50  ;;  %v1669_v22 = vrot.slane %v1668_v20, 4  ;;  %v1695_v58 = vshll.u32 %v18989_v55, 16  ;;  %v1426_v50 = vld [vmem:[%s19205_s15 + $0x9c] sm:$0xf] }
 0x1e3   : > { %v1700_v52 = vshrl.u32 %v1420_v2, 16  ;;  %v1703_v30 = vshll.u32 %v1420_v2, 16  ;;  %v1664_v46 = vsel %vm19559_vm7, %v1659_v41, %v1663_v18  ;;  %v1691_v1 = vrot.slane %v1689_v31, 4  ;;  %v18993_v31 = vld [vmem:[%s19205_s15 + $0x98] sm:$0x1] }
 0x1e4   : > { %v1682_v34 = vor.u32 %v1681_v62, %v1678_v4  ;;  %v1709_v33 = vshll.u32 %v18990_v57, 16  ;;  %v1674_v3 = vsel %vm19559_vm7, %v1669_v22, %v1673_v48  ;;  %v1697_v61 = vrot.slane %v1695_v58, 5 }
 0x1e5   : > { %v1702_v17 = vrot.slane %v1700_v52, 4  ;;  %v1705_v15 = vrot.slane %v1703_v30, 5  ;;  %v15169_v44 = vcombine.low %v1664_v46, %v1674_v3  ;;  %v1692_v19 = vor.u32 %v1691_v1, %v1687_v8  ;;  %v18994_v1 = vld [vmem:[%s19205_s15 + $0xa0] sm:$0xf] }
 0x1e6   : > { %v1683_v36 = vrot.slane %v1682_v34, 4  ;;  %v1711_v54 = vrot.slane %v1709_v33, 5  ;;  %v24596_v25 = vcombine.low %v20712_v59, %v20716_v23  ;;  %v1713_v29 = vshrl.u32 %v18990_v57, 16  ;;  %v18992_v23 = vld [vmem:[%s19205_s15 + $0x94] sm:$0xf] }
 0x1e7   : > { %v1706_v18 = vor.u32 %v1705_v15, %v1702_v17  ;;  %v1719_v38 = vshll.u32 %v18991_v11, 16  ;;  %v1724_v37 = vshrl.u32 %v1423_v40, 16  ;;  %v24598_v49 = vcombine.low %v20738_v42, %v24597_v27  ;;  %17144 = vmatmul.mubr.msk.bf16.gmra.mrb[16].mxu1 %vm446_vm4, %v15169_v44  ;;  %v1429_v15 = vld [vmem:[%s19205_s15 + $0xa8] sm:$0xf]  ;;  %v24599_v44 = vld [vmem:[#allocation10_spill] sm:$0xff] }
 0x1e8   : > { %17420 = vmatmul.mubr.msk.bf16.gmra.mrb[20].mxu0 %vm446_vm4, %v24596_v25  ;;  %v1688_v56 = vsel %vm19559_vm7, %v1683_v36, %v1687_v8  ;;  %v1693_v63 = vrot.slane %v1692_v19, 4  ;;  %v1727_v59 = vshll.u32 %v1423_v40, 16  ;;  %v1733_v47 = vshll.u32 %v18992_v23, 16  ;;  %v24600_v36 = vld [vmem:[#allocation11_spill] sm:$0xff] }
 0x1e9   : > { %17423 = vmatprep.mubr.msk.bf16.mxu0 %vm446_vm4, %v24598_v49  ;;  %v1707_v13 = vrot.slane %v1706_v18, 4  ;;  %v1715_v5 = vrot.slane %v1713_v29, 4  ;;  %v1721_v16 = vrot.slane %v1719_v38, 5  ;;  %v1726_v2 = vrot.slane %v1724_v37, 4  ;;  %v18995_v29 = vld [vmem:[%s19205_s15 + $0xa4] sm:$0x1] }
 0x1ea   : > { %v1698_v42 = vsel %vm19559_vm7, %v1693_v63, %v1697_v61  ;;  %v1729_v20 = vrot.slane %v1727_v59, 5  ;;  %v1735_v48 = vrot.slane %v1733_v47, 5  ;;  %v1737_v4 = vshrl.u32 %v18992_v23, 16 }
 0x1eb   : > { %v15170_v41 = vcombine.low %v1688_v56, %v1698_v42  ;;  %v1712_v62 = vsel %vm19559_vm7, %v1707_v13, %v1711_v54  ;;  %v1716_v8 = vor.u32 %v1715_v5, %v1711_v54  ;;  %v1743_v22 = vshll.u32 %v18993_v31, 16  ;;  %v18996_v13 = vld [vmem:[%s19205_s15 + $0xac] sm:$0xf]  ;;  %v18997_v31 = vld [vmem:[%s19205_s15 + $0xb0] sm:$0x1] }
 0x1ec   : > { %v1730_v55 = vor.u32 %v1729_v20, %v1726_v2  ;;  %v1739_v58 = vrot.slane %v1737_v4, 4  ;;  %v1748_v52 = vshrl.u32 %v1426_v50, 16  ;;  %v1751_v30 = vshll.u32 %v1426_v50, 16  ;;  %v1432_v2 = vld [vmem:[%s19205_s15 + $0xb4] sm:$0xf]  ;;  %v18836_v4 = vld [vmem:[%s19133_s10 + $0x18] sm:$0xff]  }
 0x1ed   : > { %17147 = vmatprep.mubr.msk.bf16.mxu1 %vm446_vm4, %v15170_v41  ;;  %v1717_v46 = vrot.slane %v1716_v8, 4  ;;  %v1745_v34 = vrot.slane %v1743_v22, 5  ;;  %v1757_v57 = vshll.u32 %v18994_v1, 16  ;;  %v1761_v33 = vshrl.u32 %v18994_v1, 16 }
 0x1ee   : > { %v1731_v40 = vrot.slane %v1730_v55, 4  ;;  %v1740_v3 = vor.u32 %v1739_v58, %v1735_v48  ;;  %v1750_v61 = vrot.slane %v1748_v52, 4  ;;  %v1753_v17 = vrot.slane %v1751_v30, 5 }
 0x1ef   : > { %v24601_v19 = vcombine.low %v24599_v44, %v24600_v36  ;;  %v1722_v54 = vsel %vm19559_vm7, %v1717_v46, %v1721_v16  ;;  %v1759_v25 = vrot.slane %v1757_v57, 5  ;;  %v1763_v18 = vrot.slane %v1761_v33, 4  ;;  %v2415_v46 = vld [vmem:[%s19133_s10 + $0x60] sm:$0xe]  ;;  %v18998_v33 = vld [vmem:[%s19205_s15 + $0xb8] sm:$0xf] }
 0x1f0   : > { %v1767_v11 = vshll.u32 %v18995_v29, 16  ;;  %v24602_v38 = vcombine.low %v20775_v28, %v20796_v32  ;;  %v15171_v37 = vcombine.low %v1712_v62, %v1722_v54  ;;  %v1736_v27 = vsel %vm19559_vm7, %v1731_v40, %v1735_v48  ;;  %v2416_v36 = vld [vmem:[%s19133_s10 + $0x6c] sm:$0xe] }
 0x1f1   : > { %17424 = vmatmul.mubr.msk.bf16.gmra.mrb[24].mxu0 %vm446_vm4, %v24601_v19  ;;  %v1741_v49 = vrot.slane %v1740_v3, 4  ;;  %v1754_v56 = vor.u32 %v1753_v17, %v1750_v61  ;;  %v1764_v63 = vor.u32 %v1763_v18, %v1759_v25  ;;  %v1772_v23 = vshrl.u32 %v1429_v15, 16 }
 0x1f2   : > { %17427 = vmatprep.mubr.msk.bf16.mxu0 %vm446_vm4, %v24602_v38  ;;  %v1769_v59 = vrot.slane %v1767_v11, 5  ;;  %v1775_v47 = vshll.u32 %v1429_v15, 16  ;;  %17148 = vmatmul.mubr.msk.bf16.gmra.mrb[20].mxu1 %vm446_vm4, %v15171_v37  ;;  %v1781_v5 = vshll.u32 %v18996_v13, 16  ;;  %v1785_v16 = vshrl.u32 %v18996_v13, 16  ;;  %v19000_v38 = vld [vmem:[%s19133_s10 + $0x64] sm:$0xf] }
 0x1f3   : > { %v1746_v28 = vsel %vm19559_vm7, %v1741_v49, %v1745_v34  ;;  %v1755_v32 = vrot.slane %v1754_v56, 4  ;;  %v1765_v42 = vrot.slane %v1764_v63, 4  ;;  %v1774_v20 = vrot.slane %v1772_v23, 4  ;;  %v18837_v63 = vld [vmem:[%s19133_s10 + $0x24] sm:$0xff]  }
 0x1f4   : > { %v15172_v50 = vcombine.low %v1736_v27, %v1746_v28  ;;  %v1777_v48 = vrot.slane %v1775_v47, 5  ;;  %v1783_v62 = vrot.slane %v1781_v5, 5  ;;  %v1787_v8 = vrot.slane %v1785_v16, 4 }
 0x1f5   : > { %v1760_v41 = vsel %vm19559_vm7, %v1755_v32, %v1759_v25  ;;  %v1791_v22 = vshll.u32 %v18997_v31, 16  ;;  %v1770_v55 = vsel %vm19559_vm7, %v1765_v42, %v1769_v59  ;;  %v1796_v52 = vshrl.u32 %v1432_v2, 16  ;;  %v18999_v25 = vld [vmem:[%s19205_s15 + $0xbc] sm:$0x1]  ;;  %v18838_v32 = vld [vmem:[%s19133_s10 + $0x30] sm:$0xff]   ;;  %v18840_v31 = vld [vmem:[%s19133_s10 + $0x48] sm:$0xff]  }
 0x1f6   : > { %17151 = vmatprep.mubr.msk.bf16.mxu1 %vm446_vm4, %v15172_v50  ;;  %v1778_v58 = vor.u32 %v1777_v48, %v1774_v20  ;;  %v1799_v30 = vshll.u32 %v1432_v2, 16  ;;  %v15173_v34 = vcombine.low %v1760_v41, %v1770_v55  ;;  %v1788_v1 = vor.u32 %v1787_v8, %v1783_v62  ;;  %v18839_v8 = vld [vmem:[%s19133_s10 + $0x3c] sm:$0xff]   ;;  %v2418_v55 = vld [vmem:[%s19133_s10 + $0x84] sm:$0xe] }
 0x1f7   : > { %v1793_v57 = vrot.slane %v1791_v22, 5  ;;  %v1805_v40 = vshll.u32 %v18998_v33, 16  ;;  %v24603_v3 = vcombine.low %v20816_v0, %v20870_v53  ;;  %v1798_v17 = vrot.slane %v1796_v52, 4 }
 0x1f8   : > { %v1779_v61 = vrot.slane %v1778_v58, 4  ;;  %v1801_v15 = vrot.slane %v1799_v30, 5  ;;  %v1809_v44 = vshrl.u32 %v18998_v33, 16  ;;  %v1789_v19 = vrot.slane %v1788_v1, 4  ;;  %v24606_v58 = vld [vmem:[#allocation14_spill] sm:$0xff]  ;;  %v24607_v30 = vld [vmem:[#allocation13_spill] sm:$0xff] }
 0x1f9   : > { %17428 = vmatmul.mubr.msk.bf16.gmra.mrb[28].mxu0 %vm446_vm4, %v24603_v3  ;;  %v1807_v54 = vrot.slane %v1805_v40, 5  ;;  %v1815_v18 = vshll.u32 %v18999_v25, 16  ;;  %v15200_v29 = vrot.slane %v2415_v46, 9  ;;  %v2532_v37 = vrot.slane %v19000_v38, 5  ;;  %v18842_v25 = vld [vmem:[%s19133_s10 + $0x60] sm:$0xff]  }
 0x1fa   : > { %17433 = vmatprep.mubr.msk.bf16.mxu0 %vm446_vm4, %v18836_v4  ;;  %v1784_v0 = vsel %vm19559_vm7, %v1779_v61, %v1783_v62  ;;  %v1802_v53 = vor.u32 %v1801_v15, %v1798_v17  ;;  %v1811_v11 = vrot.slane %v1809_v44, 4  ;;  %17152 = vmatmul.mubr.msk.bf16.gmra.mrb[24].mxu1 %vm446_vm4, %v15173_v34  ;;  %v1794_v27 = vsel %vm19559_vm7, %v1789_v19, %v1793_v57  ;;  %v2417_v62 = vld [vmem:[%s19133_s10 + $0x78] sm:$0xe]  ;;  %v24608_v34 = vld [vmem:[#allocation16_spill] sm:$0xff] }
 0x1fb   : > { %v2535_v49 = vrot.slane %v20894_v51, 5  ;;  %v15201_v56 = vrot.slane %v2416_v36, 9  ;;  %v15174_v59 = vcombine.low %v1784_v0, %v1794_v27  ;;  %v1817_v28 = vrot.slane %v1815_v18, 5  ;;  %v24609_v61 = vld [vmem:[#allocation15_spill] sm:$0xff]  ;;  %v2419_v18 = vld [vmem:[%s19133_s10 + $0x90] sm:$0xe] }
 0x1fc   : > { %v1803_v23 = vrot.slane %v1802_v53, 4  ;;  %v1812_v47 = vor.u32 %v1811_v11, %v1807_v54  ;;  %v2533_v13 = vsel %vm19142_vm3, %v15200_v29, %v2532_v37  ;;  %v2534_v5 = vrot.slane %v2532_v37, 4  ;;  %v18841_v36 = vld [vmem:[%s19133_s10 + $0x54] sm:$0xff]   ;;  %v2420_v0 = vld [vmem:[%s19133_s10 + $0x9c] sm:$0xe] }
 0x1fd   : > { %v24604_v16 = vrot.slane %v20900_v12, 5  ;;  %v24605_v50 = vrot.slane %v20905_v26, 5  ;;  %v6983_v42 = vsel %vm495_vm0, %v21076_v9, 0  ;;  %17155 = vmatprep.mubr.msk.bf16.mxu1 %vm446_vm4, %v15174_v59  ;;  %v21289_v26 = vld [vmem:[%s24326_s2 + $0xe] sm:$0x3]  ;;  %v15202_v22 = vrot.slane %v2417_v62, 9 }
 0x1fe   : > { %v1808_v20 = vsel %vm19559_vm7, %v1803_v23, %v1807_v54  ;;  %v1813_v12 = vrot.slane %v1812_v47, 4  ;;  %v2546_v52 = vrot.slane %v24606_v58, 5  ;;  %v2549_v46 = vrot.slane %v24607_v30, 5  ;;  %v18844_v59 = vld [vmem:[%s19133_s10 + $0x78] sm:$0xff]   ;;  %v18853_v58 = vld [vmem:[%s19205_s15 + $0x24] sm:$0xff]  }
 0x1ff   : > { %v2540_v2 = vsel %vm19142_vm3, %v15201_v56, %v24604_v16  ;;  %v2543_v51 = vsel %vm19142_vm3, %v21083_v60, %v24605_v50  ;;  %v2536_v60 = vsel %vm19142_vm3, %v2534_v5, %v2535_v49  ;;  %v2553_v1 = vrot.slane %v24608_v34, 5  ;;  %v18843_v56 = vld [vmem:[%s19133_s10 + $0x6c] sm:$0xff]   ;;  %v18845_v5 = vld [vmem:[%s19133_s10 + $0x84] sm:$0xff]   ;;  %v18855_v34 = vld [vmem:[%s19205_s15 + $0x3c] sm:$0xff]  }
 0x200   : > { %v15234_v48 = vcombine.low %v2540_v2, %v2543_v51  ;;  %v1818_v9 = vsel %vm19559_vm7, %v1813_v12, %v1817_v28  ;;  %v15233_v4 = vcombine.low %v2533_v13, %v2536_v60  ;;  %v2547_v57 = vsel %vm19142_vm3, %v15202_v22, %v2546_v52  ;;  %v2421_v13 = vld [vmem:[%s19133_s10 + $0xa8] sm:$0xe]  ;;  %v18846_v16 = vld [vmem:[%s19133_s10 + $0x90] sm:$0xff]  }
 0x201   : > { %17434 = vmatmul.mubr.msk.bf16.vlgmr.msra.gmra.mrb[0].mxu0 %vm446_vm4, %v18837_v63  ;;  %v15175_v41 = vcombine.low %v1808_v20, %v1818_v9  ;;  %v2548_v33 = vrot.slane %v2546_v52, 4  ;;  %v15203_v40 = vrot.slane %v2418_v55, 9  ;;  %v2555_v3 = vrot.slane %v2553_v1, 4  ;;  %v18851_v22 = vld [vmem:[%s19133_s10 + $0xcc] sm:$0xff]   ;;  %v18852_v55 = vld [vmem:[%s19205_s15 + $0x18] sm:$0xff]  }
 0x202   : > { %17466 = vmatpush3.bf16.msra.mxu0 %v6983_v42  ;;  %17437 = vmatprep.mubr.msk.bf16.mxu0 %vm446_vm4, %v18838_v32  ;;  %v2556_v17 = vrot.slane %v24609_v61, 5  ;;  %v15204_v53 = vrot.slane %v2419_v18, 9  ;;  %v2560_v11 = vrot.slane %v20964_v7, 5  ;;  %v2563_v38 = vrot.slane %v20970_v43, 5  ;;  %v18854_v52 = vld [vmem:[%s19205_s15 + $0x30] sm:$0xff]  }
 0x203   : > { %18758 = vmatprep.subr.msk.bf16.mxu0 %vm495_vm0, %v21289_v26  ;;  %17156 = vmatmul.mubr.msk.bf16.gmra.mrb[28].mxu1 %vm446_vm4, %v15175_v41  ;;  %v2550_v15 = vsel %vm19142_vm3, %v2548_v33, %v2549_v46  ;;  %v2554_v19 = vsel %vm19142_vm3, %v15203_v40, %v2553_v1  ;;  %v15205_v49 = vrot.slane %v2420_v0, 9  ;;  %v2567_v63 = vrot.slane %v20980_v10, 5  ;;  %v18847_v41 = vld [vmem:[%s19133_s10 + $0x9c] sm:$0xff]   ;;  %v21385_v46 = vld [vmem:[%s24327_s3 + $0xe] sm:$0x3] }
 0x204   : > { %17177 = vmatprep.mubr.msk.bf16.mxu1 %vm446_vm4, %v15233_v4  ;;  %v15235_v44 = vcombine.low %v2547_v57, %v2550_v15  ;;  %v2557_v54 = vsel %vm19142_vm3, %v2555_v3, %v2556_v17  ;;  %v2561_v37 = vsel %vm19142_vm3, %v15204_v53, %v2560_v11  ;;  %v2562_v27 = vrot.slane %v2560_v11, 4  ;;  %v18856_v1 = vld [vmem:[%s19205_s15 + $0x48] sm:$0xff]   ;;  %v18858_v57 = vld [vmem:[%s19205_s15 + $0x60] sm:$0xff]   ;;  %v15842_v40 = vld [vmem:[%s19133_s10 + $0x18] sm:$0xf] }
 0x205   : > { %v15236_v29 = vcombine.low %v2554_v19, %v2557_v54  ;;  %v2570_v43 = vrot.slane %v20989_v14, 5  ;;  %v2568_v47 = vsel %vm19142_vm3, %v15205_v49, %v2567_v63  ;;  %v2569_v28 = vrot.slane %v2567_v63, 4  ;;  %v2422_v14 = vld [vmem:[%s19133_s10 + $0xb4] sm:$0xe]  ;;  %v18859_v33 = vld [vmem:[%s19205_s15 + $0x6c] sm:$0xff]   ;;  %v18860_v3 = vld [vmem:[%s19205_s15 + $0x78] sm:$0xff]  }
 0x206   : > { %v2564_v7 = vsel %vm19142_vm3, %v2562_v27, %v2563_v38  ;;  %v15206_v2 = vrot.slane %v2421_v13, 9  ;;  %v2574_v50 = vrot.slane %v21003_v39, 5  ;;  %v2577_v51 = vrot.slane %v21008_v45, 5  ;;  %v15843_v61 = vld [vmem:[%s19133_s10 + $0x1c] sm:$0xf] }
 0x207   : > { %v15237_v23 = vcombine.low %v2561_v37, %v2564_v7  ;;  %v2571_v10 = vsel %vm19142_vm3, %v2569_v28, %v2570_v43  ;;  %v15207_v12 = vrot.slane %v2422_v14, 9  ;;  %v2584_v60 = vrot.slane %v21032_v24, 5  ;;  %v18848_v24 = vld [vmem:[%s19133_s10 + $0xa8] sm:$0xff]   ;;  %v15845_v18 = vld [vmem:[%s19133_s10 + $0x24] sm:$0xf] }
 0x208   : > { %v15238_v32 = vcombine.low %v2568_v47, %v2571_v10  ;;  %v2575_v42 = vsel %vm19142_vm3, %v15206_v2, %v2574_v50  ;;  %v2576_v20 = vrot.slane %v2574_v50, 4  ;;  %v8141_v30 = vsel %vm495_vm0, %v21289_v26, 0  ;;  %v18857_v26 = vld [vmem:[%s19205_s15 + $0x54] sm:$0xff]   ;;  %v15846_v0 = vld [vmem:[%s19133_s10 + $0x28] sm:$0xf] }
 0x209   : > { %17438 = vmatmul.mubr.msk.bf16.gmra.mrb[4].mxu0 %vm446_vm4, %v18839_v8  ;;  %v18849_v8 = vld [vmem:[%s19133_s10 + $0xb4] sm:$0xff]   ;;  %v7227_v17 = vshrl.u32 %v15842_v40, 16  ;;  %v7230_v15 = vshll.u32 %v15842_v40, 16  ;;  %v15848_v53 = vld [vmem:[%s19133_s10 + $0x30] sm:$0xf]  ;;  %v7251_v63 = vshrl.u32 %v15845_v18, 16 }
 0x20a   : > { %17441 = vmatprep.mubr.msk.bf16.mxu0 %vm446_vm4, %v18840_v31  ;;  %v2578_v39 = vsel %vm19142_vm3, %v2576_v20, %v2577_v51  ;;  %v18850_v31 = vld [vmem:[%s19133_s10 + $0xc0] sm:$0xff]   ;;  %v15849_v37 = vld [vmem:[%s19133_s10 + $0x34] sm:$0xf]  ;;  %v15851_v27 = vld [vmem:[%s19133_s10 + $0x3c] sm:$0xf]  ;;  %v7264_v47 = vshrl.u32 %v15846_v0, 16 }
 0x20b   : > { %17178 = vmatmul.mubr.msk.bf16.vlgmr.msra.gmra.mrb[16].mxu1 %vm446_vm4, %v15234_v48  ;;  %v2581_v48 = vrot.slane %v21018_v35, 5  ;;  %v15239_v45 = vcombine.low %v2575_v42, %v2578_v39  ;;  %v7229_v19 = vrot.slane %v7227_v17, 4  ;;  %v7232_v54 = vrot.slane %v7230_v15, 5  ;;  %v15844_v49 = vld [vmem:[%s19133_s10 + $0x20] sm:$0x1]  ;;  %v18864_v20 = vld [vmem:[%s19205_s15 + $0xa8] sm:$0xff]  }
 0x20c   : > { %17181 = vmatprep.mubr.msk.bf16.mxu1 %vm446_vm4, %v15235_v44  ;;  %v7236_v44 = vshll.u32 %v15843_v61, 16  ;;  %v15852_v7 = vld [vmem:[%s19133_s10 + $0x40] sm:$0xf]  ;;  %v15847_v43 = vld [vmem:[%s19133_s10 + $0x2c] sm:$0x1]  ;;  %v7275_v28 = vshrl.u32 %v15848_v53, 16 }
 0x20d   : > { %v2582_v9 = vsel %vm19142_vm3, %v15207_v12, %v2581_v48  ;;  %v2583_v4 = vrot.slane %v2581_v48, 4  ;;  %v7278_v10 = vshll.u32 %v15848_v53, 16  ;;  %v7288_v13 = vshrl.u32 %v15849_v37, 16 }
 0x20e   : > { %v21410_v11 = vrot.slane %v7236_v44, 5  ;;  %v7302_v14 = vshll.u32 %v15851_v27, 16  ;;  %v7246_v50 = vshll.u32 %v15844_v49, 16  ;;  %v7308_v51 = vshll.u32 %v15852_v7, 16  ;;  %v15857_v44 = vld [vmem:[%s19133_s10 + $0x54] sm:$0xf] }
 0x20f   : > { %v2585_v35 = vsel %vm19142_vm3, %v2583_v4, %v2584_v60  ;;  %v7312_v42 = vshrl.u32 %v15852_v7, 16  ;;  %v7253_v48 = vrot.slane %v7251_v63, 4  ;;  %v7270_v39 = vshll.u32 %v15847_v43, 16 }
 0x210   : > { %v15240_v62 = vcombine.low %v2582_v9, %v2585_v35  ;;  %v7266_v4 = vrot.slane %v7264_v47, 4  ;;  %v7280_v35 = vrot.slane %v7278_v10, 5  ;;  %v7350_v63 = vshll.u32 %v15857_v44, 16 }
 0x211   : > { %17442 = vmatmul.mubr.msk.bf16.gmra.mrb[8].mxu0 %vm446_vm4, %v18841_v36  ;;  %v7240_v36 = vshrl.u32 %v15843_v61, 16  ;;  %v21436_v17 = vrot.slane %v7270_v39, 5  ;;  %v15859_v39 = vld [vmem:[%s19133_s10 + $0x5c] sm:$0x1] }
 0x212   : > { %17445 = vmatprep.mubr.msk.bf16.mxu0 %vm446_vm4, %v18842_v25  ;;  %v18861_v25 = vld [vmem:[%s19205_s15 + $0x84] sm:$0xff]  }
 0x213   : > { %17182 = vmatmul.mubr.msk.bf16.gmra.mrb[20].mxu1 %vm446_vm4, %v15236_v29  ;;  %v18862_v29 = vld [vmem:[%s19205_s15 + $0x90] sm:$0xff]   ;;  %v7242_v38 = vrot.slane %v7240_v36, 4 }
 0x214   : > { %17185 = vmatprep.mubr.msk.bf16.mxu1 %vm446_vm4, %v15237_v23  ;;  %v7260_v23 = vshll.u32 %v15846_v0, 16 }
 0x215   : > { %v7243_v2 = vor.u32 %v7242_v38, %v21410_v11  ;;  %v15858_v38 = vld [vmem:[%s19133_s10 + $0x58] sm:$0xf] }
 0x216   : > { %v21425_v9 = vrot.slane %v7260_v23, 5 }
 0x218   : > { %v7267_v61 = vor.u32 %v7266_v4, %v21425_v9 }
 0x219   : > { %17446 = vmatmul.mubr.msk.bf16.gmra.mrb[12].mxu0 %vm446_vm4, %v18843_v56  ;;  %v7233_v56 = vor.u32 %v7232_v54, %v7229_v19 }
 0x21a   : > { %17449 = vmatprep.mubr.msk.bf16.mxu0 %vm446_vm4, %v18844_v59  ;;  %v7254_v59 = vshll.u32 %v15845_v18, 16  ;;  %v7268_v23 = vrot.slane %v7267_v61, 4 }
 0x21b   : > { %17186 = vmatmul.mubr.msk.bf16.gmra.mrb[24].mxu1 %vm446_vm4, %v15238_v32  ;;  %v7284_v32 = vshll.u32 %v15849_v37, 16  ;;  %v21422_v12 = vrot.slane %v7233_v56, 4  ;;  %v15856_v37 = vld [vmem:[%s19133_s10 + $0x50] sm:$0x1]  ;;  %v7347_v56 = vshrl.u32 %v15857_v44, 16 }
 0x21c   : > { %17189 = vmatprep.mubr.msk.bf16.mxu1 %vm446_vm4, %v15239_v45  ;;  %v7256_v60 = vrot.slane %v7254_v59, 5  ;;  %v15854_v45 = vld [vmem:[%s19133_s10 + $0x48] sm:$0xf]  ;;  %v18865_v59 = vld [vmem:[%s19205_s15 + $0xb4] sm:$0xff]  }
 0x21d   : > { %v7239_v18 = vsel %vm19559_vm7, %v21422_v12, %v21410_v11 }
 0x221   : > { %17450 = vmatmul.mubr.msk.bf16.gmra.mrb[16].mxu0 %vm446_vm4, %v18845_v5  ;;  %v7299_v5 = vshrl.u32 %v15851_v27, 16 }
 0x222   : > { %17453 = vmatprep.mubr.msk.bf16.mxu0 %vm446_vm4, %v18846_v16  ;;  %v18863_v16 = vld [vmem:[%s19205_s15 + $0x9c] sm:$0xff]  }
 0x223   : > { %17190 = vmatmul.mubr.msk.bf16.gmra.mrb[28].mxu1 %vm446_vm4, %v15240_v62  ;;  %v15850_v62 = vld [vmem:[%s19133_s10 + $0x38] sm:$0x1] }
 0x224   : > { %v7294_v15 = vshll.u32 %v15850_v62, 16 }
 0x226   : > { %v7296_v47 = vrot.slane %v7294_v15, 5 }
 0x229   : > { %17454 = vmatmul.mubr.msk.bf16.gmra.mrb[20].mxu0 %vm446_vm4, %v18847_v41  ;;  %v7277_v41 = vrot.slane %v7275_v28, 4  ;;  %v18866_v28 = vld [vmem:[%s19205_s15 + $0xc0] sm:$0xff]  }
 0x22a   : > { %17457 = vmatprep.mubr.msk.bf16.mxu0 %vm446_vm4, %v18848_v24  ;;  %v15855_v24 = vld [vmem:[%s19133_s10 + $0x4c] sm:$0xf] }
 0x22b   : > { %v7336_v40 = vshrl.u32 %v15855_v24, 16  ;;  %v7281_v36 = vor.u32 %v7280_v35, %v7277_v41  ;;  %v15860_v41 = vld [vmem:[%s19133_s10 + $0x60] sm:$0xf]  ;;  %v15861_v35 = vld [vmem:[%s19133_s10 + $0x64] sm:$0xf] }
 0x22d   : > { %v7338_v49 = vrot.slane %v7336_v40, 4  ;;  %v7282_v11 = vrot.slane %v7281_v36, 4  ;;  %v7384_v40 = vshrl.u32 %v15861_v35, 16 }
 0x231   : > { %17458 = vmatmul.mubr.msk.bf16.gmra.mrb[24].mxu0 %vm446_vm4, %v18849_v8  ;;  %v21429_v8 = vrot.slane %v7284_v32, 5 }
 0x232   : > { %17461 = vmatprep.mubr.msk.bf16.mxu0 %vm446_vm4, %v18850_v31  ;;  %v7290_v31 = vrot.slane %v7288_v13, 4 }
 0x233   : > { %v7287_v4 = vsel %vm19559_vm7, %v7282_v11, %v21429_v8  ;;  %v15865_v11 = vld [vmem:[%s19133_s10 + $0x74] sm:$0x1] }
 0x234   : > { %v7291_v19 = vor.u32 %v7290_v31, %v21429_v8 }
 0x236   : > { %v7292_v10 = vrot.slane %v7291_v19, 4 }
 0x239   : > { %17462 = vmatmul.mubr.msk.bf16.gmra.mrb[28].mxu0 %vm446_vm4, %v18851_v22  ;;  %v7301_v22 = vrot.slane %v7299_v5, 4 }
 0x23a   : > { %17467 = vmatprep.mubr.msk.bf16.mxu0 %vm446_vm4, %v18852_v55  ;;  %v7304_v55 = vrot.slane %v7302_v14, 5 }
 0x23c   : > { %v7305_v54 = vor.u32 %v7304_v55, %v7301_v22  ;;  %v15863_v55 = vld [vmem:[%s19133_s10 + $0x6c] sm:$0xf] }
 0x23d   : > { %v7398_v15 = vshll.u32 %v15863_v55, 16 }
 0x23e   : > { %v7306_v32 = vrot.slane %v7305_v54, 4 }
 0x241   : > { %17468 = vmatmul.mubr.msk.bf16.vlgmr.msra.gmra.mrb[0].mxu0 %vm446_vm4, %v18853_v58  ;;  %v15853_v58 = vld [vmem:[%s19133_s10 + $0x44] sm:$0x1] }
 0x242   : > { %17500 = vmatpush3.bf16.msra.mxu0 %v8141_v30  ;;  %17471 = vmatprep.mubr.msk.bf16.mxu0 %vm446_vm4, %v18854_v52  ;;  %v21432_v52 = vrot.slane %v7308_v51, 5  ;;  %v7314_v30 = vrot.slane %v7312_v42, 4  ;;  %v7349_v51 = vrot.slane %v7347_v56, 4  ;;  %v7352_v42 = vrot.slane %v7350_v63, 5 }
 0x243   : > { %18759 = vmatprep.subr.msk.bf16.mxu0 %vm495_vm0, %v21385_v46  ;;  %v7386_v63 = vrot.slane %v7384_v40, 4 }
 0x249   : > { %17472 = vmatmul.mubr.msk.bf16.gmra.mrb[4].mxu0 %vm446_vm4, %v18855_v34  ;;  %v7323_v34 = vshrl.u32 %v15854_v45, 16 }
 0x24a   : > { %17475 = vmatprep.mubr.msk.bf16.mxu0 %vm446_vm4, %v18856_v1  ;;  %v7326_v1 = vshll.u32 %v15854_v45, 16  ;;  %v7273_v45 = vsel %vm19559_vm7, %v7268_v23, %v21436_v17  ;;  %v7395_v17 = vshrl.u32 %v15863_v55, 16  ;;  %v7400_v23 = vrot.slane %v7398_v15, 5 }
 0x24b   : > { %v7325_v0 = vrot.slane %v7323_v34, 4  ;;  %v7366_v34 = vshll.u32 %v15859_v39, 16 }
 0x24c   : > { %v7328_v53 = vrot.slane %v7326_v1, 5  ;;  %v15864_v1 = vld [vmem:[%s19133_s10 + $0x70] sm:$0xf] }
 0x24d   : > { %v7404_v19 = vshll.u32 %v15864_v1, 16  ;;  %v7408_v54 = vshrl.u32 %v15864_v1, 16 }
 0x24e   : > { %v7329_v14 = vor.u32 %v7328_v53, %v7325_v0  ;;  %v21496_v53 = vrot.slane %v7366_v34, 5  ;;  %v21525_v34 = vld [vmem:[%s24326_s2 + $0x10] sm:$0x3] }
 0x250   : > { %v7330_v62 = vrot.slane %v7329_v14, 4 }
 0x251   : > { %17476 = vmatmul.mubr.msk.bf16.gmra.mrb[8].mxu0 %vm446_vm4, %v18857_v26  ;;  %v7244_v26 = vrot.slane %v7243_v2, 4  ;;  %v7356_v2 = vshll.u32 %v15858_v38, 16 }
 0x252   : > { %17479 = vmatprep.mubr.msk.bf16.mxu0 %vm446_vm4, %v18858_v57  ;;  %v7248_v57 = vrot.slane %v7246_v50, 5 }
 0x253   : > { %v21480_v22 = vrot.slane %v7356_v2, 5 }
 0x254   : > { %v7249_v7 = vsel %vm19559_vm7, %v7244_v26, %v7248_v57  ;;  %v18867_v26 = vld [vmem:[%s19205_s15 + $0xcc] sm:$0xff]   ;;  %v7371_v57 = vshrl.u32 %v15860_v41, 16 }
 0x255   : > { %v15939_v12 = vcombine.low %v7239_v18, %v7249_v7  ;;  %v15862_v7 = vld [vmem:[%s19133_s10 + $0x68] sm:$0x1] }
 0x259   : > { %17480 = vmatmul.mubr.msk.bf16.gmra.mrb[12].mxu0 %vm446_vm4, %v18859_v33  ;;  %v7332_v33 = vshll.u32 %v15855_v24, 16 }
 0x25a   : > { %17483 = vmatprep.mubr.msk.bf16.mxu0 %vm446_vm4, %v18860_v3  ;;  %v7257_v3 = vor.u32 %v7256_v60, %v7253_v48  ;;  %v21461_v60 = vsel %vm495_vm0, %v21385_v46, 0  ;;  %v7311_v46 = vsel %vm19559_vm7, %v7306_v32, %v21432_v52  ;;  %v7410_v32 = vrot.slane %v7408_v54, 4 }
 0x25b   : > { %v21448_v27 = vrot.slane %v7332_v33, 5  ;;  %v7374_v33 = vshll.u32 %v15860_v41, 16 }
 0x25c   : > { %v7258_v43 = vrot.slane %v7257_v3, 4 }
 0x25d   : > { %v7339_v50 = vor.u32 %v7338_v49, %v21448_v27  ;;  %v7335_v36 = vsel %vm19559_vm7, %v7330_v62, %v21448_v27  ;;  %v7373_v49 = vrot.slane %v7371_v57, 4  ;;  %v7376_v27 = vrot.slane %v7374_v33, 5  ;;  %v15871_v57 = vld [vmem:[%s19133_s10 + $0x8c] sm:$0x1] }
 0x25e   : > { %v7263_v48 = vsel %vm19559_vm7, %v7258_v43, %v21425_v9  ;;  %v7297_v9 = vsel %vm19559_vm7, %v7292_v10, %v7296_v47  ;;  %v7397_v43 = vrot.slane %v7395_v17, 4  ;;  %v21507_v10 = vrot.slane %v7404_v19, 5 }
 0x25f   : > { %v15940_v3 = vcombine.low %v7263_v48, %v7273_v45  ;;  %v15941_v61 = vcombine.low %v7287_v4, %v7297_v9  ;;  %v7414_v45 = vshll.u32 %v15865_v11, 16  ;;  %v15868_v4 = vld [vmem:[%s19133_s10 + $0x80] sm:$0x1] }
 0x260   : > { %v7401_v39 = vor.u32 %v7400_v23, %v7397_v43  ;;  %v7411_v41 = vor.u32 %v7410_v32, %v21507_v10  ;;  %v15875_v23 = vld [vmem:[%s19133_s10 + $0x9c] sm:$0xf] }
 0x261   : > { %17484 = vmatmul.mubr.msk.bf16.gmra.mrb[16].mxu0 %vm446_vm4, %v18861_v25  ;;  %v7318_v25 = vshll.u32 %v15853_v58, 16  ;;  %v7340_v58 = vrot.slane %v7339_v50, 4  ;;  %v7416_v17 = vrot.slane %v7414_v45, 5 }
 0x262   : > { %17487 = vmatprep.mubr.msk.bf16.mxu0 %vm446_vm4, %v18862_v29  ;;  %v7315_v29 = vor.u32 %v7314_v30, %v21432_v52  ;;  %v7353_v30 = vor.u32 %v7352_v42, %v7349_v51  ;;  %v7380_v52 = vshll.u32 %v15861_v35, 16  ;;  %v7402_v19 = vrot.slane %v7401_v39, 4 }
 0x263   : > { %v7320_v13 = vrot.slane %v7318_v25, 5  ;;  %v15866_v25 = vld [vmem:[%s19133_s10 + $0x78] sm:$0xf]  ;;  %v7412_v54 = vrot.slane %v7411_v41, 4 }
 0x264   : > { %v7316_v5 = vrot.slane %v7315_v29, 4  ;;  %v21493_v29 = vrot.slane %v7353_v30, 4  ;;  %v21501_v56 = vrot.slane %v7380_v52, 5  ;;  %v7419_v47 = vshrl.u32 %v15866_v25, 16 }
 0x266   : > { %v7321_v24 = vsel %vm19559_vm7, %v7316_v5, %v7320_v13  ;;  %v7387_v48 = vor.u32 %v7386_v63, %v21501_v56  ;;  %v7421_v9 = vrot.slane %v7419_v47, 4 }
 0x267   : > { %v21485_v44 = vcombine.low %v7311_v46, %v7321_v24  ;;  %v15872_v46 = vld [vmem:[%s19133_s10 + $0x90] sm:$0xf] }
 0x268   : > { %v7467_v33 = vshrl.u32 %v15872_v46, 16  ;;  %v7470_v52 = vshll.u32 %v15872_v46, 16  ;;  %v7388_v40 = vrot.slane %v7387_v48, 4  ;;  %v15878_v48 = vld [vmem:[%s19133_s10 + $0xa8] sm:$0xf] }
 0x269   : > { %17488 = vmatmul.mubr.msk.bf16.gmra.mrb[20].mxu0 %vm446_vm4, %v18863_v16  ;;  %v7342_v16 = vshll.u32 %v15856_v37, 16  ;;  %v15869_v37 = vld [vmem:[%s19133_s10 + $0x84] sm:$0xf]  ;;  %v15881_v46 = vld [vmem:[%s19133_s10 + $0xb4] sm:$0xf] }
 0x26a   : > { %17491 = vmatprep.mubr.msk.bf16.mxu0 %vm446_vm4, %v18864_v20  ;;  %v7360_v20 = vshrl.u32 %v15858_v38, 16  ;;  %v15867_v38 = vld [vmem:[%s19133_s10 + $0x7c] sm:$0xf]  ;;  %v7443_v14 = vshrl.u32 %v15869_v37, 16 }
 0x26b   : > { %v7344_v31 = vrot.slane %v7342_v16, 5  ;;  %v7428_v13 = vshll.u32 %v15867_v38, 16  ;;  %v7432_v5 = vshrl.u32 %v15867_v38, 16  ;;  %v7446_v16 = vshll.u32 %v15869_v37, 16 }
 0x26c   : > { %v7362_v8 = vrot.slane %v7360_v20, 4  ;;  %v7377_v20 = vor.u32 %v7376_v27, %v7373_v49  ;;  %v7445_v55 = vrot.slane %v7443_v14, 4  ;;  %v7462_v38 = vshll.u32 %v15871_v57, 16  ;;  %v15876_v14 = vld [vmem:[%s19133_s10 + $0xa0] sm:$0xf] }
 0x26d   : > { %v7345_v18 = vsel %vm19559_vm7, %v7340_v58, %v7344_v31  ;;  %v21517_v24 = vrot.slane %v7428_v13, 5  ;;  %v7434_v62 = vrot.slane %v7432_v5, 4  ;;  %v15873_v31 = vld [vmem:[%s19133_s10 + $0x94] sm:$0xf]  ;;  %v7448_v58 = vrot.slane %v7446_v16, 5 }
 0x26e   : > { %v7363_v0 = vor.u32 %v7362_v8, %v21480_v22  ;;  %v21509_v51 = vcombine.low %v7335_v36, %v7345_v18  ;;  %v7378_v1 = vrot.slane %v7377_v20, 4  ;;  %v7476_v15 = vshll.u32 %v15873_v31, 16 }
 0x26f   : > { %v7480_v36 = vshrl.u32 %v15873_v31, 16  ;;  %v7438_v18 = vshll.u32 %v15868_v4, 16  ;;  %v7469_v49 = vrot.slane %v7467_v33, 4  ;;  %v7472_v27 = vrot.slane %v7470_v52, 5 }
 0x270   : > { %v21511_v42 = vrot.slane %v7363_v0, 4  ;;  %v7449_v0 = vor.u32 %v7448_v58, %v7445_v55  ;;  %v7383_v63 = vsel %vm19559_vm7, %v7378_v1, %v21501_v56  ;;  %v7464_v13 = vrot.slane %v7462_v38, 5 }
 0x271   : > { %17492 = vmatmul.mubr.msk.bf16.gmra.mrb[24].mxu0 %vm446_vm4, %v18865_v59  ;;  %v15870_v59 = vld [vmem:[%s19133_s10 + $0x88] sm:$0xf]  ;;  %v7482_v43 = vrot.slane %v7480_v36, 4  ;;  %v7440_v47 = vrot.slane %v7438_v18, 5  ;;  %v7473_v5 = vor.u32 %v7472_v27, %v7469_v49  ;;  %v7491_v16 = vshrl.u32 %v15875_v23, 16 }
 0x272   : > { %17495 = vmatprep.mubr.msk.bf16.mxu0 %vm446_vm4, %v18866_v28  ;;  %v7422_v28 = vshll.u32 %v15866_v25, 16  ;;  %v7452_v2 = vshll.u32 %v15870_v59, 16  ;;  %v7456_v50 = vshrl.u32 %v15870_v59, 16  ;;  %v7369_v37 = vsel %vm19559_vm7, %v21511_v42, %v21496_v53  ;;  %v15885_v49 = vld [vmem:[%s19133_s10 + $0xc4] sm:$0xf] }
 0x273   : > { %v7450_v56 = vrot.slane %v7449_v0, 4  ;;  %v7500_v4 = vshll.u32 %v15876_v14, 16  ;;  %v7474_v41 = vrot.slane %v7473_v5, 4  ;;  %v7504_v31 = vshrl.u32 %v15876_v14, 16  ;;  %v15884_v0 = vld [vmem:[%s19133_s10 + $0xc0] sm:$0xf] }
 0x274   : > { %v7424_v35 = vrot.slane %v7422_v28, 5  ;;  %v21520_v30 = vrot.slane %v7452_v2, 5  ;;  %v7458_v8 = vrot.slane %v7456_v50, 4  ;;  %v15874_v28 = vld [vmem:[%s19133_s10 + $0x98] sm:$0x1]  ;;  %v7518_v1 = vshll.u32 %v15878_v48, 16 }
 0x275   : > { %v7486_v50 = vshll.u32 %v15874_v28, 16  ;;  %v7539_v33 = vshrl.u32 %v15881_v46, 16  ;;  %v7542_v52 = vshll.u32 %v15881_v46, 16  ;;  %v7506_v18 = vrot.slane %v7504_v31, 4 }
 0x276   : > { %v7425_v25 = vor.u32 %v7424_v35, %v7421_v9  ;;  %v15879_v9 = vld [vmem:[%s19133_s10 + $0xac] sm:$0xf]  ;;  %v7493_v35 = vrot.slane %v7491_v16, 4 }
 0x277   : > { %v7488_v58 = vrot.slane %v7486_v50, 5  ;;  %v7524_v57 = vshll.u32 %v15879_v9, 16 }
 0x278   : > { %v7426_v53 = vrot.slane %v7425_v25, 4  ;;  %v21586_v25 = vrot.slane %v7500_v4, 5 }
 0x279   : > { %17496 = vmatmul.mubr.msk.bf16.gmra.mrb[28].mxu0 %vm446_vm4, %v18867_v26  ;;  %v21594_v27 = vrot.slane %v7524_v57, 5 }
 0x27a   : > { %17501 = vmatprep.mubr.msk.bf16.mxu0 %vm446_vm4, %v15939_v12  ;;  %v7390_v12 = vshll.u32 %v15862_v7, 16  ;;  %v21548_v7 = vrot.slane %v7476_v15, 5 }
 0x27c   : > { %v7392_v26 = vrot.slane %v7390_v12, 5  ;;  %v7483_v2 = vor.u32 %v7482_v43, %v21548_v7  ;;  %v15887_v43 = vld [vmem:[%s19133_s10 + $0xcc] sm:$0xf] }
 0x27d   : > { %v7587_v16 = vshrl.u32 %v15887_v43, 16 }
 0x27e   : > { %v7393_v59 = vsel %vm19559_vm7, %v7388_v40, %v7392_v26  ;;  %v7484_v55 = vrot.slane %v7483_v2, 4  ;;  %v15877_v26 = vld [vmem:[%s19133_s10 + $0xa4] sm:$0x1] }
 0x27f   : > { %v15945_v20 = vcombine.low %v7383_v63, %v7393_v59  ;;  %v7510_v38 = vshll.u32 %v15877_v26, 16  ;;  %v7541_v59 = vrot.slane %v7539_v33, 4 }
 0x281   : > { %17502 = vmatmul.mubr.msk.bf16.vlgmr.msra.gmra.mrb[0].mxu0 %vm446_vm4, %v15940_v3  ;;  %v7435_v3 = vor.u32 %v7434_v62, %v21517_v24 }
 0x282   : > { %17534 = vmatpush3.bf16.msra.mxu0 %v21461_v60  ;;  %17505 = vmatprep.mubr.msk.bf16.mxu0 %vm446_vm4, %v15941_v61  ;;  %v7459_v60 = vor.u32 %v7458_v8, %v21520_v30  ;;  %v7359_v61 = vsel %vm19559_vm7, %v21493_v29, %v21480_v22  ;;  %v7407_v22 = vsel %vm19559_vm7, %v7402_v19, %v21507_v10  ;;  %v7494_v10 = vshll.u32 %v15875_v23, 16 }
 0x283   : > { %18760 = vmatprep.subr.msk.bf16.mxu0 %vm495_vm0, %v21525_v34  ;;  %v7417_v29 = vsel %vm19559_vm7, %v7412_v54, %v7416_v17  ;;  %v7436_v11 = vrot.slane %v7435_v3, 4  ;;  %v15944_v42 = vcombine.low %v7359_v61, %v7369_v37  ;;  %v7515_v8 = vshrl.u32 %v15878_v48, 16  ;;  %v15880_v3 = vld [vmem:[%s19133_s10 + $0xb0] sm:$0x1] }
 0x284   : > { %v7460_v32 = vrot.slane %v7459_v60, 4  ;;  %v21563_v12 = vcombine.low %v7407_v22, %v7417_v29  ;;  %v7496_v62 = vrot.slane %v7494_v10, 5  ;;  %v7479_v19 = vsel %vm19559_vm7, %v7474_v41, %v21548_v7 }
 0x285   : > { %v7441_v39 = vsel %vm19559_vm7, %v7436_v11, %v7440_v47  ;;  %v7489_v60 = vsel %vm19559_vm7, %v7484_v55, %v7488_v58  ;;  %v7517_v61 = vrot.slane %v7515_v8, 4  ;;  %v7520_v37 = vrot.slane %v7518_v1, 5  ;;  %v15888_v47 = vld [vmem:[%s19133_s10 + $0xd0] sm:$0xf]  ;;  %v15890_v58 = vld [vmem:[%s19205_s15 + $0x18] sm:$0xf] }
 0x286   : > { %v7465_v45 = vsel %vm19559_vm7, %v7460_v32, %v7464_v13  ;;  %v7497_v54 = vor.u32 %v7496_v62, %v7493_v35  ;;  %v7544_v7 = vrot.slane %v7542_v52, 5  ;;  %v7563_v29 = vshrl.u32 %v15884_v0, 16  ;;  %v15889_v35 = vld [vmem:[%s19133_s10 + $0xd4] sm:$0x1] }
 0x287   : > { %v15949_v28 = vcombine.low %v7479_v19, %v7489_v60  ;;  %v7507_v11 = vor.u32 %v7506_v18, %v21586_v25  ;;  %v7572_v32 = vshll.u32 %v15885_v49, 16  ;;  %v7576_v13 = vshrl.u32 %v15885_v49, 16 }
 0x288   : > { %v7521_v5 = vor.u32 %v7520_v37, %v7517_v61  ;;  %v7534_v14 = vshll.u32 %v15880_v3, 16  ;;  %v7590_v10 = vshll.u32 %v15887_v43, 16  ;;  %v7545_v50 = vor.u32 %v7544_v7, %v7541_v59 }
 0x289   : > { %17506 = vmatmul.mubr.msk.bf16.gmra.mrb[4].mxu0 %vm446_vm4, %v21485_v44  ;;  %v7431_v44 = vsel %vm19559_vm7, %v7426_v53, %v21517_v24  ;;  %v15882_v24 = vld [vmem:[%s19133_s10 + $0xb8] sm:$0xf]  ;;  %v7566_v53 = vshll.u32 %v15884_v0, 16  ;;  %v7498_v4 = vrot.slane %v7497_v54, 4  ;;  %v21607_v46 = vrot.slane %v7572_v32, 5 }
 0x28a   : > { %17509 = vmatprep.mubr.msk.bf16.mxu0 %vm446_vm4, %v21509_v51  ;;  %v7455_v51 = vsel %vm19559_vm7, %v7450_v56, %v21520_v30  ;;  %v7528_v30 = vshrl.u32 %v15879_v9, 16  ;;  %v15947_v40 = vcombine.low %v7431_v44, %v7441_v39  ;;  %v7548_v15 = vshll.u32 %v15882_v24, 16  ;;  %v15883_v56 = vld [vmem:[%s19133_s10 + $0xbc] sm:$0x1]  ;;  %v15886_v39 = vld [vmem:[%s19133_s10 + $0xc8] sm:$0x1] }
 0x28b   : > { %v21580_v17 = vcombine.low %v7455_v51, %v7465_v45  ;;  %v7552_v36 = vshrl.u32 %v15882_v24, 16  ;;  %v7558_v48 = vshll.u32 %v15883_v56, 16  ;;  %v7565_v51 = vrot.slane %v7563_v29, 4  ;;  %v15892_v56 = vld [vmem:[%s19205_s15 + $0x20] sm:$0x1] }
 0x28c   : > { %v7530_v63 = vrot.slane %v7528_v30, 4  ;;  %v21597_v23 = vrot.slane %v7548_v15, 5  ;;  %v7568_v45 = vrot.slane %v7566_v53, 5  ;;  %v7512_v9 = vrot.slane %v7510_v38, 5  ;;  %v15891_v15 = vld [vmem:[%s19205_s15 + $0x1c] sm:$0xf] }
 0x28d   : > { %v7554_v22 = vrot.slane %v7552_v36, 4  ;;  %v7578_v41 = vrot.slane %v7576_v13, 4  ;;  %v7508_v62 = vrot.slane %v7507_v11, 4  ;;  %v7536_v31 = vrot.slane %v7534_v14, 5 }
 0x28e   : > { %v7531_v2 = vor.u32 %v7530_v63, %v21594_v27  ;;  %v7589_v24 = vrot.slane %v7587_v16, 4  ;;  %v7592_v55 = vrot.slane %v7590_v10, 5  ;;  %v7522_v8 = vrot.slane %v7521_v5, 4  ;;  %v15893_v63 = vld [vmem:[%s19205_s15 + $0x24] sm:$0xf] }
 0x28f   : > { %v7555_v44 = vor.u32 %v7554_v22, %v21597_v23  ;;  %v7560_v33 = vrot.slane %v7558_v48, 5  ;;  %v7569_v52 = vor.u32 %v7568_v45, %v7565_v51  ;;  %v7579_v36 = vor.u32 %v7578_v41, %v21607_v46  ;;  %v15894_v22 = vld [vmem:[%s19205_s15 + $0x28] sm:$0xf]  ;;  %v15899_v41 = vld [vmem:[%s19205_s15 + $0x3c] sm:$0xf] }
 0x290   : > { %v7532_v1 = vrot.slane %v7531_v2, 4  ;;  %v7582_v19 = vshll.u32 %v15886_v39, 16  ;;  %v7659_v54 = vshrl.u32 %v15890_v58, 16  ;;  %v7503_v18 = vsel %vm19559_vm7, %v7498_v4, %v21586_v25  ;;  %v15897_v39 = vld [vmem:[%s19205_s15 + $0x34] sm:$0xf] }
 0x291   : > { %17510 = vmatmul.mubr.msk.bf16.gmra.mrb[8].mxu0 %vm446_vm4, %v15944_v42  ;;  %v7596_v42 = vshll.u32 %v15888_v47, 16  ;;  %v7556_v30 = vrot.slane %v7555_v44, 4  ;;  %v7513_v3 = vsel %vm19559_vm7, %v7508_v62, %v7512_v9  ;;  %v7593_v0 = vor.u32 %v7592_v55, %v7589_v24  ;;  %v21658_v55 = vld [vmem:[%s19205_s15 + $0x2c] sm:$0x1] }
 0x292   : > { %17513 = vmatprep.mubr.msk.bf16.mxu0 %vm446_vm4, %v15945_v20  ;;  %v7600_v20 = vshrl.u32 %v15888_v47, 16  ;;  %v7662_v60 = vshll.u32 %v15890_v58, 16  ;;  %v7527_v38 = vsel %vm19559_vm7, %v7522_v8, %v21594_v27  ;;  %v7668_v37 = vshll.u32 %v15891_v15, 16 }
 0x293   : > { %v21612_v26 = vrot.slane %v7596_v42, 5  ;;  %v7672_v49 = vshrl.u32 %v15891_v15, 16  ;;  %v7537_v59 = vsel %vm19559_vm7, %v7532_v1, %v7536_v31  ;;  %v7561_v7 = vsel %vm19559_vm7, %v7556_v30, %v7560_v33  ;;  %v15896_v42 = vld [vmem:[%s19205_s15 + $0x30] sm:$0xf] }
 0x294   : > { %v7602_v57 = vrot.slane %v7600_v20, 4  ;;  %v7570_v43 = vrot.slane %v7569_v52, 4  ;;  %v7580_v27 = vrot.slane %v7579_v36, 4  ;;  %v7584_v29 = vrot.slane %v7582_v19, 5 }
 0x295   : > { %v7661_v47 = vrot.slane %v7659_v54, 4  ;;  %v7594_v11 = vrot.slane %v7593_v0, 4  ;;  %v7664_v32 = vrot.slane %v7662_v60, 5  ;;  %v7686_v13 = vshll.u32 %v15893_v63, 16  ;;  %v15902_v60 = vld [vmem:[%s19205_s15 + $0x48] sm:$0xf] }
 0x296   : > { %v7603_v61 = vor.u32 %v7602_v57, %v21612_v26  ;;  %v21638_v14 = vrot.slane %v7668_v37, 5  ;;  %v7674_v16 = vrot.slane %v7672_v49, 4  ;;  %v15950_v10 = vcombine.low %v7503_v18, %v7513_v3 }
 0x297   : > { %v15951_v2 = vcombine.low %v7527_v38, %v7537_v59  ;;  %v7585_v44 = vsel %vm19559_vm7, %v7580_v27, %v7584_v29  ;;  %v7678_v48 = vshll.u32 %v15892_v56, 16  ;;  %v7599_v51 = vsel %vm19559_vm7, %v7594_v11, %v21612_v26  ;;  %v21675_v59 = vld [vmem:[%s19205_s15 + $0x38] sm:$0x1] }
 0x298   : > { %v7604_v5 = vrot.slane %v7603_v61, 4  ;;  %v7665_v45 = vor.u32 %v7664_v32, %v7661_v47  ;;  %v7688_v9 = vrot.slane %v7686_v13, 5  ;;  %v7675_v31 = vor.u32 %v7674_v16, %v21638_v14 }
 0x299   : > { %17514 = vmatmul.mubr.msk.bf16.gmra.mrb[12].mxu0 %vm446_vm4, %v21563_v12  ;;  %v7546_v12 = vrot.slane %v7545_v50, 4  ;;  %v7696_v50 = vshrl.u32 %v15894_v22, 16  ;;  %v7707_v24 = vshrl.u32 %v15896_v42, 16  ;;  %v7710_v8 = vshll.u32 %v15896_v42, 16 }
 0x29a   : > { %17517 = vmatprep.mubr.msk.bf16.mxu0 %vm446_vm4, %v15947_v40  ;;  %v7606_v40 = vshll.u32 %v15889_v35, 16  ;;  %v15900_v35 = vld [vmem:[%s19205_s15 + $0x40] sm:$0xf]  ;;  %v7716_v1 = vshll.u32 %v15897_v39, 16  ;;  %v7720_v57 = vshrl.u32 %v15897_v39, 16  ;;  %v7731_v26 = vshrl.u32 %v15899_v41, 16 }
 0x29b   : > { %v7551_v25 = vsel %vm19559_vm7, %v7546_v12, %v21597_v23  ;;  %v7683_v23 = vshrl.u32 %v15893_v63, 16  ;;  %v7698_v58 = vrot.slane %v7696_v50, 4  ;;  %v7734_v12 = vshll.u32 %v15899_v41, 16  ;;  %v21672_v63 = vld [vmem:[%s19205_s15 + $0x4c] sm:$0xf] }
 0x29c   : > { %v7608_v53 = vrot.slane %v7606_v40, 5  ;;  %v15952_v20 = vcombine.low %v7551_v25, %v7561_v7  ;;  %v7740_v30 = vshll.u32 %v15900_v35, 16  ;;  %v7744_v33 = vshrl.u32 %v15900_v35, 16  ;;  %v21664_v40 = vpop.f32.mrb[0].mxu1 }
 0x29d   : > { %v7685_v4 = vrot.slane %v7683_v23, 4  ;;  %v7666_v36 = vrot.slane %v7665_v45, 4  ;;  %v7676_v54 = vrot.slane %v7675_v31, 4  ;;  %v7680_v18 = vrot.slane %v7678_v48, 5  ;;  %v21703_v48 = vld [vmem:[%s19205_s15 + $0x58] sm:$0xf] }
 0x29e   : > { %v7609_v62 = vsel %vm19559_vm7, %v7604_v5, %v7608_v53  ;;  %v7702_v3 = vshll.u32 %v21658_v55, 16  ;;  %v7709_v0 = vrot.slane %v7707_v24, 4  ;;  %v7712_v61 = vrot.slane %v7710_v8, 5  ;;  %v21683_v53 = vld [vmem:[%s19205_s15 + $0x44] sm:$0x1]  ;;  %v21705_v39 = vpop.f32.mrb[1].mxu1 }
 0x29f   : > { %v21662_v15 = vcombine.low %v7599_v51, %v7609_v62  ;;  %v7689_v19 = vor.u32 %v7688_v9, %v7685_v4  ;;  %v21669_v37 = vrot.slane %v7716_v1, 5  ;;  %v7722_v49 = vrot.slane %v7720_v57, 4  ;;  %v15908_v4 = vld [vmem:[%s19205_s15 + $0x60] sm:$0xf]  ;;  %v21712_v9 = vpop.f32.mrb[2].mxu1 }
 0x2a0   : > { %v7733_v25 = vrot.slane %v7731_v26, 4  ;;  %v7736_v7 = vrot.slane %v7734_v12, 5  ;;  %v7671_v27 = vsel %vm19559_vm7, %v7666_v36, %v21638_v14  ;;  %v7755_v47 = vshrl.u32 %v15902_v60, 16  ;;  %24610 = vst [vmem:[#allocation17_spill] sm:$0xff] %v21712_v9  ;;  %v21716_v24 = vpop.f32.mrb[3].mxu1 }
 0x2a1   : > { %17518 = vmatmul.mubr.msk.bf16.gmra.mrb[16].mxu0 %vm446_vm4, %v21580_v17  ;;  %v7692_v17 = vshll.u32 %v15894_v22, 16  ;;  %v7746_v22 = vrot.slane %v7744_v33, 4  ;;  %v7690_v29 = vrot.slane %v7689_v19, 4  ;;  %v7758_v11 = vshll.u32 %v15902_v60, 16  ;;  %24611 = vst [vmem:[#allocation19_spill] sm:$0xff] %v21716_v24 }
 0x2a2   : > { %17521 = vmatprep.mubr.msk.bf16.mxu0 %vm446_vm4, %v15949_v28  ;;  %v7575_v28 = vsel %vm19559_vm7, %v7570_v43, %v21607_v46  ;;  %v21677_v43 = vrot.slane %v7740_v30, 5  ;;  %v7681_v56 = vsel %vm19559_vm7, %v7676_v54, %v7680_v18  ;;  %v7704_v32 = vrot.slane %v7702_v3, 5 }
 0x2a3   : > { %v21655_v46 = vrot.slane %v7692_v17, 5  ;;  %v15953_v52 = vcombine.low %v7575_v28, %v7585_v44  ;;  %v7764_v23 = vshll.u32 %v21672_v63, 16  ;;  %v7768_v13 = vshrl.u32 %v21672_v63, 16  ;;  %v21700_v44 = vld [vmem:[%s19205_s15 + $0x50] sm:$0x1] }
 0x2a4   : > { %v7713_v16 = vor.u32 %v7712_v61, %v7709_v0  ;;  %v7723_v17 = vor.u32 %v7722_v49, %v21669_v37  ;;  %v7726_v14 = vshll.u32 %v21675_v59, 16  ;;  %v7737_v50 = vor.u32 %v7736_v7, %v7733_v25  ;;  %v21733_v25 = vld [vmem:[%s19205_s15 + $0x5c] sm:$0x1] }
 0x2a5   : > { %v7699_v38 = vor.u32 %v7698_v58, %v21655_v46  ;;  %v7747_v42 = vor.u32 %v7746_v22, %v21677_v43  ;;  %v7750_v28 = vshll.u32 %v21683_v53, 16  ;;  %v15972_v51 = vcombine.low %v7671_v27, %v7681_v56  ;;  %v21750_v56 = vld [vmem:[%s19205_s15 + $0x70] sm:$0xf] }
 0x2a6   : > { %v7760_v45 = vrot.slane %v7758_v11, 5  ;;  %v21714_v41 = vrot.slane %v7764_v23, 5  ;;  %v7770_v35 = vrot.slane %v7768_v13, 4  ;;  %v7714_v8 = vrot.slane %v7713_v16, 4  ;;  %v15911_v11 = vld [vmem:[%s19205_s15 + $0x6c] sm:$0xf] }
 0x2a7   : > { %v7700_v5 = vrot.slane %v7699_v38, 4  ;;  %v7724_v1 = vrot.slane %v7723_v17, 4  ;;  %v7728_v57 = vrot.slane %v7726_v14, 5  ;;  %v7738_v26 = vrot.slane %v7737_v50, 4  ;;  %v15914_v50 = vld [vmem:[%s19205_s15 + $0x78] sm:$0xf] }
 0x2a8   : > { %v7748_v12 = vrot.slane %v7747_v42, 4  ;;  %v7752_v30 = vrot.slane %v7750_v28, 5  ;;  %v7774_v33 = vshll.u32 %v21700_v44, 16  ;;  %v7788_v36 = vshll.u32 %v21703_v48, 16 }
 0x2a9   : > { %17522 = vmatmul.mubr.msk.bf16.gmra.mrb[20].mxu0 %vm446_vm4, %v15950_v10  ;;  %v15905_v10 = vld [vmem:[%s19205_s15 + $0x54] sm:$0xf]  ;;  %v7705_v58 = vsel %vm19559_vm7, %v7700_v5, %v7704_v32  ;;  %v7792_v19 = vshrl.u32 %v21703_v48, 16  ;;  %v7803_v54 = vshrl.u32 %v15908_v4, 16  ;;  %v7806_v18 = vshll.u32 %v15908_v4, 16 }
 0x2aa   : > { %17525 = vmatprep.mubr.msk.bf16.mxu0 %vm446_vm4, %v15951_v2  ;;  %v21695_v2 = vsel %vm495_vm0, %v21525_v34, 0  ;;  %v7757_v34 = vrot.slane %v7755_v47, 4  ;;  %v7779_v62 = vshrl.u32 %v15905_v10, 16  ;;  %v7782_v31 = vshll.u32 %v15905_v10, 16 }
 0x2ab   : > { %v7771_v0 = vor.u32 %v7770_v35, %v21714_v41  ;;  %v7719_v49 = vsel %vm19559_vm7, %v7714_v8, %v21669_v37  ;;  %v7729_v27 = vsel %vm19559_vm7, %v7724_v1, %v7728_v57  ;;  %v7753_v37 = vsel %vm19559_vm7, %v7748_v12, %v7752_v30  ;;  %v21776_v57 = vld [vmem:[%s19205_s15 + $0x7c] sm:$0xf] }
 0x2ac   : > { %v7761_v3 = vor.u32 %v7760_v45, %v7757_v34  ;;  %v7781_v60 = vrot.slane %v7779_v62, 4  ;;  %v7784_v38 = vrot.slane %v7782_v31, 5  ;;  %v21746_v47 = vrot.slane %v7774_v33, 5  ;;  %v21770_v62 = vld [vmem:[%s19205_s15 + $0x68] sm:$0x1] }
 0x2ad   : > { %v7794_v23 = vrot.slane %v7792_v19, 4  ;;  %v7805_v13 = vrot.slane %v7803_v54, 4  ;;  %v7808_v5 = vrot.slane %v7806_v18, 5  ;;  %v7772_v17 = vrot.slane %v7771_v0, 4  ;;  %v21789_v54 = vld [vmem:[%s19205_s15 + $0x74] sm:$0x1] }
 0x2ae   : > { %v7762_v16 = vrot.slane %v7761_v3, 4  ;;  %v7785_v14 = vor.u32 %v7784_v38, %v7781_v60  ;;  %v7798_v10 = vshll.u32 %v21733_v25, 16  ;;  %v7830_v34 = vshll.u32 %v15911_v11, 16  ;;  %v15917_v18 = vld [vmem:[%s19205_s15 + $0x84] sm:$0xf] }
 0x2af   : > { %v15974_v4 = vcombine.low %v7719_v49, %v7729_v27  ;;  %v7836_v31 = vshll.u32 %v21750_v56, 16  ;;  %v7809_v1 = vor.u32 %v7808_v5, %v7805_v13  ;;  %v7854_v12 = vshll.u32 %v15914_v50, 16  ;;  %v21793_v3 = vld [vmem:[%s19205_s15 + $0x88] sm:$0xf] }
 0x2b0   : > { %v7767_v30 = vsel %vm19559_vm7, %v7762_v16, %v21714_v41  ;;  %v7777_v33 = vsel %vm19559_vm7, %v7772_v17, %v21746_v47  ;;  %v21786_v19 = vrot.slane %v7798_v10, 5  ;;  %v7822_v60 = vshll.u32 %v21770_v62, 16  ;;  %v21800_v41 = vld [vmem:[%s24327_s3 + $0x10] sm:$0x3] }
 0x2b1   : > { %17526 = vmatmul.mubr.msk.bf16.gmra.mrb[24].mxu0 %vm446_vm4, %v15952_v20  ;;  %v7695_v20 = vsel %vm19559_vm7, %v7690_v29, %v21655_v46  ;;  %v21720_v46 = vpop.f32.mrb[4].mxu1  ;;  %v7743_v29 = vsel %vm19559_vm7, %v7738_v26, %v21677_v43  ;;  %v7851_v26 = vshrl.u32 %v15914_v50, 16  ;;  %v7832_v49 = vrot.slane %v7830_v34, 5 }
 0x2b2   : > { %17529 = vmatprep.mubr.msk.bf16.mxu0 %vm446_vm4, %v15953_v52  ;;  %24612 = vst [vmem:[#allocation18_spill] sm:$0xff] %v21720_v46  ;;  %v21724_v52 = vld [vmem:[%s19205_s15 + $0x64] sm:$0xf]  ;;  %v15973_v61 = vcombine.low %v7695_v20, %v7705_v58  ;;  %v21752_v32 = vpop.f32.mrb[5].mxu1  ;;  %v7827_v20 = vshrl.u32 %v15911_v11, 16  ;;  %v21767_v35 = vcombine.low %v7743_v29, %v7753_v37  ;;  %v7840_v58 = vshrl.u32 %v21750_v56, 16 }
 0x2b3   : > { %v7812_v7 = vshll.u32 %v21724_v52, 16  ;;  %v7816_v22 = vshrl.u32 %v21724_v52, 16  ;;  %24613 = vst [vmem:[#allocation20_spill] sm:$0xff] %v21752_v32  ;;  %v21757_v43 = vpop.f32.mrb[6].mxu1  ;;  %v7860_v27 = vshll.u32 %v21776_v57, 16  ;;  %v7864_v29 = vshrl.u32 %v21776_v57, 16 }
 0x2b4   : > { %24614 = vst [vmem:[#allocation5_spill] sm:$0xff] %v21757_v43  ;;  %v21761_v42 = vpop.f32.mrb[7].mxu1  ;;  %v7829_v38 = vrot.slane %v7827_v20, 4  ;;  %v7810_v11 = vrot.slane %v7809_v1, 4  ;;  %v7856_v13 = vrot.slane %v7854_v12, 5  ;;  %v7878_v16 = vshll.u32 %v15917_v18, 16 }
 0x2b5   : > { %24615 = vst [vmem:[#allocation6_spill] sm:$0xff] %v21761_v42  ;;  %v21763_v28 = vrot.slane %v7812_v7, 5  ;;  %v21765_v45 = vpop.f32.mrb[8].mxu1  ;;  %v21803_v7 = vrot.slane %v7836_v31, 5  ;;  %v7884_v17 = vshll.u32 %v21793_v3, 16  ;;  %v7824_v50 = vrot.slane %v7822_v60, 5 }
 0x2b6   : > { %24616 = vst [vmem:[#allocation8_spill] sm:$0xff] %v21765_v45  ;;  %v21807_v37 = vpop.f32.mrb[9].mxu1  ;;  %v7846_v20 = vshll.u32 %v21789_v54, 16  ;;  %v7866_v1 = vrot.slane %v7864_v29, 4  ;;  %v7880_v60 = vrot.slane %v7878_v16, 5 }
 0x2b7   : > { %24617 = vst [vmem:[#allocation9_spill] sm:$0xff] %v21807_v37  ;;  %v21811_v5 = vpop.f32.mrb[10].mxu1  ;;  %v21848_v29 = vld [vmem:[%s19205_s15 + $0x8c] sm:$0x1]  ;;  %v21919_v37 = vld [vmem:[%s19205_s15 + $0xc4] sm:$0xf] }
 0x2b8   : > { %24618 = vst [vmem:[#allocation7_spill] sm:$0xff] %v21811_v5  ;;  %v21938_v43 = vld [vmem:[%s19205_s15 + $0xd0] sm:$0xf] }
 0x2b9   : > { %17530 = vmatmul.mubr.msk.bf16.gmra.mrb[28].mxu0 %vm446_vm4, %v21662_v15  ;;  %v21755_v15 = vrot.slane %v7788_v36, 5  ;;  %v21784_v36 = vrot.slane %v7785_v14, 4  ;;  %v7888_v14 = vshrl.u32 %v21793_v3, 16 }
 0x2ba   : > { %17535 = vmatprep.mubr.msk.bf16.mxu0 %vm446_vm4, %v15972_v51  ;;  %v7818_v51 = vrot.slane %v7816_v22, 4  ;;  %v7842_v22 = vrot.slane %v7840_v58, 4  ;;  %v21824_v58 = vld [vmem:[%s19205_s15 + $0x80] sm:$0x1] }
 0x2bb   : > { %v7795_v8 = vor.u32 %v7794_v23, %v21755_v15  ;;  %v7853_v23 = vrot.slane %v7851_v26, 4  ;;  %v7791_v26 = vsel %vm19559_vm7, %v21784_v36, %v21755_v15 }
 0x2bc   : > { %v7819_v0 = vor.u32 %v7818_v51, %v21763_v28  ;;  %v7833_v51 = vor.u32 %v7832_v49, %v7829_v38  ;;  %v7843_v31 = vor.u32 %v7842_v22, %v21803_v7  ;;  %v21839_v38 = vrot.slane %v7884_v17, 5  ;;  %v21842_v22 = vld [vmem:[%s19205_s15 + $0x94] sm:$0xf] }
 0x2bd   : > { %v7796_v47 = vrot.slane %v7795_v8, 4  ;;  %v21826_v8 = vrot.slane %v7860_v27, 5  ;;  %v7890_v49 = vrot.slane %v7888_v14, 4  ;;  %v7848_v27 = vrot.slane %v7846_v20, 5 }
 0x2be   : > { %v7820_v10 = vrot.slane %v7819_v0, 4  ;;  %v7834_v36 = vrot.slane %v7833_v51, 4  ;;  %v7912_v16 = vshrl.u32 %v21842_v22, 16  ;;  %v15923_v51 = vld [vmem:[%s19205_s15 + $0x9c] sm:$0xf] }
 0x2bf   : > { %v7801_v12 = vsel %vm19559_vm7, %v7796_v47, %v21786_v19  ;;  %v7870_v19 = vshll.u32 %v21824_v58, 16  ;;  %v7867_v47 = vor.u32 %v7866_v1, %v21826_v8 }
 0x2c0   : > { %v7825_v15 = vsel %vm19559_vm7, %v7820_v10, %v7824_v50  ;;  %v7891_v10 = vor.u32 %v7890_v49, %v21839_v38  ;;  %v7894_v50 = vshll.u32 %v21848_v29, 16 }
 0x2c1   : > { %17536 = vmatmul.mubr.msk.bf16.vlgmr.msra.gmra.mrb[0].mxu0 %vm446_vm4, %v15973_v61  ;;  %v7875_v61 = vshrl.u32 %v15917_v18, 16  ;;  %v15920_v18 = vld [vmem:[%s19205_s15 + $0x90] sm:$0xf] }
 0x2c2   : > { %17568 = vmatpush3.bf16.msra.mxu0 %v21695_v2  ;;  %17539 = vmatprep.mubr.msk.bf16.mxu0 %vm446_vm4, %v15974_v4  ;;  %v21817_v2 = vpop.f32.mrb[11].mxu1  ;;  %v15976_v4 = vcombine.low %v7767_v30, %v7777_v33  ;;  %v7815_v30 = vsel %vm19559_vm7, %v7810_v11, %v21763_v28  ;;  %v7857_v33 = vor.u32 %v7856_v13, %v7853_v23  ;;  %v7844_v28 = vrot.slane %v7843_v31, 4 }
 0x2c3   : > { %18761 = vmatprep.subr.msk.bf16.mxu0 %vm495_vm0, %v21800_v41  ;;  %24619 = vst [vmem:[#allocation4_spill] sm:$0xff] %v21817_v2  ;;  %v21820_v34 = vpop.f32.mrb[12].mxu1  ;;  %v7877_v0 = vrot.slane %v7875_v61, 4  ;;  %v7899_v11 = vshrl.u32 %v15920_v18, 16  ;;  %v7902_v23 = vshll.u32 %v15920_v18, 16  ;;  %v7908_v61 = vshll.u32 %v21842_v22, 16 }
 0x2c4   : > { %24620 = vst [vmem:[#allocation21_spill] sm:$0xff] %v21820_v34  ;;  %v21853_v13 = vpop.f32.mrb[13].mxu1  ;;  %v7858_v14 = vrot.slane %v7857_v33, 4  ;;  %v15977_v31 = vcombine.low %v7791_v26, %v7801_v12  ;;  %v15978_v1 = vcombine.low %v7815_v30, %v7825_v15  ;;  %v7872_v18 = vrot.slane %v7870_v19, 5  ;;  %v21872_v33 = vld [vmem:[%s19205_s15 + $0xa0] sm:$0xf] }
 0x2c5   : > { %24621 = vst [vmem:[#allocation22_spill] sm:$0xff] %v21853_v13  ;;  %v21858_v17 = vpop.f32.mrb[14].mxu1  ;;  %v21869_v13 = vld [vmem:[%s19205_s15 + $0x98] sm:$0x1]  ;;  %v7901_v49 = vrot.slane %v7899_v11, 4  ;;  %v7914_v26 = vrot.slane %v7912_v16, 4 }
 0x2c6   : > { %24622 = vst [vmem:[#allocation23_spill] sm:$0xff] %v21858_v17  ;;  %v21863_v20 = vpop.f32.mrb[15].mxu1  ;;  %v7904_v17 = vrot.slane %v7902_v23, 5  ;;  %v15926_v34 = vld [vmem:[%s19205_s15 + $0xa8] sm:$0xf]  ;;  %v7923_v12 = vshrl.u32 %v15923_v51, 16 }
 0x2c7   : > { %24623 = vst [vmem:[#allocation24_spill] sm:$0xff] %v21863_v20  ;;  %v21877_v20 = vrot.slane %v7908_v61, 5  ;;  %v7926_v30 = vshll.u32 %v15923_v51, 16  ;;  %v21880_v15 = vld [vmem:[%s19205_s15 + $0xac] sm:$0xf]  ;;  %v7892_v19 = vrot.slane %v7891_v10, 4 }
 0x2c8   : > { %v7896_v2 = vrot.slane %v7894_v50, 5  ;;  %v7950_v11 = vshll.u32 %v15926_v34, 16  ;;  %v7918_v61 = vshll.u32 %v21869_v13, 16  ;;  %v7960_v16 = vshrl.u32 %v21880_v15, 16 }
 0x2c9   : > { %17540 = vmatmul.mubr.msk.bf16.gmra.mrb[4].mxu0 %vm446_vm4, %v21767_v35  ;;  %v7881_v35 = vor.u32 %v7880_v60, %v7877_v0  ;;  %v7849_v0 = vsel %vm19559_vm7, %v7844_v28, %v7848_v27  ;;  %v7868_v60 = vrot.slane %v7867_v47, 4  ;;  %v7932_v27 = vshll.u32 %v21872_v33, 16 }
 0x2ca   : > { %17543 = vmatprep.mubr.msk.bf16.mxu0 %vm446_vm4, %v15976_v4  ;;  %v7839_v4 = vsel %vm19559_vm7, %v7834_v36, %v21803_v7  ;;  %v7863_v7 = vsel %vm19559_vm7, %v7858_v14, %v21826_v8  ;;  %v7936_v28 = vshrl.u32 %v21872_v33, 16  ;;  %v7947_v47 = vshrl.u32 %v15926_v34, 16 }
 0x2cb   : > { %v7882_v36 = vrot.slane %v7881_v35, 4  ;;  %v7873_v23 = vsel %vm19559_vm7, %v7868_v60, %v7872_v18  ;;  %v7956_v8 = vshll.u32 %v21880_v15, 16  ;;  %v7905_v14 = vor.u32 %v7904_v17, %v7901_v49  ;;  %v21901_v18 = vld [vmem:[%s19205_s15 + $0xa4] sm:$0x1]  ;;  %v15929_v49 = vld [vmem:[%s19205_s15 + $0xb4] sm:$0xf] }
 0x2cc   : > { %v7915_v35 = vor.u32 %v7914_v26, %v21877_v20  ;;  %v7925_v10 = vrot.slane %v7923_v12, 4  ;;  %v7928_v34 = vrot.slane %v7926_v30, 5  ;;  %v15979_v50 = vcombine.low %v7839_v4, %v7849_v0  ;;  %v21907_v0 = vld [vmem:[%s19205_s15 + $0xb0] sm:$0x1] }
 0x2cd   : > { %v7887_v51 = vsel %vm19559_vm7, %v7882_v36, %v21839_v38  ;;  %v21903_v60 = vrot.slane %v7932_v27, 5  ;;  %v7949_v5 = vrot.slane %v7947_v47, 4  ;;  %v7952_v17 = vrot.slane %v7950_v11, 5  ;;  %v21913_v27 = vld [vmem:[%s19205_s15 + $0xb8] sm:$0xf] }
 0x2ce   : > { %v15980_v26 = vcombine.low %v7863_v7, %v7873_v23  ;;  %v7920_v4 = vrot.slane %v7918_v61, 5  ;;  %v21909_v12 = vrot.slane %v7956_v8, 5  ;;  %v7962_v38 = vrot.slane %v7960_v16, 4  ;;  %v15932_v61 = vld [vmem:[%s19205_s15 + $0xc0] sm:$0xf] }
 0x2cf   : > { %v7906_v30 = vrot.slane %v7905_v14, 4  ;;  %v7929_v36 = vor.u32 %v7928_v34, %v7925_v10  ;;  %v7953_v11 = vor.u32 %v7952_v17, %v7949_v5  ;;  %v7966_v7 = vshll.u32 %v21907_v0, 16 }
 0x2d0   : > { %v7971_v23 = vshrl.u32 %v15929_v49, 16  ;;  %v7963_v8 = vor.u32 %v7962_v38, %v21909_v12  ;;  %v7974_v16 = vshll.u32 %v15929_v49, 16  ;;  %v7980_v14 = vshll.u32 %v21913_v27, 16 }
 0x2d1   : > { %17544 = vmatmul.mubr.msk.bf16.gmra.mrb[8].mxu0 %vm446_vm4, %v15977_v31  ;;  %v7897_v31 = vsel %vm19559_vm7, %v7892_v19, %v7896_v2  ;;  %v7916_v2 = vrot.slane %v7915_v35, 4  ;;  %v7942_v19 = vshll.u32 %v21901_v18, 16  ;;  %v7984_v35 = vshrl.u32 %v21913_v27, 16 }
 0x2d2   : > { %17547 = vmatprep.mubr.msk.bf16.mxu0 %vm446_vm4, %v15978_v1  ;;  %v7938_v1 = vrot.slane %v7936_v28, 4  ;;  %v15981_v28 = vcombine.low %v7887_v51, %v7897_v31  ;;  %v7911_v5 = vsel %vm19559_vm7, %v7906_v30, %v21877_v20  ;;  %v7930_v34 = vrot.slane %v7929_v36, 4  ;;  %v21934_v20 = vld [vmem:[%s19205_s15 + $0xbc] sm:$0x1] }
 0x2d3   : > { %v7921_v10 = vsel %vm19559_vm7, %v7916_v2, %v7920_v4  ;;  %v7995_v51 = vshrl.u32 %v15932_v61, 16  ;;  %v7998_v31 = vshll.u32 %v15932_v61, 16  ;;  %v8008_v17 = vshrl.u32 %v21919_v37, 16 }
 0x2d4   : > { %v7939_v47 = vor.u32 %v7938_v1, %v21903_v60  ;;  %v8004_v1 = vshll.u32 %v21919_v37, 16  ;;  %v7954_v38 = vrot.slane %v7953_v11, 4  ;;  %v7973_v45 = vrot.slane %v7971_v23, 4  ;;  %v21949_v23 = vld [vmem:[%s19205_s15 + $0xc8] sm:$0x1] }
 0x2d5   : > { %v7964_v42 = vrot.slane %v7963_v8, 4  ;;  %v7976_v30 = vrot.slane %v7974_v16, 5  ;;  %v7982_v4 = vrot.slane %v7980_v14, 5  ;;  %v7986_v2 = vrot.slane %v7984_v35, 4 }
 0x2d6   : > { %v7940_v49 = vrot.slane %v7939_v47, 4  ;;  %v15982_v36 = vcombine.low %v7911_v5, %v7921_v10  ;;  %v7997_v61 = vrot.slane %v7995_v51, 4  ;;  %v8000_v32 = vrot.slane %v7998_v31, 5 }
 0x2d7   : > { %v8006_v46 = vrot.slane %v8004_v1, 5  ;;  %v8010_v24 = vrot.slane %v8008_v17, 4  ;;  %v7935_v47 = vsel %vm19559_vm7, %v7930_v34, %v21903_v60  ;;  %v7959_v16 = vsel %vm19559_vm7, %v7954_v38, %v21909_v12 }
 0x2d8   : > { %v7977_v35 = vor.u32 %v7976_v30, %v7973_v45  ;;  %v7987_v60 = vor.u32 %v7986_v2, %v7982_v4  ;;  %v8032_v51 = vshrl.u32 %v21938_v43, 16  ;;  %v8001_v31 = vor.u32 %v8000_v32, %v7997_v61 }
 0x2d9   : > { %17548 = vmatmul.mubr.msk.bf16.gmra.mrb[12].mxu0 %vm446_vm4, %v15979_v50  ;;  %v7944_v50 = vrot.slane %v7942_v19, 5  ;;  %v15935_v19 = vld [vmem:[%s19205_s15 + $0xcc] sm:$0xf]  ;;  %v8011_v12 = vor.u32 %v8010_v24, %v8006_v46  ;;  %v8014_v1 = vshll.u32 %v21949_v23, 16 }
 0x2da   : > { %17551 = vmatprep.mubr.msk.bf16.mxu0 %vm446_vm4, %v15980_v26  ;;  %v7968_v26 = vrot.slane %v7966_v7, 5  ;;  %v7990_v7 = vshll.u32 %v21934_v20, 16  ;;  %v8019_v10 = vshrl.u32 %v15935_v19, 16  ;;  %v8022_v34 = vshll.u32 %v15935_v19, 16 }
 0x2db   : > { %v7945_v11 = vsel %vm19559_vm7, %v7940_v49, %v7944_v50  ;;  %v8028_v50 = vshll.u32 %v21938_v43, 16  ;;  %v7978_v17 = vrot.slane %v7977_v35, 4  ;;  %v7988_v49 = vrot.slane %v7987_v60, 4 }
 0x2dc   : > { %v7969_v14 = vsel %vm19559_vm7, %v7964_v42, %v7968_v26  ;;  %v15983_v42 = vcombine.low %v7935_v47, %v7945_v11  ;;  %v7992_v38 = vrot.slane %v7990_v7, 5  ;;  %v8021_v26 = vrot.slane %v8019_v10, 4  ;;  %v19001_v10 = vld [vmem:[%s19133_s10 + $0x1c] sm:$0xf] }
 0x2dd   : > { %v15984_v45 = vcombine.low %v7959_v16, %v7969_v14  ;;  %v8024_v30 = vrot.slane %v8022_v34, 5  ;;  %v8030_v2 = vrot.slane %v8028_v50, 5  ;;  %v8002_v19 = vrot.slane %v8001_v31, 4  ;;  %v16004_v50 = vld [vmem:[%s19133_s10 + $0x18] sm:$0xe] }
 0x2de   : > { %v21940_v9 = vpop.f32.mrb[16].mxu1  ;;  %v7983_v61 = vsel %vm19559_vm7, %v7978_v17, %v7982_v4  ;;  %v7993_v11 = vsel %vm19559_vm7, %v7988_v49, %v7992_v38  ;;  %v8696_v34 = vrot.slane %v19001_v10, 5  ;;  %v19002_v49 = vld [vmem:[%s19133_s10 + $0x20] sm:$0x1] }
 0x2df   : > { %24624 = vst [vmem:[#allocation25_spill] sm:$0xff] %v21940_v9  ;;  %v21951_v8 = vpop.f32.mrb[17].mxu1  ;;  %v21968_v9 = vld [vmem:[%s19205_s15 + $0xd4] sm:$0x1]  ;;  %v8025_v7 = vor.u32 %v8024_v30, %v8021_v26  ;;  %v8007_v60 = vsel %vm19559_vm7, %v8002_v19, %v8006_v46  ;;  %v8699_v38 = vrot.slane %v19002_v49, 5 }
 0x2e0   : > { %24625 = vst [vmem:[#allocation26_spill] sm:$0xff] %v21951_v8  ;;  %v21959_v5 = vpop.f32.mrb[18].mxu1  ;;  %v8016_v8 = vrot.slane %v8014_v1, 5  ;;  %v8038_v14 = vshll.u32 %v21968_v9, 16  ;;  %v8698_v17 = vrot.slane %v8696_v34, 4 }
 0x2e1   : > { %17552 = vmatmul.mubr.msk.bf16.gmra.mrb[16].mxu0 %vm446_vm4, %v15981_v28  ;;  %24626 = vst [vmem:[#allocation27_spill] sm:$0xff] %v21959_v5  ;;  %v21964_v28 = vpop.f32.mrb[19].mxu1  ;;  %v8012_v5 = vrot.slane %v8011_v12, 4  ;;  %v8026_v12 = vrot.slane %v8025_v7, 4  ;;  %v19003_v30 = vld [vmem:[%s19133_s10 + $0x28] sm:$0xf] }
 0x2e2   : > { %17555 = vmatprep.mubr.msk.bf16.mxu0 %vm446_vm4, %v15982_v36  ;;  %v8034_v36 = vrot.slane %v8032_v51, 4  ;;  %v15985_v51 = vcombine.low %v7983_v61, %v7993_v11  ;;  %v8700_v11 = vsel %vm19142_vm3, %v8698_v17, %v8699_v38  ;;  %v16005_v7 = vld [vmem:[%s19133_s10 + $0x24] sm:$0xe]  ;;  %v19007_v38 = vld [vmem:[%s19133_s10 + $0x40] sm:$0xf] }
 0x2e3   : > { %v8017_v4 = vsel %vm19559_vm7, %v8012_v5, %v8016_v8  ;;  %v8031_v5 = vsel %vm19559_vm7, %v8026_v12, %v8030_v2 }
 0x2e4   : > { %v8035_v16 = vor.u32 %v8034_v36, %v8030_v2  ;;  %v15986_v31 = vcombine.low %v8007_v60, %v8017_v4  ;;  %v8703_v36 = vrot.slane %v19003_v30, 5  ;;  %v16006_v2 = vld [vmem:[%s19133_s10 + $0x30] sm:$0xe] }
 0x2e6   : > { %v21970_v32 = vpop.f32.mrb[20].mxu1  ;;  %v8036_v1 = vrot.slane %v8035_v16, 4  ;;  %v19004_v16 = vld [vmem:[%s19133_s10 + $0x34] sm:$0xf] }
 0x2e7   : > { %v21972_v24 = vpop.f32.mrb[21].mxu1 }
 0x2e8   : > { %v21977_v47 = vpop.f32.mrb[22].mxu1 }
 0x2e9   : > { %17556 = vmatmul.mubr.msk.bf16.gmra.mrb[20].mxu0 %vm446_vm4, %v15983_v42  ;;  %v21983_v35 = vpop.f32.mrb[23].mxu1  ;;  %v8040_v42 = vrot.slane %v8038_v14, 5  ;;  %v8710_v14 = vrot.slane %v19004_v16, 5 }
 0x2ea   : > { %17559 = vmatprep.mubr.msk.bf16.mxu0 %vm446_vm4, %v15984_v45  ;;  %v16020_v45 = vrot.slane %v16004_v50, 9  ;;  %v16021_v50 = vrot.slane %v16005_v7, 9 }
 0x2eb   : > { %v8041_v26 = vsel %vm19559_vm7, %v8036_v1, %v8040_v42  ;;  %v16022_v1 = vrot.slane %v16006_v2, 9  ;;  %v19006_v42 = vld [vmem:[%s19133_s10 + $0x38] sm:$0x1]  ;;  %v16008_v2 = vld [vmem:[%s19133_s10 + $0x48] sm:$0xe] }
 0x2ec   : > { %v8697_v61 = vsel %vm19142_vm3, %v16020_v45, %v8696_v34  ;;  %v15987_v4 = vcombine.low %v8031_v5, %v8041_v26  ;;  %v8712_v34 = vrot.slane %v8710_v14, 4  ;;  %v8713_v45 = vrot.slane %v19006_v42, 5 }
 0x2ed   : > { %v16069_v10 = vcombine.low %v8697_v61, %v8700_v11  ;;  %v8704_v17 = vsel %vm19142_vm3, %v16021_v50, %v8703_v36  ;;  %v8717_v5 = vrot.slane %v19007_v38, 5  ;;  %v8711_v26 = vsel %vm19142_vm3, %v16022_v1, %v8710_v14  ;;  %v16007_v61 = vld [vmem:[%s19133_s10 + $0x3c] sm:$0xe]  ;;  %v19008_v11 = vld [vmem:[%s19133_s10 + $0x4c] sm:$0xf] }
 0x2ee   : > { %v21992_v46 = vpop.f32.mrb[24].mxu1  ;;  %v8714_v30 = vsel %vm19142_vm3, %v8712_v34, %v8713_v45  ;;  %v8724_v7 = vrot.slane %v19008_v11, 5  ;;  %v19009_v14 = vld [vmem:[%s19133_s10 + $0x44] sm:$0x1]  ;;  %v9375_v34 = vsel %vm495_vm0, %v21800_v41, 0  ;;  %v16024_v42 = vrot.slane %v16008_v2, 9  ;;  %vm22388_vm0 = vmand %vm9641_vm13, %vm9707_vm11 }
 0x2ef   : > { %v21995_v8 = vpop.f32.mrb[25].mxu1  ;;  %v16071_v50 = vcombine.low %v8711_v26, %v8714_v30  ;;  %v19010_v38 = vld [vmem:[%s19133_s10 + $0x50] sm:$0x1]  ;;  %v19011_v30 = vld [vmem:[%s19133_s10 + $0x58] sm:$0xf] }
 0x2f0   : > { %v22003_v19 = vpop.f32.mrb[26].mxu1  ;;  %v8726_v45 = vrot.slane %v8724_v7, 4  ;;  %v8731_v41 = vrot.slane %v19011_v30, 5  ;;  %v16009_v2 = vld [vmem:[%s19133_s10 + $0x54] sm:$0xe] }
 0x2f1   : > { %17560 = vmatmul.mubr.msk.bf16.gmra.mrb[24].mxu0 %vm446_vm4, %v15985_v51  ;;  %v22011_v60 = vpop.f32.mrb[27].mxu1  ;;  %v8705_v51 = vrot.slane %v8703_v36, 4 }
 0x2f2   : > { %17563 = vmatprep.mubr.msk.bf16.mxu0 %vm446_vm4, %v15986_v31  ;;  %v19005_v31 = vld [vmem:[%s19133_s10 + $0x2c] sm:$0x1] }
 0x2f3   : > { %v8706_v12 = vrot.slane %v19005_v31, 5  ;;  %v8719_v31 = vrot.slane %v8717_v5, 4 }
 0x2f5   : > { %v8707_v49 = vsel %vm19142_vm3, %v8705_v51, %v8706_v12  ;;  %v16023_v51 = vrot.slane %v16007_v61, 9  ;;  %v8720_v12 = vrot.slane %v19009_v14, 5  ;;  %v8725_v61 = vsel %vm19142_vm3, %v16024_v42, %v8724_v7  ;;  %v19014_v7 = vld [vmem:[%s19133_s10 + $0x68] sm:$0x1] }
 0x2f6   : > { %v22029_v16 = vpop.f32.mrb[28].mxu1  ;;  %v8741_v42 = vrot.slane %v19014_v7, 5 }
 0x2f7   : > { %v22032_v36 = vpop.f32.mrb[29].mxu1  ;;  %v8721_v26 = vsel %vm19142_vm3, %v8719_v31, %v8720_v12  ;;  %v19013_v31 = vld [vmem:[%s19133_s10 + $0x5c] sm:$0x1] }
 0x2f8   : > { %v8734_v12 = vrot.slane %v19013_v31, 5 }
 0x2f9   : > { %17564 = vmatmul.mubr.msk.bf16.gmra.mrb[28].mxu0 %vm446_vm4, %v15987_v4  ;;  %v16070_v4 = vcombine.low %v8704_v17, %v8707_v49  ;;  %v8727_v17 = vrot.slane %v19010_v38, 5  ;;  %v8718_v49 = vsel %vm19142_vm3, %v16023_v51, %v8717_v5  ;;  %v16025_v5 = vrot.slane %v16009_v2, 9  ;;  %v16011_v2 = vld [vmem:[%s19133_s10 + $0x6c] sm:$0xe] }
 0x2fa   : > { %17569 = vmatprep.mubr.msk.bf16.mxu0 %vm446_vm4, %v16069_v10  ;;  %v22034_v10 = vpop.f32.mrb[30].mxu1  ;;  %v8733_v51 = vrot.slane %v8731_v41, 4 }
 0x2fb   : > { %v22037_v1 = vpop.f32.mrb[31].mxu1  ;;  %v8728_v11 = vsel %vm19142_vm3, %v8726_v45, %v8727_v17  ;;  %v8732_v45 = vsel %vm19142_vm3, %v16025_v5, %v8731_v41  ;;  %v16027_v41 = vrot.slane %v16011_v2, 9  ;;  %v16013_v2 = vld [vmem:[%s19133_s10 + $0x84] sm:$0xe] }
 0x2fc   : > { %24627 = vst [vmem:[#allocation28_spill] sm:$0xff] %v22037_v1  ;;  %v16073_v38 = vcombine.low %v8725_v61, %v8728_v11  ;;  %v8735_v17 = vsel %vm19142_vm3, %v8733_v51, %v8734_v12  ;;  %v19017_v51 = vld [vmem:[%s19133_s10 + $0x74] sm:$0x1] }
 0x2fd   : > { %v8748_v12 = vrot.slane %v19017_v51, 5 }
 0x301   : > { %17570 = vmatmul.mubr.msk.bf16.vlgmr.msra.gmra.mrb[0].mxu0 %vm446_vm4, %v16070_v4  ;;  %v19012_v4 = vld [vmem:[%s19133_s10 + $0x64] sm:$0xf] }
 0x302   : > { %17602 = vmatpush3.bf16.msra.mxu0 %v9375_v34  ;;  %17573 = vmatprep.mubr.msk.bf16.mxu0 %vm446_vm4, %v16071_v50  ;;  %v8738_v14 = vrot.slane %v19012_v4, 5  ;;  %v16010_v50 = vld [vmem:[%s19133_s10 + $0x60] sm:$0xe]  ;;  %v16072_v34 = vcombine.low %v8718_v49, %v8721_v26  ;;  %v19015_v49 = vld [vmem:[%s19133_s10 + $0x70] sm:$0xf] }
 0x303   : > { %v16026_v30 = vrot.slane %v16010_v50, 9  ;;  %v8745_v26 = vrot.slane %v19015_v49, 5  ;;  %v19016_v4 = vld [vmem:[%s19133_s10 + $0x7c] sm:$0xf] }
 0x304   : > { %v8740_v1 = vrot.slane %v8738_v14, 4  ;;  %v8752_v50 = vrot.slane %v19016_v4, 5  ;;  %v19020_v4 = vld [vmem:[%s19133_s10 + $0x94] sm:$0xf] }
 0x305   : > { %v8739_v61 = vsel %vm19142_vm3, %v16026_v30, %v8738_v14  ;;  %v8747_v5 = vrot.slane %v8745_v26, 4  ;;  %v19018_v14 = vld [vmem:[%s19133_s10 + $0x80] sm:$0x1] }
 0x306   : > { %v8742_v11 = vsel %vm19142_vm3, %v8740_v1, %v8741_v42  ;;  %v8754_v49 = vrot.slane %v8752_v50, 4  ;;  %v8755_v30 = vrot.slane %v19018_v14, 5  ;;  %v8746_v1 = vsel %vm19142_vm3, %v16027_v41, %v8745_v26 }
 0x307   : > { %v16075_v31 = vcombine.low %v8739_v61, %v8742_v11  ;;  %v8749_v42 = vsel %vm19142_vm3, %v8747_v5, %v8748_v12  ;;  %v16029_v26 = vrot.slane %v16013_v2, 9  ;;  %v19021_v5 = vld [vmem:[%s19133_s10 + $0x8c] sm:$0x1]  ;;  %v16015_v2 = vld [vmem:[%s19133_s10 + $0x9c] sm:$0xe] }
 0x308   : > { %v8756_v11 = vsel %vm19142_vm3, %v8754_v49, %v8755_v30  ;;  %v8762_v12 = vrot.slane %v19021_v5, 5 }
 0x309   : > { %17574 = vmatmul.mubr.msk.bf16.gmra.mrb[4].mxu0 %vm446_vm4, %v16072_v34  ;;  %v16012_v34 = vld [vmem:[%s19133_s10 + $0x78] sm:$0xe] }
 0x30a   : > { %17577 = vmatprep.mubr.msk.bf16.mxu0 %vm446_vm4, %v16073_v38  ;;  %v16074_v38 = vcombine.low %v8732_v45, %v8735_v17  ;;  %v16028_v7 = vrot.slane %v16012_v34, 9  ;;  %v19019_v45 = vld [vmem:[%s19133_s10 + $0x88] sm:$0xf]  ;;  %v8766_v34 = vrot.slane %v19020_v4, 5  ;;  %v19024_v4 = vld [vmem:[%s19133_s10 + $0xac] sm:$0xf] }
 0x30b   : > { %v8759_v17 = vrot.slane %v19019_v45, 5 }
 0x30c   : > { %v8753_v61 = vsel %vm19142_vm3, %v16028_v7, %v8752_v50  ;;  %v8768_v45 = vrot.slane %v8766_v34, 4  ;;  %v19022_v50 = vld [vmem:[%s19133_s10 + $0x98] sm:$0x1] }
 0x30d   : > { %v16077_v51 = vcombine.low %v8753_v61, %v8756_v11  ;;  %v8761_v41 = vrot.slane %v8759_v17, 4  ;;  %v8769_v7 = vrot.slane %v19022_v50, 5  ;;  %v8760_v49 = vsel %vm19142_vm3, %v16029_v26, %v8759_v17 }
 0x30e   : > { %v16031_v17 = vrot.slane %v16015_v2, 9  ;;  %v16017_v2 = vld [vmem:[%s19133_s10 + $0xb4] sm:$0xe] }
 0x30f   : > { %v8763_v30 = vsel %vm19142_vm3, %v8761_v41, %v8762_v12  ;;  %v8770_v11 = vsel %vm19142_vm3, %v8768_v45, %v8769_v7  ;;  %v19025_v41 = vld [vmem:[%s19133_s10 + $0xa4] sm:$0x1] }
 0x310   : > { %v8776_v12 = vrot.slane %v19025_v41, 5 }
 0x311   : > { %17578 = vmatmul.mubr.msk.bf16.gmra.mrb[8].mxu0 %vm446_vm4, %v16074_v38  ;;  %v16014_v38 = vld [vmem:[%s19133_s10 + $0x90] sm:$0xe] }
 0x312   : > { %17581 = vmatprep.mubr.msk.bf16.mxu0 %vm446_vm4, %v16075_v31  ;;  %v16076_v31 = vcombine.low %v8746_v1, %v8749_v42  ;;  %v16030_v14 = vrot.slane %v16014_v38, 9  ;;  %v19023_v1 = vld [vmem:[%s19133_s10 + $0xa0] sm:$0xf]  ;;  %v8780_v38 = vrot.slane %v19024_v4, 5  ;;  %v19028_v4 = vld [vmem:[%s19133_s10 + $0xc4] sm:$0xf] }
 0x313   : > { %v8773_v42 = vrot.slane %v19023_v1, 5 }
 0x314   : > { %v8767_v61 = vsel %vm19142_vm3, %v16030_v14, %v8766_v34  ;;  %v8782_v1 = vrot.slane %v8780_v38, 4  ;;  %v19026_v34 = vld [vmem:[%s19133_s10 + $0xb0] sm:$0x1] }
 0x315   : > { %v16079_v5 = vcombine.low %v8767_v61, %v8770_v11  ;;  %v8775_v26 = vrot.slane %v8773_v42, 4  ;;  %v8783_v14 = vrot.slane %v19026_v34, 5  ;;  %v8774_v45 = vsel %vm19142_vm3, %v16031_v17, %v8773_v42 }
 0x316   : > { %v16033_v42 = vrot.slane %v16017_v2, 9  ;;  %v16019_v2 = vld [vmem:[%s19133_s10 + $0xcc] sm:$0xe] }
 0x317   : > { %v8777_v7 = vsel %vm19142_vm3, %v8775_v26, %v8776_v12  ;;  %v8784_v11 = vsel %vm19142_vm3, %v8782_v1, %v8783_v14  ;;  %v19029_v26 = vld [vmem:[%s19133_s10 + $0xbc] sm:$0x1] }
 0x318   : > { %v8790_v12 = vrot.slane %v19029_v26, 5 }
 0x319   : > { %17582 = vmatmul.mubr.msk.bf16.gmra.mrb[12].mxu0 %vm446_vm4, %v16076_v31  ;;  %v16016_v31 = vld [vmem:[%s19133_s10 + $0xa8] sm:$0xe] }
 0x31a   : > { %17585 = vmatprep.mubr.msk.bf16.mxu0 %vm446_vm4, %v16077_v51  ;;  %v16078_v51 = vcombine.low %v8760_v49, %v8763_v30  ;;  %v16032_v50 = vrot.slane %v16016_v31, 9  ;;  %v19027_v49 = vld [vmem:[%s19133_s10 + $0xb8] sm:$0xf]  ;;  %v8794_v31 = vrot.slane %v19028_v4, 5  ;;  %v19032_v4 = vld [vmem:[%s19205_s15 + $0x1c] sm:$0xf] }
 0x31b   : > { %v8787_v30 = vrot.slane %v19027_v49, 5 }
 0x31c   : > { %v8781_v61 = vsel %vm19142_vm3, %v16032_v50, %v8780_v38  ;;  %v8796_v49 = vrot.slane %v8794_v31, 4  ;;  %v19030_v38 = vld [vmem:[%s19133_s10 + $0xc8] sm:$0x1] }
 0x31d   : > { %v16081_v41 = vcombine.low %v8781_v61, %v8784_v11  ;;  %v8789_v17 = vrot.slane %v8787_v30, 4  ;;  %v8797_v50 = vrot.slane %v19030_v38, 5  ;;  %v8788_v1 = vsel %vm19142_vm3, %v16033_v42, %v8787_v30 }
 0x31e   : > { %v16035_v30 = vrot.slane %v16019_v2, 9  ;;  %v16037_v2 = vld [vmem:[%s19205_s15 + $0x24] sm:$0xe] }
 0x31f   : > { %v8791_v14 = vsel %vm19142_vm3, %v8789_v17, %v8790_v12  ;;  %v8798_v11 = vsel %vm19142_vm3, %v8796_v49, %v8797_v50  ;;  %v19033_v17 = vld [vmem:[%s19133_s10 + $0xd4] sm:$0x1] }
 0x320   : > { %v8804_v12 = vrot.slane %v19033_v17, 5 }
 0x321   : > { %17586 = vmatmul.mubr.msk.bf16.gmra.mrb[16].mxu0 %vm446_vm4, %v16078_v51  ;;  %v16018_v51 = vld [vmem:[%s19133_s10 + $0xc0] sm:$0xe] }
 0x322   : > { %17589 = vmatprep.mubr.msk.bf16.mxu0 %vm446_vm4, %v16079_v5  ;;  %v16080_v5 = vcombine.low %v8774_v45, %v8777_v7  ;;  %v16034_v34 = vrot.slane %v16018_v51, 9  ;;  %v19031_v45 = vld [vmem:[%s19133_s10 + $0xd0] sm:$0xf]  ;;  %v8872_v51 = vrot.slane %v19032_v4, 5  ;;  %v19036_v4 = vld [vmem:[%s19205_s15 + $0x34] sm:$0xf] }
 0x323   : > { %v8801_v7 = vrot.slane %v19031_v45, 5 }
 0x324   : > { %v8795_v61 = vsel %vm19142_vm3, %v16034_v34, %v8794_v31  ;;  %v8874_v45 = vrot.slane %v8872_v51, 4  ;;  %v19034_v31 = vld [vmem:[%s19205_s15 + $0x20] sm:$0x1] }
 0x325   : > { %v16083_v26 = vcombine.low %v8795_v61, %v8798_v11  ;;  %v8803_v42 = vrot.slane %v8801_v7, 4  ;;  %v8875_v34 = vrot.slane %v19034_v31, 5  ;;  %v8802_v49 = vsel %vm19142_vm3, %v16035_v30, %v8801_v7 }
 0x326   : > { %v16053_v7 = vrot.slane %v16037_v2, 9 }
 0x327   : > { %v8805_v50 = vsel %vm19142_vm3, %v8803_v42, %v8804_v12  ;;  %v8876_v11 = vsel %vm19142_vm3, %v8874_v45, %v8875_v34  ;;  %v8882_v42 = vrot.slane %v21658_v55, 5  ;;  %v19037_v34 = vld [vmem:[%s19205_s15 + $0x40] sm:$0xf] }
 0x329   : > { %17590 = vmatmul.mubr.msk.bf16.gmra.mrb[20].mxu0 %vm446_vm4, %v16080_v5  ;;  %v16036_v5 = vld [vmem:[%s19205_s15 + $0x18] sm:$0xe] }
 0x32a   : > { %17593 = vmatprep.mubr.msk.bf16.mxu0 %vm446_vm4, %v16081_v41  ;;  %v16082_v41 = vcombine.low %v8788_v1, %v8791_v14  ;;  %v16052_v38 = vrot.slane %v16036_v5, 9  ;;  %v19035_v1 = vld [vmem:[%s19205_s15 + $0x28] sm:$0xf]  ;;  %v8886_v5 = vrot.slane %v19036_v4, 5 }
 0x32b   : > { %v8879_v14 = vrot.slane %v19035_v1, 5  ;;  %v16039_v1 = vld [vmem:[%s19205_s15 + $0x3c] sm:$0xe] }
 0x32c   : > { %v8873_v61 = vsel %vm19142_vm3, %v16052_v38, %v8872_v51  ;;  %v8888_v31 = vrot.slane %v8886_v5, 4  ;;  %v8889_v51 = vrot.slane %v21675_v59, 5  ;;  %v8900_v59 = vrot.slane %v21672_v63, 5 }
 0x32d   : > { %v16102_v17 = vcombine.low %v8873_v61, %v8876_v11  ;;  %v8881_v30 = vrot.slane %v8879_v14, 4  ;;  %v8880_v38 = vsel %vm19142_vm3, %v16053_v7, %v8879_v14  ;;  %v16040_v61 = vld [vmem:[%s19205_s15 + $0x48] sm:$0xe]  ;;  %v16055_v14 = vrot.slane %v16039_v1, 9 }
 0x32e   : > { %v8890_v55 = vsel %vm19142_vm3, %v8888_v31, %v8889_v51  ;;  %v8903_v7 = vrot.slane %v21700_v44, 5  ;;  %v8914_v44 = vrot.slane %v21724_v52, 5  ;;  %v16042_v31 = vld [vmem:[%s19205_s15 + $0x60] sm:$0xe] }
 0x32f   : > { %v8883_v45 = vsel %vm19142_vm3, %v8881_v30, %v8882_v42  ;;  %v8907_v30 = vrot.slane %v21703_v48, 5 }
 0x330   : > { %v16103_v11 = vcombine.low %v8880_v38, %v8883_v45  ;;  %v8916_v48 = vrot.slane %v8914_v44, 4 }
 0x331   : > { %17594 = vmatmul.mubr.msk.bf16.gmra.mrb[24].mxu0 %vm446_vm4, %v16082_v41  ;;  %v16038_v41 = vld [vmem:[%s19205_s15 + $0x30] sm:$0xe] }
 0x332   : > { %17597 = vmatprep.mubr.msk.bf16.mxu0 %vm446_vm4, %v16083_v26  ;;  %v16084_v26 = vcombine.low %v8802_v49, %v8805_v50  ;;  %v16054_v12 = vrot.slane %v16038_v41, 9  ;;  %v8893_v49 = vrot.slane %v19037_v34, 5  ;;  %v8896_v41 = vrot.slane %v21683_v53, 5 }
 0x333   : > { %v8909_v34 = vrot.slane %v8907_v30, 4 }
 0x334   : > { %v8887_v50 = vsel %vm19142_vm3, %v16054_v12, %v8886_v5  ;;  %v8895_v4 = vrot.slane %v8893_v49, 4  ;;  %v8894_v63 = vsel %vm19142_vm3, %v16055_v14, %v8893_v49  ;;  %v16041_v12 = vld [vmem:[%s19205_s15 + $0x54] sm:$0xe]  ;;  %v8910_v49 = vrot.slane %v21733_v25, 5 }
 0x335   : > { %v16104_v2 = vcombine.low %v8887_v50, %v8890_v55  ;;  %v16057_v45 = vrot.slane %v16041_v12, 9  ;;  %v16058_v50 = vrot.slane %v16042_v31, 9  ;;  %v8917_v55 = vrot.slane %v21770_v62, 5  ;;  %v16046_v12 = vld [vmem:[%s19205_s15 + $0x90] sm:$0xe] }
 0x336   : > { %v8897_v5 = vsel %vm19142_vm3, %v8895_v4, %v8896_v41  ;;  %v8911_v1 = vsel %vm19142_vm3, %v8909_v34, %v8910_v49  ;;  %v8928_v62 = vrot.slane %v21776_v57, 5  ;;  %v16062_v34 = vrot.slane %v16046_v12, 9 }
 0x337   : > { %v16105_v51 = vcombine.low %v8894_v63, %v8897_v5  ;;  %v8908_v52 = vsel %vm19142_vm3, %v16057_v45, %v8907_v30  ;;  %v8918_v25 = vsel %vm19142_vm3, %v8916_v48, %v8917_v55  ;;  %v8931_v63 = vrot.slane %v21824_v58, 5 }
 0x338   : > { %v16107_v14 = vcombine.low %v8908_v52, %v8911_v1  ;;  %v8935_v30 = vrot.slane %v21793_v3, 5  ;;  %v8942_v58 = vrot.slane %v21842_v22, 5  ;;  %v8938_v45 = vrot.slane %v21848_v29, 5  ;;  %v16047_v52 = vld [vmem:[%s19205_s15 + $0x9c] sm:$0xe] }
 0x339   : > { %17598 = vmatmul.mubr.msk.bf16.gmra.mrb[28].mxu0 %vm446_vm4, %v16084_v26  ;;  %v16056_v26 = vrot.slane %v16040_v61, 9  ;;  %v8915_v61 = vsel %vm19142_vm3, %v16058_v50, %v8914_v44  ;;  %v8945_v49 = vrot.slane %v21869_v13, 5  ;;  %v8949_v48 = vrot.slane %v21872_v33, 5  ;;  %v16048_v1 = vld [vmem:[%s19205_s15 + $0xa8] sm:$0xe] }
 0x33a   : > { %17603 = vmatprep.mubr.msk.bf16.mxu0 %vm446_vm4, %v16102_v17  ;;  %v8902_v17 = vrot.slane %v8900_v59, 4  ;;  %v16108_v4 = vcombine.low %v8915_v61, %v8918_v25  ;;  %v8944_v3 = vrot.slane %v8942_v58, 4  ;;  %v8943_v55 = vsel %vm19142_vm3, %v16062_v34, %v8942_v58 }
 0x33b   : > { %v8901_v42 = vsel %vm19142_vm3, %v16056_v26, %v8900_v59  ;;  %v8921_v59 = vrot.slane %v21750_v56, 5  ;;  %v8930_v56 = vrot.slane %v8928_v62, 4  ;;  %v8956_v13 = vrot.slane %v21880_v15, 5 }
 0x33c   : > { %v8904_v53 = vsel %vm19142_vm3, %v8902_v17, %v8903_v7  ;;  %v8924_v17 = vrot.slane %v21789_v54, 5  ;;  %v8946_v29 = vsel %vm19142_vm3, %v8944_v3, %v8945_v49  ;;  %v16063_v25 = vrot.slane %v16047_v52, 9 }
 0x33d   : > { %v16106_v38 = vcombine.low %v8901_v42, %v8904_v53  ;;  %v8923_v26 = vrot.slane %v8921_v59, 4  ;;  %v8932_v54 = vsel %vm19142_vm3, %v8930_v56, %v8931_v63  ;;  %v16045_v53 = vld [vmem:[%s19205_s15 + $0x84] sm:$0xe]  ;;  %v16112_v61 = vcombine.low %v8943_v55, %v8946_v29  ;;  %v9715_v29 = vld [vmem:[#allocation2 + $0x20] sm:$0x1] }
 0x33e   : > { %v8958_v33 = vrot.slane %v8956_v13, 4  ;;  %v8950_v15 = vsel %vm19142_vm3, %v16063_v25, %v8949_v48  ;;  %v8977_v58 = vrot.slane %v21938_v43, 5  ;;  %v24628_v49 = vmov 0  ;;  %v9662_v25 = vld [vmem:[#allocation2 + $0x24] sm:$0x1] }
 0x33f   : > { %v8925_v5 = vsel %vm19142_vm3, %v8923_v26, %v8924_v17  ;;  %v16049_v17 = vld [vmem:[%s19205_s15 + $0xb4] sm:$0xe]  ;;  %v24629_v49 = vsel %vm22272_vm10, 4294967295, %v24628_v49  ;;  %v24631_v55 = vmov 0  ;;  %v9716_v52 = vsel %vm22282_vm12, 0, %v9715_v29 }
 0x340   : > { %24630 = vst [vmem:[#allocation29_spill] sm:$0xff] %v24629_v49  ;;  %v24632_v55 = vsel %vm22282_vm12, 4294967295, %v24631_v55  ;;  %9717 = vst [vmem:[#allocation2 + $0x20] sm:$0x1] %v9716_v52 }
 0x341   : > { %17604 = vmatmul.mubr.msk.bf16.vlgmr.msra.gmra.mrb[0].mxu0 %vm446_vm4, %v16103_v11  ;;  %v16043_v11 = vld [vmem:[%s19205_s15 + $0x6c] sm:$0xe]  ;;  %24633 = vst [vmem:[#allocation30_spill] sm:$0xff] %v24632_v55 }
 0x342   : > { %17607 = vmatprep.mubr.msk.bf16.mxu0 %vm446_vm4, %v16104_v2  ;;  %v16044_v2 = vld [vmem:[%s19205_s15 + $0x78] sm:$0xe]  ;;  %v16059_v41 = vrot.slane %v16043_v11, 9  ;;  %v8951_v11 = vrot.slane %v8949_v48, 4 }
 0x343   : > { %v16060_v7 = vrot.slane %v16044_v2, 9  ;;  %v16064_v2 = vrot.slane %v16048_v1, 9 }
 0x344   : > { %v8922_v57 = vsel %vm19142_vm3, %v16059_v41, %v8921_v59  ;;  %v8963_v41 = vrot.slane %v21913_v27, 5  ;;  %v8973_v27 = vrot.slane %v21949_v23, 5 }
 0x345   : > { %v8929_v42 = vsel %vm19142_vm3, %v16060_v7, %v8928_v62  ;;  %v16109_v44 = vcombine.low %v8922_v57, %v8925_v5  ;;  %v8952_v62 = vrot.slane %v21901_v18, 5  ;;  %v8957_v26 = vsel %vm19142_vm3, %v16064_v2, %v8956_v13  ;;  %v16050_v7 = vld [vmem:[%s19205_s15 + $0xc0] sm:$0xe]  ;;  %v9712_v13 = vld [vmem:[#allocation2 + $0x14] sm:$0x1] }
 0x346   : > { %v16110_v31 = vcombine.low %v8929_v42, %v8932_v54  ;;  %v16065_v57 = vrot.slane %v16049_v17, 9  ;;  %v8965_v5 = vrot.slane %v8963_v41, 4  ;;  %v16066_v42 = vrot.slane %v16050_v7, 9  ;;  %v9668_v17 = vld [vmem:[#allocation2 + $0x3c] sm:$0x1] }
 0x347   : > { %v9713_v1 = vsel %vm22282_vm12, 0, %v9712_v13  ;;  %v19064_v2 = vmov 0   ;;  %v9669_v7 = vsel %vm22272_vm10, 0, %v9668_v17  ;;  %v9689_v17 = vld [vmem:[#allocation2 + $0x90] sm:$0x1] }
 0x348   : > { %9714 = vst [vmem:[#allocation2 + $0x14] sm:$0x1] %v9713_v1  ;;  %9642 = vst.msk [vmem:[#allocation2] sm:$0xf] %vm9641_vm13, %v19064_v2  ;;  %v9683_v1 = vld [vmem:[#allocation2 + $0x78] sm:$0x1] }
 0x349   : > { %17608 = vmatmul.mubr.msk.bf16.gmra.mrb[4].mxu0 %vm446_vm4, %v16105_v51  ;;  %v16061_v51 = vrot.slane %v16045_v53, 9  ;;  %v8964_v53 = vsel %vm19142_vm3, %v16065_v57, %v8963_v41  ;;  %9643 = vst.msk [vmem:[#allocation2 + $0x4] sm:$0xf] %vm9641_vm13, %v19064_v2  ;;  %9647 = vst.msk [vmem:[#allocation2 + $0xcc] sm:$0xf] %vm9641_vm13, %v19064_v2 }
 0x34a   : > { %17611 = vmatprep.mubr.msk.bf16.mxu0 %vm446_vm4, %v16106_v38  ;;  %v8937_v38 = vrot.slane %v8935_v30, 4  ;;  %9645 = vst.msk [vmem:[#allocation2 + $0x8] sm:$0x1] %vm9644_vm8, %v19064_v2  ;;  %9649 = vst.msk [vmem:[#allocation2 + $0xd4] sm:$0x1] %vm9644_vm8, %v19064_v2 }
 0x34b   : > { %v8936_v22 = vsel %vm19142_vm3, %v16061_v51, %v8935_v30  ;;  %v8966_v30 = vrot.slane %v21934_v20, 5  ;;  %9648 = vst.msk [vmem:[#allocation2 + $0xd0] sm:$0xf] %vm9641_vm13, %v19064_v2  ;;  %v9671_v41 = vld [vmem:[#allocation2 + $0x48] sm:$0x1] }
 0x34c   : > { %v8939_v50 = vsel %vm19142_vm3, %v8937_v38, %v8938_v45  ;;  %v8979_v38 = vrot.slane %v8977_v58, 4  ;;  %v8980_v45 = vrot.slane %v21968_v9, 5  ;;  %v9659_v9 = vld [vmem:[#allocation2 + $0x18] sm:$0x1]  ;;  %9670 = vst [vmem:[#allocation2 + $0x3c] sm:$0x1] %v9669_v7 }
 0x34d   : > { %v16111_v59 = vcombine.low %v8936_v22, %v8939_v50  ;;  %v9660_v22 = vsel %vm22272_vm10, 0, %v9659_v9  ;;  %v9656_v50 = vld [vmem:[#allocation2 + $0xc] sm:$0x1]  ;;  %v9724_v57 = vld [vmem:[#allocation2 + $0x44] sm:$0x1] }
 0x34e   : > { %v8981_v34 = vsel %vm19142_vm3, %v8979_v38, %v8980_v45  ;;  %9661 = vst [vmem:[#allocation2 + $0x18] sm:$0x1] %v9660_v22  ;;  %v9657_v48 = vsel %vm22272_vm10, 0, %v9656_v50  ;;  %v9730_v45 = vld [vmem:[#allocation2 + $0x5c] sm:$0x1] }
 0x34f   : > { %9658 = vst [vmem:[#allocation2 + $0xc] sm:$0x1] %v9657_v48  ;;  %v9686_v7 = vld [vmem:[#allocation2 + $0x84] sm:$0x1] }
 0x351   : > { %17612 = vmatmul.mubr.msk.bf16.gmra.mrb[8].mxu0 %vm446_vm4, %v16107_v14  ;;  %v8959_v14 = vrot.slane %v21907_v0, 5  ;;  %v8970_v0 = vrot.slane %v21919_v37, 5  ;;  %v8967_v37 = vsel %vm19142_vm3, %v8965_v5, %v8966_v30  ;;  %v9725_v5 = vsel %vm22282_vm12, 0, %v9724_v57  ;;  %v9709_v30 = vld [vmem:[#allocation2 + $0x8] sm:$0x1] }
 0x352   : > { %17615 = vmatprep.mubr.msk.bf16.mxu0 %vm446_vm4, %v16108_v4  ;;  %v8953_v4 = vsel %vm19142_vm3, %v8951_v11, %v8952_v62  ;;  %v16115_v23 = vcombine.low %v8964_v53, %v8967_v37  ;;  %v9663_v11 = vsel %vm22272_vm10, 0, %v9662_v25  ;;  %v18868_v62 = vld [vmem:[%s24329_s5 + $0x8] sm:$0xff]   ;;  %9726 = vst [vmem:[#allocation2 + $0x44] sm:$0x1] %v9725_v5  ;;  %v9674_v53 = vld [vmem:[#allocation2 + $0x54] sm:$0x1] }
 0x353   : > { %v8960_v18 = vsel %vm19142_vm3, %v8958_v33, %v8959_v14  ;;  %v16113_v56 = vcombine.low %v8950_v15, %v8953_v4  ;;  %v8972_v54 = vrot.slane %v8970_v0, 4  ;;  %v8971_v12 = vsel %vm19142_vm3, %v16066_v42, %v8970_v0  ;;  %9664 = vst [vmem:[#allocation2 + $0x24] sm:$0x1] %v9663_v11  ;;  %17635 = vmatprep.subr.bf16.mxu1 %v18868_v62  ;;  %v9721_v33 = vld [vmem:[#allocation2 + $0x38] sm:$0x1] }
 0x354   : > { %v16114_v63 = vcombine.low %v8957_v26, %v8960_v18  ;;  %17636 = vmatpush3.bf16.msra.mxu1 %v18868_v62  ;;  %v9722_v14 = vsel %vm22282_vm12, 0, %v9721_v33  ;;  %v9718_v15 = vld [vmem:[#allocation2 + $0x2c] sm:$0x1]  ;;  %v9653_v26 = vld [vmem:[#allocation2] sm:$0x1]  ;;  %v9672_v18 = vsel %vm22272_vm10, 0, %v9671_v41 }
 0x355   : > { %v8974_v20 = vsel %vm19142_vm3, %v8972_v54, %v8973_v27  ;;  %9723 = vst [vmem:[#allocation2 + $0x38] sm:$0x1] %v9722_v14  ;;  %v9719_v4 = vsel %vm22282_vm12, 0, %v9718_v15  ;;  %v9654_v0 = vsel %vm22272_vm10, 0, %v9653_v26  ;;  %9673 = vst [vmem:[#allocation2 + $0x48] sm:$0x1] %v9672_v18 }
 0x356   : > { %9720 = vst [vmem:[#allocation2 + $0x2c] sm:$0x1] %v9719_v4  ;;  %9655 = vst [vmem:[#allocation2] sm:$0x1] %v9654_v0  ;;  %v9710_v42 = vsel %vm22282_vm12, 0, %v9709_v30  ;;  %v9675_v37 = vsel %vm22272_vm10, 0, %v9674_v53 }
 0x357   : > { %9711 = vst [vmem:[#allocation2 + $0x8] sm:$0x1] %v9710_v42  ;;  %v9677_v54 = vld [vmem:[#allocation2 + $0x60] sm:$0x1]  ;;  %9676 = vst [vmem:[#allocation2 + $0x54] sm:$0x1] %v9675_v37 }
 0x358   : > { %v9678_v27 = vsel %vm22272_vm10, 0, %v9677_v54  ;;  %v9684_v25 = vsel %vm22272_vm10, 0, %v9683_v1  ;;  %v9680_v11 = vld [vmem:[#allocation2 + $0x6c] sm:$0x1]  ;;  %v9739_v14 = vld [vmem:[#allocation2 + $0x80] sm:$0x1] }
 0x359   : > { %17616 = vmatmul.mubr.msk.bf16.gmra.mrb[12].mxu0 %vm446_vm4, %v16109_v44  ;;  %v16051_v44 = vld [vmem:[%s19205_s15 + $0xcc] sm:$0xe]  ;;  %9679 = vst [vmem:[#allocation2 + $0x60] sm:$0x1] %v9678_v27  ;;  %9685 = vst [vmem:[#allocation2 + $0x78] sm:$0x1] %v9684_v25 }
 0x35a   : > { %17619 = vmatprep.mubr.msk.bf16.mxu0 %vm446_vm4, %v16110_v31  ;;  %v16116_v31 = vcombine.low %v8971_v12, %v8974_v20  ;;  %v16067_v51 = vrot.slane %v16051_v44, 9  ;;  %v10297_v12 = vld [vmem:[#allocation2 + $0x4] sm:$0xf]  ;;  %v9681_v62 = vsel %vm22272_vm10, 0, %v9680_v11  ;;  %v9740_v4 = vsel %vm22282_vm12, 0, %v9739_v14  ;;  %v24635_v25 = vld [vmem:[#allocation19_spill] sm:$0xff] }
 0x35b   : > { %9682 = vst [vmem:[#allocation2 + $0x6c] sm:$0x1] %v9681_v62  ;;  %9741 = vst [vmem:[#allocation2 + $0x80] sm:$0x1] %v9740_v4  ;;  %v9736_v41 = vld [vmem:[#allocation2 + $0x74] sm:$0x1] }
 0x35c   : > { %v8978_v43 = vsel %vm19142_vm3, %v16067_v51, %v8977_v58  ;;  %v10360_v51 = vshrl.u32 %v10297_v12, 16  ;;  %v9737_v26 = vsel %vm22282_vm12, 0, %v9736_v41  ;;  %v22343_v18 = vld [vmem:[%s24329_s5] sm:$0xff]   ;;  %v9690_v0 = vsel %vm22272_vm10, 0, %v9689_v17  ;;  %v9742_v5 = vld [vmem:[#allocation2 + $0x8c] sm:$0x1] }
 0x35d   : > { %v16117_v3 = vcombine.low %v8978_v43, %v8981_v34  ;;  %v10296_v58 = vld [vmem:[#allocation2] sm:$0xf]  ;;  %9738 = vst [vmem:[#allocation2 + $0x74] sm:$0x1] %v9737_v26  ;;  %17669 = vmatprep.subr.bf16.mxu1 %v22343_v18  ;;  %9691 = vst [vmem:[#allocation2 + $0x90] sm:$0x1] %v9690_v0 }
 0x35e   : > { %v10347_v20 = vshrl.u32 %v10296_v58, 16  ;;  %v10350_v44 = vshll.u32 %v10296_v58, 16  ;;  %v10330_v43 = vld [vmem:[#allocation2 + $0x8] sm:$0x1]  ;;  %v10362_v50 = vrot.slane %v10360_v51, 4  ;;  %v9743_v30 = vsel %vm22282_vm12, 0, %v9742_v5 }
 0x35f   : > { %v10366_v48 = vshll.u32 %v10330_v43, 16  ;;  %9744 = vst [vmem:[#allocation2 + $0x8c] sm:$0x1] %v9743_v30  ;;  %v9695_v42 = vld [vmem:[#allocation2 + $0xa8] sm:$0x1] }
 0x360   : > { %v10349_v34 = vrot.slane %v10347_v20, 4  ;;  %v10352_v9 = vrot.slane %v10350_v44, 5  ;;  %v9696_v54 = vsel %vm22272_vm10, 0, %v9695_v42  ;;  %v9692_v27 = vld [vmem:[#allocation2 + $0x9c] sm:$0x1]  ;;  %v24637_v42 = vld [vmem:[#allocation20_spill] sm:$0xff] }
 0x361   : > { %17620 = vmatmul.mubr.msk.bf16.gmra.mrb[16].mxu0 %vm446_vm4, %v16111_v59  ;;  %v9665_v59 = vld [vmem:[#allocation2 + $0x30] sm:$0x1]  ;;  %v10368_v13 = vrot.slane %v10366_v48, 5  ;;  %9697 = vst [vmem:[#allocation2 + $0xa8] sm:$0x1] %v9696_v54  ;;  %v9693_v53 = vsel %vm22272_vm10, 0, %v9692_v27 }
 0x362   : > { %17623 = vmatprep.mubr.msk.bf16.mxu0 %vm446_vm4, %v16112_v61  ;;  %v9666_v61 = vsel %vm22272_vm10, 0, %v9665_v59  ;;  %v10353_v29 = vor.u32 %v10352_v9, %v10349_v34  ;;  %v9751_v37 = vld [vmem:[#allocation2 + $0xb0] sm:$0x1]  ;;  %v9748_v58 = vld [vmem:[#allocation2 + $0xa4] sm:$0x1] }
 0x363   : > { %9667 = vst [vmem:[#allocation2 + $0x30] sm:$0x1] %v9666_v61  ;;  %9694 = vst [vmem:[#allocation2 + $0x9c] sm:$0x1] %v9693_v53  ;;  %v9749_v20 = vsel %vm22282_vm12, 0, %v9748_v58 }
 0x364   : > { %v10354_v59 = vrot.slane %v10353_v29, 4  ;;  %9750 = vst [vmem:[#allocation2 + $0xa4] sm:$0x1] %v9749_v20  ;;  %v9701_v44 = vld [vmem:[#allocation2 + $0xc0] sm:$0x1] }
 0x365   : > { %v9757_v51 = vld [vmem:[#allocation2 + $0xc8] sm:$0x1]  ;;  %v9754_v43 = vld [vmem:[#allocation2 + $0xbc] sm:$0x1]  ;;  %v22373_v9 = vld [vmem:[%s24328_s4] ss:$0 sm:$0xff] }
 0x366   : > { %v9755_v34 = vsel %vm22282_vm12, 0, %v9754_v43 }
 0x367   : > { %9756 = vst [vmem:[#allocation2 + $0xbc] sm:$0x1] %v9755_v34 }
 0x369   : > { %17624 = vmatmul.mubr.msk.bf16.gmra.mrb[20].mxu0 %vm446_vm4, %v16113_v56  ;;  %v9727_v56 = vld [vmem:[#allocation2 + $0x50] sm:$0x1] }
 0x36a   : > { %17627 = vmatprep.mubr.msk.bf16.mxu0 %vm446_vm4, %v16114_v63  ;;  %v9728_v63 = vsel %vm22282_vm12, 0, %v9727_v56  ;;  %v9745_v56 = vld [vmem:[#allocation2 + $0x98] sm:$0x1] }
 0x36b   : > { %9729 = vst [vmem:[#allocation2 + $0x50] sm:$0x1] %v9728_v63  ;;  %v9687_v63 = vsel %vm22272_vm10, 0, %v9686_v7  ;;  %v9746_v57 = vsel %vm22282_vm12, 0, %v9745_v56  ;;  %v24636_v7 = vld [vmem:[#allocation18_spill] sm:$0xff] }
 0x36c   : > { %9688 = vst [vmem:[#allocation2 + $0x84] sm:$0x1] %v9687_v63  ;;  %9747 = vst [vmem:[#allocation2 + $0x98] sm:$0x1] %v9746_v57 }
 0x371   : > { %17628 = vmatmul.mubr.msk.bf16.gmra.mrb[24].mxu0 %vm446_vm4, %v16115_v23  ;;  %v9733_v23 = vld [vmem:[#allocation2 + $0x68] sm:$0x1] }
 0x372   : > { %17631 = vmatprep.mubr.msk.bf16.mxu0 %vm446_vm4, %v16116_v31  ;;  %v10356_v31 = vshll.u32 %v10297_v12, 16  ;;  %v9734_v38 = vsel %vm22282_vm12, 0, %v9733_v23  ;;  %v9752_v12 = vsel %vm22282_vm12, 0, %v9751_v37  ;;  %v9702_v23 = vsel %vm22272_vm10, 0, %v9701_v44 }
 0x373   : > { %9735 = vst [vmem:[#allocation2 + $0x68] sm:$0x1] %v9734_v38  ;;  %9753 = vst [vmem:[#allocation2 + $0xb0] sm:$0x1] %v9752_v12 }
 0x374   : > { %v10358_v22 = vrot.slane %v10356_v31, 5  ;;  %9703 = vst [vmem:[#allocation2 + $0xc0] sm:$0x1] %v9702_v23  ;;  %v9698_v31 = vld [vmem:[#allocation2 + $0xb4] sm:$0x1] }
 0x375   : > { %v9699_v38 = vsel %vm22272_vm10, 0, %v9698_v31  ;;  %v10191_v23 = vld [vmem:[#allocation2 + $0x18] sm:$0xf] }
 0x376   : > { %v10363_v52 = vor.u32 %v10362_v50, %v10358_v22  ;;  %v10359_v2 = vsel %vm19559_vm7, %v10354_v59, %v10358_v22  ;;  %9700 = vst [vmem:[#allocation2 + $0xb4] sm:$0x1] %v9699_v38 }
 0x378   : > { %v10364_v61 = vrot.slane %v10363_v52, 4 }
 0x379   : > { %17632 = vmatmul.mubr.msk.bf16.gmra.mrb[28].mxu0 %vm446_vm4, %v16117_v3  ;;  %v9731_v3 = vsel %vm22282_vm12, 0, %v9730_v45  ;;  %v9758_v45 = vsel %vm22282_vm12, 0, %v9757_v51 }
 0x37a   : > { %9732 = vst [vmem:[#allocation2 + $0x5c] sm:$0x1] %v9731_v3  ;;  %v10369_v33 = vsel %vm19559_vm7, %v10364_v61, %v10368_v13  ;;  %9759 = vst [vmem:[#allocation2 + $0xc8] sm:$0x1] %v9758_v45  ;;  %v24634_v13 = vld [vmem:[#allocation17_spill] sm:$0xff] }
 0x37b   : > { %v16169_v15 = vcombine.low %v10359_v2, %v10369_v33 }
 0x37d   : > { %17637 = vmatprep.mubr.msk.bf16.mxu1 %vm10787_vm14, %v16169_v15 }
 0x414   : > { %v17605_v3 = vpop.f32.mrb[0].mxu0 }
 0x415   : > { %v17943_v22 = vadd.f32 %v17605_v3, %v21664_v40  ;;  %v9411_v50 = vpop.f32.mrb[1].mxu0  ;;  %v10184_v3 = vld [vmem:[#allocation2 + $0xc] sm:$0xf] }
 0x416   : > { %v17944_v48 = vadd.f32 %v9411_v50, %v21705_v39  ;;  %v17606_v29 = vpop.f32.mrb[2].mxu0 }
 0x417   : > { %v9579_v52 = vadd.f32 %v17943_v22, %v22373_v9  ;;  %v17945_v1 = vadd.f32 %v17606_v29, %v24634_v13  ;;  %v9414_v59 = vpop.f32.mrb[3].mxu0  ;;  %v10195_v13 = vld [vmem:[#allocation2 + $0x20] sm:$0x1] }
 0x418   : > { %v9577_v61 = vadd.f32 %v17944_v48, %v22373_v9  ;;  %v17946_v11 = vadd.f32 %v9414_v59, %v24635_v25 }
 0x419   : > { %v9611_v62 = vmax.f32 %v9579_v52, 0.0  ;;  %v9580_v2 = vadd.f32 %v17945_v1, %v22373_v9 }
 0x41a   : > { %v9609_v33 = vmax.f32 %v9577_v61, 0.0  ;;  %v9578_v14 = vadd.f32 %v17946_v11, %v22373_v9 }
 0x41b   : > { %v16534_v40 = vpack.c.bf16 %v9611_v62, %v9611_v62  ;;  %v9612_v15 = vmax.f32 %v9580_v2, 0.0  ;;  %v10188_v62 = vld [vmem:[#allocation2 + $0x14] sm:$0x1] }
 0x41c   : > { %v16532_v4 = vpack.c.bf16 %v9609_v33, %v9609_v33  ;;  %v9610_v39 = vmax.f32 %v9578_v14, 0.0  ;;  %v17609_v41 = vpop.f32.mrb[4].mxu0 }
 0x41d   : > { %v9879_v26 = vshrl.u32 %v16534_v40, 16  ;;  %v9882_v17 = vshll.u32 %v16534_v40, 16  ;;  %v16535_v0 = vpack.c.bf16 %v9612_v15, %v9612_v15  ;;  %v17947_v56 = vadd.f32 %v17609_v41, %v24636_v7  ;;  %v9427_v63 = vpop.f32.mrb[5].mxu0 }
 0x41e   : > { %v9862_v57 = vshrl.u32 %v16532_v4, 16  ;;  %v9865_v5 = vshll.u32 %v16532_v4, 16  ;;  %v16533_v30 = vpack.c.bf16 %v9610_v39, %v9610_v39  ;;  %v17948_v54 = vadd.f32 %v9427_v63, %v24637_v42  ;;  %v17610_v27 = vpop.f32.mrb[6].mxu0  ;;  %v24642_v42 = vld [vmem:[#allocation5_spill] sm:$0xff] }
 0x41f   : > { %v9881_v53 = vrot.slane %v9879_v26, 7  ;;  %v9887_v37 = vshrl.u32 %v16535_v0, 16  ;;  %v9890_v58 = vshll.u32 %v16535_v0, 16  ;;  %v9583_v12 = vadd.f32 %v17947_v56, %v22373_v9  ;;  %v9430_v20 = vpop.f32.mrb[7].mxu0 }
 0x420   : > { %v9864_v31 = vrot.slane %v9862_v57, 7  ;;  %v9870_v51 = vshrl.u32 %v16533_v30, 16  ;;  %v9873_v38 = vshll.u32 %v16533_v30, 16  ;;  %v9581_v45 = vadd.f32 %v17948_v54, %v22373_v9 }
 0x421   : > { %v9884_v43 = vor.u32 %v9882_v17, %v9881_v53  ;;  %v9885_v34 = vrot.slane %v9881_v53, 4  ;;  %v9889_v22 = vrot.slane %v9887_v37, 7  ;;  %v9615_v50 = vmax.f32 %v9583_v12, 0.0  ;;  %v24643_v53 = vld [vmem:[#allocation6_spill] sm:$0xff] }
 0x422   : > { %v9867_v48 = vor.u32 %v9865_v5, %v9864_v31  ;;  %v9868_v29 = vrot.slane %v9864_v31, 4  ;;  %v9872_v1 = vrot.slane %v9870_v51, 7  ;;  %v9613_v59 = vmax.f32 %v9581_v45, 0.0  ;;  %v10205_v31 = vld [vmem:[#allocation2 + $0x30] sm:$0xf] }
 0x423   : > { %v10192_v61 = vsel %vm22388_vm0, %v9884_v43, %v10191_v23  ;;  %v9892_v25 = vor.u32 %v9890_v58, %v9889_v22  ;;  %v9894_v11 = vrot.slane %v9889_v22, 4  ;;  %v16538_v2 = vpack.c.bf16 %v9615_v50, %v9615_v50  ;;  %v24644_v58 = vld [vmem:[#allocation8_spill] sm:$0xff]  ;;  %v24646_v43 = vld [vmem:[#allocation7_spill] sm:$0xff] }
 0x424   : > { %10193 = vst [vmem:[#allocation2 + $0x18] sm:$0xf] %v10192_v61  ;;  %v10185_v33 = vsel %vm22388_vm0, %v9867_v48, %v10184_v3  ;;  %v9875_v14 = vor.u32 %v9873_v38, %v9872_v1  ;;  %v9877_v40 = vrot.slane %v9872_v1, 4  ;;  %v16536_v15 = vpack.c.bf16 %v9613_v59, %v9613_v59  ;;  %v17613_v4 = vpop.f32.mrb[8].mxu0  ;;  %v24645_v38 = vld [vmem:[#allocation9_spill] sm:$0xff]  ;;  %v24647_v3 = vld [vmem:[#allocation4_spill] sm:$0xff] }
 0x425   : > { %10186 = vst [vmem:[#allocation2 + $0xc] sm:$0xf] %v10185_v33  ;;  %v9893_v39 = vsel %vm22395_vm1, %v9885_v34, %v9892_v25  ;;  %v10196_v41 = vsel %vm22272_vm10, %v9894_v11, %v10195_v13  ;;  %v9913_v26 = vshrl.u32 %v16538_v2, 16  ;;  %v9916_v17 = vshll.u32 %v16538_v2, 16  ;;  %v9443_v0 = vpop.f32.mrb[9].mxu0 }
 0x426   : > { %10194 = vst.msk [vmem:[#allocation2 + $0x1c] sm:$0xf] %vm9641_vm13, %v9893_v39  ;;  %10197 = vst [vmem:[#allocation2 + $0x20] sm:$0x1] %v10196_v41  ;;  %v9876_v7 = vsel %vm22395_vm1, %v9868_v29, %v9875_v14  ;;  %v10189_v56 = vsel %vm22272_vm10, %v9877_v40, %v10188_v62  ;;  %v9896_v63 = vshrl.u32 %v16536_v15, 16  ;;  %v9899_v57 = vshll.u32 %v16536_v15, 16 }
 0x427   : > { %v17614_v5 = vpop.f32.mrb[10].mxu0  ;;  %10187 = vst.msk [vmem:[#allocation2 + $0x10] sm:$0xf] %vm9641_vm13, %v9876_v7  ;;  %10190 = vst [vmem:[#allocation2 + $0x14] sm:$0x1] %v10189_v56  ;;  %v22413_v30 = vrot.slane %v9913_v26, 7  ;;  %v17949_v54 = vadd.f32 %v17610_v27, %v24642_v42  ;;  %v17950_v37 = vadd.f32 %v9430_v20, %v24643_v53  ;;  %v17951_v12 = vadd.f32 %v17613_v4, %v24644_v58 }
 0x428   : > { %v9446_v23 = vpop.f32.mrb[11].mxu0  ;;  %v22418_v51 = vrot.slane %v9896_v63, 7  ;;  %v17952_v45 = vadd.f32 %v9443_v0, %v24645_v38  ;;  %v17953_v34 = vadd.f32 %v17614_v5, %v24646_v43  ;;  %v10198_v29 = vld [vmem:[#allocation2 + $0x24] sm:$0xf]  ;;  %v24649_v5 = vld [vmem:[#allocation22_spill] sm:$0xff] }
 0x429   : > { %v17954_v22 = vadd.f32 %v9446_v23, %v24647_v3  ;;  %v9918_v50 = vor.u32 %v9916_v17, %v22413_v30  ;;  %v9919_v48 = vrot.slane %v22413_v30, 4  ;;  %v9584_v27 = vadd.f32 %v17949_v54, %v22373_v9  ;;  %v24648_v17 = vld [vmem:[#allocation21_spill] sm:$0xff]  ;;  %v10209_v23 = vld [vmem:[#allocation2 + $0x38] sm:$0x1] }
 0x42a   : > { %v9582_v20 = vadd.f32 %v17950_v37, %v22373_v9  ;;  %v9901_v13 = vor.u32 %v9899_v57, %v22418_v51  ;;  %v9902_v1 = vrot.slane %v22418_v51, 4  ;;  %v9587_v59 = vadd.f32 %v17951_v12, %v22373_v9  ;;  %v10202_v3 = vld [vmem:[#allocation2 + $0x2c] sm:$0x1] }
 0x42b   : > { %v9585_v61 = vadd.f32 %v17952_v45, %v22373_v9  ;;  %v10206_v25 = vsel %vm22388_vm0, %v9918_v50, %v10205_v31  ;;  %v9616_v11 = vmax.f32 %v9584_v27, 0.0  ;;  %v9588_v2 = vadd.f32 %v17953_v34, %v22373_v9 }
 0x42c   : > { %v9614_v62 = vmax.f32 %v9582_v20, 0.0  ;;  %10207 = vst [vmem:[#allocation2 + $0x30] sm:$0xf] %v10206_v25  ;;  %v10199_v33 = vsel %vm22388_vm0, %v9901_v13, %v10198_v29  ;;  %v9619_v14 = vmax.f32 %v9587_v59, 0.0  ;;  %v9586_v15 = vadd.f32 %v17954_v22, %v22373_v9  ;;  %v17617_v4 = vpop.f32.mrb[12].mxu0 }
 0x42d   : > { %v9617_v40 = vmax.f32 %v9585_v61, 0.0  ;;  %10200 = vst [vmem:[#allocation2 + $0x24] sm:$0xf] %v10199_v33  ;;  %v16539_v39 = vpack.c.bf16 %v9616_v11, %v9616_v11  ;;  %v9620_v26 = vmax.f32 %v9588_v2, 0.0  ;;  %v17955_v0 = vadd.f32 %v17617_v4, %v24648_v17  ;;  %v9459_v7 = vpop.f32.mrb[13].mxu0 }
 0x42e   : > { %v16537_v41 = vpack.c.bf16 %v9614_v62, %v9614_v62  ;;  %v16542_v56 = vpack.c.bf16 %v9619_v14, %v9619_v14  ;;  %v9618_v57 = vmax.f32 %v9586_v15, 0.0  ;;  %v17956_v30 = vadd.f32 %v9459_v7, %v24649_v5  ;;  %v17618_v42 = vpop.f32.mrb[14].mxu0  ;;  %v10219_v62 = vld [vmem:[#allocation2 + $0x48] sm:$0xf]  ;;  %v10212_v2 = vld [vmem:[#allocation2 + $0x3c] sm:$0xf] }
 0x42f   : > { %v16540_v63 = vpack.c.bf16 %v9617_v40, %v9617_v40  ;;  %v9921_v54 = vshrl.u32 %v16539_v39, 16  ;;  %v9924_v53 = vshll.u32 %v16539_v39, 16  ;;  %v9462_v12 = vpop.f32.mrb[15].mxu0  ;;  %v16543_v22 = vpack.c.bf16 %v9620_v26, %v9620_v26 }
 0x430   : > { %v9904_v37 = vshrl.u32 %v16537_v41, 16  ;;  %v9907_v58 = vshll.u32 %v16537_v41, 16  ;;  %v9947_v31 = vshrl.u32 %v16542_v56, 16  ;;  %v9950_v51 = vshll.u32 %v16542_v56, 16 }
 0x431   : > { %v9930_v38 = vshrl.u32 %v16540_v63, 16  ;;  %v9933_v45 = vshll.u32 %v16540_v63, 16  ;;  %v9923_v43 = vrot.slane %v9921_v54, 7  ;;  %v16541_v50 = vpack.c.bf16 %v9618_v57, %v9618_v57 }
 0x432   : > { %v9906_v34 = vrot.slane %v9904_v37, 7  ;;  %v9949_v29 = vrot.slane %v9947_v31, 7  ;;  %v9591_v20 = vadd.f32 %v17955_v0, %v22373_v9  ;;  %v9589_v13 = vadd.f32 %v17956_v30, %v22373_v9  ;;  %v24651_v31 = vld [vmem:[#allocation24_spill] sm:$0xff] }
 0x433   : > { %v9932_v27 = vrot.slane %v9930_v38, 7  ;;  %v9926_v59 = vor.u32 %v9924_v53, %v9923_v43  ;;  %v9928_v61 = vrot.slane %v9923_v43, 4  ;;  %v9955_v56 = vshrl.u32 %v16543_v22, 16  ;;  %v24652_v38 = vld [vmem:[#allocation25_spill] sm:$0xff]  ;;  %v10223_v43 = vld [vmem:[#allocation2 + $0x50] sm:$0x1] }
 0x434   : > { %v9909_v25 = vor.u32 %v9907_v58, %v9906_v34  ;;  %v9911_v11 = vrot.slane %v9906_v34, 4  ;;  %v9952_v33 = vor.u32 %v9950_v51, %v9949_v29  ;;  %v9953_v14 = vrot.slane %v9949_v29, 4  ;;  %v17621_v4 = vpop.f32.mrb[16].mxu0  ;;  %v24650_v58 = vld [vmem:[#allocation23_spill] sm:$0xff]  ;;  %v24653_v29 = vld [vmem:[#allocation26_spill] sm:$0xff] }
 0x435   : > { %v9935_v40 = vor.u32 %v9933_v45, %v9932_v27  ;;  %v9936_v15 = vrot.slane %v9932_v27, 4  ;;  %v9927_v39 = vsel %vm22395_vm1, %v9919_v48, %v9926_v59  ;;  %v10210_v41 = vsel %vm22272_vm10, %v9928_v61, %v10209_v23  ;;  %v9475_v0 = vpop.f32.mrb[17].mxu0 }
 0x436   : > { %v9910_v26 = vsel %vm22395_vm1, %v9902_v1, %v9909_v25  ;;  %v10203_v17 = vsel %vm22272_vm10, %v9911_v11, %v10202_v3  ;;  %10208 = vst.msk [vmem:[#allocation2 + $0x34] sm:$0xf] %vm9641_vm13, %v9927_v39  ;;  %10211 = vst [vmem:[#allocation2 + $0x38] sm:$0x1] %v10210_v41  ;;  %v10220_v7 = vsel %vm22388_vm0, %v9952_v33, %v10219_v62  ;;  %v9958_v63 = vshll.u32 %v16543_v22, 16  ;;  %v17622_v57 = vpop.f32.mrb[18].mxu0 }
 0x437   : > { %10201 = vst.msk [vmem:[#allocation2 + $0x28] sm:$0xf] %vm9641_vm13, %v9910_v26  ;;  %10204 = vst [vmem:[#allocation2 + $0x2c] sm:$0x1] %v10203_v17  ;;  %v10213_v48 = vsel %vm22388_vm0, %v9935_v40, %v10212_v2  ;;  %v9938_v1 = vshrl.u32 %v16541_v50, 16  ;;  %v9941_v5 = vshll.u32 %v16541_v50, 16  ;;  %v17957_v23 = vadd.f32 %v17618_v42, %v24650_v58 }
 0x438   : > { %10221 = vst [vmem:[#allocation2 + $0x48] sm:$0xf] %v10220_v7  ;;  %10214 = vst [vmem:[#allocation2 + $0x3c] sm:$0xf] %v10213_v48  ;;  %v9623_v30 = vmax.f32 %v9591_v20, 0.0  ;;  %v9621_v54 = vmax.f32 %v9589_v13, 0.0  ;;  %v17958_v51 = vadd.f32 %v9462_v12, %v24651_v31  ;;  %v17959_v45 = vadd.f32 %v17621_v4, %v24652_v38 }
 0x439   : > { %v22455_v53 = vpop.f32.mrb[19].mxu0  ;;  %v9957_v37 = vrot.slane %v9955_v56, 7  ;;  %v9940_v34 = vrot.slane %v9938_v1, 7  ;;  %v17960_v27 = vadd.f32 %v9475_v0, %v24653_v29  ;;  %v10216_v50 = vld [vmem:[#allocation2 + $0x44] sm:$0x1]  ;;  %v9592_v20 = vadd.f32 %v17957_v23, %v22373_v9 }
 0x43a   : > { %v16546_v3 = vpack.c.bf16 %v9623_v30, %v9623_v30  ;;  %v16544_v22 = vpack.c.bf16 %v9621_v54, %v9621_v54  ;;  %v9590_v13 = vadd.f32 %v17958_v51, %v22373_v9  ;;  %v9595_v56 = vadd.f32 %v17959_v45, %v22373_v9  ;;  %v10226_v30 = vld [vmem:[#allocation2 + $0x54] sm:$0xf]  ;;  %v10298_v29 = vld [vmem:[#allocation2 + $0xc] sm:$0xf] }
 0x43b   : > { %v9960_v59 = vor.u32 %v9958_v63, %v9957_v37  ;;  %v9962_v61 = vrot.slane %v9957_v37, 4  ;;  %v9943_v25 = vor.u32 %v9941_v5, %v9940_v34  ;;  %v9945_v11 = vrot.slane %v9940_v34, 4  ;;  %v24654_v37 = vld [vmem:[#allocation27_spill] sm:$0xff] }
 0x43c   : > { %v9981_v42 = vshrl.u32 %v16546_v3, 16  ;;  %v9984_v62 = vshll.u32 %v16546_v3, 16  ;;  %v9964_v33 = vshrl.u32 %v16544_v22, 16  ;;  %v9967_v40 = vshll.u32 %v16544_v22, 16  ;;  %v22467_v4 = vpop.f32.mrb[20].mxu0 }
 0x43d   : > { %v9961_v12 = vsel %vm22395_vm1, %v9953_v14, %v9960_v59  ;;  %v10224_v2 = vsel %vm22272_vm10, %v9962_v61, %v10223_v43  ;;  %v9944_v39 = vsel %vm22395_vm1, %v9936_v15, %v9943_v25  ;;  %v10217_v41 = vsel %vm22272_vm10, %v9945_v11, %v10216_v50  ;;  %v22474_v0 = vpop.f32.mrb[21].mxu0  ;;  %v10233_v14 = vld [vmem:[#allocation2 + $0x60] sm:$0xf]  ;;  %v10237_v59 = vld [vmem:[#allocation2 + $0x68] sm:$0x1] }
 0x43e   : > { %10222 = vst.msk [vmem:[#allocation2 + $0x4c] sm:$0xf] %vm9641_vm13, %v9961_v12  ;;  %10225 = vst [vmem:[#allocation2 + $0x50] sm:$0x1] %v10224_v2  ;;  %v9983_v26 = vrot.slane %v9981_v42, 7  ;;  %v9624_v17 = vmax.f32 %v9592_v20, 0.0  ;;  %v9593_v63 = vadd.f32 %v17960_v27, %v22373_v9  ;;  %v17961_v58 = vadd.f32 %v17622_v57, %v24654_v37 }
 0x43f   : > { %10215 = vst.msk [vmem:[#allocation2 + $0x40] sm:$0xf] %vm9641_vm13, %v9944_v39  ;;  %10218 = vst [vmem:[#allocation2 + $0x44] sm:$0x1] %v10217_v41  ;;  %v9966_v7 = vrot.slane %v9964_v33, 7  ;;  %v9622_v48 = vmax.f32 %v9590_v13, 0.0  ;;  %v17962_v11 = vadd.f32 %v22455_v53, %v21964_v28 }
 0x440   : > { %v22479_v1 = vpop.f32.mrb[22].mxu0  ;;  %v9986_v15 = vor.u32 %v9984_v62, %v9983_v26  ;;  %v9987_v5 = vrot.slane %v9983_v26, 4  ;;  %v16547_v54 = vpack.c.bf16 %v9624_v17, %v9624_v17  ;;  %v9627_v43 = vmax.f32 %v9595_v56, 0.0  ;;  %v10230_v41 = vld [vmem:[#allocation2 + $0x5c] sm:$0x1] }
 0x441   : > { %v22482_v23 = vpop.f32.mrb[23].mxu0  ;;  %v9969_v31 = vor.u32 %v9967_v40, %v9966_v7  ;;  %v9970_v51 = vrot.slane %v9966_v7, 4  ;;  %v16545_v38 = vpack.c.bf16 %v9622_v48, %v9622_v48  ;;  %v9625_v22 = vmax.f32 %v9593_v63, 0.0  ;;  %v10247_v63 = vld [vmem:[#allocation2 + $0x78] sm:$0xf] }
 0x442   : > { %v10234_v34 = vsel %vm22388_vm0, %v9986_v15, %v10233_v14  ;;  %v9989_v45 = vshrl.u32 %v16547_v54, 16  ;;  %v9992_v3 = vshll.u32 %v16547_v54, 16  ;;  %v16550_v50 = vpack.c.bf16 %v9627_v43, %v9627_v43  ;;  %v10240_v37 = vld [vmem:[#allocation2 + $0x6c] sm:$0xf] }
 0x443   : > { %10235 = vst [vmem:[#allocation2 + $0x60] sm:$0xf] %v10234_v34  ;;  %v10227_v27 = vsel %vm22388_vm0, %v9969_v31, %v10226_v30  ;;  %v9972_v61 = vshrl.u32 %v16545_v38, 16  ;;  %v9975_v57 = vshll.u32 %v16545_v38, 16  ;;  %v16548_v13 = vpack.c.bf16 %v9625_v22, %v9625_v22  ;;  %v10299_v31 = vld [vmem:[#allocation2 + $0x10] sm:$0xf] }
 0x444   : > { %10228 = vst [vmem:[#allocation2 + $0x54] sm:$0xf] %v10227_v27  ;;  %v9991_v20 = vrot.slane %v9989_v45, 7  ;;  %v9596_v25 = vadd.f32 %v17961_v58, %v22373_v9  ;;  %v10015_v62 = vshrl.u32 %v16550_v50, 16  ;;  %v10018_v12 = vshll.u32 %v16550_v50, 16  ;;  %v22491_v33 = vpop.f32.mrb[24].mxu0 }
 0x445   : > { %v9974_v42 = vrot.slane %v9972_v61, 7  ;;  %v10371_v2 = vshrl.u32 %v10298_v29, 16  ;;  %v9998_v26 = vshrl.u32 %v16548_v13, 16  ;;  %v10001_v17 = vshll.u32 %v16548_v13, 16  ;;  %v22493_v14 = vpop.f32.mrb[25].mxu0 }
 0x446   : > { %v9994_v40 = vor.u32 %v9992_v3, %v9991_v20  ;;  %v9996_v39 = vrot.slane %v9991_v20, 4  ;;  %v22495_v56 = vrot.slane %v10015_v62, 7  ;;  %v9628_v15 = vmax.f32 %v9596_v25, 0.0  ;;  %v22497_v28 = vpop.f32.mrb[26].mxu0  ;;  %v10331_v61 = vld [vmem:[#allocation2 + $0x14] sm:$0x1] }
 0x447   : > { %v9977_v7 = vor.u32 %v9975_v57, %v9974_v42  ;;  %v9979_v48 = vrot.slane %v9974_v42, 4  ;;  %v22503_v54 = vrot.slane %v9998_v26, 7  ;;  %v9594_v58 = vadd.f32 %v17962_v11, %v22373_v9  ;;  %v22506_v38 = vpop.f32.mrb[27].mxu0  ;;  %v10300_v13 = vld [vmem:[#allocation2 + $0x18] sm:$0xf] }
 0x448   : > { %v9995_v53 = vsel %vm22395_vm1, %v9987_v5, %v9994_v40  ;;  %v10238_v30 = vsel %vm22272_vm10, %v9996_v39, %v10237_v59  ;;  %v10020_v34 = vor.u32 %v10018_v12, %v22495_v56  ;;  %v10021_v45 = vrot.slane %v22495_v56, 4  ;;  %v10301_v12 = vld [vmem:[#allocation2 + $0x1c] sm:$0xf]  ;;  %v10251_v40 = vld [vmem:[#allocation2 + $0x80] sm:$0x1] }
 0x449   : > { %10236 = vst.msk [vmem:[#allocation2 + $0x64] sm:$0xf] %vm9641_vm13, %v9995_v53  ;;  %10239 = vst [vmem:[#allocation2 + $0x68] sm:$0x1] %v10238_v30  ;;  %v9978_v43 = vsel %vm22395_vm1, %v9970_v51, %v9977_v7  ;;  %v10231_v5 = vsel %vm22272_vm10, %v9979_v48, %v10230_v41  ;;  %v10003_v3 = vor.u32 %v10001_v17, %v22503_v54  ;;  %v10004_v22 = vrot.slane %v22503_v54, 4 }
 0x44a   : > { %10229 = vst.msk [vmem:[#allocation2 + $0x58] sm:$0xf] %vm9641_vm13, %v9978_v43  ;;  %10232 = vst [vmem:[#allocation2 + $0x5c] sm:$0x1] %v10231_v5  ;;  %v16551_v27 = vpack.c.bf16 %v9628_v15, %v9628_v15  ;;  %v9626_v59 = vmax.f32 %v9594_v58, 0.0  ;;  %v10248_v51 = vsel %vm22388_vm0, %v10020_v34, %v10247_v63  ;;  %v10373_v57 = vrot.slane %v10371_v2, 4 }
 0x44b   : > { %v10374_v50 = vshll.u32 %v10298_v29, 16  ;;  %v10380_v20 = vshll.u32 %v10299_v31, 16  ;;  %10249 = vst [vmem:[#allocation2 + $0x78] sm:$0xf] %v10248_v51  ;;  %v10241_v25 = vsel %vm22388_vm0, %v10003_v3, %v10240_v37  ;;  %v10384_v26 = vshrl.u32 %v10299_v31, 16 }
 0x44c   : > { %v10023_v11 = vshrl.u32 %v16551_v27, 16  ;;  %v10026_v42 = vshll.u32 %v16551_v27, 16  ;;  %v16549_v62 = vpack.c.bf16 %v9626_v59, %v9626_v59  ;;  %10242 = vst [vmem:[#allocation2 + $0x6c] sm:$0xf] %v10241_v25  ;;  %v10390_v17 = vshll.u32 %v10331_v61, 16  ;;  %v22522_v7 = vpop.f32.mrb[28].mxu0 }
 0x44d   : > { %v10376_v39 = vrot.slane %v10374_v50, 5  ;;  %v10382_v41 = vrot.slane %v10380_v20, 5  ;;  %v10395_v56 = vshrl.u32 %v10300_v13, 16  ;;  %v22524_v63 = vpop.f32.mrb[29].mxu0  ;;  %v10386_v53 = vrot.slane %v10384_v26, 4 }
 0x44e   : > { %v10025_v2 = vrot.slane %v10023_v11, 7  ;;  %v10006_v29 = vshrl.u32 %v16549_v62, 16  ;;  %v10009_v48 = vshll.u32 %v16549_v62, 16  ;;  %v10392_v30 = vrot.slane %v10390_v17, 5  ;;  %v22526_v37 = vpop.f32.mrb[30].mxu0 }
 0x44f   : > { %v10377_v15 = vor.u32 %v10376_v39, %v10373_v57  ;;  %v10398_v54 = vshll.u32 %v10300_v13, 16  ;;  %v10244_v34 = vld [vmem:[#allocation2 + $0x74] sm:$0x1]  ;;  %v10397_v31 = vrot.slane %v10395_v56, 4  ;;  %v22528_v3 = vpop.f32.mrb[31].mxu0  ;;  %v10387_v59 = vor.u32 %v10386_v53, %v10382_v41 }
 0x450   : > { %v10028_v58 = vor.u32 %v10026_v42, %v10025_v2  ;;  %v10030_v43 = vrot.slane %v10025_v2, 4  ;;  %v10008_v5 = vrot.slane %v10006_v29, 7  ;;  %v10332_v61 = vld [vmem:[#allocation2 + $0x20] sm:$0x1]  ;;  %v10404_v50 = vshll.u32 %v10301_v12, 16 }
 0x451   : > { %v10378_v27 = vrot.slane %v10377_v15, 4  ;;  %v10400_v51 = vrot.slane %v10398_v54, 5  ;;  %v10388_v42 = vrot.slane %v10387_v59, 4  ;;  %v10408_v17 = vshrl.u32 %v10301_v12, 16  ;;  %v10303_v29 = vld [vmem:[#allocation2 + $0x28] sm:$0xf] }
 0x452   : > { %v10029_v57 = vsel %vm22395_vm1, %v10021_v45, %v10028_v58  ;;  %v10252_v20 = vsel %vm22272_vm10, %v10030_v43, %v10251_v40  ;;  %v10011_v13 = vor.u32 %v10009_v48, %v10008_v5  ;;  %v10013_v25 = vrot.slane %v10008_v5, 4  ;;  %v10302_v40 = vld [vmem:[#allocation2 + $0x24] sm:$0xf]  ;;  %v22551_v12 = vld [vmem:[%s24329_s5 + $0x10] sm:$0xff]   ;;  %v13697_v6 = vld [vmem:[#allocation2 + $0x60] sm:$0xf] }
 0x453   : > { %10250 = vst.msk [vmem:[#allocation2 + $0x7c] sm:$0xf] %vm9641_vm13, %v10029_v57  ;;  %10253 = vst [vmem:[#allocation2 + $0x80] sm:$0x1] %v10252_v20  ;;  %v10383_v11 = vsel %vm19559_vm7, %v10378_v27, %v10382_v41  ;;  %v10401_v62 = vor.u32 %v10400_v51, %v10397_v31  ;;  %v10406_v39 = vrot.slane %v10404_v50, 5  ;;  %v10414_v2 = vshll.u32 %v10332_v61, 16 }
 0x454   : > { %v10012_v26 = vsel %vm22395_vm1, %v10004_v22, %v10011_v13  ;;  %v10245_v45 = vsel %vm22272_vm10, %v10013_v25, %v10244_v34  ;;  %v10393_v48 = vsel %vm19559_vm7, %v10388_v42, %v10392_v30  ;;  %v17963_v56 = vadd.f32 %v22467_v4, %v21970_v32  ;;  %v10333_v25 = vld [vmem:[#allocation2 + $0x2c] sm:$0x1] }
 0x455   : > { %10243 = vst.msk [vmem:[#allocation2 + $0x70] sm:$0xf] %vm9641_vm13, %v10012_v26  ;;  %10246 = vst [vmem:[#allocation2 + $0x74] sm:$0x1] %v10245_v45  ;;  %v10402_v41 = vrot.slane %v10401_v62, 4  ;;  %v17964_v22 = vadd.f32 %v22474_v0, %v21972_v24  ;;  %v16170_v15 = vcombine.low %v10383_v11, %v10393_v48  ;;  %v10410_v53 = vrot.slane %v10408_v17, 4 }
 0x456   : > { %v10416_v54 = vrot.slane %v10414_v2, 5  ;;  %v17965_v58 = vadd.f32 %v22479_v1, %v21977_v47  ;;  %v9599_v43 = vadd.f32 %v17963_v56, %v22373_v9  ;;  %v17966_v24 = vadd.f32 %v22482_v23, %v21983_v35  ;;  %v10261_v56 = vld [vmem:[#allocation2 + $0x90] sm:$0xf] }
 0x457   : > { %v10407_v30 = vsel %vm19559_vm7, %v10402_v41, %v10406_v39  ;;  %v9597_v32 = vadd.f32 %v17964_v22, %v22373_v9  ;;  %17638 = vmatmul.mubr.msk.bf16.vlgmr.msra.gmra.mrb[32].mxu1 %vm10787_vm14, %v16170_v15  ;;  %v10411_v4 = vor.u32 %v10410_v53, %v10406_v39  ;;  %v10419_v5 = vshrl.u32 %v10302_v40, 16 }
 0x458   : > { %v9600_v0 = vadd.f32 %v17965_v58, %v22373_v9  ;;  %v10422_v34 = vshll.u32 %v10302_v40, 16  ;;  %17670 = vmatpush3.bf16.msra.mxu1 %v22343_v18  ;;  %v9631_v47 = vmax.f32 %v9599_v43, 0.0  ;;  %v9598_v31 = vadd.f32 %v17966_v24, %v22373_v9 }
 0x459   : > { %v9629_v1 = vmax.f32 %v9597_v32, 0.0  ;;  %v10428_v27 = vshll.u32 %v10303_v29, 16  ;;  %v10412_v59 = vrot.slane %v10411_v4, 4  ;;  %v10421_v51 = vrot.slane %v10419_v5, 4  ;;  %17703 = vmatprep.subr.bf16.mxu1 %v22551_v12  ;;  %v10265_v5 = vld [vmem:[#allocation2 + $0x98] sm:$0x1] }
 0x45a   : > { %v9632_v61 = vmax.f32 %v9600_v0, 0.0  ;;  %v10424_v50 = vrot.slane %v10422_v34, 5  ;;  %v16554_v35 = vpack.c.bf16 %v9631_v47, %v9631_v47  ;;  %v9630_v57 = vmax.f32 %v9598_v31, 0.0 }
 0x45b   : > { %v16552_v23 = vpack.c.bf16 %v9629_v1, %v9629_v1  ;;  %v22566_v20 = vrot.slane %v10428_v27, 5  ;;  %v10417_v13 = vsel %vm19559_vm7, %v10412_v59, %v10416_v54  ;;  %v10432_v42 = vshrl.u32 %v10303_v29, 16  ;;  %v10254_v54 = vld [vmem:[#allocation2 + $0x84] sm:$0xf]  ;;  %v22574_v27 = vld [vmem:[#allocation2 + $0x30] sm:$0xf] }
 0x45c   : > { %v16555_v18 = vpack.c.bf16 %v9632_v61, %v9632_v61  ;;  %v10425_v11 = vor.u32 %v10424_v50, %v10421_v51  ;;  %v16171_v62 = vcombine.low %v10407_v30, %v10417_v13  ;;  %v10049_v39 = vshrl.u32 %v16554_v35, 16  ;;  %v22576_v59 = vld [vmem:[#allocation2 + $0x34] sm:$0xf]  ;;  %v10258_v50 = vld [vmem:[#allocation2 + $0x8c] sm:$0x1] }
 0x45d   : > { %v10052_v26 = vshll.u32 %v16554_v35, 16  ;;  %v10032_v45 = vshrl.u32 %v16552_v23, 16  ;;  %v10035_v17 = vshll.u32 %v16552_v23, 16  ;;  %v16553_v48 = vpack.c.bf16 %v9630_v57, %v9630_v57  ;;  %v10334_v57 = vld [vmem:[#allocation2 + $0x38] sm:$0x1] }
 0x45e   : > { %v10057_v2 = vshrl.u32 %v16555_v18, 16  ;;  %v10060_v40 = vshll.u32 %v16555_v18, 16  ;;  %17641 = vmatprep.mubr.msk.bf16.mxu1 %vm10787_vm14, %v16171_v62  ;;  %v10051_v41 = vrot.slane %v10049_v39, 7  ;;  %v10426_v15 = vrot.slane %v10425_v11, 4 }
 0x45f   : > { %v10034_v22 = vrot.slane %v10032_v45, 7  ;;  %v10434_v53 = vrot.slane %v10432_v42, 4  ;;  %v10040_v43 = vshrl.u32 %v16553_v48, 16  ;;  %v10043_v32 = vshll.u32 %v16553_v48, 16 }
 0x460   : > { %v10059_v58 = vrot.slane %v10057_v2, 7  ;;  %v10438_v29 = vshll.u32 %v10333_v25, 16  ;;  %v10054_v30 = vor.u32 %v10052_v26, %v10051_v41  ;;  %v10055_v24 = vrot.slane %v10051_v41, 4  ;;  %v22591_v26 = vld [vmem:[#allocation2 + $0x3c] sm:$0xf] }
 0x461   : > { %v10037_v4 = vor.u32 %v10035_v17, %v10034_v22  ;;  %v10038_v0 = vrot.slane %v10034_v22, 4  ;;  %v10042_v1 = vrot.slane %v10040_v43, 7  ;;  %v10431_v31 = vsel %vm19559_vm7, %v10426_v15, %v22566_v20 }
 0x462   : > { %v10062_v34 = vor.u32 %v10060_v40, %v10059_v58  ;;  %v10064_v47 = vrot.slane %v10059_v58, 4  ;;  %v10262_v61 = vsel %vm22388_vm0, %v10054_v30, %v10261_v56  ;;  %v10435_v35 = vor.u32 %v10434_v53, %v22566_v20 }
 0x463   : > { %v10255_v51 = vsel %vm22388_vm0, %v10037_v4, %v10254_v54  ;;  %v10440_v23 = vrot.slane %v10438_v29, 5  ;;  %10263 = vst [vmem:[#allocation2 + $0x90] sm:$0xf] %v10262_v61  ;;  %v10045_v25 = vor.u32 %v10043_v32, %v10042_v1  ;;  %v10047_v11 = vrot.slane %v10042_v1, 4 }
 0x464   : > { %10256 = vst [vmem:[#allocation2 + $0x84] sm:$0xf] %v10255_v51  ;;  %v10063_v13 = vsel %vm22395_vm1, %v10055_v24, %v10062_v34  ;;  %v10266_v18 = vsel %vm22272_vm10, %v10064_v47, %v10265_v5  ;;  %v10436_v42 = vrot.slane %v10435_v35, 4  ;;  %v10443_v62 = vshrl.u32 %v22574_v27, 16 }
 0x465   : > { %10264 = vst.msk [vmem:[#allocation2 + $0x94] sm:$0xf] %vm9641_vm13, %v10063_v13  ;;  %10267 = vst [vmem:[#allocation2 + $0x98] sm:$0x1] %v10266_v18  ;;  %v10446_v20 = vshll.u32 %v22574_v27, 16  ;;  %v10452_v39 = vshll.u32 %v22576_v59, 16  ;;  %v10046_v45 = vsel %vm22395_vm1, %v10038_v0, %v10045_v25  ;;  %v10259_v17 = vsel %vm22272_vm10, %v10047_v11, %v10258_v50 }
 0x466   : > { %v10456_v2 = vshrl.u32 %v22576_v59, 16  ;;  %v10462_v40 = vshll.u32 %v10334_v57, 16  ;;  %10257 = vst.msk [vmem:[#allocation2 + $0x88] sm:$0xf] %vm9641_vm13, %v10046_v45  ;;  %10260 = vst [vmem:[#allocation2 + $0x8c] sm:$0x1] %v10259_v17  ;;  %v10441_v48 = vsel %vm19559_vm7, %v10436_v42, %v10440_v23  ;;  %v17967_v58 = vadd.f32 %v22491_v33, %v21992_v46 }
 0x467   : > { %v10445_v41 = vrot.slane %v10443_v62, 4  ;;  %v10448_v56 = vrot.slane %v10446_v20, 5  ;;  %v10454_v22 = vrot.slane %v10452_v39, 5  ;;  %v16172_v15 = vcombine.low %v10431_v31, %v10441_v48  ;;  %v22623_v25 = vld [vmem:[#allocation2 + $0x44] sm:$0x1] }
 0x468   : > { %v10458_v53 = vrot.slane %v10456_v2, 4  ;;  %v10464_v54 = vrot.slane %v10462_v40, 5  ;;  %v17968_v32 = vadd.f32 %v22493_v14, %v21995_v8  ;;  %v17969_v29 = vadd.f32 %v22497_v28, %v22003_v19  ;;  %v22616_v19 = vld [vmem:[#allocation2 + $0x40] sm:$0xf]  ;;  %v22625_v11 = vld [vmem:[#allocation2 + $0x48] sm:$0xf] }
 0x469   : > { %v10449_v43 = vor.u32 %v10448_v56, %v10445_v41  ;;  %v17970_v30 = vadd.f32 %v22506_v38, %v22011_v60  ;;  %17642 = vmatmul.mubr.msk.bf16.gmra.mrb[36].mxu1 %vm10787_vm14, %v16172_v15  ;;  %v9603_v4 = vadd.f32 %v17967_v58, %v22373_v9  ;;  %v10467_v0 = vshrl.u32 %v22591_v26, 16  ;;  %v10275_v45 = vld [vmem:[#allocation2 + $0xa8] sm:$0xf] }
 0x46a   : > { %v10459_v24 = vor.u32 %v10458_v53, %v10454_v22  ;;  %v10470_v5 = vshll.u32 %v22591_v26, 16  ;;  %v9601_v33 = vadd.f32 %v17968_v32, %v22373_v9  ;;  %v9604_v8 = vadd.f32 %v17969_v29, %v22373_v9 }
 0x46b   : > { %v10450_v46 = vrot.slane %v10449_v43, 4  ;;  %v9602_v14 = vadd.f32 %v17970_v30, %v22373_v9  ;;  %v9635_v60 = vmax.f32 %v9603_v4, 0.0  ;;  %v10469_v38 = vrot.slane %v10467_v0, 4 }
 0x46c   : > { %v10460_v28 = vrot.slane %v10459_v24, 4  ;;  %v10472_v34 = vrot.slane %v10470_v5, 5  ;;  %v9633_v1 = vmax.f32 %v9601_v33, 0.0  ;;  %v9636_v31 = vmax.f32 %v9604_v8, 0.0  ;;  %v10279_v24 = vld [vmem:[#allocation2 + $0xb0] sm:$0x1] }
 0x46d   : > { %v10455_v47 = vsel %vm19559_vm7, %v10450_v46, %v10454_v22  ;;  %v9634_v61 = vmax.f32 %v9602_v14, 0.0  ;;  %v16558_v50 = vpack.c.bf16 %v9635_v60, %v9635_v60  ;;  %v10476_v23 = vshll.u32 %v22616_v19, 16  ;;  %v10272_v14 = vld [vmem:[#allocation2 + $0xa4] sm:$0x1] }
 0x46e   : > { %v10465_v51 = vsel %vm19559_vm7, %v10460_v28, %v10464_v54  ;;  %v10473_v35 = vor.u32 %v10472_v34, %v10469_v38  ;;  %v16556_v57 = vpack.c.bf16 %v9633_v1, %v9633_v1  ;;  %v16559_v13 = vpack.c.bf16 %v9636_v31, %v9636_v31  ;;  %v10268_v54 = vld [vmem:[#allocation2 + $0x9c] sm:$0xf]  ;;  %v22643_v1 = vld [vmem:[#allocation2 + $0x50] sm:$0x1] }
 0x46f   : > { %v16173_v9 = vcombine.low %v10455_v47, %v10465_v51  ;;  %v16557_v18 = vpack.c.bf16 %v9634_v61, %v9634_v61  ;;  %v10083_v42 = vshrl.u32 %v16558_v50, 16  ;;  %v10086_v62 = vshll.u32 %v16558_v50, 16  ;;  %v22641_v47 = vld [vmem:[#allocation2 + $0x4c] sm:$0xf] }
 0x470   : > { %v22627_v20 = vrot.slane %v10473_v35, 4  ;;  %v22629_v39 = vrot.slane %v10476_v23, 5  ;;  %v10066_v17 = vshrl.u32 %v16556_v57, 16  ;;  %v10069_v2 = vshll.u32 %v16556_v57, 16 }
 0x471   : > { %17645 = vmatprep.mubr.msk.bf16.mxu1 %vm10787_vm14, %v16173_v9  ;;  %v10091_v40 = vshrl.u32 %v16559_v13, 16  ;;  %v10094_v48 = vshll.u32 %v16559_v13, 16  ;;  %v10085_v41 = vrot.slane %v10083_v42, 7  ;;  %v10074_v56 = vshrl.u32 %v16557_v18, 16 }
 0x472   : > { %v10077_v22 = vshll.u32 %v16557_v18, 16  ;;  %v10479_v15 = vsel %vm19559_vm7, %v22627_v20, %v22629_v39  ;;  %v10068_v53 = vrot.slane %v10066_v17, 7  ;;  %v10480_v43 = vshrl.u32 %v22616_v19, 16 }
 0x473   : > { %v10093_v58 = vrot.slane %v10091_v40, 7  ;;  %v10486_v32 = vshll.u32 %v22623_v25, 16  ;;  %v10088_v29 = vor.u32 %v10086_v62, %v10085_v41  ;;  %v10089_v30 = vrot.slane %v10085_v41, 4 }
 0x474   : > { %v10076_v4 = vrot.slane %v10074_v56, 7  ;;  %v10491_v0 = vshrl.u32 %v22625_v11, 16  ;;  %v10071_v5 = vor.u32 %v10069_v2, %v10068_v53  ;;  %v10072_v46 = vrot.slane %v10068_v53, 4  ;;  %v22668_v56 = vld [vmem:[#allocation2 + $0x54] sm:$0xf] }
 0x475   : > { %v10096_v33 = vor.u32 %v10094_v48, %v10093_v58  ;;  %v10098_v8 = vrot.slane %v10093_v58, 4  ;;  %v10276_v28 = vsel %vm22388_vm0, %v10088_v29, %v10275_v45  ;;  %v10482_v34 = vrot.slane %v10480_v43, 4  ;;  %v19038_v53 = vld [vmem:[%s24328_s4] ss:$0 sm:$0xff] }
 0x476   : > { %v10079_v60 = vor.u32 %v10077_v22, %v10076_v4  ;;  %v10081_v38 = vrot.slane %v10076_v4, 4  ;;  %10277 = vst [vmem:[#allocation2 + $0xa8] sm:$0xf] %v10276_v28  ;;  %v10269_v31 = vsel %vm22388_vm0, %v10071_v5, %v10268_v54  ;;  %v10488_v50 = vrot.slane %v10486_v32, 5 }
 0x477   : > { %v10097_v61 = vsel %vm22395_vm1, %v10089_v30, %v10096_v33  ;;  %v10280_v51 = vsel %vm22272_vm10, %v10098_v8, %v10279_v24  ;;  %10270 = vst [vmem:[#allocation2 + $0x9c] sm:$0xf] %v10269_v31  ;;  %v10483_v9 = vor.u32 %v10482_v34, %v22629_v39  ;;  %v10493_v57 = vrot.slane %v10491_v0, 4 }
 0x478   : > { %10278 = vst.msk [vmem:[#allocation2 + $0xac] sm:$0xf] %vm9641_vm13, %v10097_v61  ;;  %10281 = vst [vmem:[#allocation2 + $0xb0] sm:$0x1] %v10280_v51  ;;  %v10080_v35 = vsel %vm22395_vm1, %v10072_v46, %v10079_v60  ;;  %v10273_v23 = vsel %vm22272_vm10, %v10081_v38, %v10272_v14  ;;  %v10494_v13 = vshll.u32 %v22625_v11, 16  ;;  %v10500_v18 = vshll.u32 %v22641_v47, 16 }
 0x479   : > { %10271 = vst.msk [vmem:[#allocation2 + $0xa0] sm:$0xf] %vm9641_vm13, %v10080_v35  ;;  %10274 = vst [vmem:[#allocation2 + $0xa4] sm:$0x1] %v10273_v23  ;;  %v10504_v42 = vshrl.u32 %v22641_v47, 16  ;;  %v10510_v62 = vshll.u32 %v22643_v1, 16  ;;  %v17971_v45 = vadd.f32 %v22522_v7, %v22029_v16  ;;  %v17972_v17 = vadd.f32 %v22524_v63, %v22032_v36 }
 0x47a   : > { %v10484_v20 = vrot.slane %v10483_v9, 4  ;;  %v17973_v39 = vadd.f32 %v22526_v37, %v22034_v10  ;;  %v10496_v2 = vrot.slane %v10494_v13, 5  ;;  %v10502_v40 = vrot.slane %v10500_v18, 5  ;;  %v24655_v10 = vld [vmem:[#allocation28_spill] sm:$0xff]  ;;  %v22684_v60 = vld [vmem:[#allocation2 + $0x58] sm:$0xf] }
 0x47b   : > { %v10506_v48 = vrot.slane %v10504_v42, 4  ;;  %v10512_v41 = vrot.slane %v10510_v62, 5  ;;  %v9607_v16 = vadd.f32 %v19038_v53, %v17971_v45  ;;  %v9605_v7 = vadd.f32 %v19038_v53, %v17972_v17  ;;  %v10282_v23 = vld [vmem:[#allocation2 + $0xb4] sm:$0xf]  ;;  %v10293_v62 = vld [vmem:[#allocation2 + $0xc8] sm:$0x1] }
 0x47c   : > { %v10489_v22 = vsel %vm19559_vm7, %v10484_v20, %v10488_v50  ;;  %v9608_v54 = vadd.f32 %v19038_v53, %v17973_v39  ;;  %v10497_v63 = vor.u32 %v10496_v2, %v10493_v57  ;;  %v17974_v37 = vadd.f32 %v22528_v3, %v24655_v10  ;;  %v10289_v50 = vld [vmem:[#allocation2 + $0xc0] sm:$0xf] }
 0x47d   : > { %v16174_v36 = vcombine.low %v10479_v15, %v10489_v22  ;;  %v10507_v58 = vor.u32 %v10506_v48, %v10502_v40  ;;  %v9639_v43 = vmax.f32 %v9607_v16, 0.0  ;;  %v9637_v32 = vmax.f32 %v9605_v7, 0.0  ;;  %v22689_v48 = vld [vmem:[#allocation2 + $0x60] sm:$0xf] }
 0x47e   : > { %v9640_v29 = vmax.f32 %v9608_v54, 0.0  ;;  %v10515_v30 = vshrl.u32 %v22668_v56, 16  ;;  %v10498_v24 = vrot.slane %v10497_v63, 4  ;;  %v9606_v0 = vadd.f32 %v19038_v53, %v17974_v37  ;;  %v22691_v63 = vld [vmem:[#allocation2 + $0x5c] sm:$0x1] }
 0x47f   : > { %17646 = vmatmul.mubr.msk.bf16.gmra.mrb[40].mxu1 %vm10787_vm14, %v16174_v36  ;;  %v10508_v4 = vrot.slane %v10507_v58, 4  ;;  %v10518_v5 = vshll.u32 %v22668_v56, 16  ;;  %v16562_v46 = vpack.c.bf16 %v9639_v43, %v9639_v43  ;;  %v16560_v33 = vpack.c.bf16 %v9637_v32, %v9637_v32  ;;  %v10286_v43 = vld [vmem:[#allocation2 + $0xbc] sm:$0x1] }
 0x480   : > { %v16563_v15 = vpack.c.bf16 %v9640_v29, %v9640_v29  ;;  %v10517_v8 = vrot.slane %v10515_v30, 4  ;;  %v10503_v14 = vsel %vm19559_vm7, %v10498_v24, %v10502_v40  ;;  %v9638_v28 = vmax.f32 %v9606_v0, 0.0  ;;  %v22697_v30 = vld [vmem:[#allocation2 + $0x64] sm:$0xf]  ;;  %v23218_v55 = vld [vmem:[#allocation2 + $0xa0] sm:$0xf] }
 0x481   : > { %v10513_v3 = vsel %vm19559_vm7, %v10508_v4, %v10512_v41  ;;  %v10520_v38 = vrot.slane %v10518_v5, 5  ;;  %v10117_v31 = vshrl.u32 %v16562_v46, 16  ;;  %v10120_v61 = vshll.u32 %v16562_v46, 16  ;;  %v22703_v46 = vld [vmem:[#allocation2 + $0x68] sm:$0x1] }
 0x482   : > { %v16175_v34 = vcombine.low %v10503_v14, %v10513_v3  ;;  %v10100_v51 = vshrl.u32 %v16560_v33, 16  ;;  %v10103_v35 = vshll.u32 %v16560_v33, 16  ;;  %v10125_v9 = vshrl.u32 %v16563_v15, 16  ;;  %v22705_v33 = vld [vmem:[#allocation2 + $0x6c] sm:$0xf] }
 0x483   : > { %v10128_v57 = vshll.u32 %v16563_v15, 16  ;;  %v16561_v13 = vpack.c.bf16 %v9638_v28, %v9638_v28  ;;  %v10119_v18 = vrot.slane %v10117_v31, 7  ;;  %v10521_v20 = vor.u32 %v10520_v38, %v10517_v8  ;;  %v22712_v3 = vld [vmem:[#allocation2 + $0x70] sm:$0xf] }
 0x484   : > { %17649 = vmatprep.mubr.msk.bf16.mxu1 %vm10787_vm14, %v16175_v34  ;;  %v10102_v42 = vrot.slane %v10100_v51, 7  ;;  %v10524_v45 = vshll.u32 %v22684_v60, 16  ;;  %v10127_v17 = vrot.slane %v10125_v9, 7  ;;  %v10528_v40 = vshrl.u32 %v22684_v60, 16 }
 0x485   : > { %v10108_v39 = vshrl.u32 %v16561_v13, 16  ;;  %v10111_v2 = vshll.u32 %v16561_v13, 16  ;;  %v10122_v41 = vor.u32 %v10120_v61, %v10119_v18  ;;  %v10123_v22 = vrot.slane %v10119_v18, 4  ;;  %v22725_v13 = vld [vmem:[#allocation2 + $0x74] sm:$0x1] }
 0x486   : > { %v10105_v53 = vor.u32 %v10103_v35, %v10102_v42  ;;  %v10106_v16 = vrot.slane %v10102_v42, 4  ;;  %v10130_v7 = vor.u32 %v10128_v57, %v10127_v17  ;;  %v10132_v54 = vrot.slane %v10127_v17, 4  ;;  %v22728_v42 = vld [vmem:[#allocation2 + $0x7c] sm:$0xf] }
 0x487   : > { %v10110_v36 = vrot.slane %v10108_v39, 7  ;;  %v10522_v58 = vrot.slane %v10521_v20, 4  ;;  %v10290_v10 = vsel %vm22388_vm0, %v10122_v41, %v10289_v50  ;;  %v10526_v32 = vrot.slane %v10524_v45, 5 }
 0x488   : > { %v10283_v37 = vsel %vm22388_vm0, %v10105_v53, %v10282_v23  ;;  %v10530_v29 = vrot.slane %v10528_v40, 4  ;;  %10291 = vst [vmem:[#allocation2 + $0xc0] sm:$0xf] %v10290_v10  ;;  %v10131_v24 = vsel %vm22395_vm1, %v10123_v22, %v10130_v7  ;;  %v10294_v4 = vsel %vm22272_vm10, %v10132_v54, %v10293_v62  ;;  %v22722_v23 = vld [vmem:[#allocation2 + $0x78] sm:$0xf] }
 0x489   : > { %10284 = vst [vmem:[#allocation2 + $0xb4] sm:$0xf] %v10283_v37  ;;  %v10113_v0 = vor.u32 %v10111_v2, %v10110_v36  ;;  %v10115_v5 = vrot.slane %v10110_v36, 4  ;;  %10292 = vst.msk [vmem:[#allocation2 + $0xc4] sm:$0xf] %vm9641_vm13, %v10131_v24  ;;  %v10527_v44 = vsel %vm19559_vm7, %v10522_v58, %v10526_v32  ;;  %v10534_v8 = vshll.u32 %v22691_v63, 16 }
 0x48a   : > { %10295 = vst [vmem:[#allocation2 + $0xc8] sm:$0x1] %v10294_v4  ;;  %v10531_v15 = vor.u32 %v10530_v29, %v10526_v32  ;;  %v10539_v14 = vshrl.u32 %v22689_v48, 16  ;;  %v10542_v34 = vshll.u32 %v22689_v48, 16  ;;  %v10548_v31 = vshll.u32 %v22697_v30, 16 }
 0x48b   : > { %v10114_v28 = vsel %vm22395_vm1, %v10106_v16, %v10113_v0  ;;  %v10287_v38 = vsel %vm22272_vm10, %v10115_v5, %v10286_v43  ;;  %v10536_v51 = vrot.slane %v10534_v8, 5  ;;  %v10552_v35 = vshrl.u32 %v22697_v30, 16  ;;  %v22737_v58 = vld [vmem:[#allocation2 + $0x80] sm:$0x1] }
 0x48c   : > { %10285 = vst.msk [vmem:[#allocation2 + $0xb8] sm:$0xf] %vm9641_vm13, %v10114_v28  ;;  %10288 = vst [vmem:[#allocation2 + $0xbc] sm:$0x1] %v10287_v38  ;;  %v10532_v61 = vrot.slane %v10531_v15, 4  ;;  %v10541_v50 = vrot.slane %v10539_v14, 4 }
 0x48d   : > { %v10544_v9 = vrot.slane %v10542_v34, 5  ;;  %v10550_v52 = vrot.slane %v10548_v31, 5  ;;  %v10558_v57 = vshll.u32 %v22703_v46, 16  ;;  %v10563_v18 = vshrl.u32 %v22705_v33, 16  ;;  %v22744_v15 = vld [vmem:[#allocation2 + $0x84] sm:$0xf] }
 0x48e   : > { %v10537_v62 = vsel %vm19559_vm7, %v10532_v61, %v10536_v51  ;;  %v10554_v20 = vrot.slane %v10552_v35, 4  ;;  %v10566_v45 = vshll.u32 %v22705_v33, 16  ;;  %v10572_v17 = vshll.u32 %v22712_v3, 16  ;;  %v22748_v34 = vld [vmem:[#allocation2 + $0x88] sm:$0xf] }
 0x48f   : > { %v16176_v39 = vcombine.low %v10527_v44, %v10537_v62  ;;  %v10545_v2 = vor.u32 %v10544_v9, %v10541_v50  ;;  %v10560_v40 = vrot.slane %v10558_v57, 5  ;;  %v10565_v41 = vrot.slane %v10563_v18, 4  ;;  %v22756_v18 = vld [vmem:[#allocation2 + $0x90] sm:$0xf] }
 0x490   : > { %v10555_v22 = vor.u32 %v10554_v20, %v10550_v52  ;;  %v10568_v53 = vrot.slane %v10566_v45, 5  ;;  %v10574_v16 = vrot.slane %v10572_v17, 5  ;;  %v10576_v7 = vshrl.u32 %v22712_v3, 16  ;;  %v22759_v17 = vld [vmem:[#allocation2 + $0x8c] sm:$0x1] }
 0x491   : > { %17650 = vmatmul.mubr.msk.bf16.gmra.mrb[44].mxu1 %vm10787_vm14, %v16176_v39  ;;  %v10546_v54 = vrot.slane %v10545_v2, 4  ;;  %v10582_v36 = vshll.u32 %v22725_v13, 16  ;;  %v10587_v10 = vshrl.u32 %v22722_v23, 16  ;;  %v10590_v37 = vshll.u32 %v22722_v23, 16 }
 0x492   : > { %v10556_v43 = vrot.slane %v10555_v22, 4  ;;  %v10569_v32 = vor.u32 %v10568_v53, %v10565_v41  ;;  %v10578_v29 = vrot.slane %v10576_v7, 4  ;;  %v10596_v24 = vshll.u32 %v22728_v42, 16  ;;  %v22765_v53 = vld [vmem:[#allocation2 + $0x94] sm:$0xf] }
 0x493   : > { %v10551_v4 = vsel %vm19559_vm7, %v10546_v54, %v10550_v52  ;;  %v10584_v0 = vrot.slane %v10582_v36, 5  ;;  %v10589_v5 = vrot.slane %v10587_v10, 4  ;;  %v10592_v44 = vrot.slane %v10590_v37, 5 }
 0x494   : > { %v10561_v8 = vsel %vm19559_vm7, %v10556_v43, %v10560_v40  ;;  %v10570_v14 = vrot.slane %v10569_v32, 4  ;;  %v10579_v28 = vor.u32 %v10578_v29, %v10574_v16  ;;  %v10598_v38 = vrot.slane %v10596_v24, 5  ;;  %v22770_v32 = vld [vmem:[#allocation2 + $0x98] sm:$0x1] }
 0x495   : > { %v16177_v31 = vcombine.low %v10551_v4, %v10561_v8  ;;  %v10593_v61 = vor.u32 %v10592_v44, %v10589_v5  ;;  %v10600_v51 = vshrl.u32 %v22728_v42, 16  ;;  %v10606_v50 = vshll.u32 %v22737_v58, 16  ;;  %v22777_v44 = vld [vmem:[#allocation2 + $0x9c] sm:$0xf] }
 0x496   : > { %v10575_v35 = vsel %vm19559_vm7, %v10570_v14, %v10574_v16  ;;  %v10580_v9 = vrot.slane %v10579_v28, 4  ;;  %v10611_v52 = vshrl.u32 %v22744_v15, 16  ;;  %v10614_v57 = vshll.u32 %v22744_v15, 16 }
 0x497   : > { %17653 = vmatprep.mubr.msk.bf16.mxu1 %vm10787_vm14, %v16177_v31  ;;  %v10594_v62 = vrot.slane %v10593_v61, 4  ;;  %v10602_v20 = vrot.slane %v10600_v51, 4  ;;  %v10608_v45 = vrot.slane %v10606_v50, 5  ;;  %v10620_v39 = vshll.u32 %v22748_v34, 16  ;;  %v22779_v31 = vld [vmem:[#allocation2 + $0xa0] sm:$0xf] }
 0x498   : > { %v10585_v2 = vsel %vm19559_vm7, %v10580_v9, %v10584_v0  ;;  %v10613_v40 = vrot.slane %v10611_v52, 4  ;;  %v10616_v41 = vrot.slane %v10614_v57, 5  ;;  %v10624_v22 = vshrl.u32 %v22748_v34, 16  ;;  %v22783_v9 = vld [vmem:[#allocation2 + $0xa4] sm:$0x1] }
 0x499   : > { %v16178_v16 = vcombine.low %v10575_v35, %v10585_v2  ;;  %v10599_v7 = vsel %vm19559_vm7, %v10594_v62, %v10598_v38  ;;  %v10603_v54 = vor.u32 %v10602_v20, %v10598_v38  ;;  %v10622_v36 = vrot.slane %v10620_v39, 5  ;;  %v22788_v39 = vld [vmem:[#allocation2 + $0xa8] sm:$0xf] }
 0x49a   : > { %v10617_v10 = vor.u32 %v10616_v41, %v10613_v40  ;;  %v10626_v37 = vrot.slane %v10624_v22, 4  ;;  %v10630_v43 = vshll.u32 %v22759_v17, 16  ;;  %v10635_v29 = vshrl.u32 %v22756_v18, 16 }
 0x49b   : > { %17654 = vmatmul.mubr.msk.bf16.gmra.mrb[48].mxu1 %vm10787_vm14, %v16178_v16  ;;  %v10604_v24 = vrot.slane %v10603_v54, 4  ;;  %v10638_v4 = vshll.u32 %v22756_v18, 16  ;;  %v10644_v0 = vshll.u32 %v22765_v53, 16  ;;  %v10648_v5 = vshrl.u32 %v22765_v53, 16 }
 0x49c   : > { %v10618_v8 = vrot.slane %v10617_v10, 4  ;;  %v10627_v14 = vor.u32 %v10626_v37, %v10622_v36  ;;  %v10632_v28 = vrot.slane %v10630_v43, 5  ;;  %v10637_v38 = vrot.slane %v10635_v29, 4  ;;  %v22797_v29 = vld [vmem:[#allocation2 + $0xac] sm:$0xf] }
 0x49d   : > { %v10609_v61 = vsel %vm19559_vm7, %v10604_v24, %v10608_v45  ;;  %v10640_v51 = vrot.slane %v10638_v4, 5  ;;  %v10646_v50 = vrot.slane %v10644_v0, 5  ;;  %v10650_v35 = vrot.slane %v10648_v5, 4 }
 0x49e   : > { %v16179_v52 = vcombine.low %v10599_v7, %v10609_v61  ;;  %v10623_v57 = vsel %vm19559_vm7, %v10618_v8, %v10622_v36  ;;  %v10628_v62 = vrot.slane %v10627_v14, 4  ;;  %v10654_v20 = vshll.u32 %v22770_v32, 16  ;;  %v22800_v8 = vld [vmem:[#allocation2 + $0xb0] sm:$0x1] }
 0x49f   : > { %v10641_v2 = vor.u32 %v10640_v51, %v10637_v38  ;;  %v10651_v40 = vor.u32 %v10650_v35, %v10646_v50  ;;  %v10659_v41 = vshrl.u32 %v22777_v44, 16  ;;  %v10662_v45 = vshll.u32 %v22777_v44, 16  ;;  %v22809_v51 = vld [vmem:[#allocation2 + $0xb4] sm:$0xf] }
 0x4a0   : > { %17657 = vmatprep.mubr.msk.bf16.mxu1 %vm10787_vm14, %v16179_v52  ;;  %v10633_v22 = vsel %vm19559_vm7, %v10628_v62, %v10632_v28  ;;  %v10656_v16 = vrot.slane %v10654_v20, 5  ;;  %v10668_v7 = vshll.u32 %v22779_v31, 16  ;;  %v10672_v54 = vshrl.u32 %v22779_v31, 16 }
 0x4a1   : > { %v16180_v36 = vcombine.low %v10623_v57, %v10633_v22  ;;  %v10642_v10 = vrot.slane %v10641_v2, 4  ;;  %v10652_v37 = vrot.slane %v10651_v40, 4  ;;  %v10661_v43 = vrot.slane %v10659_v41, 4 }
 0x4a2   : > { %v10664_v24 = vrot.slane %v10662_v45, 5  ;;  %v10670_v4 = vrot.slane %v10668_v7, 5  ;;  %v10674_v0 = vrot.slane %v10672_v54, 4  ;;  %v10678_v5 = vshll.u32 %v22783_v9, 16 }
 0x4a3   : > { %17658 = vmatmul.mubr.msk.bf16.gmra.mrb[52].mxu1 %vm10787_vm14, %v16180_v36  ;;  %v10647_v14 = vsel %vm19559_vm7, %v10642_v10, %v10646_v50  ;;  %v10657_v28 = vsel %vm19559_vm7, %v10652_v37, %v10656_v16  ;;  %v10683_v38 = vshrl.u32 %v22788_v39, 16  ;;  %v10686_v61 = vshll.u32 %v22788_v39, 16  ;;  %v22816_v10 = vld [vmem:[#allocation2 + $0xb8] sm:$0xf] }
 0x4a4   : > { %v16181_v35 = vcombine.low %v10647_v14, %v10657_v28  ;;  %v10665_v52 = vor.u32 %v10664_v24, %v10661_v43  ;;  %v10675_v57 = vor.u32 %v10674_v0, %v10670_v4  ;;  %v10680_v62 = vrot.slane %v10678_v5, 5  ;;  %v22823_v0 = vld [vmem:[#allocation2 + $0xbc] sm:$0x1] }
 0x4a5   : > { %v10685_v20 = vrot.slane %v10683_v38, 4  ;;  %v10688_v2 = vrot.slane %v10686_v61, 5  ;;  %v10692_v40 = vshll.u32 %v22797_v29, 16  ;;  %v10696_v41 = vshrl.u32 %v22797_v29, 16 }
 0x4a6   : > { %17661 = vmatprep.mubr.msk.bf16.mxu1 %vm10787_vm14, %v16181_v35  ;;  %v10666_v50 = vrot.slane %v10665_v52, 4  ;;  %v10676_v45 = vrot.slane %v10675_v57, 4  ;;  %v10702_v22 = vshll.u32 %v22800_v8, 16  ;;  %v10707_v16 = vshrl.u32 %v22809_v51, 16 }
 0x4a7   : > { %v10689_v7 = vor.u32 %v10688_v2, %v10685_v20  ;;  %v10694_v54 = vrot.slane %v10692_v40, 5  ;;  %v10698_v36 = vrot.slane %v10696_v41, 4  ;;  %v10710_v37 = vshll.u32 %v22809_v51, 16 }
 0x4a8   : > { %v10671_v43 = vsel %vm19559_vm7, %v10666_v50, %v10670_v4  ;;  %v10681_v24 = vsel %vm19559_vm7, %v10676_v45, %v10680_v62  ;;  %v10709_v5 = vrot.slane %v10707_v16, 4  ;;  %v10716_v35 = vshll.u32 %v22816_v10, 16 }
 0x4a9   : > { %v16182_v14 = vcombine.low %v10671_v43, %v10681_v24  ;;  %v10690_v28 = vrot.slane %v10689_v7, 4  ;;  %v10699_v38 = vor.u32 %v10698_v36, %v10694_v54  ;;  %v10712_v61 = vrot.slane %v10710_v37, 5 }
 0x4aa   : > { %v10720_v52 = vshrl.u32 %v22816_v10, 16  ;;  %v10704_v20 = vrot.slane %v10702_v22, 5  ;;  %v10726_v4 = vshll.u32 %v22823_v0, 16  ;;  %v10718_v40 = vrot.slane %v10716_v35, 5 }
 0x4ab   : > { %17662 = vmatmul.mubr.msk.bf16.gmra.mrb[56].mxu1 %vm10787_vm14, %v16182_v14  ;;  %v10700_v57 = vrot.slane %v10699_v38, 4  ;;  %v10713_v2 = vor.u32 %v10712_v61, %v10709_v5  ;;  %v10695_v41 = vsel %vm19559_vm7, %v10690_v28, %v10694_v54  ;;  %v16209_v37 = vcombine.low %v22668_v56, %v22684_v60  ;;  %v11302_v28 = vld [vmem:[#allocation2 + $0x78] sm:$0xe]  ;;  %v11305_v54 = vld [vmem:[#allocation2 + $0x9c] sm:$0xe] }
 0x4ac   : > { %v10722_v62 = vrot.slane %v10720_v52, 4  ;;  %v10728_v36 = vrot.slane %v10726_v4, 5  ;;  %v11401_v14 = vrot.slane %v22703_v46, 5  ;;  %v11412_v46 = vrot.slane %v22728_v42, 5 }
 0x4ad   : > { %v10705_v50 = vsel %vm19559_vm7, %v10700_v57, %v10704_v20  ;;  %v10714_v16 = vrot.slane %v10713_v2, 4  ;;  %v19039_v57 = vld [vmem:[#allocation2] sm:$0xf]  ;;  %v22856_v20 = vld [vmem:[#allocation2 + $0x4] sm:$0xf]  ;;  %v16208_v43 = vcombine.low %v22625_v11, %v22641_v47  ;;  %v24659_v56 = vcombine.low %v22744_v15, %v22748_v34 }
 0x4ae   : > { %v16183_v45 = vcombine.low %v10695_v41, %v10705_v50  ;;  %v10723_v7 = vor.u32 %v10722_v62, %v10718_v40  ;;  %v16202_v2 = vcombine.low %v19039_v57, %v22856_v20  ;;  %v19041_v62 = vld [vmem:[#allocation2 + $0xc] sm:$0xf]  ;;  %v22861_v41 = vld [vmem:[#allocation2 + $0x10] sm:$0xf]  ;;  %v11398_v57 = vrot.slane %v22697_v30, 5 }
 0x4af   : > { %v10719_v35 = vsel %vm19559_vm7, %v10714_v16, %v10718_v40  ;;  %v16203_v50 = vcombine.low %v19041_v62, %v22861_v41  ;;  %v22867_v40 = vld [vmem:[%s24329_s5 + $0x18] sm:$0xff]   ;;  %v22877_v62 = vld [vmem:[#allocation2 + $0x28] sm:$0xf] }
 0x4b0   : > { %17665 = vmatprep.mubr.msk.bf16.mxu1 %vm10787_vm14, %v16183_v45  ;;  %v10724_v24 = vrot.slane %v10723_v7, 4  ;;  %v11299_v45 = vld [vmem:[#allocation2 + $0x54] sm:$0xe]  ;;  %v19043_v16 = vld [vmem:[#allocation2 + $0x18] sm:$0xf] }
 0x4b1   : > { %v22869_v7 = vld [vmem:[#allocation2 + $0x1c] sm:$0xf] }
 0x4b2   : > { %v10729_v52 = vsel %vm19559_vm7, %v10724_v24, %v10728_v36  ;;  %v16204_v36 = vcombine.low %v19043_v16, %v22869_v7  ;;  %v11300_v24 = vld [vmem:[#allocation2 + $0x60] sm:$0xe] }
 0x4b3   : > { %v16184_v4 = vcombine.low %v10719_v35, %v10729_v52  ;;  %v11391_v35 = vrot.slane %v22684_v60, 5  ;;  %v16242_v52 = vrot.slane %v11299_v45, 9  ;;  %v16243_v38 = vrot.slane %v11300_v24, 9 }
 0x4b4   : > { %v11405_v24 = vrot.slane %v22712_v3, 5  ;;  %v24660_v60 = vcombine.low %v22756_v18, %v22765_v53  ;;  %v11349_v18 = vrot.slane %v22861_v41, 5 }
 0x4b5   : > { %17666 = vmatmul.mubr.msk.bf16.gmra.mrb[60].mxu1 %vm10787_vm14, %v16184_v4  ;;  %v19045_v4 = vld [vmem:[#allocation2 + $0x24] sm:$0xf]  ;;  %v11393_v16 = vrot.slane %v11391_v35, 4  ;;  %v22886_v45 = vsel %vm19142_vm3, %v16242_v52, %v11391_v35  ;;  %v22895_v5 = vsel %vm19142_vm3, %v16243_v38, %v11398_v57  ;;  %v16245_v35 = vrot.slane %v11302_v28, 9 }
 0x4b6   : > { %17671 = vmatprep.mubr.msk.bf16.mxu1 %vm10787_vm14, %v16202_v2  ;;  %v11301_v2 = vld [vmem:[#allocation2 + $0x6c] sm:$0xe]  ;;  %v16205_v61 = vcombine.low %v19045_v4, %v22877_v62  ;;  %v11303_v52 = vld [vmem:[#allocation2 + $0x84] sm:$0xe]  ;;  %v11415_v28 = vrot.slane %v22737_v58, 5 }
 0x4bd   : > { %17672 = vmatmul.mubr.msk.bf16.vlgmr.msra.gmra.mrb[32].mxu1 %vm10787_vm14, %v16203_v50  ;;  %v11394_v50 = vrot.slane %v22691_v63, 5  ;;  %v16244_v63 = vrot.slane %v11301_v2, 9  ;;  %v11408_v2 = vrot.slane %v22725_v13, 5  ;;  %v11426_v13 = vrot.slane %v22765_v53, 5 }
 0x4be   : > { %17704 = vmatpush3.bf16.msra.mxu1 %v22551_v12  ;;  %17675 = vmatprep.mubr.msk.bf16.mxu1 %vm10787_vm14, %v16204_v36  ;;  %v16206_v12 = vcombine.low %v22574_v27, %v22576_v59  ;;  %v11400_v36 = vrot.slane %v11398_v57, 4  ;;  %v11407_v57 = vrot.slane %v11405_v24, 4  ;;  %v22914_v27 = vsel %vm19142_vm3, %v16245_v35, %v11412_v46 }
 0x4bf   : > { %17737 = vmatprep.subr.bf16.mxu1 %v22867_v40  ;;  %v22891_v4 = vsel %vm19142_vm3, %v11393_v16, %v11394_v50  ;;  %v22909_v38 = vsel %vm19142_vm3, %v16244_v63, %v11405_v24  ;;  %v11304_v50 = vld [vmem:[#allocation2 + $0x90] sm:$0xe]  ;;  %v16246_v63 = vrot.slane %v11303_v52, 9  ;;  %v11422_v24 = vrot.slane %v22759_v17, 5 }
 0x4c0   : > { %v22902_v59 = vsel %vm19142_vm3, %v11400_v36, %v11401_v14  ;;  %v11414_v14 = vrot.slane %v11412_v46, 4  ;;  %v11419_v36 = vrot.slane %v22748_v34, 5  ;;  %v22921_v16 = vsel %vm19142_vm3, %v11407_v57, %v11408_v2 }
 0x4c1   : > { %v16207_v57 = vcombine.low %v22591_v26, %v22616_v19  ;;  %v11428_v52 = vrot.slane %v11426_v13, 4  ;;  %v11429_v2 = vrot.slane %v22770_v32, 5  ;;  %v11433_v26 = vrot.slane %v22779_v31, 5 }
 0x4c2   : > { %v22930_v58 = vsel %vm19142_vm3, %v11414_v14, %v11415_v28  ;;  %v11421_v46 = vrot.slane %v11419_v36, 4  ;;  %v22939_v35 = vsel %vm19142_vm3, %v16246_v63, %v11419_v36  ;;  %v16248_v17 = vrot.slane %v11305_v54, 9  ;;  %v11307_v63 = vld [vmem:[#allocation2 + $0xb4] sm:$0xe] }
 0x4c3   : > { %v22954_v32 = vsel %vm19142_vm3, %v11428_v52, %v11429_v2  ;;  %v11440_v36 = vrot.slane %v22797_v29, 5  ;;  %v11443_v28 = vrot.slane %v22800_v8, 5  ;;  %v11447_v52 = vrot.slane %v22816_v10, 5 }
 0x4c4   : > { %v22943_v14 = vsel %vm19142_vm3, %v11421_v46, %v11422_v24  ;;  %v11435_v46 = vrot.slane %v11433_v26, 4  ;;  %v22966_v54 = vsel %vm19142_vm3, %v16248_v17, %v11433_v26  ;;  %v11450_v26 = vrot.slane %v22823_v0, 5  ;;  %v12853_v24 = vld [vmem:[#allocation2 + $0x90] sm:$0xe] }
 0x4c5   : > { %17676 = vmatmul.mubr.msk.bf16.gmra.mrb[36].mxu1 %vm10787_vm14, %v16205_v61  ;;  %v16247_v61 = vrot.slane %v11304_v50, 9  ;;  %v11442_v22 = vrot.slane %v11440_v36, 4  ;;  %v11449_v17 = vrot.slane %v11447_v52, 4  ;;  %v24656_v0 = vcombine.low %v22689_v48, %v22697_v30  ;;  %v11292_v30 = vld [vmem:[#allocation2] sm:$0xe] }
 0x4c6   : > { %17679 = vmatprep.mubr.msk.bf16.mxu1 %vm10787_vm14, %v16206_v12  ;;  %v11306_v12 = vld [vmem:[#allocation2 + $0xa8] sm:$0xe]  ;;  %v11342_v48 = vrot.slane %v22856_v20, 5  ;;  %v11356_v53 = vrot.slane %v22869_v7, 5  ;;  %v11363_v7 = vrot.slane %v22877_v62, 5 }
 0x4c7   : > { %v22947_v50 = vsel %vm19142_vm3, %v16247_v61, %v11426_v13  ;;  %v11436_v13 = vrot.slane %v22783_v9, 5  ;;  %v16249_v61 = vrot.slane %v11306_v12, 9  ;;  %v16250_v12 = vrot.slane %v11307_v63, 9 }
 0x4c8   : > { %v22981_v8 = vsel %vm19142_vm3, %v11442_v22, %v11443_v28  ;;  %v24658_v28 = vcombine.low %v22722_v23, %v22728_v42  ;;  %v24661_v23 = vcombine.low %v22777_v44, %v22779_v31  ;;  %v24662_v42 = vcombine.low %v22788_v39, %v22797_v29  ;;  %v11293_v31 = vld [vmem:[#allocation2 + $0xc] sm:$0xe]  ;;  %v19048_v29 = vld [vmem:[#allocation2 + $0x14] sm:$0x1] }
 0x4c9   : > { %v22970_v2 = vsel %vm19142_vm3, %v11435_v46, %v11436_v13  ;;  %v22974_v9 = vsel %vm19142_vm3, %v16249_v61, %v11440_v36  ;;  %v22989_v36 = vsel %vm19142_vm3, %v16250_v12, %v11447_v52  ;;  %v11351_v13 = vrot.slane %v11349_v18, 4  ;;  %v11294_v52 = vld [vmem:[#allocation2 + $0x18] sm:$0xe]  ;;  %v19049_v12 = vld [vmem:[#allocation2 + $0x20] sm:$0x1] }
 0x4ca   : > { %v24663_v44 = vcombine.low %v22809_v51, %v22816_v10  ;;  %v11358_v39 = vrot.slane %v11356_v53, 4  ;;  %v11352_v61 = vrot.slane %v19048_v29, 5  ;;  %v19050_v10 = vld [vmem:[#allocation2 + $0x34] sm:$0xf]  ;;  %v11365_v62 = vrot.slane %v11363_v7, 4 }
 0x4cc   : > { %v11353_v41 = vsel %vm19142_vm3, %v11351_v13, %v11352_v61 }
 0x4cd   : > { %17680 = vmatmul.mubr.msk.bf16.gmra.mrb[40].mxu1 %vm10787_vm14, %v16207_v57  ;;  %v22993_v57 = vsel %vm19142_vm3, %v11449_v17, %v11450_v26  ;;  %v11359_v17 = vrot.slane %v19049_v12, 5  ;;  %v16236_v26 = vrot.slane %v11293_v31, 9 }
 0x4ce   : > { %17683 = vmatprep.mubr.msk.bf16.mxu1 %vm10787_vm14, %v16208_v43  ;;  %v24657_v43 = vcombine.low %v22705_v33, %v22712_v3  ;;  %v16235_v33 = vrot.slane %v11292_v30, 9  ;;  %v11344_v3 = vrot.slane %v11342_v48, 4 }
 0x4cf   : > { %v11360_v51 = vsel %vm19142_vm3, %v11358_v39, %v11359_v17  ;;  %v11298_v17 = vld [vmem:[#allocation2 + $0x48] sm:$0xe] }
 0x4d0   : > { %v11343_v15 = vsel %vm19142_vm3, %v16235_v33, %v11342_v48  ;;  %v23053_v48 = vld [vmem:[%s24329_s5 + $0x20] sm:$0xff]  }
 0x4d1   : > { %v11295_v33 = vld [vmem:[#allocation2 + $0x24] sm:$0xe] }
 0x4d5   : > { %17684 = vmatmul.mubr.msk.bf16.gmra.mrb[44].mxu1 %vm10787_vm14, %v16209_v37  ;;  %v19047_v37 = vld [vmem:[#allocation2 + $0x8] sm:$0x1] }
 0x4d6   : > { %17687 = vmatprep.mubr.msk.bf16.mxu1 %vm10787_vm14, %v24656_v0  ;;  %v11345_v63 = vrot.slane %v19047_v37, 5  ;;  %v16237_v0 = vrot.slane %v11294_v52, 9  ;;  %v19051_v37 = vld [vmem:[#allocation2 + $0x2c] sm:$0x1]  ;;  %v11297_v52 = vld [vmem:[#allocation2 + $0x3c] sm:$0xe] }
 0x4d8   : > { %v11346_v34 = vsel %vm19142_vm3, %v11344_v3, %v11345_v63  ;;  %v11366_v63 = vrot.slane %v19051_v37, 5  ;;  %v24664_v37 = vcombine.low %v22886_v45, %v22891_v4 }
 0x4d9   : > { %v16253_v20 = vcombine.low %v11343_v15, %v11346_v34  ;;  %v16238_v34 = vrot.slane %v11295_v33, 9 }
 0x4dd   : > { %17688 = vmatmul.mubr.msk.bf16.gmra.mrb[48].mxu1 %vm10787_vm14, %v24657_v43  ;;  %v11370_v43 = vrot.slane %v19050_v10, 5 }
 0x4de   : > { %17691 = vmatprep.mubr.msk.bf16.mxu1 %vm10787_vm14, %v24658_v28  ;;  %v11350_v28 = vsel %vm19142_vm3, %v16236_v26, %v11349_v18  ;;  %v11367_v18 = vsel %vm19142_vm3, %v11365_v62, %v11366_v63  ;;  %v16240_v26 = vrot.slane %v11297_v52, 9  ;;  %v23091_v62 = vld [vmem:[#allocation2 + $0x4c] sm:$0xf]  ;;  %v23098_v63 = vld [vmem:[#allocation2 + $0x40] sm:$0xf] }
 0x4df   : > { %v11372_v3 = vrot.slane %v11370_v43, 4 }
 0x4e5   : > { %17692 = vmatmul.mubr.msk.bf16.gmra.mrb[52].mxu1 %vm10787_vm14, %v24659_v56  ;;  %v16254_v56 = vcombine.low %v11350_v28, %v11353_v41 }
 0x4e6   : > { %17695 = vmatprep.mubr.msk.bf16.mxu1 %vm10787_vm14, %v24660_v60  ;;  %v11357_v60 = vsel %vm19142_vm3, %v16237_v0, %v11356_v53  ;;  %v11377_v53 = vrot.slane %v22616_v19, 5  ;;  %v11380_v19 = vrot.slane %v22623_v25, 5  ;;  %v23083_v25 = vld [vmem:[#allocation2 + $0x28] sm:$0xf] }
 0x4e7   : > { %v16255_v30 = vcombine.low %v11357_v60, %v11360_v51  ;;  %v23087_v60 = vld [vmem:[#allocation2 + $0x34] sm:$0xf]  ;;  %v12922_v33 = vrot.slane %v23083_v25, 5 }
 0x4e8   : > { %v11379_v61 = vrot.slane %v11377_v53, 4  ;;  %v11378_v51 = vsel %vm19142_vm3, %v16240_v26, %v11377_v53  ;;  %v23130_v26 = vld [vmem:[#allocation2 + $0x68] sm:$0x1] }
 0x4e9   : > { %v12924_v53 = vrot.slane %v12922_v33, 4 }
 0x4ea   : > { %v11381_v41 = vsel %vm19142_vm3, %v11379_v61, %v11380_v19  ;;  %v12943_v19 = vrot.slane %v23091_v62, 5 }
 0x4eb   : > { %v16258_v10 = vcombine.low %v11378_v51, %v11381_v41 }
 0x4ed   : > { %17696 = vmatmul.mubr.msk.bf16.gmra.mrb[56].mxu1 %vm10787_vm14, %v24661_v23  ;;  %v11296_v23 = vld [vmem:[#allocation2 + $0x30] sm:$0xe] }
 0x4ee   : > { %17699 = vmatprep.mubr.msk.bf16.mxu1 %vm10787_vm14, %v24662_v42  ;;  %v19052_v42 = vld [vmem:[#allocation2 + $0x38] sm:$0x1] }
 0x4ef   : > { %v11373_v15 = vrot.slane %v19052_v42, 5  ;;  %v12846_v42 = vld [vmem:[#allocation2 + $0x3c] sm:$0xe] }
 0x4f1   : > { %v11374_v13 = vsel %vm19142_vm3, %v11372_v3, %v11373_v15  ;;  %v12845_v3 = vld [vmem:[#allocation2 + $0x30] sm:$0xe]  ;;  %v24665_v15 = vcombine.low %v22895_v5, %v22902_v59  ;;  %v23116_v5 = vld [vmem:[#allocation2 + $0x5c] sm:$0x1] }
 0x4f2   : > { %v16359_v4 = vrot.slane %v12845_v3, 9  ;;  %v23146_v3 = vld [vmem:[#allocation2 + $0x70] sm:$0xf] }
 0x4f5   : > { %17700 = vmatmul.mubr.msk.bf16.gmra.mrb[60].mxu1 %vm10787_vm14, %v24663_v44  ;;  %v11364_v44 = vsel %vm19142_vm3, %v16238_v34, %v11363_v7  ;;  %v16241_v7 = vrot.slane %v11298_v17, 9  ;;  %v23104_v34 = vld [vmem:[#allocation2 + $0x44] sm:$0x1]  ;;  %v12848_v17 = vld [vmem:[#allocation2 + $0x54] sm:$0xe] }
 0x4f6   : > { %17705 = vmatprep.mubr.msk.bf16.mxu1 %vm10787_vm14, %v16253_v20  ;;  %v16239_v20 = vrot.slane %v11296_v23, 9  ;;  %v16256_v31 = vcombine.low %v11364_v44, %v11367_v18  ;;  %v23106_v18 = vld [vmem:[#allocation2 + $0x50] sm:$0x1]  ;;  %v12847_v44 = vld [vmem:[#allocation2 + $0x48] sm:$0xe] }
 0x4f7   : > { %v16361_v51 = vrot.slane %v12847_v44, 9  ;;  %v23200_v44 = vld [vmem:[#allocation2 + $0x8c] sm:$0x1] }
 0x4f8   : > { %v11371_v39 = vsel %vm19142_vm3, %v16239_v20, %v11370_v43 }
 0x4f9   : > { %v16257_v29 = vcombine.low %v11371_v39, %v11374_v13  ;;  %v23109_v13 = vld [vmem:[#allocation2 + $0x58] sm:$0xf]  ;;  %v16360_v39 = vrot.slane %v12846_v42, 9  ;;  %v23156_v42 = vsel %vm19142_vm3, %v16361_v51, %v12943_v19  ;;  %v23186_v51 = vld [vmem:[#allocation2 + $0x88] sm:$0xf] }
 0x4fa   : > { %24672 = vst [vmem:[#allocation37_spill] sm:$0xff] %v23156_v42  ;;  %v12978_v11 = vrot.slane %v23186_v51, 5 }
 0x4fd   : > { %17706 = vmatmul.mubr.msk.bf16.vlgmr.msra.gmra.mrb[32].mxu1 %vm10787_vm14, %v16254_v56  ;;  %v23085_v56 = vld [vmem:[#allocation2 + $0x2c] sm:$0x1] }
 0x4fe   : > { %17738 = vmatpush3.bf16.msra.mxu1 %v22867_v40  ;;  %17709 = vmatprep.mubr.msk.bf16.mxu1 %vm10787_vm14, %v16255_v30  ;;  %v11384_v40 = vrot.slane %v22641_v47, 5  ;;  %v11387_v47 = vrot.slane %v22643_v1, 5  ;;  %v12844_v1 = vld [vmem:[#allocation2 + $0x24] sm:$0xe]  ;;  %v23089_v30 = vld [vmem:[#allocation2 + $0x38] sm:$0x1] }
 0x4ff   : > { %17771 = vmatprep.subr.bf16.mxu1 %v23053_v48  ;;  %v16358_v23 = vrot.slane %v12844_v1, 9  ;;  %v12925_v20 = vrot.slane %v23085_v56, 5  ;;  %v12950_v1 = vrot.slane %v23109_v13, 5 }
 0x500   : > { %v11386_v12 = vrot.slane %v11384_v40, 4  ;;  %v11385_v43 = vsel %vm19142_vm3, %v16241_v7, %v11384_v40  ;;  %v12929_v40 = vrot.slane %v23087_v60, 5 }
 0x501   : > { %v23113_v45 = vsel %vm19142_vm3, %v16358_v23, %v12922_v33  ;;  %v23120_v59 = vsel %vm19142_vm3, %v12924_v53, %v12925_v20  ;;  %v12849_v33 = vld [vmem:[#allocation2 + $0x60] sm:$0xe]  ;;  %v12850_v53 = vld [vmem:[#allocation2 + $0x6c] sm:$0xe]  ;;  %v24673_v20 = vcombine.low %v22909_v38, %v22921_v16  ;;  %v23177_v16 = vld [vmem:[#allocation2 + $0x80] sm:$0x1] }
 0x502   : > { %v11388_v0 = vsel %vm19142_vm3, %v11386_v12, %v11387_v47  ;;  %24666 = vst [vmem:[#allocation31_spill] sm:$0xff] %v23113_v45  ;;  %24667 = vst [vmem:[#allocation32_spill] sm:$0xff] %v23120_v59  ;;  %v12931_v52 = vrot.slane %v12929_v40, 4  ;;  %v12939_v12 = vrot.slane %v23104_v34, 5  ;;  %v23128_v47 = vld [vmem:[#allocation2 + $0x64] sm:$0xf]  ;;  %v23134_v41 = vsel %vm19142_vm3, %v16359_v4, %v12929_v40 }
 0x503   : > { %v16259_v28 = vcombine.low %v11385_v43, %v11388_v0  ;;  %24668 = vst [vmem:[#allocation33_spill] sm:$0xff] %v23134_v41  ;;  %v12945_v43 = vrot.slane %v12943_v19, 4  ;;  %v23162_v4 = vld [vmem:[#allocation2 + $0x74] sm:$0x1]  ;;  %v23164_v40 = vld [vmem:[#allocation2 + $0x7c] sm:$0xf] }
 0x504   : > { %v16363_v19 = vrot.slane %v12849_v33, 9  ;;  %v12852_v38 = vld [vmem:[#allocation2 + $0x84] sm:$0xe]  ;;  %v12974_v46 = vrot.slane %v23177_v16, 5  ;;  %v12133_v59 = vld [vmem:[#allocation2 + $0x60] sm:$0xf] }
 0x505   : > { %17710 = vmatmul.mubr.msk.bf16.gmra.mrb[36].mxu1 %vm10787_vm14, %v16256_v31  ;;  %v12932_v31 = vrot.slane %v23089_v30, 5 }
 0x506   : > { %17713 = vmatprep.mubr.msk.bf16.mxu1 %vm10787_vm14, %v16257_v29  ;;  %v12936_v29 = vrot.slane %v23098_v63, 5 }
 0x508   : > { %v23138_v7 = vsel %vm19142_vm3, %v16360_v39, %v12936_v29  ;;  %v12938_v0 = vrot.slane %v12936_v29, 4  ;;  %v12952_v39 = vrot.slane %v12950_v1, 4  ;;  %v12953_v29 = vrot.slane %v23116_v5, 5 }
 0x509   : > { %24669 = vst [vmem:[#allocation34_spill] sm:$0xff] %v23138_v7 }
 0x50a   : > { %v23152_v23 = vsel %vm19142_vm3, %v12938_v0, %v12939_v12  ;;  %v12851_v0 = vld [vmem:[#allocation2 + $0x78] sm:$0xe] }
 0x50b   : > { %24671 = vst [vmem:[#allocation36_spill] sm:$0xff] %v23152_v23 }
 0x50d   : > { %17714 = vmatmul.mubr.msk.bf16.gmra.mrb[40].mxu1 %vm10787_vm14, %v16258_v10  ;;  %v23142_v10 = vsel %vm19142_vm3, %v12931_v52, %v12932_v31  ;;  %v24675_v52 = vcombine.low %v22914_v27, %v22930_v58  ;;  %v23190_v27 = vsel %vm19142_vm3, %v12952_v39, %v12953_v29  ;;  %v12960_v58 = vrot.slane %v23130_v26, 5  ;;  %v23202_v39 = vld [vmem:[#allocation2 + $0x98] sm:$0x1] }
 0x50e   : > { %17717 = vmatprep.mubr.msk.bf16.mxu1 %vm10787_vm14, %v16259_v28  ;;  %24670 = vst [vmem:[#allocation35_spill] sm:$0xff] %v23142_v10  ;;  %v12946_v28 = vrot.slane %v23106_v18, 5  ;;  %24677 = vst [vmem:[#allocation40_spill] sm:$0xff] %v23190_v27  ;;  %v16367_v27 = vrot.slane %v12853_v24, 9 }
 0x510   : > { %v23170_v31 = vsel %vm19142_vm3, %v12945_v43, %v12946_v28  ;;  %v16364_v43 = vrot.slane %v12850_v53, 9  ;;  %v12964_v28 = vrot.slane %v23146_v3, 5 }
 0x511   : > { %24674 = vst [vmem:[#allocation38_spill] sm:$0xff] %v23170_v31 }
 0x512   : > { %v23210_v29 = vsel %vm19142_vm3, %v16364_v43, %v12964_v28  ;;  %v12854_v43 = vld [vmem:[#allocation2 + $0x9c] sm:$0xe] }
 0x513   : > { %24679 = vst [vmem:[#allocation46_spill] sm:$0xff] %v23210_v29  ;;  %v23280_v29 = vld [vmem:[#allocation2 + $0xc4] sm:$0xf] }
 0x515   : > { %17718 = vmatmul.mubr.msk.bf16.gmra.mrb[44].mxu1 %vm10787_vm14, %v24664_v37  ;;  %v12966_v37 = vrot.slane %v12964_v28, 4  ;;  %v23230_v28 = vld [vmem:[#allocation2 + $0xa4] sm:$0x1] }
 0x516   : > { %17721 = vmatprep.mubr.msk.bf16.mxu1 %vm10787_vm14, %v24665_v15  ;;  %v16362_v15 = vrot.slane %v12848_v17, 9  ;;  %v12957_v17 = vrot.slane %v23128_v47, 5 }
 0x518   : > { %v23183_v12 = vsel %vm19142_vm3, %v16362_v15, %v12950_v1  ;;  %v12959_v33 = vrot.slane %v12957_v17, 4  ;;  %v12967_v15 = vrot.slane %v23162_v4, 5  ;;  %v23206_v53 = vsel %vm19142_vm3, %v16363_v19, %v12957_v17 }
 0x519   : > { %24676 = vst [vmem:[#allocation39_spill] sm:$0xff] %v23183_v12  ;;  %24678 = vst [vmem:[#allocation41_spill] sm:$0xff] %v23206_v53  ;;  %v16365_v1 = vrot.slane %v12851_v0, 9 }
 0x51a   : > { %v23214_v61 = vsel %vm19142_vm3, %v12959_v33, %v12960_v58  ;;  %v23224_v17 = vsel %vm19142_vm3, %v12966_v37, %v12967_v15  ;;  %v16366_v58 = vrot.slane %v12852_v38, 9  ;;  %v23232_v33 = vld [vmem:[#allocation2 + $0xac] sm:$0xf]  ;;  %v12981_v37 = vrot.slane %v23200_v44, 5  ;;  %v23245_v38 = vld [vmem:[#allocation2 + $0xb0] sm:$0x1] }
 0x51b   : > { %24680 = vst [vmem:[#allocation42_spill] sm:$0xff] %v23214_v61  ;;  %24681 = vst [vmem:[#allocation43_spill] sm:$0xff] %v23224_v17  ;;  %v12980_v61 = vrot.slane %v12978_v11, 4  ;;  %v24687_v17 = vcombine.low %v22947_v50, %v22954_v32  ;;  %v16368_v15 = vrot.slane %v12854_v43, 9  ;;  %v12999_v50 = vrot.slane %v23232_v33, 5 }
 0x51c   : > { %24685 = vst [vmem:[#allocation3_spill] sm:$0xff] %v23245_v38  ;;  %v12856_v32 = vld [vmem:[#allocation2 + $0xb4] sm:$0xe] }
 0x51d   : > { %17722 = vmatmul.mubr.msk.bf16.gmra.mrb[48].mxu1 %vm10787_vm14, %v24673_v20  ;;  %v23194_v20 = vld [vmem:[#allocation2 + $0x94] sm:$0xf] }
 0x51e   : > { %17725 = vmatprep.mubr.msk.bf16.mxu1 %vm10787_vm14, %v24675_v52  ;;  %v12971_v52 = vrot.slane %v23164_v40, 5 }
 0x520   : > { %v12973_v22 = vrot.slane %v12971_v52, 4  ;;  %v23228_v0 = vsel %vm19142_vm3, %v16365_v1, %v12971_v52  ;;  %v24684_v1 = vcombine.low %v22939_v35, %v22943_v14  ;;  %v23251_v52 = vsel %vm19142_vm3, %v16366_v58, %v12978_v11  ;;  %v23258_v35 = vld [vmem:[#allocation2 + $0xb8] sm:$0xf] }
 0x521   : > { %24682 = vst [vmem:[#allocation44_spill] sm:$0xff] %v23228_v0  ;;  %24686 = vst [vmem:[#allocation12_spill] sm:$0xff] %v23251_v52  ;;  %v23262_v14 = vsel %vm19142_vm3, %v12980_v61, %v12981_v37  ;;  %v12992_v11 = vrot.slane %v23218_v55, 5  ;;  %v13002_v52 = vrot.slane %v23245_v38, 5  ;;  %v13006_v53 = vrot.slane %v23258_v35, 5 }
 0x522   : > { %v23238_v19 = vsel %vm19142_vm3, %v12973_v22, %v12974_v46  ;;  %v12985_v46 = vrot.slane %v23194_v20, 5  ;;  %v12855_v22 = vld [vmem:[#allocation2 + $0xa8] sm:$0xe]  ;;  %24688 = vst [vmem:[#allocation10_spill] sm:$0xff] %v23262_v14  ;;  %v13001_v14 = vrot.slane %v12999_v50, 4 }
 0x523   : > { %24683 = vst [vmem:[#allocation45_spill] sm:$0xff] %v23238_v19  ;;  %v12995_v19 = vrot.slane %v23230_v28, 5  ;;  %v23278_v43 = vsel %vm19142_vm3, %v16368_v15, %v12992_v11  ;;  %v12994_v37 = vrot.slane %v12992_v11, 4  ;;  %v16369_v0 = vrot.slane %v12855_v22, 9  ;;  %v23298_v11 = vld [vmem:[#allocation2 + $0xc8] sm:$0x1] }
 0x524   : > { %v12987_v58 = vrot.slane %v12985_v46, 4  ;;  %v23274_v61 = vsel %vm19142_vm3, %v16367_v27, %v12985_v46  ;;  %24691 = vst [vmem:[#allocation13_spill] sm:$0xff] %v23278_v43  ;;  %v16370_v22 = vrot.slane %v12856_v32, 9  ;;  %24695 = vst [vmem:[#allocation19_spill] sm:$0xff] %v23298_v11  ;;  %v13008_v12 = vrot.slane %v13006_v53, 4 }
 0x525   : > { %17726 = vmatmul.mubr.msk.bf16.gmra.mrb[52].mxu1 %vm10787_vm14, %v24684_v1  ;;  %v12988_v1 = vrot.slane %v23202_v39, 5  ;;  %24690 = vst [vmem:[#allocation14_spill] sm:$0xff] %v23274_v61  ;;  %v23292_v15 = vsel %vm19142_vm3, %v12994_v37, %v12995_v19  ;;  %v23296_v46 = vsel %vm19142_vm3, %v16369_v0, %v12999_v50  ;;  %v13013_v0 = vrot.slane %v23280_v29, 5  ;;  %v18887_v61 = vld [vmem:[#allocation2 + $0x48] sm:$0xff]   ;;  %v23572_v38 = vld [vmem:[#allocation2 + $0x70] sm:$0xf] }
 0x526   : > { %17729 = vmatprep.mubr.msk.bf16.mxu1 %vm10787_vm14, %v24687_v17  ;;  %v23270_v17 = vld [vmem:[#allocation2 + $0xbc] sm:$0x1]  ;;  %24693 = vst [vmem:[#allocation15_spill] sm:$0xff] %v23292_v15  ;;  %24694 = vst [vmem:[#allocation17_spill] sm:$0xff] %v23296_v46  ;;  %v24697_v50 = vcombine.low %v22966_v54, %v22970_v2  ;;  %v23316_v32 = vsel %vm19142_vm3, %v16370_v22, %v13006_v53  ;;  %v13016_v2 = vrot.slane %v23298_v11, 5  ;;  %v23347_v22 = vld [vmem:[%s24329_s5 + $0x28] sm:$0xff]  }
 0x527   : > { %24689 = vst [vmem:[#allocation11_spill] sm:$0xff] %v23270_v17  ;;  %v23284_v24 = vsel %vm19142_vm3, %v12987_v58, %v12988_v1  ;;  %v23304_v58 = vsel %vm19142_vm3, %v13001_v14, %v13002_v52  ;;  %v13009_v27 = vrot.slane %v23270_v17, 5  ;;  %24698 = vst [vmem:[#allocation20_spill] sm:$0xff] %v23316_v32  ;;  %v24700_v14 = vcombine.low %v22974_v9, %v22981_v8  ;;  %v18881_v8 = vld [vmem:[#allocation2 + $0xc] sm:$0xff]   ;;  %v18897_v11 = vld [vmem:[#allocation2 + $0xc0] sm:$0xff]  }
 0x528   : > { %24692 = vst [vmem:[#allocation16_spill] sm:$0xff] %v23284_v24  ;;  %24696 = vst [vmem:[#allocation18_spill] sm:$0xff] %v23304_v58  ;;  %v12857_v24 = vld [vmem:[#allocation2 + $0xc0] sm:$0xe]  ;;  %v13015_v54 = vrot.slane %v13013_v0, 4 }
 0x529   : > { %v23320_v52 = vsel %vm19142_vm3, %v13008_v12, %v13009_v27  ;;  %v16371_v19 = vrot.slane %v12857_v24, 9  ;;  %v24703_v27 = vcombine.low %v22989_v36, %v22993_v57  ;;  %v18883_v24 = vld [vmem:[#allocation2 + $0x18] sm:$0xff]   ;;  %v12112_v36 = vld [vmem:[#allocation2 + $0xc] sm:$0xf]  ;;  %v14415_v17 = vld [vmem:[#allocation2 + $0x60] sm:$0xe] }
 0x52a   : > { %24699 = vst [vmem:[#allocation5_spill] sm:$0xff] %v23320_v52  ;;  %v23335_v12 = vsel %vm19142_vm3, %v13015_v54, %v13016_v2  ;;  %v18885_v54 = vld [vmem:[#allocation2 + $0x30] sm:$0xff]   ;;  %v18886_v2 = vld [vmem:[#allocation2 + $0x3c] sm:$0xff]   ;;  %24725 = vst [vmem:[#allocation57_spill] sm:$0xff] %v23572_v38 }
 0x52b   : > { %v23331_v53 = vsel %vm19142_vm3, %v16371_v19, %v13013_v0  ;;  %24702 = vst [vmem:[#allocation8_spill] sm:$0xff] %v23335_v12  ;;  %v18884_v19 = vld [vmem:[#allocation2 + $0x24] sm:$0xff]   ;;  %v23352_v0 = vld [vmem:[#allocation2 + $0x10] sm:$0xf]  ;;  %v23363_v52 = vld [vmem:[#allocation2 + $0x14] sm:$0x1] }
 0x52c   : > { %24701 = vst [vmem:[#allocation6_spill] sm:$0xff] %v23331_v53  ;;  %24704 = vst [vmem:[#allocation9_spill] sm:$0xff] %v23352_v0  ;;  %v12170_v57 = vshll.u32 %v23352_v0, 16  ;;  %v12118_v53 = vld [vmem:[#allocation2 + $0x24] sm:$0xf] }
 0x52d   : > { %17730 = vmatmul.mubr.msk.bf16.gmra.mrb[56].mxu1 %vm10787_vm14, %v24697_v50  ;;  %v12174_v50 = vshrl.u32 %v23352_v0, 16  ;;  %24706 = vst [vmem:[#allocation4_spill] sm:$0xff] %v23363_v52  ;;  %v12209_v43 = vshrl.u32 %v12118_v53, 16 }
 0x52e   : > { %17733 = vmatprep.mubr.msk.bf16.mxu1 %vm10787_vm14, %v24700_v14  ;;  %v12115_v14 = vld [vmem:[#allocation2 + $0x18] sm:$0xf]  ;;  %v12172_v9 = vrot.slane %v12170_v57, 5  ;;  %v12180_v57 = vshll.u32 %v23363_v52, 16 }
 0x52f   : > { %v12176_v37 = vrot.slane %v12174_v50, 4 }
 0x535   : > { %17734 = vmatmul.mubr.msk.bf16.gmra.mrb[60].mxu1 %vm10787_vm14, %v24703_v27  ;;  %v12161_v27 = vshrl.u32 %v12112_v36, 16 }
 0x536   : > { %17739 = vmatprep.mubr.msk.bf16.mxu1 %vm10787_vm14, %v18881_v8  ;;  %v23357_v8 = vld [vmem:[#allocation2 + $0x1c] sm:$0xf] }
 0x537   : > { %24705 = vst [vmem:[#allocation7_spill] sm:$0xff] %v23357_v8  ;;  %v12194_v1 = vshll.u32 %v23357_v8, 16  ;;  %v12198_v12 = vshrl.u32 %v23357_v8, 16  ;;  %v12163_v32 = vrot.slane %v12161_v27, 4  ;;  %v23368_v27 = vld [vmem:[#allocation2 + $0x20] sm:$0x1] }
 0x538   : > { %24707 = vst [vmem:[#allocation21_spill] sm:$0xff] %v23368_v27 }
 0x539   : > { %v12200_v31 = vrot.slane %v12198_v12, 4  ;;  %v12182_v12 = vrot.slane %v12180_v57, 5  ;;  %v12242_v57 = vshll.u32 %v23087_v60, 16 }
 0x53d   : > { %17740 = vmatmul.mubr.msk.bf16.vlgmr.msra.gmra.mrb[32].mxu1 %vm10787_vm14, %v18883_v24  ;;  %v12185_v24 = vshrl.u32 %v12115_v14, 16 }
 0x53e   : > { %17772 = vmatpush3.bf16.msra.mxu1 %v23053_v48  ;;  %17743 = vmatprep.mubr.msk.bf16.mxu1 %vm10787_vm14, %v18884_v19  ;;  %v12164_v48 = vshll.u32 %v12112_v36, 16  ;;  %v12188_v19 = vshll.u32 %v12115_v14, 16  ;;  %v12212_v36 = vshll.u32 %v12118_v53, 16  ;;  %v12196_v14 = vrot.slane %v12194_v1, 5 }
 0x53f   : > { %17805 = vmatprep.subr.bf16.mxu1 %v23347_v22  ;;  %v12187_v46 = vrot.slane %v12185_v24, 4  ;;  %v12222_v1 = vshrl.u32 %v23083_v25, 16 }
 0x540   : > { %v12166_v58 = vrot.slane %v12164_v48, 5  ;;  %v12190_v15 = vrot.slane %v12188_v19, 5  ;;  %v12211_v48 = vrot.slane %v12209_v43, 4  ;;  %v12214_v24 = vrot.slane %v12212_v36, 5  ;;  %v12121_v19 = vld [vmem:[#allocation2 + $0x30] sm:$0xf] }
 0x541   : > { %v12201_v53 = vor.u32 %v12200_v31, %v12196_v14  ;;  %v12228_v43 = vshll.u32 %v23085_v56, 16  ;;  %v12224_v36 = vrot.slane %v12222_v1, 4  ;;  %v12233_v31 = vshrl.u32 %v12121_v19, 16 }
 0x542   : > { %v12167_v50 = vor.u32 %v12166_v58, %v12163_v32  ;;  %v12191_v42 = vor.u32 %v12190_v15, %v12187_v46  ;;  %v12215_v46 = vor.u32 %v12214_v24, %v12211_v48  ;;  %v18889_v32 = vld [vmem:[#allocation2 + $0x60] sm:$0xff]   ;;  %v12124_v48 = vld [vmem:[#allocation2 + $0x3c] sm:$0xf]  ;;  %v12266_v24 = vshll.u32 %v23098_v63, 16 }
 0x543   : > { %v12270_v56 = vshrl.u32 %v23098_v63, 16  ;;  %v23397_v63 = vrot.slane %v12242_v57, 5  ;;  %v12252_v57 = vshll.u32 %v23089_v30, 16 }
 0x544   : > { %v12168_v7 = vrot.slane %v12167_v50, 4  ;;  %v12192_v10 = vrot.slane %v12191_v42, 4  ;;  %v12246_v42 = vshrl.u32 %v23087_v60, 16  ;;  %v23390_v1 = vrot.slane %v12215_v46, 4 }
 0x545   : > { %17744 = vmatmul.mubr.msk.bf16.gmra.mrb[36].mxu1 %vm10787_vm14, %v18885_v54  ;;  %v12177_v54 = vor.u32 %v12176_v37, %v12172_v9  ;;  %v12218_v37 = vshll.u32 %v23083_v25, 16  ;;  %v18890_v25 = vld [vmem:[#allocation2 + $0x6c] sm:$0xff]   ;;  %v23392_v60 = vrot.slane %v12228_v43, 5  ;;  %v18891_v43 = vld [vmem:[#allocation2 + $0x78] sm:$0xff]  }
 0x546   : > { %17747 = vmatprep.mubr.msk.bf16.mxu1 %vm10787_vm14, %v18886_v2  ;;  %v18888_v2 = vld [vmem:[#allocation2 + $0x54] sm:$0xff]  }
 0x547   : > { %v12178_v23 = vrot.slane %v12177_v54, 4  ;;  %v23375_v58 = vrot.slane %v12218_v37, 5  ;;  %v12202_v54 = vrot.slane %v12201_v53, 4  ;;  %v12197_v53 = vsel %vm19559_vm7, %v12192_v10, %v12196_v14 }
 0x548   : > { %v12272_v10 = vrot.slane %v12270_v56, 4 }
 0x549   : > { %v12183_v15 = vsel %vm19559_vm7, %v12178_v23, %v12182_v12  ;;  %v12173_v23 = vsel %vm19559_vm7, %v12168_v7, %v12172_v9  ;;  %v12127_v12 = vld [vmem:[#allocation2 + $0x48] sm:$0xf]  ;;  %v12225_v9 = vor.u32 %v12224_v36, %v23375_v58  ;;  %v12290_v36 = vshll.u32 %v23091_v62, 16 }
 0x54a   : > { %v23386_v37 = vcombine.low %v12173_v23, %v12183_v15  ;;  %v12257_v15 = vshrl.u32 %v12124_v48, 16  ;;  %v23399_v23 = vrot.slane %v12266_v24, 5  ;;  %v12281_v14 = vshrl.u32 %v12127_v12, 16  ;;  %v18892_v24 = vld [vmem:[#allocation2 + $0x84] sm:$0xff]  }
 0x54b   : > { %v12284_v46 = vshll.u32 %v12127_v12, 16 }
 0x54c   : > { %v12259_v12 = vrot.slane %v12257_v15, 4  ;;  %v12329_v15 = vshrl.u32 %v12133_v59, 16 }
 0x54d   : > { %17748 = vmatmul.mubr.msk.bf16.gmra.mrb[40].mxu1 %vm10787_vm14, %v18887_v61  ;;  %v12204_v61 = vshll.u32 %v23368_v27, 16  ;;  %v12286_v30 = vrot.slane %v12284_v46, 5 }
 0x54e   : > { %17751 = vmatprep.mubr.msk.bf16.mxu1 %vm10787_vm14, %v18888_v2  ;;  %v12236_v2 = vshll.u32 %v12121_v19, 16  ;;  %v12235_v19 = vrot.slane %v12233_v31, 4  ;;  %v12294_v31 = vshrl.u32 %v23091_v62, 16  ;;  %v12276_v62 = vshll.u32 %v23104_v34, 16 }
 0x54f   : > { %v12206_v50 = vrot.slane %v12204_v61, 5  ;;  %v12254_v34 = vrot.slane %v12252_v57, 5  ;;  %v12331_v49 = vrot.slane %v12329_v15, 4 }
 0x550   : > { %v12238_v61 = vrot.slane %v12236_v2, 5  ;;  %v12226_v2 = vrot.slane %v12225_v9, 4  ;;  %v23417_v9 = vrot.slane %v12290_v36, 5 }
 0x551   : > { %v12207_v7 = vsel %vm19559_vm7, %v12202_v54, %v12206_v50  ;;  %v12221_v54 = vsel %vm19559_vm7, %v23390_v1, %v23375_v58  ;;  %v12314_v50 = vshll.u32 %v23109_v13, 16  ;;  %v12273_v58 = vor.u32 %v12272_v10, %v23399_v23 }
 0x552   : > { %v23401_v41 = vcombine.low %v12197_v53, %v12207_v7  ;;  %v12239_v56 = vor.u32 %v12238_v61, %v12235_v19  ;;  %v12283_v1 = vrot.slane %v12281_v14, 4  ;;  %v12231_v10 = vsel %vm19559_vm7, %v12226_v2, %v23392_v60  ;;  %v18894_v2 = vld [vmem:[#allocation2 + $0x9c] sm:$0xff]  }
 0x553   : > { %v23419_v61 = vrot.slane %v12314_v50, 5  ;;  %v12274_v27 = vrot.slane %v12273_v58, 4  ;;  %v12338_v50 = vshll.u32 %v23128_v47, 16  ;;  %v12342_v60 = vshrl.u32 %v23128_v47, 16 }
 0x554   : > { %v12287_v36 = vor.u32 %v12286_v30, %v12283_v1  ;;  %v23428_v57 = vcombine.low %v12221_v54, %v12231_v10  ;;  %v12324_v54 = vshll.u32 %v23116_v5, 16  ;;  %v23461_v10 = vld [vmem:[#allocation2 + $0x1c] sm:$0xf] }
 0x555   : > { %17752 = vmatmul.mubr.msk.bf16.gmra.mrb[44].mxu1 %vm10787_vm14, %v18889_v32  ;;  %v12248_v32 = vrot.slane %v12246_v42, 4  ;;  %v12130_v42 = vld [vmem:[#allocation2 + $0x54] sm:$0xf]  ;;  %v23445_v1 = vrot.slane %v12338_v50, 5  ;;  %24708 = vst [vmem:[#allocation22_spill] sm:$0xff] %v23461_v10 }
 0x556   : > { %17755 = vmatprep.mubr.msk.bf16.mxu1 %vm10787_vm14, %v18890_v25  ;;  %v12260_v25 = vshll.u32 %v12124_v48, 16  ;;  %v12318_v48 = vshrl.u32 %v23109_v13, 16  ;;  %v12296_v13 = vrot.slane %v12294_v31, 4  ;;  %v12305_v45 = vshrl.u32 %v12130_v42, 16 }
 0x557   : > { %v12249_v53 = vor.u32 %v12248_v32, %v23397_v63  ;;  %v12308_v19 = vshll.u32 %v12130_v42, 16  ;;  %v23439_v47 = vrot.slane %v12287_v36, 4 }
 0x558   : > { %v12262_v7 = vrot.slane %v12260_v25, 5  ;;  %v12320_v32 = vrot.slane %v12318_v48, 4  ;;  %v12332_v25 = vshll.u32 %v12133_v59, 16  ;;  %v12297_v31 = vor.u32 %v12296_v13, %v23417_v9  ;;  %v18893_v48 = vld [vmem:[#allocation2 + $0x90] sm:$0xff]  }
 0x559   : > { %v12250_v46 = vrot.slane %v12249_v53, 4  ;;  %v12307_v8 = vrot.slane %v12305_v45, 4  ;;  %v12310_v42 = vrot.slane %v12308_v19, 5  ;;  %v12300_v45 = vshll.u32 %v23106_v18, 16 }
 0x55a   : > { %v12263_v14 = vor.u32 %v12262_v7, %v12259_v12  ;;  %v12321_v59 = vor.u32 %v12320_v32, %v23419_v61  ;;  %v12334_v52 = vrot.slane %v12332_v25, 5  ;;  %v12136_v12 = vld [vmem:[#allocation2 + $0x6c] sm:$0xf]  ;;  %v12348_v18 = vshll.u32 %v23130_v26, 16 }
 0x55b   : > { %v12255_v7 = vsel %vm19559_vm7, %v12250_v46, %v12254_v34  ;;  %v23450_v19 = vrot.slane %v12342_v60, 4  ;;  %v12353_v32 = vshrl.u32 %v12136_v12, 16  ;;  %v23457_v15 = vrot.slane %v12300_v45, 5  ;;  %v18895_v26 = vld [vmem:[#allocation2 + $0xa8] sm:$0xff]   ;;  %v18896_v46 = vld [vmem:[#allocation2 + $0xb4] sm:$0xff]  }
 0x55c   : > { %v12264_v53 = vrot.slane %v12263_v14, 4  ;;  %v23448_v30 = vrot.slane %v12321_v59, 4  ;;  %v12335_v13 = vor.u32 %v12334_v52, %v12331_v49  ;;  %v12356_v25 = vshll.u32 %v12136_v12, 16  ;;  %v23469_v14 = vld [vmem:[#allocation2 + $0x20] sm:$0x1] }
 0x55d   : > { %17756 = vmatmul.mubr.msk.bf16.gmra.mrb[48].mxu1 %vm10787_vm14, %v18891_v43  ;;  %v12240_v43 = vrot.slane %v12239_v56, 4  ;;  %v23465_v49 = vrot.slane %v12324_v54, 5  ;;  %v12362_v52 = vshll.u32 %v23146_v3, 16  ;;  %v12366_v34 = vshrl.u32 %v23146_v3, 16  ;;  %24709 = vst [vmem:[#allocation23_spill] sm:$0xff] %v23469_v14 }
 0x55e   : > { %17759 = vmatprep.mubr.msk.bf16.mxu1 %vm10787_vm14, %v18892_v24  ;;  %v12278_v24 = vrot.slane %v12276_v62, 5  ;;  %v23443_v62 = vrot.slane %v12297_v31, 4  ;;  %v12269_v5 = vsel %vm19559_vm7, %v12264_v53, %v23399_v23  ;;  %v23481_v31 = vrot.slane %v12348_v18, 5  ;;  %v14409_v3 = vld [vmem:[#allocation2 + $0x18] sm:$0xe] }
 0x55f   : > { %v12245_v56 = vsel %vm19559_vm7, %v12240_v43, %v23397_v63  ;;  %v12311_v63 = vor.u32 %v12310_v42, %v12307_v8  ;;  %v23459_v8 = vld [vmem:[#allocation2 + $0x78] sm:$0xf]  ;;  %v23483_v42 = vld [vmem:[#allocation2 + $0x34] sm:$0xf]  ;;  %v23493_v60 = vrot.slane %v12353_v32, 4  ;;  %v23499_v53 = vrot.slane %v12356_v25, 5 }
 0x560   : > { %v12279_v58 = vsel %vm19559_vm7, %v12274_v27, %v12278_v24  ;;  %v23452_v27 = vcombine.low %v12245_v56, %v12255_v7  ;;  %24710 = vst [vmem:[#allocation24_spill] sm:$0xff] %v23483_v42  ;;  %v23497_v56 = vld [vmem:[#allocation2 + $0x2c] sm:$0x1]  ;;  %v23503_v7 = vld [vmem:[#allocation2 + $0x38] sm:$0x1]  ;;  %v23509_v18 = vrot.slane %v12366_v34, 4 }
 0x561   : > { %v23463_v43 = vcombine.low %v12269_v5, %v12279_v58  ;;  %v23479_v36 = vrot.slane %v12311_v63, 4  ;;  %24712 = vst [vmem:[#allocation26_spill] sm:$0xff] %v23497_v56  ;;  %24713 = vst [vmem:[#allocation27_spill] sm:$0xff] %v23503_v7  ;;  %v14475_v58 = vrot.slane %v23461_v10, 5  ;;  %v14410_v54 = vld [vmem:[#allocation2 + $0x24] sm:$0xe] }
 0x562   : > { %v23507_v63 = vrot.slane %v12362_v52, 5  ;;  %v16477_v32 = vrot.slane %v14409_v3, 9  ;;  %v14411_v5 = vld [vmem:[#allocation2 + $0x30] sm:$0xe]  ;;  %v23514_v45 = vld [vmem:[#allocation2 + $0x40] sm:$0xf] }
 0x563   : > { %24714 = vst [vmem:[#allocation28_spill] sm:$0xff] %v23514_v45  ;;  %v14477_v50 = vrot.slane %v14475_v58, 4  ;;  %v14478_v23 = vrot.slane %v23469_v14, 5  ;;  %v23519_v52 = vld [vmem:[#allocation2 + $0x44] sm:$0x1]  ;;  %v14485_v25 = vrot.slane %v23497_v56, 5 }
 0x564   : > { %v23521_v34 = vld [vmem:[#allocation2 + $0x4c] sm:$0xf]  ;;  %v23525_v3 = vsel %vm19142_vm3, %v16477_v32, %v14475_v58  ;;  %v16479_v14 = vrot.slane %v14411_v5, 9  ;;  %v23535_v10 = vld [vmem:[#allocation2 + $0x50] sm:$0x1]  ;;  %v14492_v32 = vrot.slane %v23503_v7, 5 }
 0x565   : > { %17760 = vmatmul.mubr.msk.bf16.gmra.mrb[52].mxu1 %vm10787_vm14, %v18893_v48  ;;  %v23489_v48 = vrot.slane %v12335_v13, 4  ;;  %24715 = vst [vmem:[#allocation47_spill] sm:$0xff] %v23525_v3  ;;  %v14489_v13 = vrot.slane %v23483_v42, 5  ;;  %v23530_v12 = vsel %vm19142_vm3, %v14477_v50, %v14478_v23  ;;  %24717 = vst [vmem:[#allocation49_spill] sm:$0xff] %v23535_v10  ;;  %v14413_v42 = vld [vmem:[#allocation2 + $0x48] sm:$0xe] }
 0x566   : > { %17763 = vmatprep.mubr.msk.bf16.mxu1 %vm10787_vm14, %v18894_v2  ;;  %v23495_v2 = vld [vmem:[#allocation2 + $0x28] sm:$0xf]  ;;  %24716 = vst [vmem:[#allocation48_spill] sm:$0xff] %v23530_v12  ;;  %v23540_v23 = vld [vmem:[#allocation2 + $0x58] sm:$0xf]  ;;  %v14496_v12 = vrot.slane %v23514_v45, 5 }
 0x567   : > { %24711 = vst [vmem:[#allocation25_spill] sm:$0xff] %v23495_v2  ;;  %v14482_v24 = vrot.slane %v23495_v2, 5  ;;  %v23542_v50 = vld [vmem:[#allocation2 + $0x64] sm:$0xf]  ;;  %v23554_v58 = vsel %vm19142_vm3, %v16479_v14, %v14489_v13  ;;  %v14414_v3 = vld [vmem:[#allocation2 + $0x54] sm:$0xe] }
 0x568   : > { %24718 = vst [vmem:[#allocation50_spill] sm:$0xff] %v23542_v50  ;;  %24721 = vst [vmem:[#allocation53_spill] sm:$0xff] %v23554_v58  ;;  %v23557_v7 = vld [vmem:[#allocation2 + $0x5c] sm:$0x1]  ;;  %v23559_v56 = vld [vmem:[#allocation2 + $0x68] sm:$0x1] }
 0x569   : > { %v14484_v59 = vrot.slane %v14482_v24, 4  ;;  %24722 = vst [vmem:[#allocation54_spill] sm:$0xff] %v23557_v7  ;;  %24723 = vst [vmem:[#allocation55_spill] sm:$0xff] %v23559_v56  ;;  %v14503_v45 = vrot.slane %v23521_v34, 5  ;;  %v23610_v58 = vld [vmem:[#allocation2 + $0x88] sm:$0xf] }
 0x56a   : > { %24733 = vst [vmem:[#allocation65_spill] sm:$0xff] %v23610_v58 }
 0x56b   : > { %v23550_v2 = vsel %vm19142_vm3, %v14484_v59, %v14485_v25  ;;  %v14499_v25 = vrot.slane %v23519_v52, 5 }
 0x56c   : > { %24720 = vst [vmem:[#allocation52_spill] sm:$0xff] %v23550_v2  ;;  %v16483_v2 = vrot.slane %v14415_v17, 9 }
 0x56d   : > { %17764 = vmatmul.mubr.msk.bf16.gmra.mrb[56].mxu1 %vm10787_vm14, %v18895_v26  ;;  %v14412_v26 = vld [vmem:[#allocation2 + $0x3c] sm:$0xe] }
 0x56e   : > { %17767 = vmatprep.mubr.msk.bf16.mxu1 %vm10787_vm14, %v18896_v46  ;;  %v16478_v46 = vrot.slane %v14410_v54, 9  ;;  %v14491_v54 = vrot.slane %v14489_v13, 4  ;;  %v16480_v59 = vrot.slane %v14412_v26, 9  ;;  %v14498_v13 = vrot.slane %v14496_v12, 4 }
 0x56f   : > { %v14506_v26 = vrot.slane %v23535_v10, 5  ;;  %v23598_v10 = vld [vmem:[#allocation2 + $0x80] sm:$0x1] }
 0x570   : > { %v23546_v5 = vsel %vm19142_vm3, %v16478_v46, %v14482_v24  ;;  %v23565_v24 = vsel %vm19142_vm3, %v14491_v54, %v14492_v32  ;;  %v16481_v46 = vrot.slane %v14413_v42, 9  ;;  %v23576_v0 = vsel %vm19142_vm3, %v16480_v59, %v14496_v12  ;;  %v23582_v42 = vld [vmem:[#allocation2 + $0x7c] sm:$0xf]  ;;  %24730 = vst [vmem:[#allocation62_spill] sm:$0xff] %v23598_v10 }
 0x571   : > { %24719 = vst [vmem:[#allocation51_spill] sm:$0xff] %v23546_v5  ;;  %24724 = vst [vmem:[#allocation56_spill] sm:$0xff] %v23565_v24  ;;  %v16482_v54 = vrot.slane %v14414_v3, 9  ;;  %v14510_v32 = vrot.slane %v23540_v23, 5  ;;  %v23586_v14 = vsel %vm19142_vm3, %v14498_v13, %v14499_v25  ;;  %v14505_v12 = vrot.slane %v14503_v45, 4 }
 0x572   : > { %24726 = vst [vmem:[#allocation58_spill] sm:$0xff] %v23576_v0  ;;  %24727 = vst [vmem:[#allocation59_spill] sm:$0xff] %v23586_v14  ;;  %v14513_v59 = vrot.slane %v23557_v7, 5  ;;  %v14416_v24 = vld [vmem:[#allocation2 + $0x6c] sm:$0xe]  ;;  %v14517_v5 = vrot.slane %v23542_v50, 5 }
 0x573   : > { %v23593_v3 = vld [vmem:[#allocation2 + $0x74] sm:$0x1]  ;;  %v23602_v25 = vsel %vm19142_vm3, %v14505_v12, %v14506_v26  ;;  %v14520_v13 = vrot.slane %v23559_v56, 5  ;;  %v14417_v7 = vld [vmem:[#allocation2 + $0x78] sm:$0xe]  ;;  %v16484_v12 = vrot.slane %v14416_v24, 9 }
 0x574   : > { %24729 = vst [vmem:[#allocation61_spill] sm:$0xff] %v23593_v3  ;;  %24731 = vst [vmem:[#allocation63_spill] sm:$0xff] %v23602_v25  ;;  %v14519_v26 = vrot.slane %v14517_v5, 4  ;;  %v14418_v0 = vld [vmem:[#allocation2 + $0x84] sm:$0xe]  ;;  %v23626_v56 = vsel %vm19142_vm3, %v16483_v2, %v14517_v5  ;;  %v14527_v17 = vrot.slane %v23593_v3, 5 }
 0x575   : > { %17768 = vmatmul.mubr.msk.bf16.gmra.mrb[60].mxu1 %vm10787_vm14, %v18897_v11  ;;  %v23590_v11 = vsel %vm19142_vm3, %v16481_v46, %v14503_v45  ;;  %v23606_v45 = vsel %vm19142_vm3, %v16482_v54, %v14510_v32  ;;  %v14524_v46 = vrot.slane %v23572_v38, 5  ;;  %v23618_v50 = vld [vmem:[#allocation2 + $0x94] sm:$0xf]  ;;  %v23620_v54 = vld [vmem:[#allocation2 + $0x98] sm:$0x1]  ;;  %24737 = vst [vmem:[#allocation69_spill] sm:$0xff] %v23626_v56 }
 0x576   : > { %17773 = vmatprep.mubr.msk.bf16.mxu1 %vm10787_vm14, %v23386_v37  ;;  %24728 = vst [vmem:[#allocation60_spill] sm:$0xff] %v23590_v11  ;;  %v14512_v37 = vrot.slane %v14510_v32, 4  ;;  %24732 = vst [vmem:[#allocation64_spill] sm:$0xff] %v23606_v45  ;;  %v23634_v24 = vld [vmem:[#allocation2 + $0x8c] sm:$0x1]  ;;  %v16485_v2 = vrot.slane %v14417_v7, 9 }
 0x577   : > { %24735 = vst [vmem:[#allocation67_spill] sm:$0xff] %v23618_v50  ;;  %24736 = vst [vmem:[#allocation68_spill] sm:$0xff] %v23620_v54  ;;  %v14526_v38 = vrot.slane %v14524_v46, 4  ;;  %v23642_v32 = vsel %vm19142_vm3, %v16484_v12, %v14524_v46  ;;  %v14531_v5 = vrot.slane %v23582_v42, 5  ;;  %v16486_v11 = vrot.slane %v14418_v0, 9 }
 0x578   : > { %v23616_v14 = vsel %vm19142_vm3, %v14512_v37, %v14513_v59  ;;  %v23632_v59 = vld [vmem:[%s24329_s5 + $0x30] sm:$0xff]   ;;  %24738 = vst [vmem:[#allocation70_spill] sm:$0xff] %v23634_v24  ;;  %v23638_v37 = vsel %vm19142_vm3, %v14519_v26, %v14520_v13  ;;  %24740 = vst [vmem:[#allocation72_spill] sm:$0xff] %v23642_v32  ;;  %v14538_v13 = vrot.slane %v23610_v58, 5  ;;  %v23656_v46 = vld [vmem:[#allocation2 + $0xac] sm:$0xf] }
 0x579   : > { %24734 = vst [vmem:[#allocation66_spill] sm:$0xff] %v23616_v14  ;;  %24739 = vst [vmem:[#allocation71_spill] sm:$0xff] %v23638_v37  ;;  %v23645_v14 = vld [vmem:[#allocation2 + $0xa0] sm:$0xf]  ;;  %v23651_v25 = vsel %vm19142_vm3, %v14526_v38, %v14527_v17  ;;  %v14419_v26 = vld [vmem:[#allocation2 + $0x90] sm:$0xe]  ;;  %v23662_v12 = vsel %vm19142_vm3, %v16485_v2, %v14531_v5 }
 0x57a   : > { %24741 = vst [vmem:[#allocation73_spill] sm:$0xff] %v23645_v14  ;;  %24742 = vst [vmem:[#allocation74_spill] sm:$0xff] %v23651_v25  ;;  %v14533_v45 = vrot.slane %v14531_v5, 4  ;;  %v14534_v38 = vrot.slane %v23598_v10, 5  ;;  %v14420_v17 = vld [vmem:[#allocation2 + $0x9c] sm:$0xe] }
 0x57b   : > { %v23668_v0 = vld [vmem:[#allocation2 + $0xa4] sm:$0x1]  ;;  %v14540_v7 = vrot.slane %v14538_v13, 4  ;;  %v14541_v25 = vrot.slane %v23634_v24, 5  ;;  %v14545_v2 = vrot.slane %v23618_v50, 5  ;;  %v16487_v32 = vrot.slane %v14419_v26, 9 }
 0x57c   : > { %v13717_v5 = vld [vmem:[#allocation2 + $0xb0] sm:$0x1]  ;;  %v14552_v37 = vrot.slane %v23645_v14, 5  ;;  %v23683_v56 = vld [vmem:[#allocation2 + $0xb8] sm:$0xf]  ;;  %v16488_v10 = vrot.slane %v14420_v17, 9 }
 0x57d   : > { %17774 = vmatmul.mubr.msk.bf16.vlgmr.msra.gmra.mrb[32].mxu1 %vm10787_vm14, %v23401_v41  ;;  %v23672_v41 = vsel %vm19142_vm3, %v16486_v11, %v14538_v13  ;;  %v23689_v13 = vsel %vm19142_vm3, %v14540_v7, %v14541_v25  ;;  %v14547_v24 = vrot.slane %v14545_v2, 4  ;;  %v14421_v50 = vld [vmem:[#allocation2 + $0xa8] sm:$0xe]  ;;  %v14555_v14 = vrot.slane %v23668_v0, 5  ;;  %v14422_v58 = vld [vmem:[#allocation2 + $0xb4] sm:$0xe] }
 0x57e   : > { %17806 = vmatpush3.bf16.msra.mxu1 %v23347_v22  ;;  %17777 = vmatprep.mubr.msk.bf16.mxu1 %vm10787_vm14, %v23428_v57  ;;  %24743 = vst [vmem:[#allocation75_spill] sm:$0xff] %v23672_v41  ;;  %v23679_v22 = vsel %vm19142_vm3, %v14533_v45, %v14534_v38  ;;  %v14548_v57 = vrot.slane %v23620_v54, 5  ;;  %24745 = vst [vmem:[#allocation77_spill] sm:$0xff] %v23689_v13  ;;  %v24746_v45 = vshll.u32 %v23164_v40, 16  ;;  %v14554_v54 = vrot.slane %v14552_v37, 4  ;;  %v24837_v21 = vld [vmem:[#allocation58_spill] sm:$0xff] }
 0x57f   : > { %17839 = vmatprep.subr.bf16.mxu1 %v23632_v59  ;;  %24744 = vst [vmem:[#allocation76_spill] sm:$0xff] %v23679_v22  ;;  %v13720_v3 = vld [vmem:[#allocation2 + $0xbc] sm:$0x1]  ;;  %v23698_v11 = vld [vmem:[#allocation2 + $0xc4] sm:$0xf]  ;;  %v23702_v25 = vsel %vm19142_vm3, %v16487_v32, %v14545_v2  ;;  %v23710_v17 = vsel %vm19142_vm3, %v16488_v10, %v14552_v37  ;;  %v16489_v41 = vrot.slane %v14421_v50, 9 }
 0x580   : > { %v23693_v38 = vrot.slane %v24746_v45, 5  ;;  %24747 = vst [vmem:[#allocation78_spill] sm:$0xff] %v23702_v25  ;;  %v23706_v7 = vsel %vm19142_vm3, %v14547_v24, %v14548_v57  ;;  %v14559_v45 = vrot.slane %v23656_v46, 5  ;;  %v23717_v13 = vsel %vm19142_vm3, %v14554_v54, %v14555_v14  ;;  %v14423_v2 = vld [vmem:[#allocation2 + $0xc0] sm:$0xe] }
 0x581   : > { %24748 = vst [vmem:[#allocation79_spill] sm:$0xff] %v23706_v7  ;;  %v14566_v32 = vrot.slane %v23683_v56, 5  ;;  %v13723_v22 = vld [vmem:[#allocation2 + $0xc8] sm:$0x1]  ;;  %v16506_v24 = vcombine.low %v23710_v17, %v23717_v13  ;;  %v14562_v10 = vrot.slane %v13717_v5, 5  ;;  %v16490_v37 = vrot.slane %v14422_v58, 9 }
 0x582   : > { %v14561_v57 = vrot.slane %v14559_v45, 4  ;;  %v24749_v26 = vshrl.u32 %v23164_v40, 16  ;;  %v14569_v14 = vrot.slane %v13720_v3, 5  ;;  %v14573_v50 = vrot.slane %v23698_v11, 5  ;;  %v12142_v5 = vld [vmem:[#allocation2 + $0x84] sm:$0xf] }
 0x583   : > { %v14568_v25 = vrot.slane %v14566_v32, 4  ;;  %v23731_v54 = vsel %vm19142_vm3, %v16489_v41, %v14559_v45  ;;  %v16491_v40 = vrot.slane %v14423_v2, 9  ;;  %v14576_v41 = vrot.slane %v13723_v22, 5  ;;  %v24217_v13 = vld [vmem:[%s24330_s6] ss:$0 sm:$0xff] }
 0x584   : > { %v12392_v7 = vrot.slane %v24749_v26, 4  ;;  %v23735_v58 = vsel %vm19142_vm3, %v14561_v57, %v14562_v10  ;;  %v14575_v26 = vrot.slane %v14573_v50, 4  ;;  %v24750_v45 = vor.u32 %v23450_v19, %v23445_v1 }
 0x585   : > { %17778 = vmatmul.mubr.msk.bf16.gmra.mrb[36].mxu1 %vm10787_vm14, %v23452_v27  ;;  %v23739_v27 = vsel %vm19142_vm3, %v16490_v37, %v14566_v32  ;;  %v12359_v10 = vor.u32 %v23499_v53, %v23493_v60  ;;  %v24751_v32 = vshrl.u32 %v23459_v8, 16  ;;  %v12410_v3 = vshll.u32 %v23186_v51, 16 }
 0x586   : > { %17781 = vmatprep.mubr.msk.bf16.mxu1 %vm10787_vm14, %v23463_v43  ;;  %v23745_v43 = vsel %vm19142_vm3, %v14568_v25, %v14569_v14  ;;  %v12346_v57 = vrot.slane %v24750_v45, 4  ;;  %v12414_v25 = vshrl.u32 %v23186_v51, 16  ;;  %v23760_v22 = vsel %vm19142_vm3, %v16491_v40, %v14573_v50 }
 0x587   : > { %v12379_v2 = vrot.slane %v24751_v32, 4  ;;  %v16508_v37 = vcombine.low %v23739_v27, %v23745_v43  ;;  %v23764_v19 = vsel %vm19142_vm3, %v14575_v26, %v14576_v41  ;;  %v24752_v60 = vshll.u32 %v23459_v8, 16 }
 0x588   : > { %v12401_v14 = vshrl.u32 %v12142_v5, 16  ;;  %v12404_v45 = vshll.u32 %v12142_v5, 16  ;;  %v16509_v32 = vcombine.low %v23760_v22, %v23764_v19  ;;  %v24753_v51 = vsel %vm19559_vm7, %v23443_v62, %v23457_v15 }
 0x589   : > { %v12382_v53 = vrot.slane %v24752_v60, 5  ;;  %v24754_v50 = vsel %vm19559_vm7, %v23439_v47, %v23417_v9  ;;  %v12317_v8 = vsel %vm19559_vm7, %v23479_v36, %v23419_v61  ;;  %v24755_v5 = vor.u32 %v23509_v18, %v23507_v63 }
 0x58a   : > { %v16328_v40 = vcombine.low %v24754_v50, %v24753_v51  ;;  %v12393_v41 = vor.u32 %v12392_v7, %v23693_v38  ;;  %v24756_v62 = vsel %vm19559_vm7, %v23448_v30, %v23465_v49  ;;  %v12341_v9 = vsel %vm19559_vm7, %v23489_v48, %v23445_v1  ;;  %v12145_v30 = vld [vmem:[#allocation2 + $0x90] sm:$0xf] }
 0x58b   : > { %v12370_v26 = vrot.slane %v24755_v5, 4  ;;  %v16329_v15 = vcombine.low %v12317_v8, %v24756_v62  ;;  %v12351_v61 = vsel %vm19559_vm7, %v12346_v57, %v23481_v31  ;;  %v24757_v47 = vshll.u32 %v23162_v4, 16 }
 0x58c   : > { %v12396_v18 = vshll.u32 %v23177_v16, 16  ;;  %v12412_v7 = vrot.slane %v12410_v3, 5  ;;  %v12416_v60 = vrot.slane %v12414_v25, 4  ;;  %v12360_v49 = vrot.slane %v12359_v10, 4  ;;  %v12148_v3 = vld [vmem:[#allocation2 + $0x9c] sm:$0xf] }
 0x58d   : > { %17782 = vmatmul.mubr.msk.bf16.gmra.mrb[40].mxu1 %vm10787_vm14, %v16328_v40  ;;  %v12374_v36 = vrot.slane %v24757_v47, 5  ;;  %v12383_v51 = vor.u32 %v12382_v53, %v12379_v2  ;;  %v12403_v50 = vrot.slane %v12401_v14, 4  ;;  %v12406_v1 = vrot.slane %v12404_v45, 5 }
 0x58e   : > { %17785 = vmatprep.mubr.msk.bf16.mxu1 %vm10787_vm14, %v16329_v15  ;;  %v16330_v48 = vcombine.low %v12341_v9, %v12351_v61  ;;  %v12394_v57 = vrot.slane %v12393_v41, 4  ;;  %v12425_v40 = vshrl.u32 %v12145_v30, 16  ;;  %v12428_v8 = vshll.u32 %v12145_v30, 16 }
 0x58f   : > { %v12375_v31 = vsel %vm19559_vm7, %v12370_v26, %v12374_v36  ;;  %v12434_v4 = vshll.u32 %v23194_v20, 16  ;;  %v12438_v16 = vshrl.u32 %v23194_v20, 16  ;;  %v12398_v25 = vrot.slane %v12396_v18, 5 }
 0x590   : > { %v12417_v5 = vor.u32 %v12416_v60, %v12412_v7  ;;  %v12458_v62 = vshll.u32 %v23218_v55, 16  ;;  %v12462_v10 = vshrl.u32 %v23218_v55, 16  ;;  %v12365_v2 = vsel %vm19559_vm7, %v12360_v49, %v23507_v63 }
 0x591   : > { %v12384_v53 = vrot.slane %v12383_v51, 4  ;;  %v12407_v14 = vor.u32 %v12406_v1, %v12403_v50  ;;  %v12420_v45 = vshll.u32 %v23200_v44, 16  ;;  %v16331_v26 = vcombine.low %v12365_v2, %v12375_v31  ;;  %v12151_v1 = vld [vmem:[#allocation2 + $0xa8] sm:$0xf] }
 0x592   : > { %v12399_v41 = vsel %vm19559_vm7, %v12394_v57, %v12398_v25  ;;  %v12449_v20 = vshrl.u32 %v12148_v3, 16  ;;  %v12452_v15 = vshll.u32 %v12148_v3, 16  ;;  %v12427_v9 = vrot.slane %v12425_v40, 4 }
 0x593   : > { %v12430_v61 = vrot.slane %v12428_v8, 5  ;;  %v12436_v47 = vrot.slane %v12434_v4, 5  ;;  %v12440_v36 = vrot.slane %v12438_v16, 4  ;;  %v12418_v55 = vrot.slane %v12417_v5, 4  ;;  %v12154_v8 = vld [vmem:[#allocation2 + $0xb4] sm:$0xf] }
 0x594   : > { %v12460_v18 = vrot.slane %v12458_v62, 5  ;;  %v12464_v60 = vrot.slane %v12462_v10, 4  ;;  %v12389_v44 = vsel %vm19559_vm7, %v12384_v53, %v23693_v38  ;;  %v12408_v63 = vrot.slane %v12407_v14, 4 }
 0x595   : > { %17786 = vmatmul.mubr.msk.bf16.gmra.mrb[44].mxu1 %vm10787_vm14, %v16330_v48  ;;  %v16332_v30 = vcombine.low %v12389_v44, %v12399_v41  ;;  %v12422_v49 = vrot.slane %v12420_v45, 5  ;;  %v12451_v51 = vrot.slane %v12449_v20, 4  ;;  %v12454_v50 = vrot.slane %v12452_v15, 5 }
 0x596   : > { %17789 = vmatprep.mubr.msk.bf16.mxu1 %vm10787_vm14, %v16331_v26  ;;  %v12431_v31 = vor.u32 %v12430_v61, %v12427_v9  ;;  %v12441_v57 = vor.u32 %v12440_v36, %v12436_v47  ;;  %v12482_v40 = vshll.u32 %v23232_v33, 16  ;;  %v12486_v48 = vshrl.u32 %v23232_v33, 16 }
 0x597   : > { %v12423_v4 = vsel %vm19559_vm7, %v12418_v55, %v12422_v49  ;;  %v12465_v16 = vor.u32 %v12464_v60, %v12460_v18  ;;  %v12506_v3 = vshll.u32 %v23258_v35, 16  ;;  %v12510_v38 = vshrl.u32 %v23258_v35, 16 }
 0x598   : > { %v12413_v25 = vsel %vm19559_vm7, %v12408_v63, %v12412_v7  ;;  %v12444_v5 = vshll.u32 %v23202_v39, 16  ;;  %v12473_v62 = vshrl.u32 %v12151_v1, 16  ;;  %v12476_v10 = vshll.u32 %v12151_v1, 16  ;;  %v12157_v63 = vld [vmem:[#allocation2 + $0xc0] sm:$0xf] }
 0x599   : > { %v12455_v2 = vor.u32 %v12454_v50, %v12451_v51  ;;  %v12468_v53 = vshll.u32 %v23230_v28, 16  ;;  %v12497_v33 = vshrl.u32 %v12154_v8, 16  ;;  %v12500_v14 = vshll.u32 %v12154_v8, 16 }
 0x59a   : > { %v16333_v45 = vcombine.low %v12413_v25, %v12423_v4  ;;  %v12442_v26 = vrot.slane %v12441_v57, 4  ;;  %v12484_v41 = vrot.slane %v12482_v40, 5  ;;  %v12488_v20 = vrot.slane %v12486_v48, 4  ;;  %v24758_v48 = vld [vmem:[#allocation3_spill] sm:$0xff] }
 0x59b   : > { %v12432_v15 = vrot.slane %v12431_v31, 4  ;;  %v12466_v35 = vrot.slane %v12465_v16, 4  ;;  %v12508_v9 = vrot.slane %v12506_v3, 5  ;;  %v12512_v61 = vrot.slane %v12510_v38, 4 }
 0x59c   : > { %v12446_v39 = vrot.slane %v12444_v5, 5  ;;  %v12475_v7 = vrot.slane %v12473_v62, 4  ;;  %v12478_v36 = vrot.slane %v12476_v10, 5  ;;  %v12456_v55 = vrot.slane %v12455_v2, 4  ;;  %v24759_v5 = vld [vmem:[#allocation11_spill] sm:$0xff] }
 0x59d   : > { %17790 = vmatmul.mubr.msk.bf16.gmra.mrb[48].mxu1 %vm10787_vm14, %v16332_v30  ;;  %v12470_v60 = vrot.slane %v12468_v53, 5  ;;  %v12499_v28 = vrot.slane %v12497_v33, 4  ;;  %v12502_v44 = vrot.slane %v12500_v14, 5  ;;  %v12489_v51 = vor.u32 %v12488_v20, %v12484_v41 }
 0x59e   : > { %17793 = vmatprep.mubr.msk.bf16.mxu1 %vm10787_vm14, %v16333_v45  ;;  %v12447_v49 = vsel %vm19559_vm7, %v12442_v26, %v12446_v39  ;;  %v12530_v30 = vshll.u32 %v23280_v29, 16  ;;  %v12534_v50 = vshrl.u32 %v23280_v29, 16  ;;  %v12437_v1 = vsel %vm19559_vm7, %v12432_v15, %v12436_v47  ;;  %v24760_v39 = vld [vmem:[#allocation9_spill] sm:$0xff] }
 0x59f   : > { %v12471_v31 = vsel %vm19559_vm7, %v12466_v35, %v12470_v60  ;;  %v12513_v57 = vor.u32 %v12512_v61, %v12508_v9  ;;  %v12479_v40 = vor.u32 %v12478_v36, %v12475_v7  ;;  %v12492_v8 = vshll.u32 %v24758_v48, 16  ;;  %v24761_v60 = vld [vmem:[#allocation19_spill] sm:$0xff]  ;;  %v24788_v48 = vld [vmem:[#allocation45_spill] sm:$0xff] }
 0x5a0   : > { %v12521_v4 = vshrl.u32 %v12157_v63, 16  ;;  %v12524_v16 = vshll.u32 %v12157_v63, 16  ;;  %v16334_v3 = vcombine.low %v12437_v1, %v12447_v49  ;;  %v12461_v38 = vsel %vm19559_vm7, %v12456_v55, %v12460_v18 }
 0x5a1   : > { %v12503_v25 = vor.u32 %v12502_v44, %v12499_v28  ;;  %v12516_v62 = vshll.u32 %v24759_v5, 16  ;;  %v16335_v29 = vcombine.low %v12461_v38, %v12471_v31  ;;  %v12490_v10 = vrot.slane %v12489_v51, 4  ;;  %v12842_v31 = vld [vmem:[#allocation2 + $0xc] sm:$0xe] }
 0x5a2   : > { %v12532_v2 = vrot.slane %v12530_v30, 5  ;;  %v12536_v47 = vrot.slane %v12534_v50, 4  ;;  %v12514_v53 = vrot.slane %v12513_v57, 4  ;;  %v12480_v33 = vrot.slane %v12479_v40, 4  ;;  %v9704_v57 = vld [vmem:[#allocation2 + $0xcc] sm:$0x1] }
 0x5a3   : > { %v12494_v14 = vrot.slane %v12492_v8, 5  ;;  %v12523_v45 = vrot.slane %v12521_v4, 4  ;;  %v12526_v26 = vrot.slane %v12524_v16, 5  ;;  %v12504_v20 = vrot.slane %v12503_v25, 4  ;;  %v24762_v40 = vld [vmem:[#allocation4_spill] sm:$0xff] }
 0x5a4   : > { %v12518_v15 = vrot.slane %v12516_v62, 5  ;;  %v12537_v35 = vor.u32 %v12536_v47, %v12532_v2  ;;  %v12908_v7 = vrot.slane %v24760_v39, 5  ;;  %v12485_v36 = vsel %vm19559_vm7, %v12480_v33, %v12484_v41  ;;  %v12843_v47 = vld [vmem:[#allocation2 + $0x18] sm:$0xe] }
 0x5a5   : > { %17794 = vmatmul.mubr.msk.bf16.gmra.mrb[52].mxu1 %vm10787_vm14, %v16334_v3  ;;  %v12495_v18 = vsel %vm19559_vm7, %v12490_v10, %v12494_v14  ;;  %v12527_v55 = vor.u32 %v12526_v26, %v12523_v45  ;;  %v12540_v28 = vshll.u32 %v24761_v60, 16  ;;  %v12509_v63 = vsel %vm19559_vm7, %v12504_v20, %v12508_v9  ;;  %v24764_v9 = vld [vmem:[#allocation7_spill] sm:$0xff] }
 0x5a6   : > { %17797 = vmatprep.mubr.msk.bf16.mxu1 %vm10787_vm14, %v16335_v29  ;;  %v12519_v61 = vsel %vm19559_vm7, %v12514_v53, %v12518_v15  ;;  %v16336_v44 = vcombine.low %v12485_v36, %v12495_v18  ;;  %v12538_v51 = vrot.slane %v12537_v35, 4  ;;  %v12910_v30 = vrot.slane %v12908_v7, 4  ;;  %v24765_v53 = vld [vmem:[#allocation21_spill] sm:$0xff]  ;;  %v18901_v20 = vld [vmem:[%s24329_s5 + $0x38] sm:$0xff]   ;;  %v24767_v18 = vld [vmem:[#allocation32_spill] sm:$0xff] }
 0x5a7   : > { %v16337_v49 = vcombine.low %v12509_v63, %v12519_v61  ;;  %v12528_v50 = vrot.slane %v12527_v55, 4  ;;  %v12542_v1 = vrot.slane %v12540_v28, 5  ;;  %v12911_v41 = vrot.slane %v24762_v40, 5  ;;  %v24766_v15 = vld [vmem:[#allocation31_spill] sm:$0xff]  ;;  %v24769_v61 = vld [vmem:[#allocation33_spill] sm:$0xff]  ;;  %v24772_v36 = vld [vmem:[#allocation34_spill] sm:$0xff] }
 0x5a8   : > { %v9705_v8 = vsel %vm22272_vm10, 0, %v9704_v57  ;;  %v12915_v16 = vrot.slane %v24764_v9, 5  ;;  %v16356_v3 = vrot.slane %v12842_v31, 9  ;;  %v12918_v33 = vrot.slane %v24765_v53, 5  ;;  %v24770_v39 = vld [vmem:[#allocation35_spill] sm:$0xff]  ;;  %v24773_v55 = vld [vmem:[#allocation36_spill] sm:$0xff] }
 0x5a9   : > { %v12543_v4 = vsel %vm19559_vm7, %v12538_v51, %v12542_v1  ;;  %9706 = vst [vmem:[#allocation2 + $0xcc] sm:$0x1] %v9705_v8  ;;  %v12912_v38 = vsel %vm19142_vm3, %v12910_v30, %v12911_v41  ;;  %v12533_v25 = vsel %vm19559_vm7, %v12528_v50, %v12532_v2  ;;  %v16357_v14 = vrot.slane %v12843_v47, 9  ;;  %v24775_v28 = vld [vmem:[#allocation37_spill] sm:$0xff]  ;;  %v24782_v50 = vld [vmem:[#allocation42_spill] sm:$0xff]  ;;  %v24785_v57 = vld [vmem:[#allocation43_spill] sm:$0xff] }
 0x5aa   : > { %v16338_v5 = vcombine.low %v12533_v25, %v12543_v4  ;;  %v12909_v62 = vsel %vm19142_vm3, %v16356_v3, %v12908_v7  ;;  %v12917_v10 = vrot.slane %v12915_v16, 4  ;;  %v24768_v35 = vcombine.low %v24766_v15, %v24767_v18  ;;  %v24781_v30 = vld [vmem:[#allocation41_spill] sm:$0xff]  ;;  %v24784_v31 = vld [vmem:[#allocation46_spill] sm:$0xff]  ;;  %v24787_v41 = vld [vmem:[#allocation44_spill] sm:$0xff] }
 0x5ab   : > { %v16374_v29 = vcombine.low %v12909_v62, %v12912_v38  ;;  %v12916_v2 = vsel %vm19142_vm3, %v16357_v14, %v12915_v16  ;;  %v24771_v7 = vcombine.low %v24769_v61, %v24770_v39  ;;  %v24774_v60 = vcombine.low %v24772_v36, %v24773_v55  ;;  %v24790_v4 = vld [vmem:[#allocation12_spill] sm:$0xff]  ;;  %v24791_v9 = vld [vmem:[#allocation10_spill] sm:$0xff]  ;;  %v24797_v62 = vld [vmem:[#allocation15_spill] sm:$0xff] }
 0x5ac   : > { %v12919_v45 = vsel %vm19142_vm3, %v12917_v10, %v12918_v33  ;;  %v24783_v1 = vcombine.low %v24781_v30, %v24782_v50  ;;  %v24786_v40 = vcombine.low %v24784_v31, %v24785_v57  ;;  %v24789_v8 = vcombine.low %v24787_v41, %v24788_v48  ;;  %v24793_v3 = vld [vmem:[#allocation14_spill] sm:$0xff]  ;;  %v24794_v38 = vld [vmem:[#allocation16_spill] sm:$0xff]  ;;  %v24799_v10 = vld [vmem:[#allocation17_spill] sm:$0xff] }
 0x5ad   : > { %17798 = vmatmul.mubr.msk.bf16.gmra.mrb[56].mxu1 %vm10787_vm14, %v16336_v44  ;;  %v16375_v26 = vcombine.low %v12916_v2, %v12919_v45  ;;  %v24776_v44 = vld [vmem:[#allocation38_spill] sm:$0xff]  ;;  %v24792_v16 = vcombine.low %v24790_v4, %v24791_v9  ;;  %v24795_v25 = vcombine.low %v24793_v3, %v24794_v38  ;;  %v24802_v33 = vld [vmem:[#allocation20_spill] sm:$0xff]  ;;  %v24803_v14 = vld [vmem:[#allocation5_spill] sm:$0xff] }
 0x5ae   : > { %17801 = vmatprep.mubr.msk.bf16.mxu1 %vm10787_vm14, %v16337_v49  ;;  %v24777_v63 = vcombine.low %v24775_v28, %v24776_v44  ;;  %v24779_v49 = vld [vmem:[#allocation40_spill] sm:$0xff]  ;;  %v24800_v47 = vld [vmem:[#allocation18_spill] sm:$0xff]  ;;  %v24804_v45 = vcombine.low %v24802_v33, %v24803_v14  ;;  %v18900_v18 = vld [vmem:[#allocation2 + $0x18] sm:$0xff]  }
 0x5af   : > { %v24801_v53 = vcombine.low %v24799_v10, %v24800_v47  ;;  %v9760_v2 = vld [vmem:[#allocation2 + $0xd4] sm:$0x1]  ;;  %v24807_v61 = vld [vmem:[#allocation8_spill] sm:$0xff]  ;;  %v18905_v28 = vld [vmem:[#allocation2 + $0x48] sm:$0xff]  }
 0x5b0   : > { %v9761_v15 = vsel %vm22282_vm12, 0, %v9760_v2  ;;  %v23946_v36 = vld [vmem:[%s24329_s5 + $0x40] sm:$0xff]   ;;  %v18903_v55 = vld [vmem:[#allocation2 + $0x30] sm:$0xff]   ;;  %v24811_v47 = vld [vmem:[#allocation23_spill] sm:$0xff] }
 0x5b1   : > { %9762 = vst [vmem:[#allocation2 + $0xd4] sm:$0x1] %v9761_v15  ;;  %v18906_v44 = vld [vmem:[#allocation2 + $0x54] sm:$0xff]   ;;  %v18910_v57 = vld [vmem:[#allocation2 + $0x84] sm:$0xff]   ;;  %v18912_v33 = vld [vmem:[#allocation2 + $0x9c] sm:$0xff]  }
 0x5b5   : > { %17802 = vmatmul.mubr.msk.bf16.gmra.mrb[60].mxu1 %vm10787_vm14, %v16338_v5  ;;  %v24796_v5 = vld [vmem:[#allocation13_spill] sm:$0xff] }
 0x5b6   : > { %17807 = vmatprep.mubr.msk.bf16.mxu1 %vm10787_vm14, %v16374_v29  ;;  %v24798_v29 = vcombine.low %v24796_v5, %v24797_v62 }
 0x5bd   : > { %17808 = vmatmul.mubr.msk.bf16.vlgmr.msra.gmra.mrb[32].mxu1 %vm10787_vm14, %v16375_v26 }
 0x5be   : > { %17840 = vmatpush3.bf16.msra.mxu1 %v23632_v59  ;;  %17811 = vmatprep.mubr.msk.bf16.mxu1 %vm10787_vm14, %v24768_v35  ;;  %v24778_v59 = vld [vmem:[#allocation39_spill] sm:$0xff]  ;;  %v24806_v35 = vld [vmem:[#allocation6_spill] sm:$0xff] }
 0x5bf   : > { %17873 = vmatprep.subr.bf16.mxu1 %v18901_v20  ;;  %v24780_v51 = vcombine.low %v24778_v59, %v24779_v49  ;;  %v24808_v39 = vcombine.low %v24806_v35, %v24807_v61  ;;  %v18908_v59 = vld [vmem:[#allocation2 + $0x6c] sm:$0xff]   ;;  %v18909_v49 = vld [vmem:[#allocation2 + $0x78] sm:$0xff]  }
 0x5c5   : > { %17812 = vmatmul.mubr.msk.bf16.gmra.mrb[36].mxu1 %vm10787_vm14, %v24771_v7  ;;  %v18902_v7 = vld [vmem:[#allocation2 + $0x24] sm:$0xff]  }
 0x5c6   : > { %17815 = vmatprep.mubr.msk.bf16.mxu1 %vm10787_vm14, %v24774_v60  ;;  %v18904_v60 = vld [vmem:[#allocation2 + $0x3c] sm:$0xff]  }
 0x5cd   : > { %17816 = vmatmul.mubr.msk.bf16.gmra.mrb[40].mxu1 %vm10787_vm14, %v24777_v63  ;;  %v18907_v63 = vld [vmem:[#allocation2 + $0x60] sm:$0xff]  }
 0x5ce   : > { %17819 = vmatprep.mubr.msk.bf16.mxu1 %vm10787_vm14, %v24780_v51  ;;  %v24809_v51 = vld [vmem:[#allocation22_spill] sm:$0xff] }
 0x5cf   : > { %v13737_v30 = vshll.u32 %v24809_v51, 16  ;;  %v13741_v50 = vshrl.u32 %v24809_v51, 16 }
 0x5d1   : > { %v13739_v41 = vrot.slane %v13737_v30, 5  ;;  %v13743_v48 = vrot.slane %v13741_v50, 4 }
 0x5d3   : > { %v13744_v3 = vor.u32 %v13743_v48, %v13739_v41  ;;  %v18914_v48 = vld [vmem:[#allocation2 + $0xb4] sm:$0xff]  }
 0x5d5   : > { %17820 = vmatmul.mubr.msk.bf16.gmra.mrb[44].mxu1 %vm10787_vm14, %v24783_v1  ;;  %v13745_v2 = vrot.slane %v13744_v3, 4  ;;  %v18915_v3 = vld [vmem:[#allocation2 + $0xc0] sm:$0xff]  }
 0x5d6   : > { %17823 = vmatprep.mubr.msk.bf16.mxu1 %vm10787_vm14, %v24786_v40  ;;  %v18911_v40 = vld [vmem:[#allocation2 + $0x90] sm:$0xff]  }
 0x5dd   : > { %17824 = vmatmul.mubr.msk.bf16.gmra.mrb[48].mxu1 %vm10787_vm14, %v24789_v8  ;;  %v13682_v8 = vld [vmem:[#allocation2 + $0x24] sm:$0xf] }
 0x5de   : > { %17827 = vmatprep.mubr.msk.bf16.mxu1 %vm10787_vm14, %v24792_v16  ;;  %v13752_v16 = vshrl.u32 %v13682_v8, 16  ;;  %v13755_v38 = vshll.u32 %v13682_v8, 16 }
 0x5e0   : > { %v13754_v14 = vrot.slane %v13752_v16, 4  ;;  %v13757_v26 = vrot.slane %v13755_v38, 5  ;;  %v13691_v16 = vld [vmem:[#allocation2 + $0x48] sm:$0xf] }
 0x5e5   : > { %17828 = vmatmul.mubr.msk.bf16.gmra.mrb[52].mxu1 %vm10787_vm14, %v24795_v25  ;;  %v24810_v25 = vld [vmem:[#allocation25_spill] sm:$0xff] }
 0x5e6   : > { %17831 = vmatprep.mubr.msk.bf16.mxu1 %vm10787_vm14, %v24798_v29  ;;  %v13761_v5 = vshll.u32 %v24810_v25, 16  ;;  %v13765_v62 = vshrl.u32 %v24810_v25, 16  ;;  %v13685_v29 = vld [vmem:[#allocation2 + $0x30] sm:$0xf]  ;;  %v24814_v25 = vld [vmem:[#allocation27_spill] sm:$0xff] }
 0x5e7   : > { %v13779_v61 = vshll.u32 %v13685_v29, 16 }
 0x5e8   : > { %v23964_v15 = vrot.slane %v13761_v5, 5  ;;  %v13767_v35 = vrot.slane %v13765_v62, 4  ;;  %v13795_v5 = vshll.u32 %v24814_v25, 16  ;;  %v24815_v62 = vld [vmem:[#allocation28_spill] sm:$0xff] }
 0x5e9   : > { %v13781_v50 = vrot.slane %v13779_v61, 5 }
 0x5ea   : > { %v13768_v30 = vor.u32 %v13767_v35, %v23964_v15 }
 0x5ed   : > { %17832 = vmatmul.mubr.msk.bf16.gmra.mrb[56].mxu1 %vm10787_vm14, %v24801_v53  ;;  %v13747_v53 = vshll.u32 %v24811_v47, 16  ;;  %v13769_v47 = vrot.slane %v13768_v30, 4 }
 0x5ee   : > { %17835 = vmatprep.mubr.msk.bf16.mxu1 %vm10787_vm14, %v24804_v45  ;;  %v18913_v45 = vld [vmem:[#allocation2 + $0xa8] sm:$0xff]  }
 0x5f5   : > { %17836 = vmatmul.mubr.msk.bf16.gmra.mrb[60].mxu1 %vm10787_vm14, %v24808_v39  ;;  %v24812_v39 = vld [vmem:[#allocation24_spill] sm:$0xff] }
 0x5f6   : > { %17841 = vmatprep.mubr.msk.bf16.mxu1 %vm10787_vm14, %v18900_v18  ;;  %v13776_v18 = vshrl.u32 %v13685_v29, 16  ;;  %v13809_v29 = vshll.u32 %v24815_v62, 16 }
 0x5f8   : > { %v13778_v51 = vrot.slane %v13776_v18, 4  ;;  %v14424_v18 = vld [vmem:[#allocation2 + $0xcc] sm:$0xe] }
 0x5fd   : > { %17842 = vmatmul.mubr.msk.bf16.vlgmr.msra.gmra.mrb[32].mxu1 %vm10787_vm14, %v18902_v7  ;;  %v13785_v7 = vshll.u32 %v24812_v39, 16 }
 0x5fe   : > { %17874 = vmatpush3.bf16.msra.mxu1 %v18901_v20  ;;  %17845 = vmatprep.mubr.msk.bf16.mxu1 %vm10787_vm14, %v18903_v55  ;;  %v13679_v20 = vld [vmem:[#allocation2 + $0x18] sm:$0xf]  ;;  %v13789_v55 = vshrl.u32 %v24812_v39, 16 }
 0x5ff   : > { %17907 = vmatprep.subr.bf16.mxu1 %v23946_v36  ;;  %v13728_v1 = vshrl.u32 %v13679_v20, 16  ;;  %v13731_v31 = vshll.u32 %v13679_v20, 16  ;;  %v13758_v20 = vor.u32 %v13757_v26, %v13754_v14  ;;  %v23984_v14 = vld [vmem:[#allocation2 + $0xd0] sm:$0xf]  ;;  %v13837_v26 = vshrl.u32 %v23521_v34, 16 }
 0x600   : > { %v14580_v35 = vrot.slane %v23984_v14, 5 }
 0x601   : > { %v13730_v4 = vrot.slane %v13728_v1, 4  ;;  %v13733_v9 = vrot.slane %v13731_v31, 5  ;;  %v23974_v1 = vrot.slane %v13785_v7, 5  ;;  %v13791_v31 = vrot.slane %v13789_v55, 4  ;;  %v13694_v7 = vld [vmem:[#allocation2 + $0x54] sm:$0xf] }
 0x602   : > { %v13759_v38 = vrot.slane %v13758_v20, 4  ;;  %v13857_v55 = vshll.u32 %v23540_v23, 16  ;;  %v18916_v20 = vld [vmem:[#allocation2 + $0xcc] sm:$0xff]  }
 0x603   : > { %v13734_v10 = vor.u32 %v13733_v9, %v13730_v4 }
 0x604   : > { %v13764_v25 = vsel %vm19559_vm7, %v13759_v38, %v23964_v15 }
 0x605   : > { %17846 = vmatmul.mubr.msk.bf16.gmra.mrb[36].mxu1 %vm10787_vm14, %v18904_v60  ;;  %v13735_v60 = vrot.slane %v13734_v10, 4  ;;  %v13813_v10 = vshrl.u32 %v24815_v62, 16 }
 0x606   : > { %17849 = vmatprep.mubr.msk.bf16.mxu1 %vm10787_vm14, %v18905_v28  ;;  %v13749_v28 = vrot.slane %v13747_v53, 5  ;;  %v13782_v53 = vor.u32 %v13781_v50, %v13778_v51 }
 0x60d   : > { %17850 = vmatmul.mubr.msk.bf16.gmra.mrb[40].mxu1 %vm10787_vm14, %v18906_v44  ;;  %v24813_v44 = vld [vmem:[#allocation26_spill] sm:$0xff] }
 0x60e   : > { %17853 = vmatprep.mubr.msk.bf16.mxu1 %vm10787_vm14, %v18907_v63  ;;  %v13771_v63 = vshll.u32 %v24813_v44, 16  ;;  %v23994_v44 = vrot.slane %v13809_v29, 5  ;;  %v13783_v29 = vrot.slane %v13782_v53, 4  ;;  %v13872_v53 = vshrl.u32 %v13697_v6, 16 }
 0x610   : > { %v13773_v4 = vrot.slane %v13771_v63, 5  ;;  %v13815_v63 = vrot.slane %v13813_v10, 4  ;;  %v13819_v10 = vshll.u32 %v23519_v52, 16 }
 0x612   : > { %v13774_v62 = vsel %vm19559_vm7, %v13769_v47, %v13773_v4 }
 0x613   : > { %v16445_v47 = vcombine.low %v13764_v25, %v13774_v62 }
 0x615   : > { %17854 = vmatmul.mubr.msk.bf16.gmra.mrb[44].mxu1 %vm10787_vm14, %v18908_v59  ;;  %v13688_v59 = vld [vmem:[#allocation2 + $0x3c] sm:$0xf] }
 0x616   : > { %17857 = vmatprep.mubr.msk.bf16.mxu1 %vm10787_vm14, %v18909_v49  ;;  %v13750_v49 = vsel %vm19559_vm7, %v13745_v2, %v13749_v28  ;;  %v13803_v9 = vshll.u32 %v13688_v59, 16  ;;  %v16492_v28 = vrot.slane %v14424_v18, 9 }
 0x618   : > { %v13805_v39 = vrot.slane %v13803_v9, 5  ;;  %v24000_v50 = vsel %vm19142_vm3, %v16492_v28, %v14580_v35  ;;  %v24006_v9 = vrot.slane %v13857_v55, 5 }
 0x61d   : > { %17858 = vmatmul.mubr.msk.bf16.gmra.mrb[48].mxu1 %vm10787_vm14, %v18910_v57  ;;  %v13740_v57 = vsel %vm19559_vm7, %v13735_v60, %v13739_v41  ;;  %v13792_v41 = vor.u32 %v13791_v31, %v23974_v1  ;;  %v13861_v60 = vshrl.u32 %v23540_v23, 16  ;;  %v13839_v31 = vrot.slane %v13837_v26, 4 }
 0x61e   : > { %17861 = vmatprep.mubr.msk.bf16.mxu1 %vm10787_vm14, %v18911_v40  ;;  %v13800_v40 = vshrl.u32 %v13688_v59, 16  ;;  %v16444_v8 = vcombine.low %v13740_v57, %v13750_v49  ;;  %v13824_v59 = vshrl.u32 %v13691_v16, 16  ;;  %v14582_v49 = vrot.slane %v14580_v35, 4 }
 0x61f   : > { %v13793_v51 = vrot.slane %v13792_v41, 4  ;;  %v13848_v57 = vshrl.u32 %v13694_v7, 16  ;;  %v13875_v35 = vshll.u32 %v13697_v6, 16 }
 0x620   : > { %v13802_v2 = vrot.slane %v13800_v40, 4  ;;  %v13851_v40 = vshll.u32 %v13694_v7, 16  ;;  %v13826_v26 = vrot.slane %v13824_v59, 4  ;;  %v24817_v7 = vld [vmem:[#allocation50_spill] sm:$0xff]  ;;  %v13821_v59 = vrot.slane %v13819_v10, 5 }
 0x621   : > { %v13850_v38 = vrot.slane %v13848_v57, 4  ;;  %v13881_v55 = vshll.u32 %v24817_v7, 16 }
 0x622   : > { %v13806_v41 = vor.u32 %v13805_v39, %v13802_v2  ;;  %v13853_v4 = vrot.slane %v13851_v40, 5  ;;  %v24816_v2 = vld [vmem:[#allocation49_spill] sm:$0xff] }
 0x623   : > { %v13843_v39 = vshll.u32 %v24816_v2, 16  ;;  %v24030_v62 = vrot.slane %v13881_v55, 5 }
 0x624   : > { %v13854_v57 = vor.u32 %v13853_v4, %v13850_v38 }
 0x625   : > { %17862 = vmatmul.mubr.msk.bf16.gmra.mrb[52].mxu1 %vm10787_vm14, %v18912_v33  ;;  %v13833_v33 = vshll.u32 %v23521_v34, 16  ;;  %v13827_v34 = vshll.u32 %v13691_v16, 16  ;;  %v13845_v25 = vrot.slane %v13843_v39, 5 }
 0x626   : > { %17865 = vmatprep.mubr.msk.bf16.mxu1 %vm10787_vm14, %v18913_v45  ;;  %v23986_v45 = vld [vmem:[#allocation2 + $0xd4] sm:$0x1] }
 0x627   : > { %v14583_v61 = vrot.slane %v23986_v45, 5  ;;  %v23996_v30 = vrot.slane %v13833_v33, 5  ;;  %v13816_v33 = vor.u32 %v13815_v63, %v23994_v44  ;;  %v13829_v18 = vrot.slane %v13827_v34, 5 }
 0x628   : > { %v13807_v63 = vrot.slane %v13806_v41, 4  ;;  %v24819_v41 = vld [vmem:[#allocation57_spill] sm:$0xff] }
 0x629   : > { %v24004_v23 = vsel %vm19142_vm3, %v14582_v49, %v14583_v61  ;;  %v13840_v15 = vor.u32 %v13839_v31, %v23996_v30  ;;  %v13788_v61 = vsel %vm19559_vm7, %v13783_v29, %v23974_v1  ;;  %v24818_v49 = vld [vmem:[#allocation54_spill] sm:$0xff]  ;;  %v13830_v34 = vor.u32 %v13829_v18, %v13826_v26  ;;  %v13703_v18 = vld [vmem:[#allocation2 + $0x78] sm:$0xf] }
 0x62a   : > { %v16510_v16 = vcombine.low %v24000_v50, %v24004_v23  ;;  %v13812_v10 = vsel %vm19559_vm7, %v13807_v63, %v23994_v44  ;;  %v13909_v26 = vshrl.u32 %v24819_v41, 16  ;;  %v13920_v39 = vshrl.u32 %v13703_v18, 16 }
 0x62b   : > { %v13841_v31 = vrot.slane %v13840_v15, 4  ;;  %v13831_v38 = vrot.slane %v13830_v34, 4 }
 0x62d   : > { %17866 = vmatmul.mubr.msk.bf16.gmra.mrb[56].mxu1 %vm10787_vm14, %v18914_v48  ;;  %v13797_v48 = vrot.slane %v13795_v5, 5  ;;  %v13846_v4 = vsel %vm19559_vm7, %v13841_v31, %v13845_v25 }
 0x62e   : > { %17869 = vmatprep.mubr.msk.bf16.mxu1 %vm10787_vm14, %v18915_v3  ;;  %v13863_v3 = vrot.slane %v13861_v60, 4  ;;  %v13700_v60 = vld [vmem:[#allocation2 + $0x6c] sm:$0xf] }
 0x62f   : > { %v13798_v5 = vsel %vm19559_vm7, %v13793_v51, %v13797_v48  ;;  %v13817_v51 = vrot.slane %v13816_v33, 4  ;;  %v13874_v48 = vrot.slane %v13872_v53, 4  ;;  %v13896_v1 = vshrl.u32 %v13700_v60, 16  ;;  %v24820_v53 = vld [vmem:[#allocation55_spill] sm:$0xff] }
 0x630   : > { %v13864_v52 = vor.u32 %v13863_v3, %v24006_v9  ;;  %v16446_v28 = vcombine.low %v13788_v61, %v13798_v5  ;;  %v13877_v3 = vrot.slane %v13875_v35, 5  ;;  %v13899_v6 = vshll.u32 %v13700_v60, 16 }
 0x631   : > { %v13905_v33 = vshll.u32 %v24819_v41, 16  ;;  %v13822_v15 = vsel %vm19559_vm7, %v13817_v51, %v13821_v59  ;;  %v13891_v35 = vshll.u32 %v24820_v53, 16  ;;  %v13898_v61 = vrot.slane %v13896_v1, 4  ;;  %v24822_v41 = vld [vmem:[#allocation65_spill] sm:$0xff] }
 0x632   : > { %v13865_v40 = vrot.slane %v13864_v52, 4  ;;  %v13878_v52 = vor.u32 %v13877_v3, %v13874_v48  ;;  %v13929_v60 = vshll.u32 %v23582_v42, 16  ;;  %v16447_v63 = vcombine.low %v13812_v10, %v13822_v15  ;;  %v24821_v48 = vld [vmem:[#allocation61_spill] sm:$0xff] }
 0x633   : > { %v24048_v55 = vrot.slane %v13905_v33, 5  ;;  %v13836_v59 = vsel %vm19559_vm7, %v13831_v38, %v23996_v30  ;;  %v13893_v31 = vrot.slane %v13891_v35, 5  ;;  %v13915_v3 = vshll.u32 %v24821_v48, 16  ;;  %v24823_v38 = vld [vmem:[#allocation67_spill] sm:$0xff] }
 0x634   : > { %v13879_v34 = vrot.slane %v13878_v52, 4  ;;  %v13922_v1 = vrot.slane %v13920_v39, 4  ;;  %v13953_v33 = vshll.u32 %v24822_v41, 16  ;;  %v24824_v39 = vld [vmem:[#allocation62_spill] sm:$0xff] }
 0x635   : > { %17870 = vmatmul.mubr.msk.bf16.gmra.mrb[60].mxu1 %vm10787_vm14, %v18916_v20  ;;  %v13867_v20 = vshll.u32 %v24818_v49, 16  ;;  %v13917_v53 = vrot.slane %v13915_v3, 5 }
 0x636   : > { %17875 = vmatprep.mubr.msk.bf16.mxu1 %vm10787_vm14, %v16444_v8  ;;  %v13885_v8 = vshrl.u32 %v24817_v7, 16  ;;  %v13923_v7 = vshll.u32 %v13703_v18, 16 }
 0x637   : > { %v13869_v5 = vrot.slane %v13867_v20, 5  ;;  %v16448_v20 = vcombine.low %v13836_v59, %v13846_v4  ;;  %v13977_v4 = vshll.u32 %v24823_v38, 16 }
 0x638   : > { %v13887_v29 = vrot.slane %v13885_v8, 4  ;;  %v13911_v8 = vrot.slane %v13909_v26, 4  ;;  %v13925_v25 = vrot.slane %v13923_v7, 5  ;;  %v13957_v26 = vshrl.u32 %v24822_v41, 16 }
 0x639   : > { %v13870_v44 = vsel %vm19559_vm7, %v13865_v40, %v13869_v5  ;;  %v13939_v7 = vshll.u32 %v24824_v39, 16 }
 0x63a   : > { %v13888_v2 = vor.u32 %v13887_v29, %v24030_v62  ;;  %v13912_v30 = vor.u32 %v13911_v8, %v24048_v55  ;;  %v13926_v35 = vor.u32 %v13925_v25, %v13922_v1 }
 0x63c   : > { %v13889_v29 = vrot.slane %v13888_v2, 4  ;;  %v13913_v2 = vrot.slane %v13912_v30, 4  ;;  %v13941_v30 = vrot.slane %v13939_v7, 5 }
 0x63d   : > { %17876 = vmatmul.mubr.msk.bf16.vlgmr.msra.gmra.mrb[32].mxu1 %vm10787_vm14, %v16445_v47  ;;  %v13855_v47 = vrot.slane %v13854_v57, 4  ;;  %v13706_v57 = vld [vmem:[#allocation2 + $0x84] sm:$0xf] }
 0x63e   : > { %17908 = vmatpush3.bf16.msra.mxu1 %v23946_v36  ;;  %17879 = vmatprep.mubr.msk.bf16.mxu1 %vm10787_vm14, %v16446_v28  ;;  %v13901_v36 = vrot.slane %v13899_v6, 5  ;;  %v13933_v28 = vshrl.u32 %v23582_v42, 16  ;;  %v13709_v42 = vld [vmem:[#allocation2 + $0x90] sm:$0xf]  ;;  %v13931_v6 = vrot.slane %v13929_v60, 5  ;;  %v13947_v5 = vshll.u32 %v13706_v57, 16 }
 0x63f   : > { %v13860_v49 = vsel %vm19559_vm7, %v13855_v47, %v24006_v9  ;;  %v13944_v9 = vshrl.u32 %v13706_v57, 16  ;;  %v13968_v18 = vshrl.u32 %v13709_v42, 16  ;;  %v13971_v15 = vshll.u32 %v13709_v42, 16 }
 0x640   : > { %v16449_v51 = vcombine.low %v13860_v49, %v13870_v44  ;;  %v13902_v40 = vor.u32 %v13901_v36, %v13898_v61  ;;  %v13935_v10 = vrot.slane %v13933_v28, 4  ;;  %v13981_v47 = vshrl.u32 %v24823_v38, 16 }
 0x641   : > { %v13884_v44 = vsel %vm19559_vm7, %v13879_v34, %v24030_v62  ;;  %v13894_v61 = vsel %vm19559_vm7, %v13889_v29, %v13893_v31  ;;  %v13946_v8 = vrot.slane %v13944_v9, 4  ;;  %v13949_v60 = vrot.slane %v13947_v5, 5  ;;  %v13712_v34 = vld [vmem:[#allocation2 + $0x9c] sm:$0xf] }
 0x642   : > { %v13903_v52 = vrot.slane %v13902_v40, 4  ;;  %v13936_v36 = vor.u32 %v13935_v10, %v13931_v6  ;;  %v24072_v28 = vrot.slane %v13953_v33, 5  ;;  %v13970_v59 = vrot.slane %v13968_v18, 4  ;;  %v24825_v10 = vld [vmem:[#allocation70_spill] sm:$0xff]  ;;  %v24826_v33 = vld [vmem:[#allocation73_spill] sm:$0xff] }
 0x643   : > { %v13973_v49 = vrot.slane %v13971_v15, 5  ;;  %v13983_v62 = vrot.slane %v13981_v47, 4  ;;  %v16450_v57 = vcombine.low %v13884_v44, %v13894_v61  ;;  %v13927_v40 = vrot.slane %v13926_v35, 4  ;;  %v13715_v15 = vld [vmem:[#allocation2 + $0xa8] sm:$0xf] }
 0x644   : > { %v13908_v31 = vsel %vm19559_vm7, %v13903_v52, %v24048_v55  ;;  %v13918_v48 = vsel %vm19559_vm7, %v13913_v2, %v13917_v53  ;;  %v13937_v3 = vrot.slane %v13936_v36, 4  ;;  %v13950_v1 = vor.u32 %v13949_v60, %v13946_v8 }
 0x645   : > { %17880 = vmatmul.mubr.msk.bf16.gmra.mrb[36].mxu1 %vm10787_vm14, %v16447_v63  ;;  %v13959_v63 = vrot.slane %v13957_v26, 4  ;;  %v13992_v42 = vshrl.u32 %v13712_v34, 16  ;;  %v13995_v29 = vshll.u32 %v13712_v34, 16  ;;  %v13963_v9 = vshll.u32 %v24825_v10, 16 }
 0x646   : > { %17883 = vmatprep.mubr.msk.bf16.mxu1 %vm10787_vm14, %v16448_v20  ;;  %v24074_v20 = vrot.slane %v13977_v4, 5  ;;  %v13974_v5 = vor.u32 %v13973_v49, %v13970_v59  ;;  %v16451_v41 = vcombine.low %v13908_v31, %v13918_v48  ;;  %v13932_v55 = vsel %vm19559_vm7, %v13927_v40, %v13931_v6  ;;  %v24827_v4 = vld [vmem:[#allocation68_spill] sm:$0xff] }
 0x647   : > { %v13960_v25 = vor.u32 %v13959_v63, %v24072_v28  ;;  %v14001_v26 = vshll.u32 %v24826_v33, 16  ;;  %v14005_v18 = vshrl.u32 %v24826_v33, 16  ;;  %v13942_v38 = vsel %vm19559_vm7, %v13937_v3, %v13941_v30 }
 0x648   : > { %v13987_v47 = vshll.u32 %v24827_v4, 16  ;;  %v14025_v44 = vshll.u32 %v23656_v46, 16  ;;  %v14029_v52 = vshrl.u32 %v23656_v46, 16  ;;  %v13951_v53 = vrot.slane %v13950_v1, 4  ;;  %v13718_v46 = vld [vmem:[#allocation2 + $0xb4] sm:$0xf] }
 0x649   : > { %v13961_v35 = vrot.slane %v13960_v25, 4  ;;  %v13994_v61 = vrot.slane %v13992_v42, 4  ;;  %v13997_v2 = vrot.slane %v13995_v29, 5  ;;  %v13975_v36 = vrot.slane %v13974_v5, 4 }
 0x64a   : > { %v14016_v39 = vshrl.u32 %v13715_v15, 16  ;;  %v14019_v7 = vshll.u32 %v13715_v15, 16  ;;  %v16452_v8 = vcombine.low %v13932_v55, %v13942_v38  ;;  %v13965_v60 = vrot.slane %v13963_v9, 5  ;;  %v13721_v9 = vld [vmem:[#allocation2 + $0xc0] sm:$0xf] }
 0x64b   : > { %v24095_v63 = vrot.slane %v14001_v26, 5  ;;  %v14007_v59 = vrot.slane %v14005_v18, 4  ;;  %v13989_v49 = vrot.slane %v13987_v47, 5  ;;  %v14031_v34 = vrot.slane %v14029_v52, 4  ;;  %v19053_v15 = vld [vmem:[#allocation2 + $0xb0] sm:$0x1] }
 0x64c   : > { %v13966_v40 = vsel %vm19559_vm7, %v13961_v35, %v13965_v60  ;;  %v13998_v31 = vor.u32 %v13997_v2, %v13994_v61  ;;  %v14011_v48 = vshll.u32 %v23668_v0, 16  ;;  %v13980_v3 = vsel %vm19559_vm7, %v13975_v36, %v24074_v20 }
 0x64d   : > { %17884 = vmatmul.mubr.msk.bf16.gmra.mrb[40].mxu1 %vm10787_vm14, %v16449_v51  ;;  %v13984_v51 = vor.u32 %v13983_v62, %v24074_v20  ;;  %v24098_v62 = vrot.slane %v14025_v44, 5  ;;  %v14018_v25 = vrot.slane %v14016_v39, 4  ;;  %v14021_v42 = vrot.slane %v14019_v7, 5  ;;  %v13724_v44 = vld [vmem:[#allocation2 + $0xcc] sm:$0xf] }
 0x64e   : > { %17887 = vmatprep.mubr.msk.bf16.mxu1 %vm10787_vm14, %v16450_v57  ;;  %v13956_v57 = vsel %vm19559_vm7, %v13951_v53, %v24072_v28  ;;  %v14008_v29 = vor.u32 %v14007_v59, %v24095_v63  ;;  %v14040_v30 = vshrl.u32 %v13718_v46, 16  ;;  %v14049_v28 = vshll.u32 %v23683_v56, 16 }
 0x64f   : > { %v13985_v6 = vrot.slane %v13984_v51, 4  ;;  %v14053_v10 = vshrl.u32 %v23683_v56, 16  ;;  %v14032_v5 = vor.u32 %v14031_v34, %v24098_v62  ;;  %v14043_v0 = vshll.u32 %v13718_v46, 16 }
 0x650   : > { %v14073_v51 = vshll.u32 %v23698_v11, 16  ;;  %v14077_v20 = vshrl.u32 %v23698_v11, 16  ;;  %v13999_v33 = vrot.slane %v13998_v31, 4  ;;  %v14013_v26 = vrot.slane %v14011_v48, 5 }
 0x651   : > { %v13990_v1 = vsel %vm19559_vm7, %v13985_v6, %v13989_v49  ;;  %v14022_v18 = vor.u32 %v14021_v42, %v14018_v25  ;;  %v14035_v38 = vshll.u32 %v19053_v15, 16  ;;  %v14064_v4 = vshrl.u32 %v13721_v9, 16 }
 0x652   : > { %v16454_v55 = vcombine.low %v13980_v3, %v13990_v1  ;;  %v14067_v47 = vshll.u32 %v13721_v9, 16  ;;  %v14009_v52 = vrot.slane %v14008_v29, 4  ;;  %v14042_v56 = vrot.slane %v14040_v30, 4  ;;  %v19054_v3 = vld [vmem:[#allocation2 + $0xbc] sm:$0x1] }
 0x653   : > { %v14051_v53 = vrot.slane %v14049_v28, 5  ;;  %v14055_v35 = vrot.slane %v14053_v10, 4  ;;  %v14033_v61 = vrot.slane %v14032_v5, 4  ;;  %v14045_v2 = vrot.slane %v14043_v0, 5  ;;  %v19055_v9 = vld [vmem:[#allocation2 + $0xc8] sm:$0x1] }
 0x654   : > { %v14075_v36 = vrot.slane %v14073_v51, 5  ;;  %v14079_v11 = vrot.slane %v14077_v20, 4  ;;  %v14088_v6 = vshrl.u32 %v13724_v44, 16  ;;  %v14091_v39 = vshll.u32 %v13724_v44, 16 }
 0x655   : > { %17888 = vmatmul.mubr.msk.bf16.gmra.mrb[44].mxu1 %vm10787_vm14, %v16451_v41  ;;  %v16453_v41 = vcombine.low %v13956_v57, %v13966_v40  ;;  %v14097_v7 = vshll.u32 %v23984_v14, 16  ;;  %v14023_v60 = vrot.slane %v14022_v18, 4  ;;  %v14037_v59 = vrot.slane %v14035_v38, 5 }
 0x656   : > { %17891 = vmatprep.mubr.msk.bf16.mxu1 %vm10787_vm14, %v16452_v8  ;;  %v14101_v8 = vshrl.u32 %v23984_v14, 16  ;;  %v14066_v49 = vrot.slane %v14064_v4, 4  ;;  %v14069_v34 = vrot.slane %v14067_v47, 5  ;;  %v14004_v46 = vsel %vm19559_vm7, %v13999_v33, %v24095_v63 }
 0x657   : > { %v14014_v57 = vsel %vm19559_vm7, %v14009_v52, %v14013_v26  ;;  %v14056_v40 = vor.u32 %v14055_v35, %v14051_v53  ;;  %v14038_v31 = vsel %vm19559_vm7, %v14033_v61, %v14037_v59  ;;  %v14046_v48 = vor.u32 %v14045_v2, %v14042_v56  ;;  %v24834_v59 = vld [vmem:[#allocation53_spill] sm:$0xff] }
 0x658   : > { %v14059_v1 = vshll.u32 %v19054_v3, 16  ;;  %v14080_v25 = vor.u32 %v14079_v11, %v14075_v36  ;;  %v14090_v14 = vrot.slane %v14088_v6, 4  ;;  %v14093_v42 = vrot.slane %v14091_v39, 5  ;;  %v24829_v39 = vld [vmem:[#allocation48_spill] sm:$0xff] }
 0x659   : > { %v14099_v29 = vrot.slane %v14097_v7, 5  ;;  %v14103_v30 = vrot.slane %v14101_v8, 4  ;;  %v16455_v28 = vcombine.low %v14004_v46, %v14014_v57  ;;  %v14028_v63 = vsel %vm19559_vm7, %v14023_v60, %v24098_v62  ;;  %v24832_v8 = vld [vmem:[#allocation52_spill] sm:$0xff]  ;;  %v24838_v46 = vld [vmem:[#allocation59_spill] sm:$0xff] }
 0x65a   : > { %v14070_v10 = vor.u32 %v14069_v34, %v14066_v49  ;;  %v14083_v5 = vshll.u32 %v19055_v9, 16  ;;  %v16456_v0 = vcombine.low %v14028_v63, %v14038_v31  ;;  %v14057_v51 = vrot.slane %v14056_v40, 4  ;;  %v24835_v49 = vld [vmem:[#allocation56_spill] sm:$0xff]  ;;  %v24841_v31 = vld [vmem:[#allocation63_spill] sm:$0xff] }
 0x65b   : > { %v14061_v20 = vrot.slane %v14059_v1, 5  ;;  %v14094_v33 = vor.u32 %v14093_v42, %v14090_v14  ;;  %v14104_v26 = vor.u32 %v14103_v30, %v14099_v29  ;;  %v14107_v18 = vshll.u32 %v23986_v45, 16  ;;  %v24840_v40 = vld [vmem:[#allocation60_spill] sm:$0xff]  ;;  %v24844_v1 = vld [vmem:[#allocation66_spill] sm:$0xff]  ;;  %v24846_v14 = vld [vmem:[#allocation69_spill] sm:$0xff] }
 0x65c   : > { %v14071_v15 = vrot.slane %v14070_v10, 4  ;;  %v14085_v38 = vrot.slane %v14083_v5, 5  ;;  %v24836_v34 = vcombine.low %v24834_v59, %v24835_v49  ;;  %v24839_v57 = vcombine.low %v24837_v21, %v24838_v46  ;;  %v24843_v3 = vld [vmem:[#allocation64_spill] sm:$0xff]  ;;  %v24847_v42 = vld [vmem:[#allocation71_spill] sm:$0xff] }
 0x65d   : > { %17892 = vmatmul.mubr.msk.bf16.gmra.mrb[48].mxu1 %vm10787_vm14, %v16453_v41  ;;  %v14081_v41 = vrot.slane %v14080_v25, 4  ;;  %v14062_v62 = vsel %vm19559_vm7, %v14057_v51, %v14061_v20  ;;  %v14095_v44 = vrot.slane %v14094_v33, 4  ;;  %v14105_v52 = vrot.slane %v14104_v26, 4  ;;  %v24849_v30 = vld [vmem:[#allocation72_spill] sm:$0xff]  ;;  %v24854_v5 = vld [vmem:[#allocation75_spill] sm:$0xff]  ;;  %v24857_v20 = vld [vmem:[#allocation78_spill] sm:$0xff] }
 0x65e   : > { %17895 = vmatprep.mubr.msk.bf16.mxu1 %vm10787_vm14, %v16454_v55  ;;  %v14047_v55 = vrot.slane %v14046_v48, 4  ;;  %v14109_v56 = vrot.slane %v14107_v18, 5  ;;  %v14076_v61 = vsel %vm19559_vm7, %v14071_v15, %v14075_v36  ;;  %v24831_v36 = vld [vmem:[#allocation51_spill] sm:$0xff]  ;;  %v24842_v48 = vcombine.low %v24840_v40, %v24841_v31  ;;  %v24852_v10 = vld [vmem:[#allocation76_spill] sm:$0xff] }
 0x65f   : > { %v14086_v4 = vsel %vm19559_vm7, %v14081_v41, %v14085_v38  ;;  %v14100_v45 = vsel %vm19559_vm7, %v14095_v44, %v14099_v29  ;;  %v24833_v60 = vcombine.low %v24831_v36, %v24832_v8  ;;  %v24845_v25 = vcombine.low %v24843_v3, %v24844_v1  ;;  %v24858_v41 = vld [vmem:[#allocation79_spill] sm:$0xff] }
 0x660   : > { %v14052_v47 = vsel %vm19559_vm7, %v14047_v55, %v14051_v53  ;;  %v16458_v2 = vcombine.low %v14076_v61, %v14086_v4  ;;  %v14110_v11 = vsel %vm19559_vm7, %v14105_v52, %v14109_v56  ;;  %v24828_v53 = vld [vmem:[#allocation47_spill] sm:$0xff]  ;;  %v24848_v29 = vcombine.low %v24846_v14, %v24847_v42 }
 0x661   : > { %v16457_v35 = vcombine.low %v14052_v47, %v14062_v62  ;;  %v16459_v6 = vcombine.low %v14100_v45, %v14110_v11  ;;  %v24830_v7 = vcombine.low %v24828_v53, %v24829_v39  ;;  %v24853_v9 = vcombine.low %v23662_v12, %v24852_v10 }
 0x662   : > { %v24859_v55 = vcombine.low %v24857_v20, %v24858_v41  ;;  %v24860_v12 = vcombine.low %v23731_v54, %v23735_v58 }
 0x665   : > { %17896 = vmatmul.mubr.msk.bf16.gmra.mrb[52].mxu1 %vm10787_vm14, %v16455_v28  ;;  %v24850_v28 = vld [vmem:[#allocation74_spill] sm:$0xff] }
 0x666   : > { %17899 = vmatprep.mubr.msk.bf16.mxu1 %vm10787_vm14, %v16456_v0  ;;  %v24851_v63 = vcombine.low %v24849_v30, %v24850_v28  ;;  %v24855_v0 = vld [vmem:[#allocation77_spill] sm:$0xff] }
 0x667   : > { %v24856_v51 = vcombine.low %v24854_v5, %v24855_v0 }
 0x66d   : > { %17900 = vmatmul.mubr.msk.bf16.gmra.mrb[56].mxu1 %vm10787_vm14, %v16457_v35 }
 0x66e   : > { %17903 = vmatprep.mubr.msk.bf16.mxu1 %vm10787_vm14, %v16458_v2 }
 0x675   : > { %17904 = vmatmul.mubr.msk.bf16.gmra.mrb[60].mxu1 %vm10787_vm14, %v16459_v6 }
 0x676   : > { %17909 = vmatprep.mubr.msk.bf16.mxu1 %vm10787_vm14, %v24830_v7 }
 0x67d   : > { %17910 = vmatmul.mubr.msk.bf16.vlgmr.msra.gmra.mrb[32].mxu1 %vm10787_vm14, %v24833_v60 }
 0x67e   : > { %17913 = vmatprep.mubr.msk.bf16.mxu1 %vm10787_vm14, %v24836_v34 }
 0x685   : > { %17914 = vmatmul.mubr.msk.bf16.gmra.mrb[36].mxu1 %vm10787_vm14, %v24839_v57 }
 0x686   : > { %17917 = vmatprep.mubr.msk.bf16.mxu1 %vm10787_vm14, %v24842_v48 }
 0x68d   : > { %17918 = vmatmul.mubr.msk.bf16.gmra.mrb[40].mxu1 %vm10787_vm14, %v24845_v25 }
 0x68e   : > { %17921 = vmatprep.mubr.msk.bf16.mxu1 %vm10787_vm14, %v24848_v29 }
 0x695   : > { %17922 = vmatmul.mubr.msk.bf16.gmra.mrb[44].mxu1 %vm10787_vm14, %v24851_v63 }
 0x696   : > { %17925 = vmatprep.mubr.msk.bf16.mxu1 %vm10787_vm14, %v24853_v9 }
 0x69d   : > { %17926 = vmatmul.mubr.msk.bf16.gmra.mrb[48].mxu1 %vm10787_vm14, %v24856_v51 }
 0x69e   : > { %17929 = vmatprep.mubr.msk.bf16.mxu1 %vm10787_vm14, %v24859_v55 }
 0x6a5   : > { %17930 = vmatmul.mubr.msk.bf16.gmra.mrb[52].mxu1 %vm10787_vm14, %v16506_v24 }
 0x6a6   : > { %17933 = vmatprep.mubr.msk.bf16.mxu1 %vm10787_vm14, %v24860_v12 }
 0x6ad   : > { %17934 = vmatmul.mubr.msk.bf16.gmra.mrb[56].mxu1 %vm10787_vm14, %v16508_v37 }
 0x6ae   : > { %17937 = vmatprep.mubr.msk.bf16.mxu1 %vm10787_vm14, %v16509_v32 }
 0x6b5   : > { %17938 = vmatmul.mubr.msk.bf16.gmra.mrb[60].mxu1 %vm10787_vm14, %v16510_v16 }
 0x750   : > { %v17911_v17 = vpop.f32.mrb[32].mxu1 }
 0x751   : > { %v14892_v24 = vadd.f32 %v17911_v17, %v24217_v13  ;;  %v14724_v54 = vpop.f32.mrb[33].mxu1 }
 0x752   : > { %v14890_v58 = vadd.f32 %v24217_v13, %v14724_v54  ;;  %v17912_v27 = vpop.f32.mrb[34].mxu1 }
 0x753   : > { %v14924_v43 = vmax.f32 %v14892_v24, 0.0  ;;  %v14893_v37 = vadd.f32 %v17912_v27, %v24217_v13  ;;  %v14727_v22 = vpop.f32.mrb[35].mxu1 }
 0x754   : > { %v14922_v19 = vmax.f32 %v14890_v58, 0.0  ;;  %v14891_v32 = vadd.f32 %v24217_v13, %v14727_v22 }
 0x755   : > { %14956 = vst.msk [vmem:[%s24224_s13 + $0x10] sm:$0xff] %vm446_vm4, %v14924_v43  ;;  %v14925_v50 = vmax.f32 %v14893_v37, 0.0 }
 0x756   : > { %14954 = vst.msk [vmem:[%s24224_s13] sm:$0xff] %vm446_vm4, %v14922_v19  ;;  %v14923_v23 = vmax.f32 %v14891_v32, 0.0 }
 0x757   : > { %14957 = vst.msk [vmem:[%s24224_s13 + $0x18] sm:$0xff] %vm446_vm4, %v14925_v50 }
 0x758   : > { %14955 = vst.msk [vmem:[%s24224_s13 + $0x8] sm:$0xff] %vm446_vm4, %v14923_v23  ;;  %v17915_v16 = vpop.f32.mrb[36].mxu1 }
 0x759   : > { %v14896_v33 = vadd.f32 %v17915_v16, %v24217_v13  ;;  %v14740_v26 = vpop.f32.mrb[37].mxu1 }
 0x75a   : > { %v14894_v18 = vadd.f32 %v24217_v13, %v14740_v26  ;;  %v17916_v15 = vpop.f32.mrb[38].mxu1 }
 0x75b   : > { %v14928_v38 = vmax.f32 %v14896_v33, 0.0  ;;  %v14897_v62 = vadd.f32 %v17916_v15, %v24217_v13  ;;  %v14743_v4 = vpop.f32.mrb[39].mxu1 }
 0x75c   : > { %v14926_v47 = vmax.f32 %v14894_v18, 0.0  ;;  %v14895_v44 = vadd.f32 %v24217_v13, %v14743_v4 }
 0x75d   : > { %14960 = vst.msk [vmem:[%s24224_s13 + $0x30] sm:$0xff] %vm446_vm4, %v14928_v38  ;;  %v14929_v52 = vmax.f32 %v14897_v62, 0.0 }
 0x75e   : > { %14958 = vst.msk [vmem:[%s24224_s13 + $0x20] sm:$0xff] %vm446_vm4, %v14926_v47  ;;  %v14927_v56 = vmax.f32 %v14895_v44, 0.0 }
 0x75f   : > { %14961 = vst.msk [vmem:[%s24224_s13 + $0x38] sm:$0xff] %vm446_vm4, %v14929_v52 }
 0x760   : > { %14959 = vst.msk [vmem:[%s24224_s13 + $0x28] sm:$0xff] %vm446_vm4, %v14927_v56  ;;  %v17919_v35 = vpop.f32.mrb[40].mxu1 }
 0x761   : > { %v14900_v61 = vadd.f32 %v17919_v35, %v24217_v13  ;;  %v14756_v2 = vpop.f32.mrb[41].mxu1 }
 0x762   : > { %v14898_v45 = vadd.f32 %v24217_v13, %v14756_v2  ;;  %v17920_v11 = vpop.f32.mrb[42].mxu1 }
 0x763   : > { %v14932_v6 = vmax.f32 %v14900_v61, 0.0  ;;  %v14901_v53 = vadd.f32 %v17920_v11, %v24217_v13  ;;  %v14759_v39 = vpop.f32.mrb[43].mxu1 }
 0x764   : > { %v14930_v7 = vmax.f32 %v14898_v45, 0.0  ;;  %v14899_v36 = vadd.f32 %v24217_v13, %v14759_v39 }
 0x765   : > { %14964 = vst.msk [vmem:[%s24224_s13 + $0x50] sm:$0xff] %vm446_vm4, %v14932_v6  ;;  %v14933_v8 = vmax.f32 %v14901_v53, 0.0 }
 0x766   : > { %14962 = vst.msk [vmem:[%s24224_s13 + $0x40] sm:$0xff] %vm446_vm4, %v14930_v7  ;;  %v14931_v60 = vmax.f32 %v14899_v36, 0.0 }
 0x767   : > { %14965 = vst.msk [vmem:[%s24224_s13 + $0x58] sm:$0xff] %vm446_vm4, %v14933_v8 }
 0x768   : > { %14963 = vst.msk [vmem:[%s24224_s13 + $0x48] sm:$0xff] %vm446_vm4, %v14931_v60  ;;  %v17923_v59 = vpop.f32.mrb[44].mxu1 }
 0x769   : > { %v14904_v49 = vadd.f32 %v17923_v59, %v24217_v13  ;;  %v14772_v34 = vpop.f32.mrb[45].mxu1 }
 0x76a   : > { %v14902_v21 = vadd.f32 %v24217_v13, %v14772_v34  ;;  %v17924_v46 = vpop.f32.mrb[46].mxu1 }
 0x76b   : > { %v14936_v57 = vmax.f32 %v14904_v49, 0.0  ;;  %v14905_v40 = vadd.f32 %v17924_v46, %v24217_v13  ;;  %v14775_v31 = vpop.f32.mrb[47].mxu1 }
 0x76c   : > { %v14934_v48 = vmax.f32 %v14902_v21, 0.0  ;;  %v14903_v3 = vadd.f32 %v24217_v13, %v14775_v31 }
 0x76d   : > { %14968 = vst.msk [vmem:[%s24224_s13 + $0x70] sm:$0xff] %vm446_vm4, %v14936_v57  ;;  %v14937_v1 = vmax.f32 %v14905_v40, 0.0 }
 0x76e   : > { %14966 = vst.msk [vmem:[%s24224_s13 + $0x60] sm:$0xff] %vm446_vm4, %v14934_v48  ;;  %v14935_v25 = vmax.f32 %v14903_v3, 0.0 }
 0x76f   : > { %14969 = vst.msk [vmem:[%s24224_s13 + $0x78] sm:$0xff] %vm446_vm4, %v14937_v1 }
 0x770   : > { %14967 = vst.msk [vmem:[%s24224_s13 + $0x68] sm:$0xff] %vm446_vm4, %v14935_v25  ;;  %v17927_v14 = vpop.f32.mrb[48].mxu1 }
 0x771   : > { %v14908_v42 = vadd.f32 %v17927_v14, %v24217_v13  ;;  %v14788_v29 = vpop.f32.mrb[49].mxu1 }
 0x772   : > { %v14906_v30 = vadd.f32 %v24217_v13, %v14788_v29  ;;  %v17928_v28 = vpop.f32.mrb[50].mxu1 }
 0x773   : > { %v14940_v63 = vmax.f32 %v14908_v42, 0.0  ;;  %v14909_v10 = vadd.f32 %v17928_v28, %v24217_v13  ;;  %v14791_v9 = vpop.f32.mrb[51].mxu1 }
 0x774   : > { %v14938_v5 = vmax.f32 %v14906_v30, 0.0  ;;  %v14907_v0 = vadd.f32 %v24217_v13, %v14791_v9 }
 0x775   : > { %14972 = vst.msk [vmem:[%s24224_s13 + $0x90] sm:$0xff] %vm446_vm4, %v14940_v63  ;;  %v14941_v51 = vmax.f32 %v14909_v10, 0.0 }
 0x776   : > { %14970 = vst.msk [vmem:[%s24224_s13 + $0x80] sm:$0xff] %vm446_vm4, %v14938_v5  ;;  %v14939_v20 = vmax.f32 %v14907_v0, 0.0 }
 0x777   : > { %14973 = vst.msk [vmem:[%s24224_s13 + $0x98] sm:$0xff] %vm446_vm4, %v14941_v51 }
 0x778   : > { %14971 = vst.msk [vmem:[%s24224_s13 + $0x88] sm:$0xff] %vm446_vm4, %v14939_v20  ;;  %v17931_v41 = vpop.f32.mrb[52].mxu1 }
 0x779   : > { %v14912_v55 = vadd.f32 %v17931_v41, %v24217_v13  ;;  %v14804_v12 = vpop.f32.mrb[53].mxu1 }
 0x77a   : > { %v14910_v17 = vadd.f32 %v24217_v13, %v14804_v12  ;;  %v17932_v24 = vpop.f32.mrb[54].mxu1 }
 0x77b   : > { %v14944_v54 = vmax.f32 %v14912_v55, 0.0  ;;  %v14913_v58 = vadd.f32 %v17932_v24, %v24217_v13  ;;  %v14807_v27 = vpop.f32.mrb[55].mxu1 }
 0x77c   : > { %v14942_v43 = vmax.f32 %v14910_v17, 0.0  ;;  %v14911_v37 = vadd.f32 %v24217_v13, %v14807_v27 }
 0x77d   : > { %14976 = vst.msk [vmem:[%s24224_s13 + $0xb0] sm:$0xff] %vm446_vm4, %v14944_v54  ;;  %v14945_v22 = vmax.f32 %v14913_v58, 0.0 }
 0x77e   : > { %14974 = vst.msk [vmem:[%s24224_s13 + $0xa0] sm:$0xff] %vm446_vm4, %v14942_v43  ;;  %v14943_v19 = vmax.f32 %v14911_v37, 0.0 }
 0x77f   : > { %14977 = vst.msk [vmem:[%s24224_s13 + $0xb8] sm:$0xff] %vm446_vm4, %v14945_v22 }
 0x780   : > { %14975 = vst.msk [vmem:[%s24224_s13 + $0xa8] sm:$0xff] %vm446_vm4, %v14943_v19  ;;  %v17935_v32 = vpop.f32.mrb[56].mxu1 }
 0x781   : > { %v14916_v50 = vadd.f32 %v17935_v32, %v24217_v13  ;;  %v14820_v23 = vpop.f32.mrb[57].mxu1 }
 0x782   : > { %v14914_v16 = vadd.f32 %v24217_v13, %v14820_v23  ;;  %v17936_v33 = vpop.f32.mrb[58].mxu1 }
 0x783   : > { %v14948_v26 = vmax.f32 %v14916_v50, 0.0  ;;  %v14917_v18 = vadd.f32 %v17936_v33, %v24217_v13  ;;  %v14823_v15 = vpop.f32.mrb[59].mxu1 }
 0x784   : > { %v14946_v38 = vmax.f32 %v14914_v16, 0.0  ;;  %v14915_v62 = vadd.f32 %v24217_v13, %v14823_v15 }
 0x785   : > { %14980 = vst.msk [vmem:[%s24224_s13 + $0xd0] sm:$0xff] %vm446_vm4, %v14948_v26  ;;  %v14949_v4 = vmax.f32 %v14917_v18, 0.0 }
 0x786   : > { %14978 = vst.msk [vmem:[%s24224_s13 + $0xc0] sm:$0xff] %vm446_vm4, %v14946_v38  ;;  %v14947_v47 = vmax.f32 %v14915_v62, 0.0 }
 0x787   : > { %14981 = vst.msk [vmem:[%s24224_s13 + $0xd8] sm:$0xff] %vm446_vm4, %v14949_v4 }
 0x788   : > { %14979 = vst.msk [vmem:[%s24224_s13 + $0xc8] sm:$0xff] %vm446_vm4, %v14947_v47  ;;  %v17939_v44 = vpop.f32.mrb[60].mxu1 }
 0x789   : > { %v14920_v52 = vadd.f32 %v17939_v44, %v24217_v13  ;;  %v14836_v56 = vpop.f32.mrb[61].mxu1 }
 0x78a   : > { %v14918_v35 = vadd.f32 %v24217_v13, %v14836_v56  ;;  %v17940_v61 = vpop.f32.mrb[62].mxu1 }
 0x78b   : > { %v14952_v2 = vmax.f32 %v14920_v52, 0.0  ;;  %v14921_v45 = vadd.f32 %v17940_v61, %v24217_v13  ;;  %v14839_v11 = vpop.f32.mrb[63].mxu1 }
 0x78c   : > { %v14950_v6 = vmax.f32 %v14918_v35, 0.0  ;;  %v14919_v53 = vadd.f32 %v24217_v13, %v14839_v11 }
 0x78d   : > { %14984 = vst.msk [vmem:[%s24224_s13 + $0xf0] sm:$0xff] %vm446_vm4, %v14952_v2  ;;  %v14953_v39 = vmax.f32 %v14921_v45, 0.0 }
 0x78e   : > { %14982 = vst.msk [vmem:[%s24224_s13 + $0xe0] sm:$0xff] %vm446_vm4, %v14950_v6  ;;  %v14951_v7 = vmax.f32 %v14919_v53, 0.0 }
 0x78f   : > { %14985 = vst.msk [vmem:[%s24224_s13 + $0xf8] sm:$0xff] %vm446_vm4, %v14953_v39 }
 0x790   : > { %14983 = vst.msk [vmem:[%s24224_s13 + $0xe8] sm:$0xff] %vm446_vm4, %v14951_v7 }
 0x791 PF: > { %s17_s24 = sadd.s32 1, %s19062_s24  }
 0x792   : > { %p14_p4 = scmp.ge.s32.totalorder %s17_s24, 4  }
 0x794   :  { %16 = sbr.rel (!%p14_p4) target bundleno = 1 (0x1), region = 112 }

</bundles_post_ra>
